<compile_context>
chip_gen: v5e
topology: v5e:2x2
jax: 0.10.0
libtpu: 0.0.40
codegen_flags: <defaults>
</compile_context>

<pallas_src>
import jax
import jax.numpy as jnp
from jax.experimental import pallas as pl
from jax.experimental.pallas import tpu as pltpu

LANE = 128


def _round_up(x, m):
    return (x + m - 1) // m * m


# ---------------------------------------------------------------------------
# In-kernel helpers
# ---------------------------------------------------------------------------
def _im2col(xpad, H, W):
    """(H+2, W+2, C) padded bf16 value -> (H*W, 9*C) bf16 im2col patches.

    Column order is (dy, dx, c) row-major, matching the host-side weight
    reshape in _prep_w.
    """
    cols = jnp.concatenate(
        [xpad[dy:dy + H, dx:dx + W, :] for dy in range(3) for dx in range(3)],
        axis=-1)                                   # (H, W, 9*C)
    return cols.reshape(H * W, 9 * xpad.shape[-1])


def _ffb_kernel(x_ref, f_ref,
                w1_ref, b1_ref,      # block1.conv1      (9*CIN, CP)
                wd_ref, bd_ref,      # block1.downsample (9*CIN, CP)
                w2_ref, b2_ref,      # block1.conv2      (9*CP,  CP)
                w3_ref, b3_ref,      # block2.conv1      (9*CP,  CP)
                w4_ref, b4_ref,      # block2.conv2      (9*CP,  CP)
                out_ref,
                padA_ref, padB_ref):
    bf16 = jnp.bfloat16
    H, W = x_ref.shape[1], x_ref.shape[2]
    CP = out_ref.shape[-1]

    # Zero the padded scratches once; interior writes below never touch the
    # 1-pixel halo, so it stays zero for every subsequent grid step.
    @pl.when(pl.program_id(0) == 0)
    def _init():
        padA_ref[...] = jnp.zeros_like(padA_ref)
        padB_ref[...] = jnp.zeros_like(padB_ref)

    def conv(patches, w_ref, b_ref):
        return jnp.dot(patches, w_ref[...],
                       preferred_element_type=jnp.float32) + b_ref[...]

    # ------------------- block1 (indim -> outdim, downsample skip) ---------
    # Channel concat of x and f16 happens here, straight into the padded
    # bf16 scratch (never materialized in HBM).
    padA_ref[1:H + 1, 1:W + 1, :] = jnp.concatenate(
        [x_ref[0].astype(bf16), f_ref[0].astype(bf16)], axis=-1)

    patches_in = _im2col(padA_ref[...], H, W)          # raw cat(x, f16)
    patches_relu = jnp.maximum(patches_in, 0)          # relu(cat) == cat(relu)

    skip = conv(patches_in, wd_ref, bd_ref)            # downsample(cat), f32
    r1 = conv(patches_relu, w1_ref, b1_ref)            # conv1(relu(cat)), f32

    # h1 = skip + conv2(relu(r1))
    padB_ref[1:H + 1, 1:W + 1, :] = (
        jnp.maximum(r1, 0.0).astype(bf16).reshape(H, W, CP))
    h1 = skip + conv(_im2col(padB_ref[...], H, W), w2_ref, b2_ref)

    # ------------------- block2 (outdim -> outdim, identity skip) ----------
    padB_ref[1:H + 1, 1:W + 1, :] = (
        jnp.maximum(h1, 0.0).astype(bf16).reshape(H, W, CP))
    r2 = conv(_im2col(padB_ref[...], H, W), w3_ref, b3_ref)

    padB_ref[1:H + 1, 1:W + 1, :] = (
        jnp.maximum(r2, 0.0).astype(bf16).reshape(H, W, CP))
    out = h1 + conv(_im2col(padB_ref[...], H, W), w4_ref, b4_ref)

    out_ref[0] = out.reshape(H, W, CP).astype(out_ref.dtype)


# ---------------------------------------------------------------------------
# Wrapper: one pallas_call for the whole FeatureFusionBlock forward
# ---------------------------------------------------------------------------
def feature_fusion_block(x_nchw, f16_nchw, params):
    """x, f16 in PyTorch NCHW layout; returns NCHW (N, outdim, H, W) bf16."""
    # TODO(synk): in an NHWC end-to-end pipeline these transposes (and the
    # channel-slice below) disappear; kept here only to match the NCHW spec.
    x = jnp.transpose(x_nchw, (0, 2, 3, 1))
    f = jnp.transpose(f16_nchw, (0, 2, 3, 1))
    N, H, W, Cx = x.shape
    Cf = f.shape[-1]
    CIN = Cx + Cf
    CP = params["cp"]
    outdim = params["outdim"]

    w1, b1 = params["w1"], params["b1"]
    wd, bd = params["wd"], params["bd"]
    w2, b2 = params["w2"], params["b2"]
    w3, b3 = params["w3"], params["b3"]
    w4, b4 = params["w4"], params["b4"]

    const2 = lambda n: (0, 0)
    in_specs = [
        pl.BlockSpec((1, H, W, Cx), lambda n: (n, 0, 0, 0)),
        pl.BlockSpec((1, H, W, Cf), lambda n: (n, 0, 0, 0)),
        pl.BlockSpec(w1.shape, const2), pl.BlockSpec(b1.shape, const2),
        pl.BlockSpec(wd.shape, const2), pl.BlockSpec(bd.shape, const2),
        pl.BlockSpec(w2.shape, const2), pl.BlockSpec(b2.shape, const2),
        pl.BlockSpec(w3.shape, const2), pl.BlockSpec(b3.shape, const2),
        pl.BlockSpec(w4.shape, const2), pl.BlockSpec(b4.shape, const2),
    ]

    out = pl.pallas_call(
        _ffb_kernel,
        out_shape=jax.ShapeDtypeStruct((N, H, W, CP), jnp.bfloat16),
        grid_spec=pltpu.PrefetchScalarGridSpec(
            num_scalar_prefetch=0,
            grid=(N,),
            in_specs=in_specs,
            out_specs=pl.BlockSpec((1, H, W, CP), lambda n: (n, 0, 0, 0)),
            scratch_shapes=[
                pltpu.VMEM((H + 2, W + 2, CIN), jnp.bfloat16),  # padA
                pltpu.VMEM((H + 2, W + 2, CP), jnp.bfloat16),   # padB (reused)
            ],
        ),
        compiler_params=pltpu.CompilerParams(
            dimension_semantics=("parallel",),
            vmem_limit_bytes=32 * 1024 * 1024),
    )(x, f, w1, b1, wd, bd, w2, b2, w3, b3, w4, b4)

    out = out[..., :outdim]                       # strip lane padding
    return jnp.transpose(out, (0, 3, 1, 2))       # back to NCHW


# ---------------------------------------------------------------------------
# Deterministic parameter init + host-side weight prep (pad / reshape / cast)
# ---------------------------------------------------------------------------
def _init_conv(key, cin, cout):
    kw, kb = jax.random.split(key)
    w = jax.random.normal(kw, (3, 3, cin, cout), jnp.float32) * 0.05
    b = jax.random.normal(kb, (cout,), jnp.float32) * 0.05
    return w, b


def _prep_w(w, cin_p, cout_p):
    """(3,3,cin,cout) f32 -> (9*cin_p, cout_p) bf16 im2col weight."""
    kh, kw, cin, cout = w.shape
    wp = jnp.zeros((kh, kw, cin_p, cout_p), jnp.float32)
    wp = wp.at[:, :, :cin, :cout].set(w)
    return wp.reshape(kh * kw * cin_p, cout_p).astype(jnp.bfloat16)


def _prep_b(b, cout_p):
    return jnp.zeros((1, cout_p), jnp.float32).at[0, :b.shape[0]].set(b)


def init_ffb_params(key, cx, cf, outdim):
    indim = cx + cf
    assert indim != outdim, (
        "fused kernel implements the downsample variant only "
        "(indim != outdim => block1 has a downsample conv)")
    cp = _round_up(outdim, LANE)

    ks = jax.random.split(key, 5)
    w1, b1 = _init_conv(ks[0], indim, outdim)    # block1.conv1
    wd, bd = _init_conv(ks[1], indim, outdim)    # block1.downsample
    w2, b2 = _init_conv(ks[2], outdim, outdim)   # block1.conv2
    w3, b3 = _init_conv(ks[3], outdim, outdim)   # block2.conv1
    w4, b4 = _init_conv(ks[4], outdim, outdim)   # block2.conv2

    return {
        "w1": _prep_w(w1, indim, cp), "b1": _prep_b(b1, cp),
        "wd": _prep_w(wd, indim, cp), "bd": _prep_b(bd, cp),
        "w2": _prep_w(w2, cp, cp), "b2": _prep_b(b2, cp),
        "w3": _prep_w(w3, cp, cp), "b3": _prep_b(b3, cp),
        "w4": _prep_w(w4, cp, cp), "b4": _prep_b(b4, cp),
        "cp": cp,
        "outdim": outdim,
    }


if __name__ == "__main__":
    key = jax.random.PRNGKey(0)
    kx, kf, kp = jax.random.split(key, 3)

    N, H, W = 2, 16, 16
    cx, cf = 16, 16          # x channels + f16 channels -> indim = 32
    outdim = 64              # indim != outdim => block1 uses its downsample

    x_nchw = jax.random.normal(kx, (N, cx, H, W), jnp.float32)
    f16_nchw = jax.random.normal(kf, (N, cf, H, W), jnp.float32)

    params = init_ffb_params(kp, cx, cf, outdim)

    out = feature_fusion_block(x_nchw, f16_nchw, params)
    jax.block_until_ready(out)
    assert out.shape == (N, outdim, H, W)
    assert bool(jnp.all(jnp.isfinite(out.astype(jnp.float32))))
    print("KERNEL_OK")
</pallas_src>

<mosaic_0001>
module attributes {stable_mosaic.version = 11 : i64} {
  func.func @_ffb_kernel(%arg0: i32, %arg1: memref<1x16x16x16xf32, #tpu.memory_space<vmem>>, %arg2: memref<1x16x16x16xf32, #tpu.memory_space<vmem>>, %arg3: memref<288x128xbf16, #tpu.memory_space<vmem>>, %arg4: memref<1x128xf32, #tpu.memory_space<vmem>>, %arg5: memref<288x128xbf16, #tpu.memory_space<vmem>>, %arg6: memref<1x128xf32, #tpu.memory_space<vmem>>, %arg7: memref<1152x128xbf16, #tpu.memory_space<vmem>>, %arg8: memref<1x128xf32, #tpu.memory_space<vmem>>, %arg9: memref<1152x128xbf16, #tpu.memory_space<vmem>>, %arg10: memref<1x128xf32, #tpu.memory_space<vmem>>, %arg11: memref<1152x128xbf16, #tpu.memory_space<vmem>>, %arg12: memref<1x128xf32, #tpu.memory_space<vmem>>, %arg13: memref<1x16x16x128xbf16, #tpu.memory_space<vmem>>, %arg14: memref<18x18x32xbf16, #tpu.memory_space<vmem>>, %arg15: memref<18x18x128xbf16, #tpu.memory_space<vmem>>) attributes {dimension_semantics = [#tpu.dimension_semantics<parallel>], iteration_bounds = array<i64: 2>, scalar_prefetch = 0 : i64, scratch_operands = 2 : i64, tpu.core_type = #tpu.core_type<tc>, window_params = [{transform_indices = @transform_0, window_bounds = array<i64: 1, 16, 16, 16>}, {transform_indices = @transform_1, window_bounds = array<i64: 1, 16, 16, 16>}, {pipeline_mode = #tpu.pipeline_mode<synchronous>, transform_indices = @transform_2, window_bounds = array<i64: 288, 128>}, {pipeline_mode = #tpu.pipeline_mode<synchronous>, transform_indices = @transform_3, window_bounds = array<i64: 1, 128>}, {pipeline_mode = #tpu.pipeline_mode<synchronous>, transform_indices = @transform_4, window_bounds = array<i64: 288, 128>}, {pipeline_mode = #tpu.pipeline_mode<synchronous>, transform_indices = @transform_5, window_bounds = array<i64: 1, 128>}, {pipeline_mode = #tpu.pipeline_mode<synchronous>, transform_indices = @transform_6, window_bounds = array<i64: 1152, 128>}, {pipeline_mode = #tpu.pipeline_mode<synchronous>, transform_indices = @transform_7, window_bounds = array<i64: 1, 128>}, {pipeline_mode = #tpu.pipeline_mode<synchronous>, transform_indices = @transform_8, window_bounds = array<i64: 1152, 128>}, {pipeline_mode = #tpu.pipeline_mode<synchronous>, transform_indices = @transform_9, window_bounds = array<i64: 1, 128>}, {pipeline_mode = #tpu.pipeline_mode<synchronous>, transform_indices = @transform_10, window_bounds = array<i64: 1152, 128>}, {pipeline_mode = #tpu.pipeline_mode<synchronous>, transform_indices = @transform_11, window_bounds = array<i64: 1, 128>}, {transform_indices = @transform_12, window_bounds = array<i64: 1, 16, 16, 128>}]} {
    %c0_i32 = arith.constant 0 : i32
    %0 = arith.cmpi eq, %arg0, %c0_i32 : i32
    %1 = arith.extui %0 : i1 to i32
    %c0_i32_0 = arith.constant 0 : i32
    %2 = arith.cmpi ne, %1, %c0_i32_0 : i32
    scf.if %2 {
      %cst_63 = arith.constant 0.000000e+00 : bf16
      %108 = vector.broadcast %cst_63 : bf16 to vector<18x18x32xbf16>
      %c0_64 = arith.constant 0 : index
      %c0_65 = arith.constant 0 : index
      %c0_66 = arith.constant 0 : index
      %109 = vector.load %arg14[%c0_64, %c0_65, %c0_66] : memref<18x18x32xbf16, #tpu.memory_space<vmem>>, vector<18x18x32xbf16>
      tpu.vector_store %arg14[%c0_64, %c0_65, %c0_66], %108 {strides = array<i32>} : memref<18x18x32xbf16, #tpu.memory_space<vmem>>, vector<18x18x32xbf16>,
      %cst_67 = arith.constant 0.000000e+00 : bf16
      %110 = vector.broadcast %cst_67 : bf16 to vector<18x18x128xbf16>
      %c0_68 = arith.constant 0 : index
      %c0_69 = arith.constant 0 : index
      %c0_70 = arith.constant 0 : index
      %111 = vector.load %arg15[%c0_68, %c0_69, %c0_70] : memref<18x18x128xbf16, #tpu.memory_space<vmem>>, vector<18x18x128xbf16>
      tpu.vector_store %arg15[%c0_68, %c0_69, %c0_70], %110 {strides = array<i32>} : memref<18x18x128xbf16, #tpu.memory_space<vmem>>, vector<18x18x128xbf16>,
    } else {
    }
    %c0 = arith.constant 0 : index
    %c0_1 = arith.constant 0 : index
    %c0_2 = arith.constant 0 : index
    %c0_3 = arith.constant 0 : index
    %3 = vector.load %arg1[%c0, %c0_1, %c0_2, %c0_3] : memref<1x16x16x16xf32, #tpu.memory_space<vmem>>, vector<1x16x16x16xf32>
    %4 = vector.shape_cast %3 : vector<1x16x16x16xf32> to vector<16x16x16xf32>
    %5 = arith.truncf %4 : vector<16x16x16xf32> to vector<16x16x16xbf16>
    %c0_4 = arith.constant 0 : index
    %c0_5 = arith.constant 0 : index
    %c0_6 = arith.constant 0 : index
    %c0_7 = arith.constant 0 : index
    %6 = vector.load %arg2[%c0_4, %c0_5, %c0_6, %c0_7] : memref<1x16x16x16xf32, #tpu.memory_space<vmem>>, vector<1x16x16x16xf32>
    %7 = vector.shape_cast %6 : vector<1x16x16x16xf32> to vector<16x16x16xf32>
    %8 = arith.truncf %7 : vector<16x16x16xf32> to vector<16x16x16xbf16>
    %9 = tpu.concatenate %5, %8 in 2 : vector<16x16x16xbf16>, vector<16x16x16xbf16> -> vector<16x16x32xbf16>
    %c1 = arith.constant 1 : index
    %c1_8 = arith.constant 1 : index
    %c0_9 = arith.constant 0 : index
    %10 = vector.load %arg14[%c1, %c1_8, %c0_9] : memref<18x18x32xbf16, #tpu.memory_space<vmem>>, vector<16x16x32xbf16>
    tpu.vector_store %arg14[%c1, %c1_8, %c0_9], %9 {strides = array<i32>} : memref<18x18x32xbf16, #tpu.memory_space<vmem>>, vector<16x16x32xbf16>,
    %c0_10 = arith.constant 0 : index
    %c0_11 = arith.constant 0 : index
    %c0_12 = arith.constant 0 : index
    %11 = vector.load %arg14[%c0_10, %c0_11, %c0_12] : memref<18x18x32xbf16, #tpu.memory_space<vmem>>, vector<18x18x32xbf16>
    %12 = vector.extract_strided_slice %11 {offsets = [0, 0, 0], sizes = [16, 16, 32], strides = [1, 1, 1]} : vector<18x18x32xbf16> to vector<16x16x32xbf16>
    %13 = vector.extract_strided_slice %11 {offsets = [0, 1, 0], sizes = [16, 16, 32], strides = [1, 1, 1]} : vector<18x18x32xbf16> to vector<16x16x32xbf16>
    %14 = vector.extract_strided_slice %11 {offsets = [0, 2, 0], sizes = [16, 16, 32], strides = [1, 1, 1]} : vector<18x18x32xbf16> to vector<16x16x32xbf16>
    %15 = vector.extract_strided_slice %11 {offsets = [1, 0, 0], sizes = [16, 16, 32], strides = [1, 1, 1]} : vector<18x18x32xbf16> to vector<16x16x32xbf16>
    %16 = vector.extract_strided_slice %11 {offsets = [1, 1, 0], sizes = [16, 16, 32], strides = [1, 1, 1]} : vector<18x18x32xbf16> to vector<16x16x32xbf16>
    %17 = vector.extract_strided_slice %11 {offsets = [1, 2, 0], sizes = [16, 16, 32], strides = [1, 1, 1]} : vector<18x18x32xbf16> to vector<16x16x32xbf16>
    %18 = vector.extract_strided_slice %11 {offsets = [2, 0, 0], sizes = [16, 16, 32], strides = [1, 1, 1]} : vector<18x18x32xbf16> to vector<16x16x32xbf16>
    %19 = vector.extract_strided_slice %11 {offsets = [2, 1, 0], sizes = [16, 16, 32], strides = [1, 1, 1]} : vector<18x18x32xbf16> to vector<16x16x32xbf16>
    %20 = vector.extract_strided_slice %11 {offsets = [2, 2, 0], sizes = [16, 16, 32], strides = [1, 1, 1]} : vector<18x18x32xbf16> to vector<16x16x32xbf16>
    %21 = tpu.concatenate %12, %13, %14, %15, %16, %17, %18, %19, %20 in 2 : vector<16x16x32xbf16>, vector<16x16x32xbf16>, vector<16x16x32xbf16>, vector<16x16x32xbf16>, vector<16x16x32xbf16>, vector<16x16x32xbf16>, vector<16x16x32xbf16>, vector<16x16x32xbf16>, vector<16x16x32xbf16> -> vector<16x16x288xbf16>
    %22 = vector.shape_cast %21 : vector<16x16x288xbf16> to vector<256x288xbf16>
    %cst = arith.constant 0.000000e+00 : bf16
    %23 = vector.broadcast %cst : bf16 to vector<256x288xbf16>
    %24 = arith.maximumf %22, %23 : vector<256x288xbf16>
    %c0_13 = arith.constant 0 : index
    %c0_14 = arith.constant 0 : index
    %25 = vector.load %arg5[%c0_13, %c0_14] : memref<288x128xbf16, #tpu.memory_space<vmem>>, vector<288x128xbf16>
    %cst_15 = arith.constant dense<0.000000e+00> : vector<256x128xf32>
    %26 = tpu.matmul %22, %25, %cst_15 {dimension_numbers = #tpu.dot_dimension_numbers<[1], [0], [0], [1], [0, 0, 1, 1], [], []>} : vector<256x288xbf16>, vector<288x128xbf16>, vector<256x128xf32> -> vector<256x128xf32>
    %c0_16 = arith.constant 0 : index
    %c0_17 = arith.constant 0 : index
    %27 = vector.load %arg6[%c0_16, %c0_17] : memref<1x128xf32, #tpu.memory_space<vmem>>, vector<1x128xf32>
    %28 = vector.broadcast %27 : vector<1x128xf32> to vector<256x128xf32>
    %29 = arith.addf %26, %28 : vector<256x128xf32>
    %c0_18 = arith.constant 0 : index
    %c0_19 = arith.constant 0 : index
    %30 = vector.load %arg3[%c0_18, %c0_19] : memref<288x128xbf16, #tpu.memory_space<vmem>>, vector<288x128xbf16>
    %cst_20 = arith.constant dense<0.000000e+00> : vector<256x128xf32>
    %31 = tpu.matmul %24, %30, %cst_20 {dimension_numbers = #tpu.dot_dimension_numbers<[1], [0], [0], [1], [0, 0, 1, 1], [], []>} : vector<256x288xbf16>, vector<288x128xbf16>, vector<256x128xf32> -> vector<256x128xf32>
    %c0_21 = arith.constant 0 : index
    %c0_22 = arith.constant 0 : index
    %32 = vector.load %arg4[%c0_21, %c0_22] : memref<1x128xf32, #tpu.memory_space<vmem>>, vector<1x128xf32>
    %33 = vector.broadcast %32 : vector<1x128xf32> to vector<256x128xf32>
    %34 = arith.addf %31, %33 : vector<256x128xf32>
    %cst_23 = arith.constant 0.000000e+00 : f32
    %35 = vector.broadcast %cst_23 : f32 to vector<256x128xf32>
    %36 = arith.maximumf %34, %35 : vector<256x128xf32>
    %37 = arith.truncf %36 : vector<256x128xf32> to vector<256x128xbf16>
    %38 = vector.shape_cast %37 : vector<256x128xbf16> to vector<16x16x128xbf16>
    %c1_24 = arith.constant 1 : index
    %c1_25 = arith.constant 1 : index
    %c0_26 = arith.constant 0 : index
    %39 = vector.load %arg15[%c1_24, %c1_25, %c0_26] : memref<18x18x128xbf16, #tpu.memory_space<vmem>>, vector<16x16x128xbf16>
    tpu.vector_store %arg15[%c1_24, %c1_25, %c0_26], %38 {strides = array<i32>} : memref<18x18x128xbf16, #tpu.memory_space<vmem>>, vector<16x16x128xbf16>,
    %c0_27 = arith.constant 0 : index
    %c0_28 = arith.constant 0 : index
    %c0_29 = arith.constant 0 : index
    %40 = vector.load %arg15[%c0_27, %c0_28, %c0_29] : memref<18x18x128xbf16, #tpu.memory_space<vmem>>, vector<18x18x128xbf16>
    %41 = vector.extract_strided_slice %40 {offsets = [0, 0, 0], sizes = [16, 16, 128], strides = [1, 1, 1]} : vector<18x18x128xbf16> to vector<16x16x128xbf16>
    %42 = vector.extract_strided_slice %40 {offsets = [0, 1, 0], sizes = [16, 16, 128], strides = [1, 1, 1]} : vector<18x18x128xbf16> to vector<16x16x128xbf16>
    %43 = vector.extract_strided_slice %40 {offsets = [0, 2, 0], sizes = [16, 16, 128], strides = [1, 1, 1]} : vector<18x18x128xbf16> to vector<16x16x128xbf16>
    %44 = vector.extract_strided_slice %40 {offsets = [1, 0, 0], sizes = [16, 16, 128], strides = [1, 1, 1]} : vector<18x18x128xbf16> to vector<16x16x128xbf16>
    %45 = vector.extract_strided_slice %40 {offsets = [1, 1, 0], sizes = [16, 16, 128], strides = [1, 1, 1]} : vector<18x18x128xbf16> to vector<16x16x128xbf16>
    %46 = vector.extract_strided_slice %40 {offsets = [1, 2, 0], sizes = [16, 16, 128], strides = [1, 1, 1]} : vector<18x18x128xbf16> to vector<16x16x128xbf16>
    %47 = vector.extract_strided_slice %40 {offsets = [2, 0, 0], sizes = [16, 16, 128], strides = [1, 1, 1]} : vector<18x18x128xbf16> to vector<16x16x128xbf16>
    %48 = vector.extract_strided_slice %40 {offsets = [2, 1, 0], sizes = [16, 16, 128], strides = [1, 1, 1]} : vector<18x18x128xbf16> to vector<16x16x128xbf16>
    %49 = vector.extract_strided_slice %40 {offsets = [2, 2, 0], sizes = [16, 16, 128], strides = [1, 1, 1]} : vector<18x18x128xbf16> to vector<16x16x128xbf16>
    %50 = tpu.concatenate %41, %42, %43, %44, %45, %46, %47, %48, %49 in 2 : vector<16x16x128xbf16>, vector<16x16x128xbf16>, vector<16x16x128xbf16>, vector<16x16x128xbf16>, vector<16x16x128xbf16>, vector<16x16x128xbf16>, vector<16x16x128xbf16>, vector<16x16x128xbf16>, vector<16x16x128xbf16> -> vector<16x16x1152xbf16>
    %51 = vector.shape_cast %50 : vector<16x16x1152xbf16> to vector<256x1152xbf16>
    %c0_30 = arith.constant 0 : index
    %c0_31 = arith.constant 0 : index
    %52 = vector.load %arg7[%c0_30, %c0_31] : memref<1152x128xbf16, #tpu.memory_space<vmem>>, vector<1152x128xbf16>
    %cst_32 = arith.constant dense<0.000000e+00> : vector<256x128xf32>
    %53 = tpu.matmul %51, %52, %cst_32 {dimension_numbers = #tpu.dot_dimension_numbers<[1], [0], [0], [1], [0, 0, 1, 1], [], []>} : vector<256x1152xbf16>, vector<1152x128xbf16>, vector<256x128xf32> -> vector<256x128xf32>
    %c0_33 = arith.constant 0 : index
    %c0_34 = arith.constant 0 : index
    %54 = vector.load %arg8[%c0_33, %c0_34] : memref<1x128xf32, #tpu.memory_space<vmem>>, vector<1x128xf32>
    %55 = vector.broadcast %54 : vector<1x128xf32> to vector<256x128xf32>
    %56 = arith.addf %53, %55 : vector<256x128xf32>
    %57 = arith.addf %29, %56 : vector<256x128xf32>
    %cst_35 = arith.constant 0.000000e+00 : f32
    %58 = vector.broadcast %cst_35 : f32 to vector<256x128xf32>
    %59 = arith.maximumf %57, %58 : vector<256x128xf32>
    %60 = arith.truncf %59 : vector<256x128xf32> to vector<256x128xbf16>
    %61 = vector.shape_cast %60 : vector<256x128xbf16> to vector<16x16x128xbf16>
    %c1_36 = arith.constant 1 : index
    %c1_37 = arith.constant 1 : index
    %c0_38 = arith.constant 0 : index
    %62 = vector.load %arg15[%c1_36, %c1_37, %c0_38] : memref<18x18x128xbf16, #tpu.memory_space<vmem>>, vector<16x16x128xbf16>
    tpu.vector_store %arg15[%c1_36, %c1_37, %c0_38], %61 {strides = array<i32>} : memref<18x18x128xbf16, #tpu.memory_space<vmem>>, vector<16x16x128xbf16>,
    %c0_39 = arith.constant 0 : index
    %c0_40 = arith.constant 0 : index
    %c0_41 = arith.constant 0 : index
    %63 = vector.load %arg15[%c0_39, %c0_40, %c0_41] : memref<18x18x128xbf16, #tpu.memory_space<vmem>>, vector<18x18x128xbf16>
    %64 = vector.extract_strided_slice %63 {offsets = [0, 0, 0], sizes = [16, 16, 128], strides = [1, 1, 1]} : vector<18x18x128xbf16> to vector<16x16x128xbf16>
    %65 = vector.extract_strided_slice %63 {offsets = [0, 1, 0], sizes = [16, 16, 128], strides = [1, 1, 1]} : vector<18x18x128xbf16> to vector<16x16x128xbf16>
    %66 = vector.extract_strided_slice %63 {offsets = [0, 2, 0], sizes = [16, 16, 128], strides = [1, 1, 1]} : vector<18x18x128xbf16> to vector<16x16x128xbf16>
    %67 = vector.extract_strided_slice %63 {offsets = [1, 0, 0], sizes = [16, 16, 128], strides = [1, 1, 1]} : vector<18x18x128xbf16> to vector<16x16x128xbf16>
    %68 = vector.extract_strided_slice %63 {offsets = [1, 1, 0], sizes = [16, 16, 128], strides = [1, 1, 1]} : vector<18x18x128xbf16> to vector<16x16x128xbf16>
    %69 = vector.extract_strided_slice %63 {offsets = [1, 2, 0], sizes = [16, 16, 128], strides = [1, 1, 1]} : vector<18x18x128xbf16> to vector<16x16x128xbf16>
    %70 = vector.extract_strided_slice %63 {offsets = [2, 0, 0], sizes = [16, 16, 128], strides = [1, 1, 1]} : vector<18x18x128xbf16> to vector<16x16x128xbf16>
    %71 = vector.extract_strided_slice %63 {offsets = [2, 1, 0], sizes = [16, 16, 128], strides = [1, 1, 1]} : vector<18x18x128xbf16> to vector<16x16x128xbf16>
    %72 = vector.extract_strided_slice %63 {offsets = [2, 2, 0], sizes = [16, 16, 128], strides = [1, 1, 1]} : vector<18x18x128xbf16> to vector<16x16x128xbf16>
    %73 = tpu.concatenate %64, %65, %66, %67, %68, %69, %70, %71, %72 in 2 : vector<16x16x128xbf16>, vector<16x16x128xbf16>, vector<16x16x128xbf16>, vector<16x16x128xbf16>, vector<16x16x128xbf16>, vector<16x16x128xbf16>, vector<16x16x128xbf16>, vector<16x16x128xbf16>, vector<16x16x128xbf16> -> vector<16x16x1152xbf16>
    %74 = vector.shape_cast %73 : vector<16x16x1152xbf16> to vector<256x1152xbf16>
    %c0_42 = arith.constant 0 : index
    %c0_43 = arith.constant 0 : index
    %75 = vector.load %arg9[%c0_42, %c0_43] : memref<1152x128xbf16, #tpu.memory_space<vmem>>, vector<1152x128xbf16>
    %cst_44 = arith.constant dense<0.000000e+00> : vector<256x128xf32>
    %76 = tpu.matmul %74, %75, %cst_44 {dimension_numbers = #tpu.dot_dimension_numbers<[1], [0], [0], [1], [0, 0, 1, 1], [], []>} : vector<256x1152xbf16>, vector<1152x128xbf16>, vector<256x128xf32> -> vector<256x128xf32>
    %c0_45 = arith.constant 0 : index
    %c0_46 = arith.constant 0 : index
    %77 = vector.load %arg10[%c0_45, %c0_46] : memref<1x128xf32, #tpu.memory_space<vmem>>, vector<1x128xf32>
    %78 = vector.broadcast %77 : vector<1x128xf32> to vector<256x128xf32>
    %79 = arith.addf %76, %78 : vector<256x128xf32>
    %cst_47 = arith.constant 0.000000e+00 : f32
    %80 = vector.broadcast %cst_47 : f32 to vector<256x128xf32>
    %81 = arith.maximumf %79, %80 : vector<256x128xf32>
    %82 = arith.truncf %81 : vector<256x128xf32> to vector<256x128xbf16>
    %83 = vector.shape_cast %82 : vector<256x128xbf16> to vector<16x16x128xbf16>
    %c1_48 = arith.constant 1 : index
    %c1_49 = arith.constant 1 : index
    %c0_50 = arith.constant 0 : index
    %84 = vector.load %arg15[%c1_48, %c1_49, %c0_50] : memref<18x18x128xbf16, #tpu.memory_space<vmem>>, vector<16x16x128xbf16>
    tpu.vector_store %arg15[%c1_48, %c1_49, %c0_50], %83 {strides = array<i32>} : memref<18x18x128xbf16, #tpu.memory_space<vmem>>, vector<16x16x128xbf16>,
    %c0_51 = arith.constant 0 : index
    %c0_52 = arith.constant 0 : index
    %c0_53 = arith.constant 0 : index
    %85 = vector.load %arg15[%c0_51, %c0_52, %c0_53] : memref<18x18x128xbf16, #tpu.memory_space<vmem>>, vector<18x18x128xbf16>
    %86 = vector.extract_strided_slice %85 {offsets = [0, 0, 0], sizes = [16, 16, 128], strides = [1, 1, 1]} : vector<18x18x128xbf16> to vector<16x16x128xbf16>
    %87 = vector.extract_strided_slice %85 {offsets = [0, 1, 0], sizes = [16, 16, 128], strides = [1, 1, 1]} : vector<18x18x128xbf16> to vector<16x16x128xbf16>
    %88 = vector.extract_strided_slice %85 {offsets = [0, 2, 0], sizes = [16, 16, 128], strides = [1, 1, 1]} : vector<18x18x128xbf16> to vector<16x16x128xbf16>
    %89 = vector.extract_strided_slice %85 {offsets = [1, 0, 0], sizes = [16, 16, 128], strides = [1, 1, 1]} : vector<18x18x128xbf16> to vector<16x16x128xbf16>
    %90 = vector.extract_strided_slice %85 {offsets = [1, 1, 0], sizes = [16, 16, 128], strides = [1, 1, 1]} : vector<18x18x128xbf16> to vector<16x16x128xbf16>
    %91 = vector.extract_strided_slice %85 {offsets = [1, 2, 0], sizes = [16, 16, 128], strides = [1, 1, 1]} : vector<18x18x128xbf16> to vector<16x16x128xbf16>
    %92 = vector.extract_strided_slice %85 {offsets = [2, 0, 0], sizes = [16, 16, 128], strides = [1, 1, 1]} : vector<18x18x128xbf16> to vector<16x16x128xbf16>
    %93 = vector.extract_strided_slice %85 {offsets = [2, 1, 0], sizes = [16, 16, 128], strides = [1, 1, 1]} : vector<18x18x128xbf16> to vector<16x16x128xbf16>
    %94 = vector.extract_strided_slice %85 {offsets = [2, 2, 0], sizes = [16, 16, 128], strides = [1, 1, 1]} : vector<18x18x128xbf16> to vector<16x16x128xbf16>
    %95 = tpu.concatenate %86, %87, %88, %89, %90, %91, %92, %93, %94 in 2 : vector<16x16x128xbf16>, vector<16x16x128xbf16>, vector<16x16x128xbf16>, vector<16x16x128xbf16>, vector<16x16x128xbf16>, vector<16x16x128xbf16>, vector<16x16x128xbf16>, vector<16x16x128xbf16>, vector<16x16x128xbf16> -> vector<16x16x1152xbf16>
    %96 = vector.shape_cast %95 : vector<16x16x1152xbf16> to vector<256x1152xbf16>
    %c0_54 = arith.constant 0 : index
    %c0_55 = arith.constant 0 : index
    %97 = vector.load %arg11[%c0_54, %c0_55] : memref<1152x128xbf16, #tpu.memory_space<vmem>>, vector<1152x128xbf16>
    %cst_56 = arith.constant dense<0.000000e+00> : vector<256x128xf32>
    %98 = tpu.matmul %96, %97, %cst_56 {dimension_numbers = #tpu.dot_dimension_numbers<[1], [0], [0], [1], [0, 0, 1, 1], [], []>} : vector<256x1152xbf16>, vector<1152x128xbf16>, vector<256x128xf32> -> vector<256x128xf32>
    %c0_57 = arith.constant 0 : index
    %c0_58 = arith.constant 0 : index
    %99 = vector.load %arg12[%c0_57, %c0_58] : memref<1x128xf32, #tpu.memory_space<vmem>>, vector<1x128xf32>
    %100 = vector.broadcast %99 : vector<1x128xf32> to vector<256x128xf32>
    %101 = arith.addf %98, %100 : vector<256x128xf32>
    %102 = arith.addf %57, %101 : vector<256x128xf32>
    %103 = vector.shape_cast %102 : vector<256x128xf32> to vector<16x16x128xf32>
    %104 = arith.truncf %103 : vector<16x16x128xf32> to vector<16x16x128xbf16>
    %c0_59 = arith.constant 0 : index
    %c0_60 = arith.constant 0 : index
    %c0_61 = arith.constant 0 : index
    %c0_62 = arith.constant 0 : index
    %105 = vector.load %arg13[%c0_59, %c0_60, %c0_61, %c0_62] : memref<1x16x16x128xbf16, #tpu.memory_space<vmem>>, vector<1x16x16x128xbf16>
    %106 = vector.shape_cast %105 : vector<1x16x16x128xbf16> to vector<16x16x128xbf16>
    %107 = vector.shape_cast %104 : vector<16x16x128xbf16> to vector<1x16x16x128xbf16>
    tpu.vector_store %arg13[%c0_59, %c0_60, %c0_61, %c0_62], %107 {strides = array<i32>} : memref<1x16x16x128xbf16, #tpu.memory_space<vmem>>, vector<1x16x16x128xbf16>,
    return
  }
  func.func @transform_0(%arg0: i32) -> (i32, i32, i32, i32) {
    %c0_i32 = arith.constant 0 : i32
    %c0_i32_0 = arith.constant 0 : i32
    %c0_i32_1 = arith.constant 0 : i32
    %c0_i32_2 = arith.constant 0 : i32
    return %arg0, %c0_i32, %c0_i32_0, %c0_i32_1 : i32, i32, i32, i32
  }
  func.func @transform_1(%arg0: i32) -> (i32, i32, i32, i32) {
    %c0_i32 = arith.constant 0 : i32
    %c0_i32_0 = arith.constant 0 : i32
    %c0_i32_1 = arith.constant 0 : i32
    %c0_i32_2 = arith.constant 0 : i32
    return %arg0, %c0_i32, %c0_i32_0, %c0_i32_1 : i32, i32, i32, i32
  }
  func.func @transform_2(%arg0: i32) -> (i32, i32) {
    %c0_i32 = arith.constant 0 : i32
    %c0_i32_0 = arith.constant 0 : i32
    %c0_i32_1 = arith.constant 0 : i32
    return %c0_i32, %c0_i32_0 : i32, i32
  }
  func.func @transform_3(%arg0: i32) -> (i32, i32) {
    %c0_i32 = arith.constant 0 : i32
    %c0_i32_0 = arith.constant 0 : i32
    %c0_i32_1 = arith.constant 0 : i32
    return %c0_i32, %c0_i32_0 : i32, i32
  }
  func.func @transform_4(%arg0: i32) -> (i32, i32) {
    %c0_i32 = arith.constant 0 : i32
    %c0_i32_0 = arith.constant 0 : i32
    %c0_i32_1 = arith.constant 0 : i32
    return %c0_i32, %c0_i32_0 : i32, i32
  }
  func.func @transform_5(%arg0: i32) -> (i32, i32) {
    %c0_i32 = arith.constant 0 : i32
    %c0_i32_0 = arith.constant 0 : i32
    %c0_i32_1 = arith.constant 0 : i32
    return %c0_i32, %c0_i32_0 : i32, i32
  }
  func.func @transform_6(%arg0: i32) -> (i32, i32) {
    %c0_i32 = arith.constant 0 : i32
    %c0_i32_0 = arith.constant 0 : i32
    %c0_i32_1 = arith.constant 0 : i32
    return %c0_i32, %c0_i32_0 : i32, i32
  }
  func.func @transform_7(%arg0: i32) -> (i32, i32) {
    %c0_i32 = arith.constant 0 : i32
    %c0_i32_0 = arith.constant 0 : i32
    %c0_i32_1 = arith.constant 0 : i32
    return %c0_i32, %c0_i32_0 : i32, i32
  }
  func.func @transform_8(%arg0: i32) -> (i32, i32) {
    %c0_i32 = arith.constant 0 : i32
    %c0_i32_0 = arith.constant 0 : i32
    %c0_i32_1 = arith.constant 0 : i32
    return %c0_i32, %c0_i32_0 : i32, i32
  }
  func.func @transform_9(%arg0: i32) -> (i32, i32) {
    %c0_i32 = arith.constant 0 : i32
    %c0_i32_0 = arith.constant 0 : i32
    %c0_i32_1 = arith.constant 0 : i32
    return %c0_i32, %c0_i32_0 : i32, i32
  }
  func.func @transform_10(%arg0: i32) -> (i32, i32) {
    %c0_i32 = arith.constant 0 : i32
    %c0_i32_0 = arith.constant 0 : i32
    %c0_i32_1 = arith.constant 0 : i32
    return %c0_i32, %c0_i32_0 : i32, i32
  }
  func.func @transform_11(%arg0: i32) -> (i32, i32) {
    %c0_i32 = arith.constant 0 : i32
    %c0_i32_0 = arith.constant 0 : i32
    %c0_i32_1 = arith.constant 0 : i32
    return %c0_i32, %c0_i32_0 : i32, i32
  }
  func.func @transform_12(%arg0: i32) -> (i32, i32, i32, i32) {
    %c0_i32 = arith.constant 0 : i32
    %c0_i32_0 = arith.constant 0 : i32
    %c0_i32_1 = arith.constant 0 : i32
    %c0_i32_2 = arith.constant 0 : i32
    return %arg0, %c0_i32, %c0_i32_0, %c0_i32_1 : i32, i32, i32, i32
  }
}

</mosaic_0001>

<bundles_post_ra>
// kernel: tpu_custom_call.1
= control target key start
LH: loop header
LB: loop body
LE: loop exit
PB: predicated region body
PF: predicated region fallthrough
CT: control target
= control target key end

     0   :  { %s18553_s0 = inlined_call_operand.hbm [shape: f32[2,16,16,16], index: 0, kind: input, shape index: {}]   ;;  %s18554_s1 = inlined_call_operand.hbm [shape: f32[2,16,16,16], index: 1, kind: input, shape index: {}]   ;;  %s18555_s2 = inlined_call_operand.hbm [shape: bf16[288,128], index: 2, kind: input, shape index: {}]   ;;  %s18556_s3 = inlined_call_operand.vmem [shape: f32[1,128], index: 3, kind: input, shape index: {}]   ;;  %s18557_s4 = inlined_call_operand.hbm [shape: bf16[288,128], index: 4, kind: input, shape index: {}]   ;;  %s18558_s5 = inlined_call_operand.vmem [shape: f32[1,128], index: 5, kind: input, shape index: {}]   ;;  %s18559_s6 = inlined_call_operand.hbm [shape: bf16[1152,128], index: 6, kind: input, shape index: {}]   ;;  %s18560_s7 = inlined_call_operand.vmem [shape: f32[1,128], index: 7, kind: input, shape index: {}]   ;;  %s18561_s8 = inlined_call_operand.hbm [shape: bf16[1152,128], index: 8, kind: input, shape index: {}]   ;;  %s18562_s9 = inlined_call_operand.vmem [shape: f32[1,128], index: 9, kind: input, shape index: {}]   ;;  %s18563_s10 = inlined_call_operand.hbm [shape: bf16[1152,128], index: 10, kind: input, shape index: {}]   ;;  %s18564_s11 = inlined_call_operand.vmem [shape: f32[1,128], index: 11, kind: input, shape index: {}]   ;;  %s18565_s12 = inlined_call_operand.hbm [shape: bf16[2,16,16,128], index: 12, kind: output, shape index: {}]  }
   0x1   :  { %18720 = sst [smem:[#allocation162_spill]] %s18553_s0 }
   0x2   :  { %18721 = sst [smem:[#allocation163_spill]] %s18555_s2 }
   0x3   :  { %18722 = sst [smem:[#allocation164_spill]] %s18557_s4 }
   0x4   :  { %18723 = sst [smem:[#allocation165_spill]] %s18559_s6 }
   0x5   :  { %18724 = sst [smem:[#allocation166_spill]] %s18561_s8 }
   0x6   :  { %18725 = sst [smem:[#allocation167_spill]] %s18563_s10 }
   0x7   :  { %18726 = sst [smem:[#allocation168_spill]] %s18565_s12 }
   0x8   :  { %17 = vsyncpa [#allocation5], 0 }
   0x9   :  { %19 = vsyncpa [#allocation5 + $0x1], 0 }
   0xa   :  { %20 = vsyncpa [#allocation8], 0 }
   0xb   :  { %22 = vsyncpa [#allocation8 + $0x1], 0 }
   0xc   :  { %23 = vsyncpa [#allocation11], 0 }
   0xd   :  { %24 = vsyncpa [#allocation14], 0 }
   0xe   :  { %25 = vsyncpa [#allocation6], 0 }
   0xf   :  { %27 = vsyncpa [#allocation6 + $0x1], 0  ;;  %s13474_s21 = smov 0   ;;  %s13476_s22 = smov 0  }
  0x10   :  { %s13478_s23 = smov 0   ;;  %s13480_s24 = smov 0  }
  0x11 LB: > { %18727 = sst [smem:[#allocation23_spill]] %s13388_s23  ;;  %s13498_s28 = sadd.s32 4294967295, %s13392_s24   ;;  %s13392_s24 = sphi %s13480_s24, %s19455_s24   ;;  %s13388_s23 = sphi %s13478_s23, %s19457_s23   ;;  %s13384_s22 = sphi %s13476_s22, %s19459_s22   ;;  %s13380_s21 = sphi %s13474_s21, %s19458_s21  }
  0x12   : > { %s18728_s2 = sld [smem:[#allocation163_spill]]  ;;  %p11141_p0 = scmp.ge.s32.totalorder %s13392_s24, 1 }
  0x13   : > { %p54_p1 = scmp.eq.s32.totalorder %s13498_s28, 0  ;;  %p326_p2 = scmp.lt.s32.totalorder %s13392_s24, 3 }
  0x14   : > { %s13394_s30 = smov [#allocation9]   ;;  %s18730_s4 = sld [smem:[#allocation164_spill]] }
  0x15   : > { %p13504_p4 = pnand %p11141_p0, %p326_p2  ;;  %s339_s13 = sshll.u32 %s13394_s30, 4  ;;  %s340_s13 = int_to_ptr.vmem [resolvable:$true] %s339_s13 }
  0x16   : > { %s18732_s8 = sld [smem:[#allocation166_spill]]  ;;  %s13395_s25 = smov [#allocation10]  }
  0x17   : > { %p12963_p5 = pneg %p13504_p4  ;;  %s356_s26 = sshll.u32 %s13395_s25, 4  ;;  %s357_s26 = int_to_ptr.vmem [resolvable:$true] %s356_s26 }
  0x18   : > { %s337_s27 = sshll.u32 %s18728_s2, 4  ;;  %s13396_s30 = smov 64   ;;  %s338_s27 = int_to_ptr.hbm [resolvable:$true] %s337_s27 }
  0x19   : > { %p13516_p7 = pnand %p12963_p5, %p54_p1  ;;  %s13397_s2 = smov 4  }
  0x1a   : > { %s354_s16 = sshll.u32 %s18730_s4, 4  ;;  %s18733_s6 = sld [smem:[#allocation165_spill]]  ;;  %s355_s16 = int_to_ptr.hbm [resolvable:$true] %s354_s16 }
  0x1b   : > { %12966 = dma.hbm_to_vmem [thread:$0]  (!%p13516_p7), %s338_s27, 2304, %s340_s13, [#allocation8], %s13396_s30, %s13396_s30, %s13397_s2  }
  0x1c   : > { %s388_s20 = sshll.u32 %s18732_s8, 4  ;;  %s13398_s12 = smov [#allocation13]   ;;  %s389_s20 = int_to_ptr.hbm [resolvable:$true] %s388_s20 }
  0x1d   : > { %12969 = dma.hbm_to_vmem [thread:$0]  (!%p13516_p7), %s355_s16, 2304, %s357_s26, [#allocation11], %s13396_s30, %s13396_s30, %s13397_s2  }
  0x1e   : > { %s390_s18 = sshll.u32 %s13398_s12, 4  ;;  %s13399_s27 = smov [#allocation12]   ;;  %s391_s18 = int_to_ptr.vmem [resolvable:$true] %s390_s18 }
  0x1f   : > { %12975 = dma.hbm_to_vmem [thread:$0]  (!%p13516_p7), %s389_s20, 9216, %s391_s18, [#allocation14], %s13396_s30, %s13396_s30, %s13397_s2  }
  0x20   : > { %s371_s4 = sshll.u32 %s18733_s6, 4  ;;  %s373_s13 = sshll.u32 %s13399_s27, 4  ;;  %s372_s4 = int_to_ptr.hbm [resolvable:$true] %s371_s4  ;;  %s374_s13 = int_to_ptr.vmem [resolvable:$true] %s373_s13 }
  0x21   : > { %s18734_s10 = sld [smem:[#allocation167_spill]]  ;;  %s13400_s12 = smov [#allocation15]  }
  0x22   : > { %12972 = dma.hbm_to_vmem [thread:$0]  (!%p13516_p7), %s372_s4, 9216, %s374_s13, [#allocation11], %s13396_s30, %s13396_s30, %s13397_s2  }
  0x23   : > { %s407_s26 = sshll.u32 %s13400_s12, 4  ;;  %s11140_s20 = sadd.s32 4294967294, %s13392_s24   ;;  %s408_s26 = int_to_ptr.vmem [resolvable:$true] %s407_s26 }
  0x24   : > { %s13541_s14 = sadd.s32 1, %s13392_s24   ;;  %s40_s15 = sadd.s32 1, %s13388_s23 }
  0x25   : > { %18735 = sst [smem:[#allocation24_spill]] %s13541_s14  ;;  %s37_s18 = ssub.s32 %s13392_s24, %s13541_s14 }
  0x26   : > { %p47_p8 = scmp.ne.s32.totalorder %s13388_s23, %s13384_s22  ;;  %p38_p9 = scmp.eq.s32.totalorder %s37_s18, 0 }
  0x27   : > { %s405_s25 = sshll.u32 %s18734_s10, 4  ;;  %p48_p10 = scmp.eq.s32.totalorder %s13392_s24, 0  ;;  %s406_s25 = int_to_ptr.hbm [resolvable:$true] %s405_s25 }
  0x28   : > { %12978 = dma.hbm_to_vmem [thread:$0]  (!%p13516_p7), %s406_s25, 9216, %s408_s26, [#allocation14], %s13396_s30, %s13396_s30, %s13397_s2  }
  0x29   : > { %p53_p11 = scmp.ne.s32.totalorder %s13384_s22, %s13380_s21  ;;  %p313_p12 = scmp.eq.s32.totalorder %s13498_s28, 1 }
  0x2a   : > { %s13553_s4 = scalar_select %p38_p9, %s13388_s23, %s40_s15  }
  0x2b   : > { %p13555_p13 = por %p48_p10, %p47_p8  ;;  %p13561_p0 = por %p54_p1, %p53_p11 }
  0x2c   : > { %18736 = sst [smem:[#allocation25_spill]] %s13553_s4  ;;  %p13565_p2 = por %p313_p12, %p47_p8 }
  0x2d   : > { %p319_p5 = scmp.eq.s32.totalorder %s11140_s20, 1  ;;  %p12995_p7 = scmp.lt.s32.totalorder %s13392_s24, 2 }
  0x2e   : > { %s424_s30 = sand.u32 1, %s13388_s23   ;;  %s12497_s19 = sshll.u32 %s13392_s24, 8 }
  0x2f   : > { %p13571_p6 = por %p319_p5, %p53_p11  ;;  %s13575_s16 = sshll.u32 %s424_s30, 8 }
  0x30   : > { %s18742_s0 = sld [smem:[#allocation162_spill]]  ;;  %s428_s18 = scalar_lea.vmem [#allocation4], %s13575_s16 }
  0x31   : > { %s18740_s13 = scalar_select %p13571_p6, 1, 0 }
  0x32   : > { %s436_s6 = sshll.u32 %s428_s18, 4  ;;  %p13584_p8 = pnand %p12995_p7, %p13555_p13  ;;  %s437_s6 = int_to_ptr.vmem [resolvable:$true] %s436_s6 }
  0x33   : > { %18741 = sst [smem:[#allocation26_spill]] %s18740_s13  ;;  %s455_s4 = scalar_lea.hbm %s18554_s1, %s12497_s19 }
  0x34   : > { %s425_s23 = scalar_lea.sflag [#allocation5], %s424_s30  ;;  %p13254_p10 = pneg %p13584_p8 }
  0x36   : > { %s433_s26 = scalar_lea.hbm %s18742_s0, %s12497_s19 }
  0x37   : > { %s434_s15 = sshll.u32 %s433_s26, 4  ;;  %s13257_s26 = scalar_lea.hbm %s18742_s0, 512  ;;  %s435_s15 = int_to_ptr.hbm [resolvable:$true] %s434_s15 }
  0x38   : > { %s13250_s14 = sshra.s32 %s435_s15, 4  ;;  %s13251_s14 = int_to_ptr.hbm [resolvable:$true] %s13250_s14 }
  0x39   : > { %s13252_s25 = scalar_lea.hbm %s13251_s14, 256  ;;  %p13258_p13 = scmp.lt.s32.totalorder %s13251_s14, %s18742_s0 }
  0x3a   : > { %p13253_p9 = scmp.ne.s32.totalorder %s13251_s14, %s13252_s25  ;;  %p13259_p5 = scmp.lt.s32.totalorder %s13257_s26, %s13252_s25 }
  0x3c   : > { %p13255_p11 = pnand %p13254_p10, %p13253_p9  ;;  %p13260_p7 = por %p13259_p5, %p13258_p13 }
  0x3e   : > { %p13256_p12 = pneg %p13255_p11 }
  0x40   : > { %p13261_p3 = pnand %p13260_p7, %p13256_p12 }
  0x42   : > { %13264 = shalt.err (!%p13261_p3)
}
  0x43   : > { %s13401_s10 = smov 128   ;;  %s13402_s30 = smov 8  }
  0x44   : > { %12982 = dma.hbm_to_vmem [thread:$0]  (!%p13584_p8), %s435_s15, 4096, %s437_s6, %s425_s23, %s13401_s10, %s13401_s10, %s13402_s30  }
  0x45   : > { %s456_s19 = sshll.u32 %s455_s4, 4  ;;  %s450_s13 = scalar_lea.vmem [#allocation7], %s13575_s16  ;;  %s457_s19 = int_to_ptr.hbm [resolvable:$true] %s456_s19 }
  0x46   : > { %s458_s27 = sshll.u32 %s450_s13, 4  ;;  %s446_s12 = sand.u32 1, %s13392_s24   ;;  %s459_s27 = int_to_ptr.vmem [resolvable:$true] %s458_s27 }
  0x47   : > { %s447_s18 = scalar_lea.sflag [#allocation8], %s446_s12  ;;  %s13280_s14 = sshra.s32 %s457_s19, 4  ;;  %s13281_s14 = int_to_ptr.hbm [resolvable:$true] %s13280_s14 }
  0x48   : > { %s13282_s25 = scalar_lea.hbm %s13281_s14, 256  ;;  %s13287_s0 = scalar_lea.hbm %s18554_s1, 512 }
  0x49   : > { %p13283_p9 = scmp.ne.s32.totalorder %s13281_s14, %s13282_s25  ;;  %p13288_p12 = scmp.lt.s32.totalorder %s13281_s14, %s18554_s1 }
  0x4a   : > { %p13289_p13 = scmp.lt.s32.totalorder %s13287_s0, %s13282_s25 }
  0x4b   : > { %p13285_p3 = pnand %p13283_p9, %p13254_p10 }
  0x4c   : > { %p13290_p5 = por %p13289_p13, %p13288_p12 }
  0x4d   : > { %p13286_p11 = pneg %p13285_p3 }
  0x4f   : > { %p13291_p7 = pnand %p13290_p5, %p13286_p11 }
  0x51   : > { %13294 = shalt.err (!%p13291_p7)
}
  0x52   : > { %12985 = dma.hbm_to_vmem [thread:$0]  (!%p13584_p8), %s457_s19, 4096, %s459_s27, %s447_s18, %s13401_s10, %s13401_s10, %s13402_s30  }
  0x53   : > { %470 = sbr.rel (%p13504_p4) target bundleno = 3351 (0xd17), region = 68 }
  0x58   : > { %s13620_s4 = sand.u32 1, %s13384_s22  }
  0x59   : > { %s11155_s13 = sshll.u32 %s13620_s4, 8  ;;  %s473_s16 = scalar_lea.sflag [#allocation5], %s13620_s4 }
  0x5a   : > { %s13624_s15 = scalar_lea.vmem [#allocation4], %s11155_s13 }
  0x5b   : > { %13355 = dma.done.wait (%p13561_p0), %s473_s16, 4096  }
  0x5c   : > { %13357 = vsyncadd (%p13561_p0), %s473_s16, 4294963200  ;;  %s482_s0 = sand.u32 1, %s13498_s28   ;;  %s13631_s20 = scalar_lea.vmem [#allocation7], %s11155_s13 }
  0x5d   : > { %s483_s29 = scalar_lea.sflag [#allocation8], %s482_s0 }
  0x5e   : > { %13359 = dma.done.wait (%p13561_p0), %s483_s29, 4096  }
  0x5f   : > { %13361 = vsyncadd (%p13561_p0), %s483_s29, 4294963200 }
  0x60   : > { %13363 = dma.done.wait (%p54_p1), [#allocation8], 2304  }
  0x61   : > { %13365 = vsyncadd (%p54_p1), [#allocation8], 4294964992 }
  0x62   : > { %13367 = dma.done.wait (%p54_p1), [#allocation11], 11520  }
  0x63   : > { %13369 = vsyncadd (%p54_p1), [#allocation11], 4294955776 }
  0x64   : > { %13371 = dma.done.wait (%p54_p1), [#allocation14], 18432  }
  0x65   : > { %13373 = vsyncadd (%p54_p1), [#allocation14], 4294948864  ;;  %s11162_s2 = sshll.u32 %s13620_s4, 7  ;;  %p18744_p4 = scmp.ne.s32.totalorder %s13498_s28, 0 }
  0x66   : > { %s13650_s10 = scalar_lea.vmem [#allocation16], %s11162_s2 }
  0x67   : > { %562 = sbr.rel (%p18744_p4) target bundleno = 217 (0xd9), region = 100 }
  0x6c   : > { %vm563_vm0 = vcmask 257024   ;;  %v13403_v0 = vmov 0   ;;  %vm566_vm1 = vcmask 253952  }
  0x6d   : > { %564 = vst.msk [vmem:[#allocation2] sm:$0xf] %vm563_vm0, %v13403_v0 }
  0x6e   : > { %565 = vst.msk [vmem:[#allocation2 + $0x4] sm:$0xf] %vm563_vm0, %v13403_v0 }
  0x6f   : > { %568 = vst.msk [vmem:[#allocation2 + $0xc] sm:$0xf] %vm563_vm0, %v13403_v0 }
  0x70   : > { %569 = vst.msk [vmem:[#allocation2 + $0x10] sm:$0xf] %vm563_vm0, %v13403_v0 }
  0x71   : > { %571 = vst.msk [vmem:[#allocation2 + $0x18] sm:$0xf] %vm563_vm0, %v13403_v0 }
  0x72   : > { %572 = vst.msk [vmem:[#allocation2 + $0x1c] sm:$0xf] %vm563_vm0, %v13403_v0 }
  0x73   : > { %574 = vst.msk [vmem:[#allocation2 + $0x24] sm:$0xf] %vm563_vm0, %v13403_v0 }
  0x74   : > { %575 = vst.msk [vmem:[#allocation2 + $0x28] sm:$0xf] %vm563_vm0, %v13403_v0 }
  0x75   : > { %577 = vst.msk [vmem:[#allocation2 + $0x30] sm:$0xf] %vm563_vm0, %v13403_v0 }
  0x76   : > { %578 = vst.msk [vmem:[#allocation2 + $0x34] sm:$0xf] %vm563_vm0, %v13403_v0 }
  0x77   : > { %580 = vst.msk [vmem:[#allocation2 + $0x3c] sm:$0xf] %vm563_vm0, %v13403_v0 }
  0x78   : > { %581 = vst.msk [vmem:[#allocation2 + $0x40] sm:$0xf] %vm563_vm0, %v13403_v0 }
  0x79   : > { %583 = vst.msk [vmem:[#allocation2 + $0x48] sm:$0xf] %vm563_vm0, %v13403_v0 }
  0x7a   : > { %584 = vst.msk [vmem:[#allocation2 + $0x4c] sm:$0xf] %vm563_vm0, %v13403_v0 }
  0x7b   : > { %586 = vst.msk [vmem:[#allocation2 + $0x54] sm:$0xf] %vm563_vm0, %v13403_v0 }
  0x7c   : > { %587 = vst.msk [vmem:[#allocation2 + $0x58] sm:$0xf] %vm563_vm0, %v13403_v0 }
  0x7d   : > { %589 = vst.msk [vmem:[#allocation2 + $0x60] sm:$0xf] %vm563_vm0, %v13403_v0 }
  0x7e   : > { %590 = vst.msk [vmem:[#allocation2 + $0x64] sm:$0xf] %vm563_vm0, %v13403_v0 }
  0x7f   : > { %592 = vst.msk [vmem:[#allocation2 + $0x6c] sm:$0xf] %vm563_vm0, %v13403_v0 }
  0x80   : > { %593 = vst.msk [vmem:[#allocation2 + $0x70] sm:$0xf] %vm563_vm0, %v13403_v0 }
  0x81   : > { %595 = vst.msk [vmem:[#allocation2 + $0x78] sm:$0xf] %vm563_vm0, %v13403_v0 }
  0x82   : > { %596 = vst.msk [vmem:[#allocation2 + $0x7c] sm:$0xf] %vm563_vm0, %v13403_v0 }
  0x83   : > { %598 = vst.msk [vmem:[#allocation2 + $0x84] sm:$0xf] %vm563_vm0, %v13403_v0 }
  0x84   : > { %599 = vst.msk [vmem:[#allocation2 + $0x88] sm:$0xf] %vm563_vm0, %v13403_v0 }
  0x85   : > { %601 = vst.msk [vmem:[#allocation2 + $0x90] sm:$0xf] %vm563_vm0, %v13403_v0 }
  0x86   : > { %602 = vst.msk [vmem:[#allocation2 + $0x94] sm:$0xf] %vm563_vm0, %v13403_v0 }
  0x87   : > { %604 = vst.msk [vmem:[#allocation2 + $0x9c] sm:$0xf] %vm563_vm0, %v13403_v0 }
  0x88   : > { %605 = vst.msk [vmem:[#allocation2 + $0xa0] sm:$0xf] %vm563_vm0, %v13403_v0 }
  0x89   : > { %607 = vst.msk [vmem:[#allocation2 + $0xa8] sm:$0xf] %vm563_vm0, %v13403_v0 }
  0x8a   : > { %608 = vst.msk [vmem:[#allocation2 + $0xac] sm:$0xf] %vm563_vm0, %v13403_v0 }
  0x8b   : > { %610 = vst.msk [vmem:[#allocation2 + $0xb4] sm:$0xf] %vm563_vm0, %v13403_v0 }
  0x8c   : > { %611 = vst.msk [vmem:[#allocation2 + $0xb8] sm:$0xf] %vm563_vm0, %v13403_v0 }
  0x8d   : > { %613 = vst.msk [vmem:[#allocation2 + $0xc0] sm:$0xf] %vm563_vm0, %v13403_v0 }
  0x8e   : > { %614 = vst.msk [vmem:[#allocation2 + $0xc4] sm:$0xf] %vm563_vm0, %v13403_v0 }
  0x8f   : > { %616 = vst.msk [vmem:[#allocation2 + $0xcc] sm:$0xf] %vm563_vm0, %v13403_v0 }
  0x90   : > { %617 = vst.msk [vmem:[#allocation2 + $0xd0] sm:$0xf] %vm563_vm0, %v13403_v0 }
  0x91   : > { %619 = vst [vmem:[#allocation3] sm:$0xf] %v13403_v0 }
  0x92   : > { %620 = vst [vmem:[#allocation3 + $0x4] sm:$0xf] %v13403_v0 }
  0x93   : > { %621 = vst [vmem:[#allocation3 + $0x8] sm:$0x1] %v13403_v0 }
  0x94   : > { %622 = vst [vmem:[#allocation3 + $0xc] sm:$0xf] %v13403_v0 }
  0x95   : > { %623 = vst [vmem:[#allocation3 + $0x10] sm:$0xf] %v13403_v0 }
  0x96   : > { %624 = vst [vmem:[#allocation3 + $0x14] sm:$0x1] %v13403_v0 }
  0x97   : > { %625 = vst [vmem:[#allocation3 + $0x18] sm:$0xf] %v13403_v0 }
  0x98   : > { %626 = vst [vmem:[#allocation3 + $0x1c] sm:$0xf] %v13403_v0 }
  0x99   : > { %627 = vst [vmem:[#allocation3 + $0x20] sm:$0x1] %v13403_v0 }
  0x9a   : > { %628 = vst [vmem:[#allocation3 + $0x24] sm:$0xf] %v13403_v0 }
  0x9b   : > { %629 = vst [vmem:[#allocation3 + $0x28] sm:$0xf] %v13403_v0 }
  0x9c   : > { %630 = vst [vmem:[#allocation3 + $0x2c] sm:$0x1] %v13403_v0 }
  0x9d   : > { %631 = vst [vmem:[#allocation3 + $0x30] sm:$0xf] %v13403_v0 }
  0x9e   : > { %632 = vst [vmem:[#allocation3 + $0x34] sm:$0xf] %v13403_v0 }
  0x9f   : > { %633 = vst [vmem:[#allocation3 + $0x38] sm:$0x1] %v13403_v0 }
  0xa0   : > { %634 = vst [vmem:[#allocation3 + $0x3c] sm:$0xf] %v13403_v0 }
  0xa1   : > { %635 = vst [vmem:[#allocation3 + $0x40] sm:$0xf] %v13403_v0 }
  0xa2   : > { %636 = vst [vmem:[#allocation3 + $0x44] sm:$0x1] %v13403_v0 }
  0xa3   : > { %637 = vst [vmem:[#allocation3 + $0x48] sm:$0xf] %v13403_v0 }
  0xa4   : > { %638 = vst [vmem:[#allocation3 + $0x4c] sm:$0xf] %v13403_v0 }
  0xa5   : > { %639 = vst [vmem:[#allocation3 + $0x50] sm:$0x1] %v13403_v0 }
  0xa6   : > { %640 = vst [vmem:[#allocation3 + $0x54] sm:$0xf] %v13403_v0 }
  0xa7   : > { %641 = vst [vmem:[#allocation3 + $0x58] sm:$0xf] %v13403_v0 }
  0xa8   : > { %642 = vst [vmem:[#allocation3 + $0x5c] sm:$0x1] %v13403_v0 }
  0xa9   : > { %643 = vst [vmem:[#allocation3 + $0x60] sm:$0xf] %v13403_v0 }
  0xaa   : > { %644 = vst [vmem:[#allocation3 + $0x64] sm:$0xf] %v13403_v0 }
  0xab   : > { %645 = vst [vmem:[#allocation3 + $0x68] sm:$0x1] %v13403_v0 }
  0xac   : > { %646 = vst [vmem:[#allocation3 + $0x6c] sm:$0xf] %v13403_v0 }
  0xad   : > { %647 = vst [vmem:[#allocation3 + $0x70] sm:$0xf] %v13403_v0 }
  0xae   : > { %648 = vst [vmem:[#allocation3 + $0x74] sm:$0x1] %v13403_v0 }
  0xaf   : > { %649 = vst [vmem:[#allocation3 + $0x78] sm:$0xf] %v13403_v0 }
  0xb0   : > { %650 = vst [vmem:[#allocation3 + $0x7c] sm:$0xf] %v13403_v0 }
  0xb1   : > { %651 = vst [vmem:[#allocation3 + $0x80] sm:$0x1] %v13403_v0 }
  0xb2   : > { %652 = vst [vmem:[#allocation3 + $0x84] sm:$0xf] %v13403_v0 }
  0xb3   : > { %653 = vst [vmem:[#allocation3 + $0x88] sm:$0xf] %v13403_v0 }
  0xb4   : > { %654 = vst [vmem:[#allocation3 + $0x8c] sm:$0x1] %v13403_v0 }
  0xb5   : > { %655 = vst [vmem:[#allocation3 + $0x90] sm:$0xf] %v13403_v0 }
  0xb6   : > { %656 = vst [vmem:[#allocation3 + $0x94] sm:$0xf] %v13403_v0 }
  0xb7   : > { %657 = vst [vmem:[#allocation3 + $0x98] sm:$0x1] %v13403_v0 }
  0xb8   : > { %658 = vst [vmem:[#allocation3 + $0x9c] sm:$0xf] %v13403_v0 }
  0xb9   : > { %659 = vst [vmem:[#allocation3 + $0xa0] sm:$0xf] %v13403_v0 }
  0xba   : > { %660 = vst [vmem:[#allocation3 + $0xa4] sm:$0x1] %v13403_v0 }
  0xbb   : > { %661 = vst [vmem:[#allocation3 + $0xa8] sm:$0xf] %v13403_v0 }
  0xbc   : > { %662 = vst [vmem:[#allocation3 + $0xac] sm:$0xf] %v13403_v0 }
  0xbd   : > { %663 = vst [vmem:[#allocation3 + $0xb0] sm:$0x1] %v13403_v0 }
  0xbe   : > { %664 = vst [vmem:[#allocation3 + $0xb4] sm:$0xf] %v13403_v0 }
  0xbf   : > { %665 = vst [vmem:[#allocation3 + $0xb8] sm:$0xf] %v13403_v0 }
  0xc0   : > { %666 = vst [vmem:[#allocation3 + $0xbc] sm:$0x1] %v13403_v0 }
  0xc1   : > { %667 = vst [vmem:[#allocation3 + $0xc0] sm:$0xf] %v13403_v0 }
  0xc2   : > { %668 = vst [vmem:[#allocation3 + $0xc4] sm:$0xf] %v13403_v0 }
  0xc3   : > { %669 = vst [vmem:[#allocation3 + $0xc8] sm:$0x1] %v13403_v0 }
  0xc4   : > { %670 = vst [vmem:[#allocation3 + $0xcc] sm:$0xf] %v13403_v0 }
  0xc5   : > { %671 = vst [vmem:[#allocation3 + $0xd0] sm:$0xf] %v13403_v0 }
  0xc6   : > { %672 = vst [vmem:[#allocation3 + $0xd4] sm:$0x1] %v13403_v0 }
  0xc7   : > { %567 = vst.msk [vmem:[#allocation2 + $0x8] sm:$0x1] %vm566_vm1, %v13403_v0 }
  0xc8   : > { %570 = vst.msk [vmem:[#allocation2 + $0x14] sm:$0x1] %vm566_vm1, %v13403_v0 }
  0xc9   : > { %573 = vst.msk [vmem:[#allocation2 + $0x20] sm:$0x1] %vm566_vm1, %v13403_v0 }
  0xca   : > { %576 = vst.msk [vmem:[#allocation2 + $0x2c] sm:$0x1] %vm566_vm1, %v13403_v0 }
  0xcb   : > { %579 = vst.msk [vmem:[#allocation2 + $0x38] sm:$0x1] %vm566_vm1, %v13403_v0 }
  0xcc   : > { %582 = vst.msk [vmem:[#allocation2 + $0x44] sm:$0x1] %vm566_vm1, %v13403_v0 }
  0xcd   : > { %585 = vst.msk [vmem:[#allocation2 + $0x50] sm:$0x1] %vm566_vm1, %v13403_v0 }
  0xce   : > { %588 = vst.msk [vmem:[#allocation2 + $0x5c] sm:$0x1] %vm566_vm1, %v13403_v0 }
  0xcf   : > { %591 = vst.msk [vmem:[#allocation2 + $0x68] sm:$0x1] %vm566_vm1, %v13403_v0 }
  0xd0   : > { %594 = vst.msk [vmem:[#allocation2 + $0x74] sm:$0x1] %vm566_vm1, %v13403_v0 }
  0xd1   : > { %597 = vst.msk [vmem:[#allocation2 + $0x80] sm:$0x1] %vm566_vm1, %v13403_v0 }
  0xd2   : > { %600 = vst.msk [vmem:[#allocation2 + $0x8c] sm:$0x1] %vm566_vm1, %v13403_v0 }
  0xd3   : > { %603 = vst.msk [vmem:[#allocation2 + $0x98] sm:$0x1] %vm566_vm1, %v13403_v0 }
  0xd4   : > { %606 = vst.msk [vmem:[#allocation2 + $0xa4] sm:$0x1] %vm566_vm1, %v13403_v0 }
  0xd5   : > { %609 = vst.msk [vmem:[#allocation2 + $0xb0] sm:$0x1] %vm566_vm1, %v13403_v0 }
  0xd6   : > { %612 = vst.msk [vmem:[#allocation2 + $0xbc] sm:$0x1] %vm566_vm1, %v13403_v0 }
  0xd7   : > { %615 = vst.msk [vmem:[#allocation2 + $0xc8] sm:$0x1] %vm566_vm1, %v13403_v0 }
  0xd8   : > { %618 = vst.msk [vmem:[#allocation2 + $0xd4] sm:$0x1] %vm566_vm1, %v13403_v0 }
  0xd9 PF: > { %v737_v1 = vld [vmem:[%s13631_s20] sm:$0xff]  ;;  %v738_v2 = vld [vmem:[%s13631_s20 + $0x8] sm:$0xff]  ;;  %v739_v3 = vld [vmem:[%s13631_s20 + $0x10] sm:$0xff]  ;;  %s13404_s30 = smov 16   ;;  %vm1746_vm2 = vsmask.f32 7424 }
  0xda   : > { %v769_v4 = vpack.c.bf16 %v737_v1, %v737_v1  ;;  %v770_v5 = vpack.c.bf16 %v738_v2, %v738_v2  ;;  %v740_v6 = vld [vmem:[%s13631_s20 + $0x18] sm:$0xff]  ;;  %v741_v7 = vld [vmem:[%s13631_s20 + $0x20] sm:$0xff]  ;;  %v742_v8 = vld [vmem:[%s13631_s20 + $0x28] sm:$0xff]  ;;  %v771_v15 = vpack.c.bf16 %v739_v3, %v739_v3  ;;  %s13405_s19 = smov 32   ;;  %vm1971_vm3 = vcmask 1046528   ;;  %s13406_s27 = smov 64  }
  0xdb   : > { %v773_v9 = vpack.c.bf16 %v741_v7, %v741_v7  ;;  %v774_v10 = vpack.c.bf16 %v742_v8, %v742_v8  ;;  %v743_v11 = vld [vmem:[%s13631_s20 + $0x30] sm:$0xff]  ;;  %v744_v12 = vld [vmem:[%s13631_s20 + $0x38] sm:$0xff]  ;;  %v772_v16 = vpack.c.bf16 %v740_v6, %v740_v6  ;;  %v745_v27 = vld [vmem:[%s13631_s20 + $0x40] sm:$0xff]  ;;  %vm993_vm4 = vcmask 130048   ;;  %s13407_s12 = smov 96   ;;  %s12823_s6 = sshll.u32 %s13498_s28, 7 }
  0xdc   : > { %v913_v13 = vunpack.c.l.b16 %v769_v4  ;;  %v914_v14 = vunpack.c.l.b16 %v770_v5  ;;  %v775_v19 = vpack.c.bf16 %v743_v11, %v743_v11  ;;  %v776_v20 = vpack.c.bf16 %v744_v12, %v744_v12  ;;  %v746_v28 = vld [vmem:[%s13631_s20 + $0x48] sm:$0xff]  ;;  %v1566_v36 = vld [vmem:[#allocation2 + $0x8] sm:$0x1]  ;;  %v13831_v37 = vld [vmem:[#allocation2] sm:$0xff]  ;;  %s19450_s16 = sld [smem:[#allocation168_spill]]  ;;  %s10994_s0 = sshll.u32 %s13650_s10, 4  ;;  %s10995_s0 = int_to_ptr.vmem [resolvable:$true] %s10994_s0 }
  0xdd   : > { %v917_v17 = vunpack.c.l.b16 %v773_v9  ;;  %v918_v18 = vunpack.c.l.b16 %v774_v10  ;;  %v915_v23 = vunpack.c.l.b16 %v771_v15  ;;  %v916_v24 = vunpack.c.l.b16 %v772_v16  ;;  %v673_v47 = vld [vmem:[%s13624_s15] sm:$0xff]  ;;  %v674_v48 = vld [vmem:[%s13624_s15 + $0x8] sm:$0xff]  ;;  %v675_v60 = vld [vmem:[%s13624_s15 + $0x10] sm:$0xff]  ;;  %s10982_s28 = scalar_lea.sflag [#allocation6], %s13620_s4 }
  0xde   : > { %v945_v21 = vpack.c.b16 %v914_v14, %v913_v13  ;;  %v919_v25 = vunpack.c.l.b16 %v775_v19  ;;  %v920_v26 = vunpack.c.l.b16 %v776_v20  ;;  %v777_v31 = vpack.c.bf16 %v745_v27, %v745_v27  ;;  %v677_v49 = vld [vmem:[%s13624_s15 + $0x20] sm:$0xff]  ;;  %v678_v50 = vld [vmem:[%s13624_s15 + $0x28] sm:$0xff]  ;;  %v676_v61 = vld [vmem:[%s13624_s15 + $0x18] sm:$0xff] }
  0xdf   : > { %v947_v22 = vpack.c.b16 %v918_v18, %v917_v17  ;;  %v946_v29 = vpack.c.b16 %v916_v24, %v915_v23  ;;  %v778_v32 = vpack.c.bf16 %v746_v28, %v746_v28  ;;  %v1714_v38 = vunpack.c.l.b16 %v1566_v36  ;;  %v679_v3 = vld [vmem:[%s13624_s15 + $0x30] sm:$0xff]  ;;  %v680_v4 = vld [vmem:[%s13624_s15 + $0x38] sm:$0xff]  ;;  %v12548_v36 = vld [vmem:[#allocation9 + $0x68] sm:$0xff] }
  0xe0   : > { %961 = vrot.lane.b32.xlu0 %v945_v21, %s13404_s30  ;;  %v948_v30 = vpack.c.b16 %v920_v26, %v919_v25  ;;  %v921_v33 = vunpack.c.l.b16 %v777_v31  ;;  %v1750_v40 = vshll.u32 %v13831_v37, 16  ;;  %v1748_v41 = vshrl.u32 %v13831_v37, 16  ;;  %v681_v25 = vld [vmem:[%s13624_s15 + $0x40] sm:$0xff] }
  0xe1   : > { %965 = vrot.lane.b32.xlu1 %v947_v22, %s13404_s30  ;;  %v922_v34 = vunpack.c.l.b16 %v778_v32  ;;  %v1730_v39 = vpack.c.b16 %v1714_v38, %v1714_v38  ;;  %v705_v51 = vpack.c.bf16 %v673_v47, %v673_v47  ;;  %v706_v52 = vpack.c.bf16 %v674_v48, %v674_v48 }
  0xe2   : > { %v1752_v42 = vrot.slane %v1750_v40, 1  ;;  %v709_v53 = vpack.c.bf16 %v677_v49, %v677_v49  ;;  %v710_v54 = vpack.c.bf16 %v678_v50, %v678_v50  ;;  %v1972_v55 = vrot.slane %v13831_v37, 1 }
  0xe3   : > { %v949_v35 = vpack.c.b16 %v922_v34, %v921_v33  ;;  %v1755_v43 = vshll.u32 %v1730_v39, 16  ;;  %v1973_v56 = vrot.slane %v1730_v39, 1  ;;  %v833_v58 = vunpack.c.l.b16 %v705_v51 }
  0xe4   : > { %v1753_v44 = vor.u32 %v1752_v42, %v1748_v41  ;;  %v834_v59 = vunpack.c.l.b16 %v706_v52  ;;  %v837_v62 = vunpack.c.l.b16 %v709_v53  ;;  %v838_v63 = vunpack.c.l.b16 %v710_v54 }
  0xe5   : > { %v1757_v45 = vrot.slane %v1755_v43, 1  ;;  %v1974_v57 = vsel %vm1971_vm3, %v1972_v55, %v1973_v56  ;;  %v707_v1 = vpack.c.bf16 %v675_v60, %v675_v60  ;;  %v708_v2 = vpack.c.bf16 %v676_v61, %v676_v61  ;;  %v1449_v43 = vld [vmem:[#allocation2 + $0xc] sm:$0xf]  ;;  %v1466_v55 = vld [vmem:[#allocation2 + $0x24] sm:$0xf] }
  0xe6   : > { %v865_v0 = vpack.c.b16 %v834_v59, %v833_v58  ;;  %v867_v5 = vpack.c.b16 %v838_v63, %v837_v62  ;;  %v711_v6 = vpack.c.bf16 %v679_v3, %v679_v3  ;;  %v712_v7 = vpack.c.bf16 %v680_v4, %v680_v4 }
  0xe7   : > { %v1758_v46 = vsel %vm1746_vm2, %v1753_v44, %v1757_v45  ;;  %v835_v10 = vunpack.c.l.b16 %v707_v1  ;;  %v836_v11 = vunpack.c.l.b16 %v708_v2  ;;  %vm1122_vm5 = vsmask.f32 256  ;;  %v1456_v45 = vld [vmem:[#allocation2 + $0x14] sm:$0x1]  ;;  %v1470_v2 = vld [vmem:[#allocation2 + $0x2c] sm:$0x1] }
  0xe8   : > { %963 = vrot.lane.b32.xlu0 %v946_v29, %s13404_s30  ;;  %1939 = vrot.lane.b32.xlu2 %v1758_v46, %s13405_s19  ;;  %v13849_v13 = vunpack.c.l.b16 %v711_v6  ;;  %v840_v17 = vunpack.c.l.b16 %v712_v7  ;;  %vm1446_vm6 = vcmask 257024   ;;  %vm1123_vm7 = vsmask.f32 4368 }
  0xe9   : > { %967 = vrot.lane.b32.xlu1 %v948_v30, %s13404_s30  ;;  %vm1447_vm8 = vsmask.f32 7938  ;;  %vm1454_vm9 = vcmask 253952   ;;  %v866_v22 = vpack.c.b16 %v836_v11, %v835_v10  ;;  %v682_v30 = vld [vmem:[%s13624_s15 + $0x48] sm:$0xff]  ;;  %vm13856_vm10 = vmor %vm1122_vm5, %vm1123_vm7  ;;  %v18745_v31 = vmov 0 }
  0xea   : > { %v868_v29 = vpack.c.b16 %v840_v17, %v13849_v13  ;;  %v18746_v31 = vsel %vm13856_vm10, 4294967295, %v18745_v31  ;;  %vm13862_vm11 = vmand %vm1446_vm6, %vm1447_vm8  ;;  %v713_v42 = vpack.c.bf16 %v681_v25, %v681_v25  ;;  %v714_v50 = vpack.c.bf16 %v682_v30, %v682_v30 }
  0xeb   : > { %18747 = vst [vmem:[#allocation27_spill] sm:$0xff] %v18746_v31  ;;  %vm13868_vm12 = vmand %vm1454_vm9, %vm1122_vm5  ;;  %vm2242_vm13 = vcmask 261120   ;;  %vm2275_vm14 = vcmask 523264   ;;  %vm2308_vm15 = vcmask 785408   ;;  %vm4036_vm0 = vcmask 1043456  }
  0xec   : > { %v841_v7 = vunpack.c.l.b16 %v713_v42  ;;  %v1477_v42 = vld [vmem:[#allocation2 + $0x38] sm:$0x1]  ;;  %vm15020_vm1 = vmand %vm4036_vm0, %vm1447_vm8 }
  0xf0   : > { %2020 = vrot.lane.b32.xlu2 %v1974_v57, %s13406_s27 }
  0xf1   : > { %969 = vrot.lane.b32.xlu1 %v949_v35, %s13404_s30 }
 0x152   : > { %v962_v8 = vpop.permute.xlu0 %961 }
 0x153   : > { %v996_v9 = vsel %vm993_vm4, %v865_v0, %v962_v8  ;;  %v966_v12 = vpop.permute.xlu1 %965  ;;  %v842_v8 = vunpack.c.l.b16 %v714_v50 }
 0x154   : > { %v1058_v14 = vunpack.c.l.b16 %v996_v9  ;;  %v1059_v15 = vunpack.c.h.b16 %v996_v9  ;;  %v1002_v16 = vsel %vm993_vm4, %v867_v5, %v966_v12 }
 0x155   : > { %v1062_v18 = vunpack.c.l.b16 %v1002_v16  ;;  %v1063_v19 = vunpack.c.h.b16 %v1002_v16 }
 0x156   : > { %v1090_v20 = vpack.c.b16 %v1058_v14, %v1058_v14  ;;  %v1091_v21 = vpack.c.b16 %v1059_v15, %v1059_v15  ;;  %v869_v14 = vpack.c.b16 %v842_v8, %v841_v7 }
 0x157   : > { %v1094_v23 = vpack.c.b16 %v1062_v18, %v1062_v18  ;;  %v1095_v24 = vpack.c.b16 %v1063_v19, %v1063_v19 }
 0x158   : > { %v1126_v26 = vshrl.u32 %v1090_v20, 16  ;;  %v1129_v27 = vshll.u32 %v1090_v20, 16  ;;  %v1134_v28 = vshrl.u32 %v1091_v21, 16  ;;  %v1137_v32 = vshll.u32 %v1091_v21, 16  ;;  %v1459_v20 = vld [vmem:[#allocation2 + $0x18] sm:$0xf] }
 0x159   : > { %v1160_v33 = vshrl.u32 %v1094_v23, 16  ;;  %v1163_v34 = vshll.u32 %v1094_v23, 16  ;;  %v1168_v35 = vshrl.u32 %v1095_v24, 16  ;;  %v1171_v41 = vshll.u32 %v1095_v24, 16  ;;  %v1463_v21 = vld [vmem:[#allocation2 + $0x20] sm:$0x1] }
 0x15a   : > { %v1128_v38 = vrot.slane %v1126_v26, 7  ;;  %v1136_v39 = vrot.slane %v1134_v28, 7  ;;  %v964_v40 = vpop.permute.xlu0 %963 }
 0x15b   : > { %v999_v46 = vsel %vm993_vm4, %v866_v22, %v964_v40  ;;  %v1162_v47 = vrot.slane %v1160_v33, 7  ;;  %v1170_v48 = vrot.slane %v1168_v35, 7  ;;  %v968_v49 = vpop.permute.xlu1 %967 }
 0x15c   : > { %v1131_v51 = vor.u32 %v1129_v27, %v1128_v38  ;;  %v1132_v52 = vrot.slane %v1128_v38, 4  ;;  %v1139_v53 = vor.u32 %v1137_v32, %v1136_v39  ;;  %v1141_v54 = vrot.slane %v1136_v39, 4 }
 0x15d   : > { %v1060_v56 = vunpack.c.l.b16 %v999_v46  ;;  %v1061_v57 = vunpack.c.h.b16 %v999_v46  ;;  %v1165_v58 = vor.u32 %v1163_v34, %v1162_v47  ;;  %v1166_v59 = vrot.slane %v1162_v47, 4  ;;  %v747_v34 = vld [vmem:[%s13631_s20 + $0x50] sm:$0xff] }
 0x15e   : > { %v1140_v60 = vsel %vm13856_vm10, %v1132_v52, %v1139_v53  ;;  %v1450_v61 = vsel %vm13862_vm11, %v1131_v51, %v1449_v43  ;;  %v1457_v62 = vsel %vm13868_vm12, %v1141_v54, %v1456_v45  ;;  %v1173_v63 = vor.u32 %v1171_v41, %v1170_v48  ;;  %v1473_v41 = vld [vmem:[#allocation2 + $0x30] sm:$0xf]  ;;  %v748_v52 = vld [vmem:[%s13631_s20 + $0x58] sm:$0xff] }
 0x15f   : > { %1451 = vst [vmem:[#allocation2 + $0xc] sm:$0xf] %v1450_v61  ;;  %v1092_v0 = vpack.c.b16 %v1060_v56, %v1060_v56  ;;  %v1093_v1 = vpack.c.b16 %v1061_v57, %v1061_v57  ;;  %v1175_v3 = vrot.slane %v1170_v48, 4  ;;  %v1467_v4 = vsel %vm13862_vm11, %v1165_v58, %v1466_v55 }
 0x160   : > { %1453 = vst.msk [vmem:[#allocation2 + $0x10] sm:$0xf] %vm1446_vm6, %v1140_v60  ;;  %v1174_v5 = vsel %vm13856_vm10, %v1166_v59, %v1173_v63  ;;  %v1005_v6 = vsel %vm993_vm4, %v868_v29, %v968_v49  ;;  %v779_v53 = vpack.c.bf16 %v747_v34, %v747_v34 }
 0x161   : > { %1458 = vst [vmem:[#allocation2 + $0x14] sm:$0x1] %v1457_v62  ;;  %v1143_v9 = vshrl.u32 %v1092_v0, 16  ;;  %v1151_v10 = vshrl.u32 %v1093_v1, 16  ;;  %v1471_v11 = vsel %vm13868_vm12, %v1175_v3, %v1470_v2  ;;  %v1064_v12 = vunpack.c.l.b16 %v1005_v6 }
 0x162   : > { %1468 = vst [vmem:[#allocation2 + $0x24] sm:$0xf] %v1467_v4  ;;  %v1065_v13 = vunpack.c.h.b16 %v1005_v6  ;;  %v1146_v16 = vshll.u32 %v1092_v0, 16  ;;  %v1154_v18 = vshll.u32 %v1093_v1, 16  ;;  %v780_v2 = vpack.c.bf16 %v748_v52, %v748_v52 }
 0x163   : > { %v1145_v15 = vrot.slane %v1143_v9, 7  ;;  %v1153_v17 = vrot.slane %v1151_v10, 7  ;;  %1469 = vst.msk [vmem:[#allocation2 + $0x28] sm:$0xf] %vm1446_vm6, %v1174_v5  ;;  %v970_v19 = vpop.permute.xlu1 %969  ;;  %v1096_v22 = vpack.c.b16 %v1064_v12, %v1064_v12 }
 0x164   : > { %1472 = vst [vmem:[#allocation2 + $0x2c] sm:$0x1] %v1471_v11  ;;  %v1097_v23 = vpack.c.b16 %v1065_v13, %v1065_v13  ;;  %v1008_v24 = vsel %vm993_vm4, %v869_v14, %v970_v19 }
 0x165   : > { %v1148_v25 = vor.u32 %v1146_v16, %v1145_v15  ;;  %v1149_v26 = vrot.slane %v1145_v15, 4  ;;  %v1156_v27 = vor.u32 %v1154_v18, %v1153_v17  ;;  %v1158_v28 = vrot.slane %v1153_v17, 4  ;;  %v1480_v18 = vld [vmem:[#allocation2 + $0x3c] sm:$0xf] }
 0x166   : > { %v1177_v29 = vshrl.u32 %v1096_v22, 16  ;;  %v1180_v30 = vshll.u32 %v1096_v22, 16  ;;  %v1185_v32 = vshrl.u32 %v1097_v23, 16  ;;  %v1188_v33 = vshll.u32 %v1097_v23, 16 }
 0x167   : > { %v1157_v35 = vsel %vm13856_vm10, %v1149_v26, %v1156_v27  ;;  %v1460_v38 = vsel %vm13862_vm11, %v1148_v25, %v1459_v20  ;;  %v1464_v39 = vsel %vm13868_vm12, %v1158_v28, %v1463_v21  ;;  %v13896_v40 = vld [vmem:[#allocation2 + $0xc] sm:$0xff]  ;;  %v1066_v43 = vunpack.c.l.b16 %v1008_v24  ;;  %v1484_v27 = vld [vmem:[#allocation2 + $0x44] sm:$0x1] }
 0x168   : > { %1461 = vst [vmem:[#allocation2 + $0x18] sm:$0xf] %v1460_v38  ;;  %v1569_v45 = vld [vmem:[#allocation2 + $0x14] sm:$0x1]  ;;  %v1179_v46 = vrot.slane %v1177_v29, 7  ;;  %v1187_v47 = vrot.slane %v1185_v32, 7  ;;  %v1067_v48 = vunpack.c.h.b16 %v1008_v24  ;;  %2057 = vrot.lane.b32.xlu0 %v13896_v40, %s13407_s12  ;;  %v923_v17 = vunpack.c.l.b16 %v779_v53 }
 0x169   : > { %1462 = vst.msk [vmem:[#allocation2 + $0x1c] sm:$0xf] %vm1446_vm6, %v1157_v35  ;;  %v1715_v49 = vunpack.c.l.b16 %v1569_v45  ;;  %v1760_v50 = vshrl.u32 %v13896_v40, 16  ;;  %v1762_v51 = vshll.u32 %v13896_v40, 16  ;;  %v1098_v60 = vpack.c.b16 %v1066_v43, %v1066_v43  ;;  %v749_v29 = vld [vmem:[%s13631_s20 + $0x60] sm:$0xff]  ;;  %v750_v35 = vld [vmem:[%s13631_s20 + $0x68] sm:$0xff] }
 0x16a   : > { %1465 = vst [vmem:[#allocation2 + $0x20] sm:$0x1] %v1464_v39  ;;  %v1182_v54 = vor.u32 %v1180_v30, %v1179_v46  ;;  %v1183_v55 = vrot.slane %v1179_v46, 4  ;;  %v1190_v56 = vor.u32 %v1188_v33, %v1187_v47  ;;  %v1192_v57 = vrot.slane %v1187_v47, 4  ;;  %v13912_v14 = vld [vmem:[#allocation2 + $0x24] sm:$0xff] }
 0x16b   : > { %v1731_v58 = vpack.c.b16 %v1715_v49, %v1715_v49  ;;  %v1764_v59 = vrot.slane %v1762_v51, 1  ;;  %v1099_v61 = vpack.c.b16 %v1067_v48, %v1067_v48  ;;  %v1575_v62 = vld [vmem:[#allocation2 + $0x2c] sm:$0x1]  ;;  %v1194_v6 = vshrl.u32 %v1098_v60, 16 }
 0x16c   : > { %v1191_v63 = vsel %vm13856_vm10, %v1183_v55, %v1190_v56  ;;  %v1474_v0 = vsel %vm13862_vm11, %v1182_v54, %v1473_v41  ;;  %v1478_v1 = vsel %vm13868_vm12, %v1192_v57, %v1477_v42  ;;  %v1975_v7 = vrot.slane %v13896_v40, 1 }
 0x16d   : > { %v1765_v3 = vor.u32 %v1764_v59, %v1760_v50  ;;  %v1767_v4 = vshll.u32 %v1731_v58, 16  ;;  %v1976_v5 = vrot.slane %v1731_v58, 1  ;;  %1475 = vst [vmem:[#allocation2 + $0x30] sm:$0xf] %v1474_v0  ;;  %v1197_v8 = vshll.u32 %v1098_v60, 16 }
 0x16e   : > { %1476 = vst.msk [vmem:[#allocation2 + $0x34] sm:$0xf] %vm1446_vm6, %v1191_v63  ;;  %v1202_v9 = vshrl.u32 %v1099_v61, 16  ;;  %v1717_v10 = vunpack.c.l.b16 %v1575_v62  ;;  %v1196_v12 = vrot.slane %v1194_v6, 7  ;;  %v1205_v13 = vshll.u32 %v1099_v61, 16  ;;  %v751_v62 = vld [vmem:[%s13631_s20 + $0x70] sm:$0xff] }
 0x16f   : > { %v1769_v11 = vrot.slane %v1767_v4, 1  ;;  %1479 = vst [vmem:[#allocation2 + $0x38] sm:$0x1] %v1478_v1  ;;  %v13917_v16 = vsel %vm1971_vm3, %v1975_v7, %v1976_v5  ;;  %v924_v21 = vunpack.c.l.b16 %v780_v2  ;;  %v1786_v34 = vshll.u32 %v13912_v14, 16  ;;  %v752_v63 = vld [vmem:[%s13631_s20 + $0x78] sm:$0xff] }
 0x170   : > { %v13914_v15 = vld [vmem:[#allocation2 + $0x18] sm:$0xff]  ;;  %v1204_v19 = vrot.slane %v1202_v9, 7  ;;  %2022 = vrot.lane.b32.xlu0 %v13917_v16, %s13406_s27  ;;  %v1199_v23 = vor.u32 %v1197_v8, %v1196_v12  ;;  %v1200_v24 = vrot.slane %v1196_v12, 4  ;;  %v1733_v28 = vpack.c.b16 %v1717_v10, %v1717_v10 }
 0x171   : > { %v13920_v20 = vsel %vm1746_vm2, %v1765_v3, %v1769_v11  ;;  %v1572_v22 = vld [vmem:[#allocation2 + $0x20] sm:$0x1]  ;;  %2059 = vrot.lane.b32.xlu1 %v13914_v15, %s13407_s12  ;;  %v1774_v26 = vshll.u32 %v13914_v15, 16  ;;  %v1772_v39 = vshrl.u32 %v13914_v15, 16  ;;  %v950_v42 = vpack.c.b16 %v924_v21, %v923_v17 }
 0x172   : > { %1941 = vrot.lane.b32.xlu2 %v13920_v20, %s13405_s19  ;;  %v1716_v25 = vunpack.c.l.b16 %v1572_v22  ;;  %v1207_v30 = vor.u32 %v1205_v13, %v1204_v19  ;;  %v1209_v32 = vrot.slane %v1204_v19, 4  ;;  %v1481_v33 = vsel %vm13862_vm11, %v1199_v23, %v1480_v18  ;;  %v12524_v13 = vld [vmem:[#allocation10 + $0x38] sm:$0xff]  ;;  %v12523_v18 = vld [vmem:[#allocation10 + $0x30] sm:$0xff] }
 0x173   : > { %v1776_v41 = vrot.slane %v1774_v26, 1  ;;  %1482 = vst [vmem:[#allocation2 + $0x3c] sm:$0xf] %v1481_v33  ;;  %v781_v46 = vpack.c.bf16 %v749_v29, %v749_v29  ;;  %v782_v50 = vpack.c.bf16 %v750_v35, %v750_v35  ;;  %v1978_v51 = vrot.slane %v13914_v15, 1  ;;  %2921 = vmatpush.bf16.msra.mxu0 %v12524_v13  ;;  %12919 = vmatpush.bf16.msra.mxu1 %v12524_v13 }
 0x174   : > { %v1732_v38 = vpack.c.b16 %v1716_v25, %v1716_v25  ;;  %v1208_v43 = vsel %vm13856_vm10, %v1200_v24, %v1207_v30  ;;  %v1485_v45 = vsel %vm13868_vm12, %v1209_v32, %v1484_v27  ;;  %v1784_v52 = vshrl.u32 %v13912_v14, 16  ;;  %12920 = vmatpush.bf16.msra.mxu3 %v12524_v13  ;;  %v12522_v27 = vld [vmem:[#allocation10 + $0x28] sm:$0xff]  ;;  %v753_v30 = vld [vmem:[%s13631_s20 + $0x80] sm:$0xff]  ;;  %v754_v32 = vld [vmem:[%s13631_s20 + $0x88] sm:$0xff] }
 0x175   : > { %v1777_v48 = vor.u32 %v1776_v41, %v1772_v39  ;;  %1483 = vst.msk [vmem:[#allocation2 + $0x40] sm:$0xf] %vm1446_vm6, %v1208_v43  ;;  %v1788_v53 = vrot.slane %v1786_v34, 1  ;;  %v1791_v54 = vshll.u32 %v1733_v28, 16  ;;  %v925_v60 = vunpack.c.l.b16 %v781_v46  ;;  %v13958_v5 = vld [vmem:[#allocation2 + $0x30] sm:$0xff]  ;;  %v12521_v39 = vld [vmem:[#allocation10 + $0x20] sm:$0xff] }
 0x176   : > { %v1979_v47 = vrot.slane %v1732_v38, 1  ;;  %v1779_v49 = vshll.u32 %v1732_v38, 16  ;;  %1486 = vst [vmem:[#allocation2 + $0x44] sm:$0x1] %v1485_v45  ;;  %v926_v61 = vunpack.c.l.b16 %v782_v50  ;;  %v1578_v0 = vld [vmem:[#allocation2 + $0x38] sm:$0x1]  ;;  %v783_v1 = vpack.c.bf16 %v751_v62, %v751_v62 }
 0x177   : > { %v1789_v58 = vor.u32 %v1788_v53, %v1784_v52  ;;  %v1793_v59 = vrot.slane %v1791_v54, 1  ;;  %v784_v2 = vpack.c.bf16 %v752_v63, %v752_v63  ;;  %v1718_v6 = vunpack.c.l.b16 %v1578_v0  ;;  %2922 = vmatpush.bf16.msra.mxu0 %v12523_v18  ;;  %12921 = vmatpush.bf16.msra.mxu1 %v12523_v18 }
 0x178   : > { %v1781_v55 = vrot.slane %v1779_v49, 1  ;;  %v13943_v56 = vsel %vm1971_vm3, %v1978_v51, %v1979_v47  ;;  %v951_v4 = vpack.c.b16 %v926_v61, %v925_v60  ;;  %v927_v7 = vunpack.c.l.b16 %v783_v1  ;;  %12922 = vmatpush.bf16.msra.mxu3 %v12523_v18 }
 0x179   : > { %2024 = vrot.lane.b32.xlu1 %v13943_v56, %s13406_s27  ;;  %v13956_v3 = vsel %vm1746_vm2, %v1789_v58, %v1793_v59  ;;  %v928_v8 = vunpack.c.l.b16 %v784_v2  ;;  %v1981_v9 = vrot.slane %v13912_v14, 1  ;;  %v1982_v10 = vrot.slane %v1733_v28, 1  ;;  %v756_v58 = vld [vmem:[%s13631_s20 + $0x98] sm:$0xff] }
 0x17a   : > { %971 = vrot.lane.b32.xlu2 %v950_v42, %s13404_s30  ;;  %v13949_v57 = vsel %vm1746_vm2, %v1777_v48, %v1781_v55  ;;  %v1734_v11 = vpack.c.b16 %v1718_v6, %v1718_v6  ;;  %v1798_v12 = vshll.u32 %v13958_v5, 16  ;;  %v1796_v22 = vshrl.u32 %v13958_v5, 16  ;;  %v755_v55 = vld [vmem:[%s13631_s20 + $0x90] sm:$0xff]  ;;  %v12519_v6 = vld [vmem:[#allocation10 + $0x10] sm:$0xff] }
 0x17b   : > { %1943 = vrot.lane.b32.xlu0 %v13949_v57, %s13405_s19  ;;  %v952_v19 = vpack.c.b16 %v928_v8, %v927_v7  ;;  %v13968_v21 = vsel %vm1971_vm3, %v1981_v9, %v1982_v10  ;;  %v1984_v33 = vrot.slane %v13958_v5, 1  ;;  %2923 = vmatpush.bf16.msra.mxu0 %v12522_v27  ;;  %v785_v41 = vpack.c.bf16 %v753_v30, %v753_v30  ;;  %v12518_v7 = vld [vmem:[#allocation10 + $0x8] sm:$0xff]  ;;  %v1940_v8 = vpop.permute.xlu2 %1939  ;;  %v12517_v9 = vld [vmem:[#allocation10] sm:$0xff] }
 0x17c   : > { %v1800_v23 = vrot.slane %v1798_v12, 1  ;;  %v1803_v24 = vshll.u32 %v1734_v11, 16  ;;  %v13971_v25 = vld [vmem:[#allocation2 + $0x3c] sm:$0xff]  ;;  %v1985_v34 = vrot.slane %v1734_v11, 1  ;;  %12923 = vmatpush.bf16.msra.mxu1 %v12522_v27  ;;  %v786_v42 = vpack.c.bf16 %v754_v32, %v754_v32  ;;  %12924 = vmatpush.bf16.msra.mxu3 %v12522_v27  ;;  %v684_v12 = vld [vmem:[%s13624_s15 + $0x58] sm:$0xff] }
 0x17d   : > { %v1581_v17 = vld [vmem:[#allocation2 + $0x44] sm:$0x1]  ;;  %v1810_v38 = vshll.u32 %v13971_v25, 16  ;;  %v1808_v46 = vshrl.u32 %v13971_v25, 16  ;;  %v929_v49 = vunpack.c.l.b16 %v785_v41  ;;  %v1987_v51 = vrot.slane %v13971_v25, 1 }
 0x17e   : > { %v1719_v26 = vunpack.c.l.b16 %v1581_v17  ;;  %v1801_v28 = vor.u32 %v1800_v23, %v1796_v22  ;;  %v1805_v29 = vrot.slane %v1803_v24, 1  ;;  %v13986_v45 = vsel %vm1971_vm3, %v1984_v33, %v1985_v34  ;;  %v683_v11 = vld [vmem:[%s13624_s15 + $0x50] sm:$0xff] }
 0x17f   : > { %v1812_v47 = vrot.slane %v1810_v38, 1  ;;  %2924 = vmatpush.bf16.msra.mxu0 %v12521_v39  ;;  %v930_v50 = vunpack.c.l.b16 %v786_v42  ;;  %v787_v61 = vpack.c.bf16 %v755_v55, %v755_v55  ;;  %v788_v62 = vpack.c.bf16 %v756_v58, %v756_v58 }
 0x180   : > { %v1735_v35 = vpack.c.b16 %v1719_v26, %v1719_v26  ;;  %v13983_v43 = vsel %vm1746_vm2, %v1801_v28, %v1805_v29  ;;  %12925 = vmatpush.bf16.msra.mxu1 %v12521_v39  ;;  %12926 = vmatpush.bf16.msra.mxu3 %v12521_v39  ;;  %v715_v13 = vpack.c.bf16 %v683_v11, %v683_v11 }
 0x181   : > { %1945 = vrot.lane.b32.xlu1 %v13956_v3, %s13405_s19  ;;  %v1813_v53 = vor.u32 %v1812_v47, %v1808_v46  ;;  %v953_v59 = vpack.c.b16 %v930_v50, %v929_v49  ;;  %v931_v0 = vunpack.c.l.b16 %v787_v61  ;;  %v932_v1 = vunpack.c.l.b16 %v788_v62  ;;  %v1491_v49 = vld [vmem:[#allocation2 + $0x50] sm:$0x1] }
 0x182   : > { %2061 = vrot.lane.b32.xlu2 %v13912_v14, %s13407_s12  ;;  %v1815_v48 = vshll.u32 %v1735_v35, 16  ;;  %v1988_v52 = vrot.slane %v1735_v35, 1  ;;  %v716_v17 = vpack.c.bf16 %v684_v12, %v684_v12  ;;  %v2244_v27 = vsel %vm2242_vm13, %v13831_v37, %v1940_v8  ;;  %v1487_v37 = vld [vmem:[#allocation2 + $0x48] sm:$0xf] }
 0x183   : > { %973 = vrot.lane.b32.xlu0 %v951_v4, %s13404_s30  ;;  %v954_v2 = vpack.c.b16 %v932_v1, %v931_v0  ;;  %v12520_v4 = vld [vmem:[#allocation10 + $0x18] sm:$0xff]  ;;  %v2021_v10 = vpop.permute.xlu2 %2020  ;;  %v689_v0 = vld [vmem:[%s13624_s15 + $0x80] sm:$0xff] }
 0x184   : > { %v1817_v54 = vrot.slane %v1815_v48, 1  ;;  %v13999_v60 = vsel %vm1971_vm3, %v1987_v51, %v1988_v52  ;;  %2925 = vmatpush.bf16.msra.mxu0 %v12520_v4  ;;  %12927 = vmatpush.bf16.msra.mxu1 %v12520_v4  ;;  %v844_v22 = vunpack.c.l.b16 %v716_v17  ;;  %v2277_v33 = vsel %vm2275_vm14, %v2244_v27, %v2021_v10  ;;  %v690_v1 = vld [vmem:[%s13624_s15 + $0x88] sm:$0xff] }
 0x185   : > { %12928 = vmatpush.bf16.msra.mxu3 %v12520_v4  ;;  %v686_v4 = vld [vmem:[%s13624_s15 + $0x68] sm:$0xff]  ;;  %v722_v10 = vpack.c.bf16 %v690_v1, %v690_v1 }
 0x186   : > { %v14002_v63 = vsel %vm1746_vm2, %v1813_v53, %v1817_v54 }
 0x188   : > { %2926 = vmatpush.bf16.msra.mxu0 %v12519_v6  ;;  %12929 = vmatpush.bf16.msra.mxu1 %v12519_v6 }
 0x189   : > { %975 = vrot.lane.b32.xlu1 %v952_v19, %s13404_s30  ;;  %12930 = vmatpush.bf16.msra.mxu3 %v12519_v6  ;;  %v843_v19 = vunpack.c.l.b16 %v715_v13  ;;  %v718_v13 = vpack.c.bf16 %v686_v4, %v686_v4 }
 0x18a   : > { %2026 = vrot.lane.b32.xlu2 %v13968_v21, %s13406_s27 }
 0x18b   : > { %2063 = vrot.lane.b32.xlu0 %v13958_v5, %s13407_s12  ;;  %v870_v23 = vpack.c.b16 %v844_v22, %v843_v19 }
 0x18c   : > { %2927 = vmatpush.bf16.msra.mxu0 %v12518_v7  ;;  %12931 = vmatpush.bf16.msra.mxu1 %v12518_v7 }
 0x18d   : > { %12932 = vmatpush.bf16.msra.mxu3 %v12518_v7  ;;  %v721_v7 = vpack.c.bf16 %v689_v0, %v689_v0 }
 0x190   : > { %2928 = vmatpush.bf16.msra.mxu0 %v12517_v9  ;;  %12933 = vmatpush.bf16.msra.mxu1 %v12517_v9 }
 0x191   : > { %2065 = vrot.lane.b32.xlu1 %v13971_v25, %s13407_s12  ;;  %12934 = vmatpush.bf16.msra.mxu3 %v12517_v9 }
 0x192   : > { %1947 = vrot.lane.b32.xlu2 %v13983_v43, %s13405_s19 }
 0x193   : > { %2028 = vrot.lane.b32.xlu0 %v13986_v45, %s13406_s27 }
 0x199   : > { %2030 = vrot.lane.b32.xlu1 %v13999_v60, %s13406_s27 }
 0x19a   : > { %977 = vrot.lane.b32.xlu2 %v953_v59, %s13404_s30 }
 0x19b   : > { %1949 = vrot.lane.b32.xlu0 %v14002_v63, %s13405_s19 }
 0x1a3   : > { %979 = vrot.lane.b32.xlu0 %v954_v2, %s13404_s30  ;;  %v685_v2 = vld [vmem:[%s13624_s15 + $0x60] sm:$0xff] }
 0x1a4   : > { %v717_v12 = vpack.c.bf16 %v685_v2, %v685_v2 }
 0x1cc   : > { %v1942_v18 = vpop.permute.xlu2 %1941 }
 0x1cd   : > { %v2246_v6 = vsel %vm2242_vm13, %v13896_v40, %v1942_v18 }
 0x1d4   : > { %v972_v24 = vpop.permute.xlu2 %971 }
 0x1d5   : > { %v1011_v26 = vsel %vm993_vm4, %v870_v23, %v972_v24  ;;  %v849_v24 = vunpack.c.l.b16 %v721_v7 }
 0x1d6   : > { %v1068_v28 = vunpack.c.l.b16 %v1011_v26  ;;  %v1069_v29 = vunpack.c.h.b16 %v1011_v26 }
 0x1d8   : > { %v1100_v30 = vpack.c.b16 %v1068_v28, %v1068_v28  ;;  %v1101_v32 = vpack.c.b16 %v1069_v29, %v1069_v29  ;;  %v687_v29 = vld [vmem:[%s13624_s15 + $0x70] sm:$0xff] }
 0x1da   : > { %v1211_v34 = vshrl.u32 %v1100_v30, 16  ;;  %v1214_v35 = vshll.u32 %v1100_v30, 16  ;;  %v1219_v38 = vshrl.u32 %v1101_v32, 16  ;;  %v1222_v39 = vshll.u32 %v1101_v32, 16  ;;  %v2058_v41 = vpop.permute.xlu0 %2057 }
 0x1db   : > { %v14019_v48 = vsel %vm2308_vm15, %v2277_v33, %v2058_v41  ;;  %v850_v30 = vunpack.c.l.b16 %v722_v10  ;;  %v845_v33 = vunpack.c.l.b16 %v717_v12 }
 0x1dc   : > { %v1213_v42 = vrot.slane %v1211_v34, 7  ;;  %v1221_v46 = vrot.slane %v1219_v38, 7  ;;  %v14016_v47 = vpop.permute.xlu2 %2061  ;;  %2929 = vmatmul.bf16.vlgmr.msra.gmra.mxu0 %v14019_v48  ;;  %v846_v34 = vunpack.c.l.b16 %v718_v13 }
 0x1de   : > { %v1216_v50 = vor.u32 %v1214_v35, %v1213_v42  ;;  %v1217_v51 = vrot.slane %v1213_v42, 4  ;;  %v1224_v52 = vor.u32 %v1222_v39, %v1221_v46  ;;  %v1226_v53 = vrot.slane %v1221_v46, 4  ;;  %v688_v35 = vld [vmem:[%s13624_s15 + $0x78] sm:$0xff] }
 0x1df   : > { %v719_v42 = vpack.c.bf16 %v687_v29, %v687_v29 }
 0x1e0   : > { %v1225_v54 = vsel %vm13856_vm10, %v1217_v51, %v1224_v52  ;;  %v1488_v55 = vsel %vm13862_vm11, %v1216_v50, %v1487_v37  ;;  %v1492_v58 = vsel %vm13868_vm12, %v1226_v53, %v1491_v49  ;;  %v720_v37 = vpack.c.bf16 %v688_v35, %v688_v35 }
 0x1e1   : > { %1489 = vst [vmem:[#allocation2 + $0x48] sm:$0xf] %v1488_v55  ;;  %v873_v49 = vpack.c.b16 %v850_v30, %v849_v24  ;;  %v871_v51 = vpack.c.b16 %v846_v34, %v845_v33 }
 0x1e2   : > { %1490 = vst.msk [vmem:[#allocation2 + $0x4c] sm:$0xf] %vm1446_vm6, %v1225_v54  ;;  %v2023_v59 = vpop.permute.xlu0 %2022 }
 0x1e3   : > { %1493 = vst [vmem:[#allocation2 + $0x50] sm:$0x1] %v1492_v58  ;;  %v2060_v62 = vpop.permute.xlu1 %2059  ;;  %v2279_v8 = vsel %vm2275_vm14, %v2246_v6, %v2023_v59  ;;  %v847_v59 = vunpack.c.l.b16 %v719_v42  ;;  %v1498_v42 = vld [vmem:[#allocation2 + $0x5c] sm:$0x1] }
 0x1e4   : > { %v14029_v61 = vpop.permute.xlu2 %2026  ;;  %v14047_v23 = vsel %vm2308_vm15, %v2279_v8, %v2060_v62  ;;  %v848_v62 = vunpack.c.l.b16 %v720_v37 }
 0x1e9   : > { %v14038_v9 = vld [vmem:[#allocation2 + $0x48] sm:$0xff] }
 0x1ea   : > { %v1584_v11 = vld [vmem:[#allocation2 + $0x50] sm:$0x1]  ;;  %2067 = vrot.lane.b32.xlu2 %v14038_v9, %s13407_s12  ;;  %v1820_v19 = vshrl.u32 %v14038_v9, 16  ;;  %v1822_v22 = vshll.u32 %v14038_v9, 16  ;;  %v1990_v32 = vrot.slane %v14038_v9, 1 }
 0x1eb   : > { %v1720_v17 = vunpack.c.l.b16 %v1584_v11  ;;  %v2025_v18 = vpop.permute.xlu1 %2024 }
 0x1ec   : > { %v14044_v40 = vpop.permute.xlu2 %1947  ;;  %2934 = vmatmul.bf16.gmra.mxu0 %v14047_v23  ;;  %v1824_v28 = vrot.slane %v1822_v22, 1 }
 0x1ed   : > { %v1944_v26 = vpop.permute.xlu0 %1943  ;;  %v1736_v27 = vpack.c.b16 %v1720_v17, %v1720_v17  ;;  %v872_v17 = vpack.c.b16 %v848_v62, %v847_v59 }
 0x1ee   : > { %v1825_v38 = vor.u32 %v1824_v28, %v1820_v19  ;;  %v2248_v55 = vsel %vm2242_vm13, %v13914_v15, %v1944_v26 }
 0x1ef   : > { %v1827_v39 = vshll.u32 %v1736_v27, 16  ;;  %v1991_v41 = vrot.slane %v1736_v27, 1  ;;  %v2281_v8 = vsel %vm2275_vm14, %v2248_v55, %v2025_v18  ;;  %v1494_v18 = vld [vmem:[#allocation2 + $0x54] sm:$0xf] }
 0x1f0   : > { %v14072_v27 = vsel %vm2308_vm15, %v2281_v8, %v14016_v47  ;;  %v1508_v47 = vld [vmem:[#allocation2 + $0x6c] sm:$0xf]  ;;  %v1512_v8 = vld [vmem:[#allocation2 + $0x74] sm:$0x1] }
 0x1f1   : > { %v1829_v46 = vrot.slane %v1827_v39, 1  ;;  %v14054_v50 = vsel %vm1971_vm3, %v1990_v32, %v1991_v41 }
 0x1f2   : > { %2032 = vrot.lane.b32.xlu2 %v14054_v50, %s13406_s27 }
 0x1f3   : > { %v14057_v52 = vsel %vm1746_vm2, %v1825_v38, %v1829_v46  ;;  %v14063_v53 = vpop.permute.xlu1 %1945 }
 0x1f4   : > { %1951 = vrot.lane.b32.xlu1 %v14057_v52, %s13405_s19  ;;  %v978_v54 = vpop.permute.xlu2 %977 }
 0x1f5   : > { %v974_v58 = vpop.permute.xlu0 %973  ;;  %v1020_v0 = vsel %vm993_vm4, %v873_v49, %v978_v54 }
 0x1f6   : > { %v1014_v1 = vsel %vm993_vm4, %v871_v51, %v974_v58  ;;  %v1074_v2 = vunpack.c.l.b16 %v1020_v0  ;;  %v1075_v4 = vunpack.c.h.b16 %v1020_v0 }
 0x1f7   : > { %v1070_v6 = vunpack.c.l.b16 %v1014_v1  ;;  %v1071_v7 = vunpack.c.h.b16 %v1014_v1 }
 0x1f8   : > { %v1106_v10 = vpack.c.b16 %v1074_v2, %v1074_v2  ;;  %v1107_v11 = vpack.c.b16 %v1075_v4, %v1075_v4 }
 0x1f9   : > { %v1102_v12 = vpack.c.b16 %v1070_v6, %v1070_v6  ;;  %v1103_v13 = vpack.c.b16 %v1071_v7, %v1071_v7 }
 0x1fa   : > { %v1262_v19 = vshrl.u32 %v1106_v10, 16  ;;  %v1265_v15 = vshll.u32 %v1106_v10, 16  ;;  %v1270_v22 = vshrl.u32 %v1107_v11, 16  ;;  %v1273_v33 = vshll.u32 %v1107_v11, 16 }
 0x1fb   : > { %v1228_v24 = vshrl.u32 %v1102_v12, 16  ;;  %v1236_v26 = vshrl.u32 %v1103_v13, 16  ;;  %v1231_v28 = vshll.u32 %v1102_v12, 16  ;;  %v976_v29 = vpop.permute.xlu1 %975  ;;  %v1239_v38 = vshll.u32 %v1103_v13, 16 }
 0x1fc   : > { %v1264_v30 = vrot.slane %v1262_v19, 7  ;;  %v1272_v32 = vrot.slane %v1270_v22, 7  ;;  %v1017_v39 = vsel %vm993_vm4, %v872_v17, %v976_v29  ;;  %2939 = vmatmul.bf16.gmra.mxu0 %v14072_v27  ;;  %v1501_v29 = vld [vmem:[#allocation2 + $0x60] sm:$0xf] }
 0x1fd   : > { %v1230_v34 = vrot.slane %v1228_v24, 7  ;;  %v1238_v35 = vrot.slane %v1236_v26, 7  ;;  %v14075_v41 = vpop.permute.xlu0 %2063  ;;  %v1072_v46 = vunpack.c.l.b16 %v1017_v39  ;;  %v1073_v37 = vunpack.c.h.b16 %v1017_v39  ;;  %v757_v26 = vld [vmem:[%s13631_s20 + $0xa0] sm:$0xff] }
 0x1fe   : > { %v1267_v49 = vor.u32 %v1265_v15, %v1264_v30  ;;  %v1268_v51 = vrot.slane %v1264_v30, 4  ;;  %v1275_v1 = vor.u32 %v1273_v33, %v1272_v32  ;;  %v1277_v2 = vrot.slane %v1272_v32, 4  ;;  %v1505_v30 = vld [vmem:[#allocation2 + $0x68] sm:$0x1] }
 0x1ff   : > { %v1233_v54 = vor.u32 %v1231_v28, %v1230_v34  ;;  %v1234_v55 = vrot.slane %v1230_v34, 4  ;;  %v1241_v58 = vor.u32 %v1239_v38, %v1238_v35  ;;  %v1243_v59 = vrot.slane %v1238_v35, 4  ;;  %v758_v28 = vld [vmem:[%s13631_s20 + $0xa8] sm:$0xff]  ;;  %v691_v38 = vld [vmem:[%s13624_s15 + $0x90] sm:$0xff] }
 0x200   : > { %v1104_v62 = vpack.c.b16 %v1072_v46, %v1072_v46  ;;  %v1105_v0 = vpack.c.b16 %v1073_v37, %v1073_v37  ;;  %v1509_v10 = vsel %vm13862_vm11, %v1267_v49, %v1508_v47  ;;  %v1276_v19 = vsel %vm13856_vm10, %v1268_v51, %v1275_v1  ;;  %v692_v46 = vld [vmem:[%s13624_s15 + $0x98] sm:$0xff] }
 0x201   : > { %v1242_v4 = vsel %vm13856_vm10, %v1234_v55, %v1241_v58  ;;  %v1495_v6 = vsel %vm13862_vm11, %v1233_v54, %v1494_v18  ;;  %v1499_v7 = vsel %vm13868_vm12, %v1243_v59, %v1498_v42  ;;  %v1513_v24 = vsel %vm13868_vm12, %v1277_v2, %v1512_v8  ;;  %1510 = vst [vmem:[#allocation2 + $0x6c] sm:$0xf] %v1509_v10 }
 0x202   : > { %1496 = vst [vmem:[#allocation2 + $0x54] sm:$0xf] %v1495_v6  ;;  %v1245_v11 = vshrl.u32 %v1104_v62, 16  ;;  %v1248_v12 = vshll.u32 %v1104_v62, 16  ;;  %v1253_v13 = vshrl.u32 %v1105_v0, 16  ;;  %v1256_v17 = vshll.u32 %v1105_v0, 16 }
 0x203   : > { %1497 = vst.msk [vmem:[#allocation2 + $0x58] sm:$0xf] %vm1446_vm6, %v1242_v4  ;;  %v789_v39 = vpack.c.bf16 %v757_v26, %v757_v26  ;;  %v790_v42 = vpack.c.bf16 %v758_v28, %v758_v28  ;;  %v2250_v37 = vsel %vm2242_vm13, %v13912_v14, %v14063_v53  ;;  %v723_v54 = vpack.c.bf16 %v691_v38, %v691_v38 }
 0x204   : > { %1500 = vst [vmem:[#allocation2 + $0x5c] sm:$0x1] %v1499_v7  ;;  %v1247_v15 = vrot.slane %v1245_v11, 7  ;;  %v1255_v22 = vrot.slane %v1253_v13, 7  ;;  %v724_v58 = vpack.c.bf16 %v692_v46, %v692_v46  ;;  %v2283_v14 = vsel %vm2275_vm14, %v2250_v37, %v14029_v61 }
 0x205   : > { %v14093_v32 = vpop.permute.xlu0 %2028  ;;  %1511 = vst.msk [vmem:[#allocation2 + $0x70] sm:$0xf] %vm1446_vm6, %v1276_v19  ;;  %v933_v59 = vunpack.c.l.b16 %v789_v39  ;;  %v934_v62 = vunpack.c.l.b16 %v790_v42  ;;  %v14116_v0 = vsel %vm2308_vm15, %v2283_v14, %v14075_v41  ;;  %v851_v6 = vunpack.c.l.b16 %v723_v54 }
 0x206   : > { %v1250_v33 = vor.u32 %v1248_v12, %v1247_v15  ;;  %v1251_v18 = vrot.slane %v1247_v15, 4  ;;  %v1258_v34 = vor.u32 %v1256_v17, %v1255_v22  ;;  %v1260_v35 = vrot.slane %v1255_v22, 4  ;;  %1514 = vst [vmem:[#allocation2 + $0x74] sm:$0x1] %v1513_v24 }
 0x207   : > { %18752 = vst [vmem:[#allocation28_spill] sm:$0xff] %v14116_v0  ;;  %v852_v10 = vunpack.c.l.b16 %v724_v58  ;;  %v955_v12 = vpack.c.b16 %v934_v62, %v933_v59  ;;  %v2252_v46 = vsel %vm2242_vm13, %v13958_v5, %v14044_v40 }
 0x208   : > { %v1259_v47 = vsel %vm13856_vm10, %v1251_v18, %v1258_v34  ;;  %v1502_v49 = vsel %vm13862_vm11, %v1250_v33, %v1501_v29  ;;  %v1506_v51 = vsel %vm13868_vm12, %v1260_v35, %v1505_v30  ;;  %v759_v34 = vld [vmem:[%s13631_s20 + $0xb0] sm:$0xff]  ;;  %v760_v35 = vld [vmem:[%s13631_s20 + $0xb8] sm:$0xff]  ;;  %v2285_v59 = vsel %vm2275_vm14, %v2252_v46, %v14093_v32 }
 0x209   : > { %1503 = vst [vmem:[#allocation2 + $0x60] sm:$0xf] %v1502_v49  ;;  %v874_v29 = vpack.c.b16 %v852_v10, %v851_v6  ;;  %v791_v14 = vpack.c.bf16 %v759_v34, %v759_v34 }
 0x20a   : > { %1504 = vst.msk [vmem:[#allocation2 + $0x64] sm:$0xf] %vm1446_vm6, %v1259_v47  ;;  %v14108_v55 = vld [vmem:[#allocation2 + $0x54] sm:$0xff] }
 0x20b   : > { %1507 = vst [vmem:[#allocation2 + $0x68] sm:$0x1] %v1506_v51  ;;  %v1587_v53 = vld [vmem:[#allocation2 + $0x5c] sm:$0x1]  ;;  %2069 = vrot.lane.b32.xlu0 %v14108_v55, %s13407_s12  ;;  %v1834_v2 = vshll.u32 %v14108_v55, 16  ;;  %v1832_v61 = vshrl.u32 %v14108_v55, 16 }
 0x20c   : > { %v1721_v1 = vunpack.c.l.b16 %v1587_v53  ;;  %2944 = vmatmul.bf16.gmra.mxu0 %v14116_v0  ;;  %v1993_v41 = vrot.slane %v14108_v55, 1  ;;  %v14124_v15 = vld [vmem:[#allocation2 + $0x6c] sm:$0xff]  ;;  %v792_v53 = vpack.c.bf16 %v760_v35, %v760_v35 }
 0x20d   : > { %v14119_v4 = vpop.permute.xlu0 %1949  ;;  %v1836_v8 = vrot.slane %v1834_v2, 1  ;;  %v1593_v11 = vld [vmem:[#allocation2 + $0x74] sm:$0x1]  ;;  %v1858_v42 = vshll.u32 %v14124_v15, 16  ;;  %v1856_v6 = vshrl.u32 %v14124_v15, 16 }
 0x20e   : > { %v1737_v7 = vpack.c.b16 %v1721_v1, %v1721_v1  ;;  %v1723_v24 = vunpack.c.l.b16 %v1593_v11 }
 0x20f   : > { %v1837_v17 = vor.u32 %v1836_v8, %v1832_v61  ;;  %v2066_v61 = vpop.permute.xlu1 %2065 }
 0x210   : > { %v1994_v13 = vrot.slane %v1737_v7, 1  ;;  %v1839_v19 = vshll.u32 %v1737_v7, 16  ;;  %v1739_v51 = vpack.c.b16 %v1723_v24, %v1723_v24  ;;  %v1860_v7 = vrot.slane %v1858_v42, 1  ;;  %v1519_v42 = vld [vmem:[#allocation2 + $0x80] sm:$0x1] }
 0x211   : > { %v14126_v22 = vld [vmem:[#allocation2 + $0x60] sm:$0xff] }
 0x212   : > { %v14129_v26 = vsel %vm1971_vm3, %v1993_v41, %v1994_v13  ;;  %v1841_v28 = vrot.slane %v1839_v19, 1  ;;  %v1590_v30 = vld [vmem:[#allocation2 + $0x68] sm:$0x1]  ;;  %v1846_v18 = vshll.u32 %v14126_v22, 16  ;;  %v1844_v39 = vshrl.u32 %v14126_v22, 16 }
 0x213   : > { %2034 = vrot.lane.b32.xlu2 %v14129_v26, %s13406_s27  ;;  %v1722_v33 = vunpack.c.l.b16 %v1590_v30  ;;  %981 = vrot.lane.b32.xlu0 %v955_v12, %s13404_s30  ;;  %v1996_v58 = vrot.slane %v14126_v22, 1  ;;  %v1863_v12 = vshll.u32 %v1739_v51, 16  ;;  %v936_v30 = vunpack.c.l.b16 %v792_v53 }
 0x214   : > { %v14137_v38 = vsel %vm1746_vm2, %v1837_v17, %v1841_v28  ;;  %v1848_v49 = vrot.slane %v1846_v18, 1  ;;  %v14161_v28 = vsel %vm2308_vm15, %v2285_v59, %v2066_v61  ;;  %v1861_v34 = vor.u32 %v1860_v7, %v1856_v6 }
 0x215   : > { %1953 = vrot.lane.b32.xlu1 %v14137_v38, %s13405_s19  ;;  %v980_v37 = vpop.permute.xlu0 %979  ;;  %v1738_v47 = vpack.c.b16 %v1722_v33, %v1722_v33  ;;  %18753 = vst [vmem:[#allocation29_spill] sm:$0xff] %v14161_v28  ;;  %v1865_v35 = vrot.slane %v1863_v12, 1  ;;  %v762_v12 = vld [vmem:[%s13631_s20 + $0xc8] sm:$0xff] }
 0x216   : > { %v1023_v54 = vsel %vm993_vm4, %v874_v29, %v980_v37  ;;  %v1849_v5 = vor.u32 %v1848_v49, %v1844_v39  ;;  %v935_v29 = vunpack.c.l.b16 %v791_v14  ;;  %v1515_v39 = vld [vmem:[#allocation2 + $0x78] sm:$0xf] }
 0x217   : > { %v1076_v62 = vunpack.c.l.b16 %v1023_v54  ;;  %v1077_v1 = vunpack.c.h.b16 %v1023_v54  ;;  %v1851_v2 = vshll.u32 %v1738_v47, 16  ;;  %v1997_v40 = vrot.slane %v1738_v47, 1 }
 0x218   : > { %v956_v54 = vpack.c.b16 %v936_v30, %v935_v29  ;;  %v14175_v59 = vsel %vm1746_vm2, %v1861_v34, %v1865_v35  ;;  %v794_v29 = vpack.c.bf16 %v762_v12, %v762_v12 }
 0x219   : > { %v1108_v8 = vpack.c.b16 %v1076_v62, %v1076_v62  ;;  %v1109_v10 = vpack.c.b16 %v1077_v1, %v1077_v1  ;;  %v1853_v11 = vrot.slane %v1851_v2, 1  ;;  %v14153_v41 = vsel %vm1971_vm3, %v1996_v58, %v1997_v40 }
 0x21a   : > { %v1999_v62 = vrot.slane %v14124_v15, 1  ;;  %v2000_v1 = vrot.slane %v1739_v51, 1  ;;  %v938_v35 = vunpack.c.l.b16 %v794_v29 }
 0x21b   : > { %v1279_v13 = vshrl.u32 %v1108_v8, 16  ;;  %v1282_v17 = vshll.u32 %v1108_v8, 16  ;;  %v1287_v19 = vshrl.u32 %v1109_v10, 16  ;;  %v1290_v32 = vshll.u32 %v1109_v10, 16  ;;  %2036 = vrot.lane.b32.xlu0 %v14153_v41, %s13406_s27 }
 0x21c   : > { %v14156_v24 = vsel %vm1746_vm2, %v1849_v5, %v1853_v11  ;;  %2949 = vmatmul.bf16.gmra.mxu0 %v14161_v28  ;;  %v14185_v2 = vsel %vm1971_vm3, %v1999_v62, %v2000_v1  ;;  %v761_v11 = vld [vmem:[%s13631_s20 + $0xc0] sm:$0xff] }
 0x21d   : > { %v1281_v33 = vrot.slane %v1279_v13, 7  ;;  %v1289_v18 = vrot.slane %v1287_v19, 7  ;;  %1955 = vrot.lane.b32.xlu2 %v14156_v24, %s13405_s19  ;;  %2071 = vrot.lane.b32.xlu1 %v14126_v22, %s13407_s12 }
 0x21f   : > { %v1284_v46 = vor.u32 %v1282_v17, %v1281_v33  ;;  %v1285_v37 = vrot.slane %v1281_v33, 4  ;;  %v1292_v47 = vor.u32 %v1290_v32, %v1289_v18  ;;  %v1294_v49 = vrot.slane %v1289_v18, 4 }
 0x220   : > { %v793_v32 = vpack.c.bf16 %v761_v11, %v761_v11 }
 0x221   : > { %v1293_v58 = vsel %vm13856_vm10, %v1285_v37, %v1292_v47  ;;  %v1516_v14 = vsel %vm13862_vm11, %v1284_v46, %v1515_v39  ;;  %v1520_v53 = vsel %vm13868_vm12, %v1294_v49, %v1519_v42  ;;  %v2254_v42 = vsel %vm2242_vm13, %v13971_v25, %v14119_v4  ;;  %v2031_v46 = vpop.permute.xlu1 %2030 }
 0x222   : > { %1517 = vst [vmem:[#allocation2 + $0x78] sm:$0xf] %v1516_v14  ;;  %v937_v34 = vunpack.c.l.b16 %v793_v32  ;;  %v2287_v37 = vsel %vm2275_vm14, %v2254_v42, %v2031_v46  ;;  %v694_v14 = vld [vmem:[%s13624_s15 + $0xa8] sm:$0xff]  ;;  %v696_v32 = vld [vmem:[%s13624_s15 + $0xb8] sm:$0xff] }
 0x223   : > { %1518 = vst.msk [vmem:[#allocation2 + $0x7c] sm:$0xf] %vm1446_vm6, %v1293_v58  ;;  %1957 = vrot.lane.b32.xlu0 %v14175_v59, %s13405_s19  ;;  %v693_v58 = vld [vmem:[%s13624_s15 + $0xa0] sm:$0xff]  ;;  %v726_v1 = vpack.c.bf16 %v694_v14, %v694_v14 }
 0x224   : > { %1521 = vst [vmem:[#allocation2 + $0x80] sm:$0x1] %v1520_v53  ;;  %v957_v39 = vpack.c.b16 %v938_v35, %v937_v34  ;;  %v725_v62 = vpack.c.bf16 %v693_v58, %v693_v58 }
 0x225   : > { %983 = vrot.lane.b32.xlu1 %v956_v54, %s13404_s30  ;;  %2073 = vrot.lane.b32.xlu2 %v14124_v15, %s13407_s12 }
 0x22a   : > { %v14187_v5 = vld [vmem:[#allocation2 + $0x78] sm:$0xff] }
 0x22b   : > { %v1596_v40 = vld [vmem:[#allocation2 + $0x80] sm:$0x1]  ;;  %v1868_v7 = vshrl.u32 %v14187_v5, 16  ;;  %v1870_v61 = vshll.u32 %v14187_v5, 16  ;;  %v2002_v51 = vrot.slane %v14187_v5, 1 }
 0x22c   : > { %v1724_v6 = vunpack.c.l.b16 %v1596_v40 }
 0x22d   : > { %2038 = vrot.lane.b32.xlu1 %v14185_v2, %s13406_s27  ;;  %2075 = vrot.lane.b32.xlu2 %v14187_v5, %s13407_s12  ;;  %v1872_v10 = vrot.slane %v1870_v61, 1  ;;  %v854_v61 = vunpack.c.l.b16 %v726_v1  ;;  %v1526_v1 = vld [vmem:[#allocation2 + $0x8c] sm:$0x1] }
 0x22e   : > { %v1740_v8 = vpack.c.b16 %v1724_v6, %v1724_v6 }
 0x22f   : > { %v1873_v13 = vor.u32 %v1872_v10, %v1868_v7  ;;  %v853_v7 = vunpack.c.l.b16 %v725_v62  ;;  %v1522_v62 = vld [vmem:[#allocation2 + $0x84] sm:$0xf] }
 0x230   : > { %v1875_v17 = vshll.u32 %v1740_v8, 16  ;;  %v2003_v19 = vrot.slane %v1740_v8, 1 }
 0x231   : > { %v875_v8 = vpack.c.b16 %v854_v61, %v853_v7  ;;  %v12533_v61 = vld [vmem:[#allocation10 + $0x80] sm:$0xff] }
 0x232   : > { %v1877_v30 = vrot.slane %v1875_v17, 1  ;;  %v14199_v33 = vsel %vm1971_vm3, %v2002_v51, %v2003_v19  ;;  %v12534_v51 = vld [vmem:[#allocation10 + $0x88] sm:$0xff]  ;;  %v695_v19 = vld [vmem:[%s13624_s15 + $0xb0] sm:$0xff] }
 0x233   : > { %3105 = vmatpush.bf16.msrb.mxu0 %v12534_v51  ;;  %12935 = vmatpush.bf16.msra.mxu2 %v12534_v51  ;;  %v727_v35 = vpack.c.bf16 %v695_v19, %v695_v19 }
 0x234   : > { %v14202_v18 = vsel %vm1746_vm2, %v1873_v13, %v1877_v30 }
 0x235   : > { %1959 = vrot.lane.b32.xlu0 %v14202_v18, %s13405_s19  ;;  %2040 = vrot.lane.b32.xlu1 %v14199_v33, %s13406_s27 }
 0x237   : > { %12936 = vmatpush.bf16.msra.mxu2 %v12533_v61  ;;  %3106 = vmatpush.bf16.msrb.mxu0 %v12533_v61 }
 0x23d   : > { %985 = vrot.lane.b32.xlu0 %v957_v39, %s13404_s30  ;;  %v728_v39 = vpack.c.bf16 %v696_v32, %v696_v32 }
 0x23f   : > { %v856_v7 = vunpack.c.l.b16 %v728_v39 }
 0x244   : > { %v2068_v47 = vpop.permute.xlu2 %2067 }
 0x245   : > { %v14214_v49 = vsel %vm2308_vm15, %v2287_v37, %v2068_v47 }
 0x246   : > { %18754 = vst [vmem:[#allocation30_spill] sm:$0xff] %v14214_v49  ;;  %2954 = vmatmul.bf16.gmra.mxu0 %v14214_v49 }
 0x24c   : > { %v2033_v25 = vpop.permute.xlu2 %2032 }
 0x259   : > { %v14229_v29 = vpop.f32.mrf.mxu0 }
 0x261   : > { %v14244_v19 = vpop.f32.mrf.mxu0 }
 0x262   : > { %18757 = vst [vmem:[#allocation33_spill] sm:$0xff] %v14244_v19 }
 0x266   : > { %v1952_v54 = vpop.permute.xlu1 %1951 }
 0x267   : > { %v2256_v53 = vsel %vm2242_vm13, %v14038_v9, %v1952_v54 }
 0x268   : > { %v2289_v40 = vsel %vm2275_vm14, %v2256_v53, %v2033_v25 }
 0x26d   : > { %v2035_v47 = vpop.permute.xlu2 %2034 }
 0x27d   : > { %v2070_v4 = vpop.permute.xlu0 %2069 }
 0x27e   : > { %v14223_v6 = vsel %vm2308_vm15, %v2289_v40, %v2070_v4  ;;  %v855_v40 = vunpack.c.l.b16 %v727_v35 }
 0x27f   : > { %18755 = vst [vmem:[#allocation31_spill] sm:$0xff] %v14223_v6  ;;  %2959 = vmatmul.bf16.gmra.mxu0 %v14223_v6 }
 0x280   : > { %v876_v32 = vpack.c.b16 %v856_v7, %v855_v40 }
 0x285   : > { %v982_v10 = vpop.permute.xlu0 %981 }
 0x286   : > { %v1026_v12 = vsel %vm993_vm4, %v875_v8, %v982_v10 }
 0x287   : > { %v1954_v11 = vpop.permute.xlu1 %1953  ;;  %v1078_v13 = vunpack.c.l.b16 %v1026_v12  ;;  %v1079_v17 = vunpack.c.h.b16 %v1026_v12 }
 0x288   : > { %v2258_v42 = vsel %vm2242_vm13, %v14108_v55, %v1954_v11 }
 0x289   : > { %v1110_v30 = vpack.c.b16 %v1078_v13, %v1078_v13  ;;  %v1111_v34 = vpack.c.b16 %v1079_v17, %v1079_v17  ;;  %v2291_v4 = vsel %vm2275_vm14, %v2258_v42, %v2035_v47 }
 0x28b   : > { %v1296_v46 = vshrl.u32 %v1110_v30, 16  ;;  %v1304_v37 = vshrl.u32 %v1111_v34, 16  ;;  %v1299_v58 = vshll.u32 %v1110_v30, 16  ;;  %v1307_v53 = vshll.u32 %v1111_v34, 16  ;;  %v1956_v30 = vpop.permute.xlu2 %1955 }
 0x28d   : > { %v1298_v54 = vrot.slane %v1296_v46, 7  ;;  %v1306_v14 = vrot.slane %v1304_v37, 7  ;;  %v2037_v34 = vpop.permute.xlu0 %2036  ;;  %v2260_v37 = vsel %vm2242_vm13, %v14126_v22, %v1956_v30 }
 0x28f   : > { %v2072_v25 = vpop.permute.xlu1 %2071  ;;  %v1301_v8 = vor.u32 %v1299_v58, %v1298_v54  ;;  %v1302_v10 = vrot.slane %v1298_v54, 4  ;;  %v1309_v51 = vor.u32 %v1307_v53, %v1306_v14  ;;  %v1311_v12 = vrot.slane %v1306_v14, 4 }
 0x290   : > { %v14235_v55 = vsel %vm2308_vm15, %v2291_v4, %v2072_v25  ;;  %v2293_v14 = vsel %vm2275_vm14, %v2260_v37, %v2037_v34 }
 0x291   : > { %18756 = vst [vmem:[#allocation32_spill] sm:$0xff] %v14235_v55  ;;  %v1310_v11 = vsel %vm13856_vm10, %v1302_v10, %v1309_v51  ;;  %v1523_v13 = vsel %vm13862_vm11, %v1301_v8, %v1522_v62  ;;  %v1527_v17 = vsel %vm13868_vm12, %v1311_v12, %v1526_v1  ;;  %2964 = vmatmul.bf16.gmra.mxu0 %v14235_v55  ;;  %v763_v62 = vld [vmem:[%s13631_s20 + $0xd0] sm:$0xff]  ;;  %v14254_v1 = vpop.f32.mrf.mxu0  ;;  %v1529_v10 = vld [vmem:[#allocation2 + $0x90] sm:$0xf] }
 0x292   : > { %1524 = vst [vmem:[#allocation2 + $0x84] sm:$0xf] %v1523_v13  ;;  %v795_v13 = vpack.c.bf16 %v763_v62, %v763_v62 }
 0x293   : > { %1525 = vst.msk [vmem:[#allocation2 + $0x88] sm:$0xf] %vm1446_vm6, %v1310_v11  ;;  %v2074_v25 = vpop.permute.xlu2 %2073 }
 0x294   : > { %1528 = vst [vmem:[#allocation2 + $0x8c] sm:$0x1] %v1527_v17  ;;  %v1533_v17 = vld [vmem:[#allocation2 + $0x98] sm:$0x1] }
 0x295   : > { %v1958_v11 = vpop.permute.xlu0 %1957 }
 0x297   : > { %v984_v35 = vpop.permute.xlu1 %983 }
 0x298   : > { %v1029_v39 = vsel %vm993_vm4, %v876_v32, %v984_v35  ;;  %v14260_v32 = vsel %vm2308_vm15, %v2293_v14, %v2074_v25 }
 0x299   : > { %v1080_v42 = vunpack.c.l.b16 %v1029_v39  ;;  %v1081_v46 = vunpack.c.h.b16 %v1029_v39  ;;  %18758 = vst [vmem:[#allocation34_spill] sm:$0xff] %v14260_v32  ;;  %v764_v39 = vld [vmem:[%s13631_s20 + $0xd8] sm:$0xff] }
 0x29a   : > { %v14250_v58 = vld [vmem:[#allocation2 + $0x84] sm:$0xff] }
 0x29b   : > { %v1112_v47 = vpack.c.b16 %v1080_v42, %v1080_v42  ;;  %v1113_v54 = vpack.c.b16 %v1081_v46, %v1081_v46  ;;  %v1599_v53 = vld [vmem:[#allocation2 + $0x8c] sm:$0x1]  ;;  %2077 = vrot.lane.b32.xlu2 %v14250_v58, %s13407_s12  ;;  %v1882_v8 = vshll.u32 %v14250_v58, 16  ;;  %v1880_v34 = vshrl.u32 %v14250_v58, 16 }
 0x29c   : > { %v1725_v22 = vunpack.c.l.b16 %v1599_v53  ;;  %v698_v53 = vld [vmem:[%s13624_s15 + $0xc8] sm:$0xff]  ;;  %v2005_v62 = vrot.slane %v14250_v58, 1 }
 0x29d   : > { %v1313_v4 = vshrl.u32 %v1112_v47, 16  ;;  %v1316_v40 = vshll.u32 %v1112_v47, 16  ;;  %v1321_v7 = vshrl.u32 %v1113_v54, 16  ;;  %v1324_v61 = vshll.u32 %v1113_v54, 16  ;;  %v697_v54 = vld [vmem:[%s13624_s15 + $0xc0] sm:$0xff] }
 0x29e   : > { %v1741_v30 = vpack.c.b16 %v1725_v22, %v1725_v22  ;;  %v1884_v35 = vrot.slane %v1882_v8, 1  ;;  %v796_v22 = vpack.c.bf16 %v764_v39, %v764_v39 }
 0x29f   : > { %v1315_v51 = vrot.slane %v1313_v4, 7  ;;  %v1323_v12 = vrot.slane %v1321_v7, 7 }
 0x2a0   : > { %v1885_v4 = vor.u32 %v1884_v35, %v1880_v34  ;;  %v1887_v7 = vshll.u32 %v1741_v30, 16  ;;  %v2006_v14 = vrot.slane %v1741_v30, 1  ;;  %v730_v34 = vpack.c.bf16 %v698_v53, %v698_v53  ;;  %v766_v35 = vld [vmem:[%s13631_s20 + $0xe8] sm:$0xff] }
 0x2a1   : > { %v1318_v42 = vor.u32 %v1316_v40, %v1315_v51  ;;  %v1319_v46 = vrot.slane %v1315_v51, 4  ;;  %v1326_v37 = vor.u32 %v1324_v61, %v1323_v12  ;;  %v1328_v47 = vrot.slane %v1323_v12, 4  ;;  %2969 = vmatmul.bf16.gmra.mxu0 %v14260_v32 }
 0x2a2   : > { %v1889_v8 = vrot.slane %v1887_v7, 1  ;;  %v14275_v51 = vsel %vm1971_vm3, %v2005_v62, %v2006_v14  ;;  %v729_v12 = vpack.c.bf16 %v697_v54, %v697_v54  ;;  %v798_v53 = vpack.c.bf16 %v766_v35, %v766_v35  ;;  %v2039_v7 = vpop.permute.xlu1 %2038 }
 0x2a3   : > { %v1327_v25 = vsel %vm13856_vm10, %v1319_v46, %v1326_v37  ;;  %v1530_v40 = vsel %vm13862_vm11, %v1318_v42, %v1529_v10  ;;  %v1534_v61 = vsel %vm13868_vm12, %v1328_v47, %v1533_v17  ;;  %2042 = vrot.lane.b32.xlu2 %v14275_v51, %s13406_s27  ;;  %v765_v10 = vld [vmem:[%s13631_s20 + $0xe0] sm:$0xff]  ;;  %v14285_v17 = vpop.f32.mrf.mxu0  ;;  %v939_v42 = vunpack.c.l.b16 %v795_v13 }
 0x2a4   : > { %1531 = vst [vmem:[#allocation2 + $0x90] sm:$0xf] %v1530_v40  ;;  %v14281_v30 = vsel %vm1746_vm2, %v1885_v4, %v1889_v8  ;;  %v940_v46 = vunpack.c.l.b16 %v796_v22  ;;  %v857_v37 = vunpack.c.l.b16 %v729_v12  ;;  %v858_v47 = vunpack.c.l.b16 %v730_v34  ;;  %v2076_v22 = vpop.permute.xlu2 %2075 }
 0x2a5   : > { %1532 = vst.msk [vmem:[#allocation2 + $0x94] sm:$0xf] %vm1446_vm6, %v1327_v25  ;;  %1961 = vrot.lane.b32.xlu1 %v14281_v30, %s13405_s19  ;;  %v797_v54 = vpack.c.bf16 %v765_v10, %v765_v10  ;;  %v2262_v25 = vsel %vm2242_vm13, %v14124_v15, %v1958_v11  ;;  %v942_v8 = vunpack.c.l.b16 %v798_v53 }
 0x2a6   : > { %1535 = vst [vmem:[#allocation2 + $0x98] sm:$0x1] %v1534_v61  ;;  %v958_v62 = vpack.c.b16 %v940_v46, %v939_v42  ;;  %v877_v4 = vpack.c.b16 %v858_v47, %v857_v37  ;;  %v2295_v13 = vsel %vm2275_vm14, %v2262_v25, %v2039_v7 }
 0x2a7   : > { %18759 = vst [vmem:[#allocation35_spill] sm:$0xff] %v14285_v17  ;;  %v14289_v39 = vpop.permute.xlu0 %1959  ;;  %v941_v61 = vunpack.c.l.b16 %v797_v54  ;;  %v14308_v35 = vsel %vm2308_vm15, %v2295_v13, %v2076_v22  ;;  %v767_v22 = vld [vmem:[%s13631_s20 + $0xf0] sm:$0xff] }
 0x2a8   : > { %18760 = vst [vmem:[#allocation36_spill] sm:$0xff] %v14308_v35 }
 0x2a9   : > { %v959_v42 = vpack.c.b16 %v942_v8, %v941_v61  ;;  %v13054_v61 = vld [vmem:[#allocation2 + $0x18] sm:$0xff] }
 0x2ab   : > { %2107 = vrot.lane.b32.xlu2 %v13917_v16, %s13405_s19  ;;  %v14305_v16 = vpop.f32.mrf.mxu0 }
 0x2ac   : > { %v14291_v14 = vld [vmem:[#allocation2 + $0x90] sm:$0xff] }
 0x2ad   : > { %v1602_v40 = vld [vmem:[#allocation2 + $0x98] sm:$0x1]  ;;  %2079 = vrot.lane.b32.xlu0 %v14291_v14, %s13407_s12  ;;  %987 = vrot.lane.b32.xlu1 %v958_v62, %s13404_s30  ;;  %v2008_v15 = vrot.slane %v14291_v14, 1 }
 0x2ae   : > { %v1726_v12 = vunpack.c.l.b16 %v1602_v40 }
 0x2af   : > { %v986_v34 = vpop.permute.xlu0 %985 }
 0x2b0   : > { %v14301_v10 = vpack.c.b16 %v1726_v12, %v1726_v12  ;;  %v1032_v11 = vsel %vm993_vm4, %v877_v4, %v986_v34  ;;  %v768_v12 = vld [vmem:[%s13631_s20 + $0xf8] sm:$0xff]  ;;  %v1536_v34 = vld [vmem:[#allocation2 + $0x9c] sm:$0xf] }
 0x2b1   : > { %v1082_v46 = vunpack.c.l.b16 %v1032_v11  ;;  %v1083_v37 = vunpack.c.h.b16 %v1032_v11  ;;  %2974 = vmatmul.bf16.gmra.mxu0 %v14308_v35 }
 0x2b2   : > { %v2009_v47 = vrot.slane %v14301_v10, 1 }
 0x2b3   : > { %v1114_v54 = vpack.c.b16 %v1082_v46, %v1082_v46  ;;  %v1115_v53 = vpack.c.b16 %v1083_v37, %v1083_v37  ;;  %989 = vrot.lane.b32.xlu2 %v959_v42, %s13404_s30  ;;  %v14323_v17 = vpop.f32.mrf.mxu0 }
 0x2b4   : > { %v14313_v7 = vsel %vm1971_vm3, %v2008_v15, %v2009_v47  ;;  %v1540_v15 = vld [vmem:[#allocation2 + $0xa4] sm:$0x1]  ;;  %v799_v47 = vpack.c.bf16 %v767_v22, %v767_v22  ;;  %18761 = vst [vmem:[#allocation37_spill] sm:$0xff] %v14323_v17  ;;  %v12526_v17 = vld [vmem:[#allocation10 + $0x48] sm:$0xff] }
 0x2b5   : > { %11318 = vmatmul.msk.bf16.vlgmr.msra.gmra.mxu2 %vm2242_vm13, %v14313_v7  ;;  %v1330_v62 = vshrl.u32 %v1114_v54, 16  ;;  %v1333_v4 = vshll.u32 %v1114_v54, 16  ;;  %v1338_v25 = vshrl.u32 %v1115_v53, 16  ;;  %v1341_v40 = vshll.u32 %v1115_v53, 16  ;;  %2144 = vrot.lane.b32.xlu0 %v13054_v61, %s13406_s27 }
 0x2b6   : > { %2191 = vrot.lane.b32.xlu1 %v13949_v57, %s13407_s12  ;;  %v800_v54 = vpack.c.bf16 %v768_v12, %v768_v12  ;;  %v13056_v12 = vld [vmem:[#allocation2 + $0x30] sm:$0xff] }
 0x2b7   : > { %v1332_v8 = vrot.slane %v1330_v62, 7  ;;  %v1340_v13 = vrot.slane %v1338_v25, 7 }
 0x2b8   : > { %v944_v25 = vunpack.c.l.b16 %v800_v54 }
 0x2b9   : > { %v1335_v11 = vor.u32 %v1333_v4, %v1332_v8  ;;  %v1336_v46 = vrot.slane %v1332_v8, 4  ;;  %v1343_v37 = vor.u32 %v1341_v40, %v1340_v13  ;;  %v1345_v42 = vrot.slane %v1340_v13, 4  ;;  %v13055_v40 = vld [vmem:[#allocation2 + $0x24] sm:$0xff] }
 0x2ba   : > { %v943_v4 = vunpack.c.l.b16 %v799_v47  ;;  %v1894_v13 = vshll.u32 %v14291_v14, 16 }
 0x2bb   : > { %v1344_v53 = vsel %vm13856_vm10, %v1336_v46, %v1343_v37  ;;  %v1537_v61 = vsel %vm13862_vm11, %v1335_v11, %v1536_v34  ;;  %v1541_v62 = vsel %vm13868_vm12, %v1345_v42, %v1540_v15  ;;  %2193 = vrot.lane.b32.xlu2 %v13956_v3, %s13407_s12  ;;  %v14340_v22 = vpop.f32.mrf.mxu0  ;;  %v1892_v15 = vshrl.u32 %v14291_v14, 16 }
 0x2bc   : > { %1538 = vst [vmem:[#allocation2 + $0x9c] sm:$0xf] %v1537_v61  ;;  %v960_v8 = vpack.c.b16 %v944_v25, %v943_v4  ;;  %v1896_v11 = vrot.slane %v1894_v13, 1  ;;  %v1899_v46 = vshll.u32 %v14301_v10, 16 }
 0x2bd   : > { %1539 = vst.msk [vmem:[#allocation2 + $0xa0] sm:$0xf] %vm1446_vm6, %v1344_v53  ;;  %2109 = vrot.lane.b32.xlu0 %v13943_v56, %s13405_s19 }
 0x2be   : > { %1542 = vst [vmem:[#allocation2 + $0xa4] sm:$0x1] %v1541_v62  ;;  %2146 = vrot.lane.b32.xlu1 %v13055_v40, %s13406_s27  ;;  %v1897_v53 = vor.u32 %v1896_v11, %v1892_v15  ;;  %v1901_v61 = vrot.slane %v1899_v46, 1 }
 0x2c0   : > { %v14359_v10 = vsel %vm1746_vm2, %v1897_v53, %v1901_v61  ;;  %v12532_v53 = vld [vmem:[#allocation10 + $0x78] sm:$0xff]  ;;  %v2264_v61 = vsel %vm2242_vm13, %v14187_v5, %v14289_v39  ;;  %v12529_v39 = vld [vmem:[#allocation10 + $0x60] sm:$0xff] }
 0x2c1   : > { %11308 = vmatmul.msk.bf16.vlgmr.msrb.gmra.mxu0 %vm2242_vm13, %v13943_v56  ;;  %3010 = vmatpush.bf16.msrb.mxu1 %v12532_v53 }
 0x2c3   : > { %2148 = vrot.lane.b32.xlu2 %v13056_v12, %s13406_s27  ;;  %v14363_v25 = vpop.f32.mrf.mxu0 }
 0x2c4   : > { %v14346_v37 = vld [vmem:[#allocation2 + $0x9c] sm:$0xff]  ;;  %18762 = vst [vmem:[#allocation38_spill] sm:$0xff] %v14363_v25 }
 0x2c5   : > { %v1605_v34 = vld [vmem:[#allocation2 + $0xa4] sm:$0x1]  ;;  %991 = vrot.lane.b32.xlu0 %v960_v8, %s13404_s30  ;;  %v2011_v54 = vrot.slane %v14346_v37, 1  ;;  %v1906_v40 = vshll.u32 %v14346_v37, 16  ;;  %v1904_v8 = vshrl.u32 %v14346_v37, 16 }
 0x2c6   : > { %v1727_v42 = vunpack.c.l.b16 %v1605_v34  ;;  %2111 = vrot.lane.b32.xlu1 %v13968_v21, %s13405_s19  ;;  %v13057_v34 = vld [vmem:[#allocation2 + $0x3c] sm:$0xff] }
 0x2c7   : > { %v1908_v13 = vrot.slane %v1906_v40, 1 }
 0x2c8   : > { %v1743_v47 = vpack.c.b16 %v1727_v42, %v1727_v42 }
 0x2c9   : > { %v1909_v15 = vor.u32 %v1908_v13, %v1904_v8  ;;  %v12531_v13 = vld [vmem:[#allocation10 + $0x70] sm:$0xff] }
 0x2ca   : > { %v2012_v62 = vrot.slane %v1743_v47, 1  ;;  %v1911_v12 = vshll.u32 %v1743_v47, 16  ;;  %3011 = vmatpush.bf16.msrb.mxu1 %v12531_v13 }
 0x2cb   : > { %2044 = vrot.lane.b32.xlu2 %v14313_v7, %s13406_s27  ;;  %v14376_v46 = vpop.f32.mrf.mxu0 }
 0x2cc   : > { %v14352_v4 = vsel %vm1971_vm3, %v2011_v54, %v2012_v62  ;;  %v1913_v11 = vrot.slane %v1911_v12, 1  ;;  %18763 = vst [vmem:[#allocation39_spill] sm:$0xff] %v14376_v46  ;;  %v2041_v62 = vpop.permute.xlu1 %2040 }
 0x2cd   : > { %11319 = vmatmul.msk.bf16.gmra.mxu2 %vm2242_vm13, %v14352_v4  ;;  %2195 = vrot.lane.b32.xlu0 %v13983_v43, %s13407_s12 }
 0x2ce   : > { %1963 = vrot.lane.b32.xlu1 %v14359_v10, %s13405_s19  ;;  %v14379_v42 = vsel %vm1746_vm2, %v1909_v15, %v1913_v11  ;;  %v701_v11 = vld [vmem:[%s13624_s15 + $0xe0] sm:$0xff] }
 0x2cf   : > { %v733_v53 = vpack.c.bf16 %v701_v11, %v701_v11  ;;  %v12525_v11 = vld [vmem:[#allocation10 + $0x40] sm:$0xff] }
 0x2d1   : > { %11309 = vmatmul.msk.bf16.gmra.mxu0 %vm2242_vm13, %v13968_v21  ;;  %v861_v13 = vunpack.c.l.b16 %v733_v53 }
 0x2d3   : > { %2150 = vrot.lane.b32.xlu2 %v13057_v34, %s13406_s27  ;;  %v14389_v47 = vpop.f32.mrf.mxu0  ;;  %v12530_v34 = vld [vmem:[#allocation10 + $0x68] sm:$0xff] }
 0x2d4   : > { %18764 = vst [vmem:[#allocation40_spill] sm:$0xff] %v14389_v47  ;;  %3012 = vmatpush.bf16.msrb.mxu1 %v12530_v34  ;;  %v702_v47 = vld [vmem:[%s13624_s15 + $0xe8] sm:$0xff]  ;;  %v12527_v34 = vld [vmem:[#allocation10 + $0x50] sm:$0xff] }
 0x2d5   : > { %2081 = vrot.lane.b32.xlu0 %v14346_v37, %s13407_s12 }
 0x2d6   : > { %2113 = vrot.lane.b32.xlu1 %v13986_v45, %s13405_s19 }
 0x2d8   : > { %3013 = vmatpush.bf16.msrb.mxu1 %v12529_v39 }
 0x2db   : > { %2046 = vrot.lane.b32.xlu2 %v14352_v4, %s13406_s27  ;;  %v14395_v54 = vpop.f32.mrf.mxu0 }
 0x2dc   : > { %18765 = vst [vmem:[#allocation41_spill] sm:$0xff] %v14395_v54 }
 0x2dd   : > { %2197 = vrot.lane.b32.xlu0 %v14002_v63, %s13407_s12 }
 0x2de   : > { %1965 = vrot.lane.b32.xlu1 %v14379_v42, %s13405_s19 }
 0x2e1   : > { %11310 = vmatmul.msk.bf16.gmra.mxu0 %vm2242_vm13, %v13986_v45 }
 0x2e3   : > { %2152 = vrot.lane.b32.xlu2 %v14038_v9, %s13406_s27  ;;  %v14402_v40 = vpop.f32.mrf.mxu0  ;;  %v2297_v9 = vsel %vm2275_vm14, %v2264_v61, %v2041_v62  ;;  %v734_v61 = vpack.c.bf16 %v702_v47, %v702_v47  ;;  %v12528_v62 = vld [vmem:[#allocation10 + $0x58] sm:$0xff] }
 0x2e4   : > { %18766 = vst [vmem:[#allocation42_spill] sm:$0xff] %v14402_v40  ;;  %3014 = vmatpush.bf16.msrb.mxu1 %v12528_v62  ;;  %v699_v62 = vld [vmem:[%s13624_s15 + $0xd0] sm:$0xff] }
 0x2e5   : > { %v862_v40 = vunpack.c.l.b16 %v734_v61  ;;  %v731_v32 = vpack.c.bf16 %v699_v62, %v699_v62 }
 0x2e6   : > { %2115 = vrot.lane.b32.xlu1 %v13999_v60, %s13405_s19 }
 0x2e7   : > { %v879_v25 = vpack.c.b16 %v862_v40, %v861_v13 }
 0x2e8   : > { %3015 = vmatpush.bf16.msrb.mxu1 %v12527_v34 }
 0x2ec   : > { %3016 = vmatpush.bf16.msrb.mxu1 %v12526_v17 }
 0x2f0   : > { %3017 = vmatpush.bf16.msrb.mxu1 %v12525_v11 }
 0x2f1   : > { %11311 = vmatmul.msk.bf16.gmra.mxu0 %vm2242_vm13, %v13999_v60 }
 0x2f5   : > { %v2078_v8 = vpop.permute.xlu2 %2077 }
 0x2f6   : > { %v14406_v12 = vsel %vm2308_vm15, %v2297_v9, %v2078_v8 }
 0x2f7   : > { %18767 = vst [vmem:[#allocation43_spill] sm:$0xff] %v14406_v12  ;;  %2979 = vmatmul.bf16.vlgmr.msra.gmra.mxu1 %v14406_v12 }
 0x2fc   : > { %v14409_v15 = vpop.f32.mrf.mxu0 }
 0x2fd   : > { %18768 = vst [vmem:[#allocation44_spill] sm:$0xff] %v14409_v15  ;;  %v2043_v5 = vpop.permute.xlu2 %2042 }
 0x301   : > { %11312 = vmatmul.msk.bf16.gmra.mxu0 %vm2242_vm13, %v14054_v50 }
 0x304   : > { %v14415_v9 = vpop.f32.mrf.mxu0 }
 0x305   : > { %18769 = vst [vmem:[#allocation45_spill] sm:$0xff] %v14415_v9  ;;  %v14417_v8 = vpop.permute.xlu2 %2107  ;;  %v700_v9 = vld [vmem:[%s13624_s15 + $0xd8] sm:$0xff] }
 0x30d   : > { %v990_v39 = vpop.permute.xlu2 %989 }
 0x30e   : > { %v14419_v19 = vpop.f32.mrf.mxu0  ;;  %v1038_v47 = vsel %vm993_vm4, %v879_v25, %v990_v39  ;;  %v1550_v39 = vld [vmem:[#allocation2 + $0xb4] sm:$0xf] }
 0x30f   : > { %18770 = vst [vmem:[#allocation46_spill] sm:$0xff] %v14419_v19  ;;  %v1086_v12 = vunpack.c.l.b16 %v1038_v47  ;;  %v1087_v35 = vunpack.c.h.b16 %v1038_v47  ;;  %v732_v19 = vpack.c.bf16 %v700_v9, %v700_v9  ;;  %v1554_v47 = vld [vmem:[#allocation2 + $0xbc] sm:$0x1] }
 0x311   : > { %11313 = vmatmul.msk.bf16.gmra.mxu0 %vm2242_vm13, %v14129_v26  ;;  %v1118_v53 = vpack.c.b16 %v1086_v12, %v1086_v12  ;;  %v1119_v61 = vpack.c.b16 %v1087_v35, %v1087_v35  ;;  %v859_v35 = vunpack.c.l.b16 %v731_v32  ;;  %v860_v49 = vunpack.c.l.b16 %v732_v19 }
 0x313   : > { %v1364_v34 = vshrl.u32 %v1118_v53, 16  ;;  %v1367_v40 = vshll.u32 %v1118_v53, 16  ;;  %v1372_v13 = vshrl.u32 %v1119_v61, 16  ;;  %v1375_v17 = vshll.u32 %v1119_v61, 16 }
 0x315   : > { %v1366_v15 = vrot.slane %v1364_v34, 7  ;;  %v1374_v55 = vrot.slane %v1372_v13, 7 }
 0x316   : > { %v14426_v25 = vpop.f32.mrf.mxu0 }
 0x317   : > { %18771 = vst [vmem:[#allocation47_spill] sm:$0xff] %v14426_v25  ;;  %v1369_v54 = vor.u32 %v1367_v40, %v1366_v15  ;;  %v1370_v6 = vrot.slane %v1366_v15, 4  ;;  %v1377_v46 = vor.u32 %v1375_v17, %v1374_v55  ;;  %v1379_v11 = vrot.slane %v1374_v55, 4  ;;  %v1962_v12 = vpop.permute.xlu1 %1961 }
 0x318   : > { %v2266_v15 = vsel %vm2242_vm13, %v14250_v58, %v1962_v12  ;;  %v878_v55 = vpack.c.b16 %v860_v49, %v859_v35 }
 0x319   : > { %v1378_v53 = vsel %vm13856_vm10, %v1370_v6, %v1377_v46  ;;  %v1551_v61 = vsel %vm13862_vm11, %v1369_v54, %v1550_v39  ;;  %v1555_v9 = vsel %vm13868_vm12, %v1379_v11, %v1554_v47  ;;  %v2299_v32 = vsel %vm2275_vm14, %v2266_v15, %v2043_v5  ;;  %v12552_v11 = vld [vmem:[#allocation9 + $0x88] sm:$0xff]  ;;  %v703_v15 = vld [vmem:[%s13624_s15 + $0xf0] sm:$0xff] }
 0x31a   : > { %1552 = vst [vmem:[#allocation2 + $0xb4] sm:$0xf] %v1551_v61  ;;  %3568 = vmatpush.bf16.msra.mxu0 %v12552_v11 }
 0x31b   : > { %1553 = vst.msk [vmem:[#allocation2 + $0xb8] sm:$0xf] %vm1446_vm6, %v1378_v53 }
 0x31c   : > { %1556 = vst [vmem:[#allocation2 + $0xbc] sm:$0x1] %v1555_v9 }
 0x31e   : > { %v14437_v62 = vpop.f32.mrf.mxu0 }
 0x31f   : > { %18772 = vst [vmem:[#allocation48_spill] sm:$0xff] %v14437_v62  ;;  %v2080_v19 = vpop.permute.xlu0 %2079  ;;  %v988_v6 = vpop.permute.xlu1 %987 }
 0x320   : > { %v14441_v46 = vsel %vm2308_vm15, %v2299_v32, %v2080_v19  ;;  %v1035_v54 = vsel %vm993_vm4, %v878_v55, %v988_v6  ;;  %v1543_v55 = vld [vmem:[#allocation2 + $0xa8] sm:$0xf]  ;;  %v1547_v19 = vld [vmem:[#allocation2 + $0xb0] sm:$0x1] }
 0x321   : > { %18773 = vst [vmem:[#allocation49_spill] sm:$0xff] %v14441_v46  ;;  %2984 = vmatmul.bf16.gmra.mxu1 %v14441_v46  ;;  %11314 = vmatmul.msk.bf16.gmra.mxu0 %vm2242_vm13, %v14153_v41  ;;  %v1084_v34 = vunpack.c.l.b16 %v1035_v54  ;;  %v1085_v40 = vunpack.c.h.b16 %v1035_v54  ;;  %v704_v32 = vld [vmem:[%s13624_s15 + $0xf8] sm:$0xff]  ;;  %v2359_v46 = vsel %vm2242_vm13, %v13920_v20, %v14417_v8  ;;  %s10993_s15 = scalar_lea.hbm %s19450_s16, %s12823_s6 }
 0x322   : > { %s10996_s29 = sshll.u32 %s10993_s15, 4  ;;  %s10997_s29 = int_to_ptr.hbm [resolvable:$true] %s10996_s29 }
 0x323   : > { %v1116_v49 = vpack.c.b16 %v1084_v34, %v1084_v34  ;;  %v1117_v13 = vpack.c.b16 %v1085_v40, %v1085_v40  ;;  %s13324_s20 = sshra.s32 %s10997_s29, 4  ;;  %s13325_s20 = int_to_ptr.hbm [resolvable:$true] %s13324_s20 }
 0x324   : > { %s13326_s2 = scalar_lea.hbm %s13325_s20, 128  ;;  %p13331_p10 = scmp.lt.s32.totalorder %s13325_s20, %s19450_s16 }
 0x325   : > { %v1347_v17 = vshrl.u32 %v1116_v49, 16  ;;  %v1355_v39 = vshrl.u32 %v1117_v13, 16  ;;  %v1350_v35 = vshll.u32 %v1116_v49, 16  ;;  %v1358_v61 = vshll.u32 %v1117_v13, 16  ;;  %p13327_p1 = scmp.ne.s32.totalorder %s13325_s20, %s13326_s2 }
 0x326   : > { %v14447_v5 = vpop.f32.mrf.mxu0 }
 0x327   : > { %18774 = vst [vmem:[#allocation50_spill] sm:$0xff] %v14447_v5  ;;  %v2145_v47 = vpop.permute.xlu0 %2144  ;;  %v1349_v12 = vrot.slane %v1347_v17, 7  ;;  %v1357_v53 = vrot.slane %v1355_v39, 7  ;;  %v735_v5 = vpack.c.bf16 %v703_v15, %v703_v15  ;;  %v736_v39 = vpack.c.bf16 %v704_v32, %v704_v32  ;;  %v2194_v15 = vpop.permute.xlu2 %2193  ;;  %p13328_p0 = pnand %p13327_p1, %p13565_p2 }
 0x328   : > { %v2192_v9 = vpop.permute.xlu1 %2191  ;;  %v2406_v11 = vsel %vm2275_vm14, %v2359_v46, %v2145_v47 }
 0x329   : > { %v1352_v6 = vor.u32 %v1350_v35, %v1349_v12  ;;  %v1353_v54 = vrot.slane %v1349_v12, 4  ;;  %v1360_v34 = vor.u32 %v1358_v61, %v1357_v53  ;;  %v1362_v40 = vrot.slane %v1357_v53, 4  ;;  %p13329_p8 = pneg %p13328_p0 }
 0x32a   : > { %v14465_v35 = vsel %vm2308_vm15, %v2406_v11, %v2192_v9  ;;  %v863_v53 = vunpack.c.l.b16 %v735_v5  ;;  %v864_v61 = vunpack.c.l.b16 %v736_v39 }
 0x32b   : > { %v1361_v49 = vsel %vm13856_vm10, %v1353_v54, %v1360_v34  ;;  %v1544_v13 = vsel %vm13862_vm11, %v1352_v6, %v1543_v55  ;;  %v1548_v17 = vsel %vm13868_vm12, %v1362_v40, %v1547_v19 }
 0x32c   : > { %1545 = vst [vmem:[#allocation2 + $0xa8] sm:$0xf] %v1544_v13  ;;  %v880_v55 = vpack.c.b16 %v864_v61, %v863_v53 }
 0x32d   : > { %1546 = vst.msk [vmem:[#allocation2 + $0xac] sm:$0xf] %vm1446_vm6, %v1361_v49 }
 0x32e   : > { %v14462_v12 = vpop.f32.mrf.mxu0  ;;  %1549 = vst [vmem:[#allocation2 + $0xb0] sm:$0x1] %v1548_v17 }
 0x32f   : > { %18775 = vst [vmem:[#allocation51_spill] sm:$0xff] %v14462_v12  ;;  %v2110_v20 = vpop.permute.xlu0 %2109 }
 0x330   : > { %v2147_v8 = vpop.permute.xlu1 %2146  ;;  %v2362_v34 = vsel %vm2242_vm13, %v13949_v57, %v2110_v20 }
 0x331   : > { %3018 = vmatmul.bf16.vlgmr.msrb.gmra.mxu1 %v14465_v35  ;;  %11315 = vmatmul.msk.bf16.gmra.mxu0 %vm2242_vm13, %v14185_v2 }
 0x334   : > { %v14470_v46 = vld [vmem:[#allocation2 + $0xa8] sm:$0xff] }
 0x335   : > { %v1608_v19 = vld [vmem:[#allocation2 + $0xb0] sm:$0x1]  ;;  %2083 = vrot.lane.b32.xlu0 %v14470_v46, %s13407_s12  ;;  %v1918_v54 = vshll.u32 %v14470_v46, 16  ;;  %v1916_v17 = vshrl.u32 %v14470_v46, 16  ;;  %v2014_v12 = vrot.slane %v14470_v46, 1 }
 0x336   : > { %v14472_v47 = vpop.f32.mrf.mxu0  ;;  %v1728_v9 = vunpack.c.l.b16 %v1608_v19  ;;  %v14483_v19 = vpop.permute.xlu2 %2148 }
 0x337   : > { %18776 = vst [vmem:[#allocation52_spill] sm:$0xff] %v14472_v47  ;;  %v992_v32 = vpop.permute.xlu0 %991  ;;  %v1920_v39 = vrot.slane %v1918_v54, 1 }
 0x338   : > { %v14476_v6 = vpop.permute.xlu1 %2111  ;;  %v1041_v5 = vsel %vm993_vm4, %v880_v55, %v992_v32  ;;  %v1744_v13 = vpack.c.b16 %v1728_v9, %v1728_v9  ;;  %v2408_v32 = vsel %vm2275_vm14, %v2362_v34, %v2147_v8  ;;  %v1561_v34 = vld [vmem:[#allocation2 + $0xc8] sm:$0x1]  ;;  %vm4042_vm4 = vcmask 1040384  }
 0x339   : > { %v1088_v40 = vunpack.c.l.b16 %v1041_v5  ;;  %v1089_v49 = vunpack.c.h.b16 %v1041_v5  ;;  %v1921_v55 = vor.u32 %v1920_v39, %v1916_v17  ;;  %v1611_v5 = vld [vmem:[#allocation2 + $0xbc] sm:$0x1]  ;;  %v12551_v39 = vld [vmem:[#allocation9 + $0x80] sm:$0xff] }
 0x33a   : > { %v2015_v61 = vrot.slane %v1744_v13, 1  ;;  %v1923_v47 = vshll.u32 %v1744_v13, 16  ;;  %v1557_v13 = vld [vmem:[#allocation2 + $0xc0] sm:$0xf]  ;;  %3569 = vmatpush.bf16.msra.mxu0 %v12551_v39 }
 0x33b   : > { %v1120_v11 = vpack.c.b16 %v1088_v40, %v1088_v40  ;;  %v1121_v53 = vpack.c.b16 %v1089_v49, %v1089_v49  ;;  %v12550_v49 = vld [vmem:[#allocation9 + $0x78] sm:$0xff] }
 0x33c   : > { %v14488_v9 = vsel %vm1971_vm3, %v2014_v12, %v2015_v61  ;;  %v1925_v54 = vrot.slane %v1923_v47, 1  ;;  %v14502_v12 = vsel %vm2308_vm15, %v2408_v32, %v2194_v15  ;;  %v14504_v47 = vld [vmem:[#allocation2 + $0xb4] sm:$0xff]  ;;  %3473 = vmatpush.bf16.msrb.mxu2 %v12550_v49 }
 0x33d   : > { %v1381_v62 = vshrl.u32 %v1120_v11, 16  ;;  %v1384_v25 = vshll.u32 %v1120_v11, 16  ;;  %v1389_v57 = vshrl.u32 %v1121_v53, 16  ;;  %v1392_v20 = vshll.u32 %v1121_v53, 16  ;;  %2048 = vrot.lane.b32.xlu2 %v14488_v9, %s13406_s27  ;;  %11320 = vmatmul.msk.bf16.gmra.mxu2 %vm2242_vm13, %v14488_v9 }
 0x33e   : > { %v14490_v40 = vpop.f32.mrf.mxu0  ;;  %v14497_v17 = vsel %vm1746_vm2, %v1921_v55, %v1925_v54  ;;  %2199 = vrot.lane.b32.xlu0 %v14057_v52, %s13407_s12  ;;  %v12549_v54 = vld [vmem:[#allocation9 + $0x70] sm:$0xff]  ;;  %v1928_v39 = vshrl.u32 %v14504_v47, 16 }
 0x33f   : > { %18777 = vst [vmem:[#allocation53_spill] sm:$0xff] %v14490_v40  ;;  %v1383_v28 = vrot.slane %v1381_v62, 7  ;;  %v1391_v0 = vrot.slane %v1389_v57, 7  ;;  %v2196_v8 = vpop.permute.xlu0 %2195  ;;  %v1729_v62 = vunpack.c.l.b16 %v1611_v5  ;;  %1967 = vrot.lane.b32.xlu1 %v14497_v17, %s13405_s19  ;;  %v2045_v5 = vpop.permute.xlu2 %2044 }
 0x340   : > { %v1964_v55 = vpop.permute.xlu1 %1963  ;;  %3474 = vmatpush.bf16.msrb.mxu2 %v12549_v54  ;;  %v2365_v54 = vsel %vm2242_vm13, %v13956_v3, %v14476_v6 }
 0x341   : > { %v1386_v11 = vor.u32 %v1384_v25, %v1383_v28  ;;  %v1387_v53 = vrot.slane %v1383_v28, 4  ;;  %v1394_v61 = vor.u32 %v1392_v20, %v1391_v0  ;;  %v1396_v57 = vrot.slane %v1391_v0, 4  ;;  %3023 = vmatmul.bf16.gmra.mxu1 %v14502_v12  ;;  %11316 = vmatmul.msk.bf16.gmra.mxu0 %vm2242_vm13, %v14199_v33 }
 0x342   : > { %v2268_v0 = vsel %vm2242_vm13, %v14291_v14, %v1964_v55  ;;  %v1745_v25 = vpack.c.b16 %v1729_v62, %v1729_v62  ;;  %v1930_v20 = vshll.u32 %v14504_v47, 16 }
 0x343   : > { %v1395_v15 = vsel %vm13856_vm10, %v1387_v53, %v1394_v61  ;;  %v1558_v32 = vsel %vm13862_vm11, %v1386_v11, %v1557_v13  ;;  %v1562_v28 = vsel %vm13868_vm12, %v1396_v57, %v1561_v34  ;;  %v13058_v13 = vld [vmem:[#allocation2 + $0x54] sm:$0xff]  ;;  %v2301_v34 = vsel %vm2275_vm14, %v2268_v0, %v2045_v5 }
 0x344   : > { %1559 = vst [vmem:[#allocation2 + $0xc0] sm:$0xf] %v1558_v32  ;;  %v1932_v11 = vrot.slane %v1930_v20, 1  ;;  %v1935_v53 = vshll.u32 %v1745_v25, 16  ;;  %3475 = vmatpush.bf16.msrb.mxu2 %v12548_v36  ;;  %v12547_v61 = vld [vmem:[#allocation9 + $0x60] sm:$0xff]  ;;  %v2017_v57 = vrot.slane %v14504_v47, 1 }
 0x345   : > { %1560 = vst.msk [vmem:[#allocation2 + $0xc4] sm:$0xf] %vm1446_vm6, %v1395_v15  ;;  %2154 = vrot.lane.b32.xlu2 %v13058_v13, %s13406_s27  ;;  %v2018_v55 = vrot.slane %v1745_v25, 1  ;;  %v12546_v20 = vld [vmem:[#allocation9 + $0x58] sm:$0xff]  ;;  %v2410_v25 = vsel %vm2275_vm14, %v2365_v54, %v14483_v19  ;;  %v12545_v36 = vld [vmem:[#allocation9 + $0x50] sm:$0xff]  ;;  %vm15043_vm6 = vmand %vm4042_vm4, %vm1122_vm5 }
 0x346   : > { %1563 = vst [vmem:[#allocation2 + $0xc8] sm:$0x1] %v1562_v28  ;;  %v14521_v49 = vpop.f32.mrf.mxu0  ;;  %2085 = vrot.lane.b32.xlu0 %v14504_v47, %s13407_s12  ;;  %v1933_v15 = vor.u32 %v1932_v11, %v1928_v39  ;;  %v1937_v32 = vrot.slane %v1935_v53, 1  ;;  %v14555_v6 = vsel %vm2308_vm15, %v2410_v25, %v2196_v8  ;;  %v12578_v13 = vld [vmem:[#allocation12 + $0x38] sm:$0xff]  ;;  %v12544_v39 = vld [vmem:[#allocation9 + $0x48] sm:$0xff]  ;;  %v13059_v11 = vld [vmem:[#allocation2 + $0x60] sm:$0xff]  ;;  %v2487_v53 = vunpack.c.l.bf16 %v13943_v56 }
 0x347   : > { %18778 = vst [vmem:[#allocation54_spill] sm:$0xff] %v14521_v49  ;;  %v2082_v44 = vpop.permute.xlu0 %2081  ;;  %2117 = vrot.lane.b32.xlu1 %v14054_v50, %s13405_s19  ;;  %v14539_v28 = vsel %vm1971_vm3, %v2017_v57, %v2018_v55  ;;  %5254 = vmatpush.bf16.msra.mxu1 %v12578_v13  ;;  %v12543_v55 = vld [vmem:[#allocation9 + $0x40] sm:$0xff] }
 0x348   : > { %v14528_v62 = vsel %vm2308_vm15, %v2301_v34, %v2082_v44  ;;  %3476 = vmatpush.bf16.msrb.mxu2 %v12547_v61  ;;  %v14550_v3 = vsel %vm1746_vm2, %v1933_v15, %v1937_v32  ;;  %v2490_v61 = vunpack.c.h.bf16 %v13943_v56  ;;  %v2114_v57 = vpop.permute.xlu1 %2113  ;;  %v2583_v32 = vmax.f32 %v2487_v53, 0.0 }
 0x349   : > { %2989 = vmatmul.bf16.vlgmr.msra.gmra.mxu3 %v14528_v62  ;;  %v2368_v25 = vsel %vm2242_vm13, %v13983_v43, %v2114_v57  ;;  %v14597_v57 = vld [vmem:[#allocation2 + $0xcc] sm:$0xff] }
 0x34c   : > { %3477 = vmatpush.bf16.msrb.mxu2 %v12546_v20  ;;  %v14564_v34 = vld [vmem:[#allocation2 + $0xc0] sm:$0xff]  ;;  %v2586_v20 = vmax.f32 %v2490_v61, 0.0 }
 0x34d   : > { %2050 = vrot.lane.b32.xlu2 %v14539_v28, %s13406_s27  ;;  %11321 = vmatmul.msk.bf16.gmra.mxu2 %vm2242_vm13, %v14539_v28  ;;  %v1614_v5 = vld [vmem:[#allocation2 + $0xc8] sm:$0x1]  ;;  %v2104_v54 = vrot.slane %v14564_v34, 1 }
 0x34e   : > { %v14541_v0 = vpop.f32.mrf.mxu0  ;;  %2201 = vrot.lane.b32.xlu0 %v14137_v38, %s13407_s12  ;;  %v2090_v19 = vunpack.c.l.b16 %v1614_v5  ;;  %v1617_v5 = vld [vmem:[#allocation2 + $0xd4] sm:$0x1]  ;;  %v2679_v53 = vpack.c.bf16 %v2586_v20, %v2583_v32  ;;  %v2223_v32 = vrot.slane %v14597_v57, 1 }
 0x34f   : > { %18779 = vst [vmem:[#allocation55_spill] sm:$0xff] %v14541_v0  ;;  %1969 = vrot.lane.b32.xlu1 %v14550_v3, %s13405_s19  ;;  %v2198_v56 = vpop.permute.xlu0 %2197  ;;  %v2177_v61 = vunpack.c.l.b16 %v1617_v5  ;;  %v12600_v0 = vld [vmem:[#allocation12 + $0xe8] sm:$0xff] }
 0x350   : > { %3478 = vmatpush.bf16.msrb.mxu2 %v12545_v36  ;;  %v14566_v8 = vpack.c.b16 %v2090_v19, %v2090_v19  ;;  %v2151_v36 = vpop.permute.xlu2 %2150 }
 0x351   : > { %3028 = vmatmul.bf16.gmra.mxu1 %v14555_v6  ;;  %11317 = vmatmul.msk.bf16.gmra.mxu0 %vm2242_vm13, %v14275_v51 }
 0x352   : > { %v2105_v15 = vrot.slane %v14566_v8, 1 }
 0x354   : > { %3479 = vmatpush.bf16.msrb.mxu2 %v12544_v39  ;;  %v14580_v19 = vsel %vm1971_vm3, %v2104_v54, %v2105_v15  ;;  %v13060_v39 = vld [vmem:[#allocation2 + $0x6c] sm:$0xff]  ;;  %v13061_v15 = vld [vmem:[#allocation2 + $0x78] sm:$0xff] }
 0x355   : > { %2156 = vrot.lane.b32.xlu2 %v13059_v11, %s13406_s27  ;;  %v2412_v11 = vsel %vm2275_vm14, %v2368_v25, %v2151_v36  ;;  %v2493_v25 = vunpack.c.l.bf16 %v13968_v21 }
 0x356   : > { %v14562_v44 = vpop.f32.mrf.mxu0  ;;  %2087 = vrot.lane.b32.xlu0 %v14564_v34, %s13407_s12  ;;  %v14591_v43 = vsel %vm2308_vm15, %v2412_v11, %v2198_v56  ;;  %v2496_v56 = vunpack.c.h.bf16 %v13968_v21 }
 0x357   : > { %18780 = vst [vmem:[#allocation56_spill] sm:$0xff] %v14562_v44  ;;  %2119 = vrot.lane.b32.xlu1 %v14129_v26, %s13405_s19  ;;  %v2589_v36 = vmax.f32 %v2493_v25, 0.0 }
 0x358   : > { %3480 = vmatpush.bf16.msrb.mxu2 %v12543_v55  ;;  %v14599_v55 = vpack.c.b16 %v2177_v61, %v2177_v61  ;;  %v2486_v61 = vunpack.c.l.bf16 %v14465_v35 }
 0x35a   : > { %v2224_v20 = vrot.slane %v14599_v55, 1  ;;  %v2582_v25 = vmax.f32 %v2486_v61, 0.0  ;;  %v2492_v61 = vunpack.c.l.bf16 %v14502_v12 }
 0x35c   : > { %v14613_v5 = vsel %vm1971_vm3, %v2223_v32, %v2224_v20  ;;  %v2502_v20 = vunpack.c.h.bf16 %v13986_v45 }
 0x35d   : > { %2158 = vrot.lane.b32.xlu2 %v13060_v39, %s13406_s27  ;;  %11322 = vmatmul.msk.bf16.gmra.mxu2 %vm2242_vm13, %v14580_v19  ;;  %v2592_v39 = vmax.f32 %v2496_v56, 0.0 }
 0x35e   : > { %v14582_v13 = vpop.f32.mrf.mxu0  ;;  %2203 = vrot.lane.b32.xlu0 %v14156_v24, %s13407_s12 }
 0x35f   : > { %18781 = vst [vmem:[#allocation57_spill] sm:$0xff] %v14582_v13  ;;  %2121 = vrot.lane.b32.xlu1 %v14153_v41, %s13405_s19  ;;  %v2682_v21 = vpack.c.bf16 %v2592_v39, %v2589_v36  ;;  %v12542_v36 = vld [vmem:[#allocation9 + $0x38] sm:$0xff]  ;;  %v2598_v39 = vmax.f32 %v2502_v20, 0.0  ;;  %v2505_v20 = vunpack.c.l.bf16 %v13999_v60 }
 0x360   : > { %3384 = vmatpush.bf16.msrb.mxu3 %v12542_v36 }
 0x361   : > { %3033 = vmatmul.bf16.gmra.mxu1 %v14591_v43  ;;  %11396 = vmatmul.msk.bf16.vlgmr.msra.gmra.mxu0 %vm2242_vm13, %v2679_v53  ;;  %v12577_v53 = vld [vmem:[#allocation12 + $0x30] sm:$0xff] }
 0x362   : > { %5255 = vmatpush.bf16.msra.mxu1 %v12577_v53 }
 0x365   : > { %2160 = vrot.lane.b32.xlu2 %v13061_v15, %s13406_s27  ;;  %v2489_v15 = vunpack.c.h.bf16 %v14465_v35 }
 0x366   : > { %v14601_v54 = vpop.f32.mrf.mxu0  ;;  %2205 = vrot.lane.b32.xlu0 %v14175_v59, %s13407_s12 }
 0x367   : > { %18782 = vst [vmem:[#allocation58_spill] sm:$0xff] %v14601_v54  ;;  %2123 = vrot.lane.b32.xlu1 %v14185_v2, %s13405_s19  ;;  %v2585_v56 = vmax.f32 %v2489_v15, 0.0  ;;  %v2495_v15 = vunpack.c.h.bf16 %v14502_v12  ;;  %v2601_v12 = vmax.f32 %v2505_v20, 0.0  ;;  %v12539_v20 = vld [vmem:[#allocation9 + $0x20] sm:$0xff] }
 0x369   : > { %v2591_v36 = vmax.f32 %v2495_v15, 0.0  ;;  %v12576_v15 = vld [vmem:[#allocation12 + $0x28] sm:$0xff] }
 0x36a   : > { %5256 = vmatpush.bf16.msra.mxu1 %v12576_v15 }
 0x36d   : > { %2162 = vrot.lane.b32.xlu2 %v14250_v58, %s13406_s27  ;;  %11323 = vmatmul.msk.bf16.gmra.mxu2 %vm2242_vm13, %v14613_v5  ;;  %v2499_v58 = vunpack.c.l.bf16 %v13986_v45 }
 0x36e   : > { %v14615_v11 = vpop.f32.mrf.mxu0  ;;  %2207 = vrot.lane.b32.xlu0 %v14202_v18, %s13407_s12 }
 0x36f   : > { %18783 = vst [vmem:[#allocation59_spill] sm:$0xff] %v14615_v11  ;;  %2125 = vrot.lane.b32.xlu1 %v14199_v33, %s13405_s19  ;;  %v2595_v35 = vmax.f32 %v2499_v58, 0.0  ;;  %v2187_v11 = vshll.u32 %v14599_v55, 16 }
 0x371   : > { %11397 = vmatmul.msk.bf16.gmra.mxu0 %vm2242_vm13, %v2682_v21  ;;  %v2678_v21 = vpack.c.bf16 %v2585_v56, %v2582_v25  ;;  %v2685_v45 = vpack.c.bf16 %v2598_v39, %v2595_v35  ;;  %v2508_v25 = vunpack.c.h.bf16 %v13999_v60  ;;  %v2588_v56 = vmax.f32 %v2492_v61, 0.0 }
 0x372   : > { %v2095_v61 = vshll.u32 %v14564_v34, 16 }
 0x373   : > { %v2604_v39 = vmax.f32 %v2508_v25, 0.0  ;;  %v2498_v25 = vunpack.c.l.bf16 %v14555_v6 }
 0x374   : > { %v14659_v35 = vpop.f32.mrf.mxu1 }
 0x375   : > { %2164 = vrot.lane.b32.xlu2 %v14291_v14, %s13406_s27  ;;  %v12541_v14 = vld [vmem:[#allocation9 + $0x30] sm:$0xff]  ;;  %v2688_v60 = vpack.c.bf16 %v2604_v39, %v2601_v12  ;;  %v2093_v12 = vshrl.u32 %v14564_v34, 16  ;;  %v2097_v39 = vrot.slane %v2095_v61, 1  ;;  %v2594_v15 = vmax.f32 %v2498_v25, 0.0  ;;  %v12538_v25 = vld [vmem:[#allocation9 + $0x18] sm:$0xff] }
 0x376   : > { %v14628_v32 = vpop.f32.mrf.mxu0  ;;  %2209 = vrot.lane.b32.xlu0 %v14281_v30, %s13407_s12  ;;  %3385 = vmatpush.bf16.msrb.mxu3 %v12541_v14 }
 0x377   : > { %18784 = vst [vmem:[#allocation60_spill] sm:$0xff] %v14628_v32  ;;  %2127 = vrot.lane.b32.xlu1 %v14275_v51, %s13405_s19 }
 0x37d   : > { %2166 = vrot.lane.b32.xlu2 %v14346_v37, %s13406_s27  ;;  %3481 = vmatmul.bf16.vlgmr.msrb.gmra.mxu2 %v2678_v21  ;;  %v2681_v21 = vpack.c.bf16 %v2591_v36, %v2588_v56  ;;  %v2501_v56 = vunpack.c.h.bf16 %v14555_v6  ;;  %v14673_v36 = vpop.f32.mrf.mxu1  ;;  %v2514_v6 = vunpack.c.h.bf16 %v14054_v50 }
 0x37e   : > { %v14638_v53 = vpop.f32.mrf.mxu0  ;;  %2211 = vrot.lane.b32.xlu0 %v14359_v10, %s13407_s12  ;;  %18788 = vst [vmem:[#allocation64_spill] sm:$0xff] %v14673_v36  ;;  %v2182_v36 = vshll.u32 %v14597_v57, 16 }
 0x37f   : > { %18785 = vst [vmem:[#allocation61_spill] sm:$0xff] %v14638_v53  ;;  %2129 = vrot.lane.b32.xlu1 %v14313_v7, %s13405_s19  ;;  %v2610_v61 = vmax.f32 %v2514_v6, 0.0  ;;  %v2180_v53 = vshrl.u32 %v14597_v57, 16 }
 0x380   : > { %v2184_v32 = vrot.slane %v2182_v36, 1  ;;  %v2047_v36 = vpop.permute.xlu2 %2046 }
 0x381   : > { %11398 = vmatmul.msk.bf16.gmra.mxu0 %vm2242_vm13, %v2685_v45  ;;  %v12540_v45 = vld [vmem:[#allocation9 + $0x28] sm:$0xff] }
 0x382   : > { %3386 = vmatpush.bf16.msrb.mxu3 %v12540_v45  ;;  %v2100_v45 = vshll.u32 %v14566_v8, 16  ;;  %v2185_v55 = vor.u32 %v2184_v32, %v2180_v53  ;;  %v2520_v32 = vunpack.c.h.bf16 %v14129_v26 }
 0x385   : > { %2168 = vrot.lane.b32.xlu2 %v14470_v46, %s13406_s27 }
 0x386   : > { %v14649_v58 = vpop.f32.mrf.mxu0  ;;  %2213 = vrot.lane.b32.xlu0 %v14379_v42, %s13407_s12  ;;  %3387 = vmatpush.bf16.msrb.mxu3 %v12539_v20  ;;  %v2597_v20 = vmax.f32 %v2501_v56, 0.0 }
 0x387   : > { %18786 = vst [vmem:[#allocation62_spill] sm:$0xff] %v14649_v58  ;;  %2131 = vrot.lane.b32.xlu1 %v14352_v4, %s13405_s19  ;;  %v14688_v58 = vpop.f32.mrf.mxu2 }
 0x388   : > { %18790 = vst [vmem:[#allocation66_spill] sm:$0xff] %v14688_v58  ;;  %v2684_v8 = vpack.c.bf16 %v2597_v20, %v2594_v15 }
 0x38a   : > { %3388 = vmatpush.bf16.msrb.mxu3 %v12538_v25 }
 0x38d   : > { %2170 = vrot.lane.b32.xlu2 %v14504_v47, %s13406_s27  ;;  %3486 = vmatmul.bf16.gmra.mxu2 %v2681_v21 }
 0x38e   : > { %v14661_v14 = vpop.f32.mrf.mxu0  ;;  %2215 = vrot.lane.b32.xlu0 %v14497_v17, %s13407_s12 }
 0x38f   : > { %18787 = vst [vmem:[#allocation63_spill] sm:$0xff] %v14661_v14  ;;  %2133 = vrot.lane.b32.xlu1 %v14488_v9, %s13405_s19  ;;  %v2102_v14 = vrot.slane %v2100_v45, 1  ;;  %v2189_v45 = vrot.slane %v2187_v11, 1  ;;  %v2517_v11 = vunpack.c.l.bf16 %v14129_v26 }
 0x391   : > { %11399 = vmatmul.msk.bf16.gmra.mxu0 %vm2242_vm13, %v2688_v60  ;;  %v2511_v60 = vunpack.c.l.bf16 %v14054_v50 }
 0x395   : > { %2172 = vrot.lane.b32.xlu2 %v14564_v34, %s13406_s27  ;;  %v2607_v34 = vmax.f32 %v2511_v60, 0.0  ;;  %v12537_v60 = vld [vmem:[#allocation9 + $0x10] sm:$0xff] }
 0x396   : > { %v14675_v21 = vpop.f32.mrf.mxu0  ;;  %2217 = vrot.lane.b32.xlu0 %v14550_v3, %s13407_s12  ;;  %3389 = vmatpush.bf16.msrb.mxu3 %v12537_v60 }
 0x397   : > { %18789 = vst [vmem:[#allocation65_spill] sm:$0xff] %v14675_v21  ;;  %2135 = vrot.lane.b32.xlu1 %v14539_v28, %s13405_s19  ;;  %v2098_v21 = vor.u32 %v2097_v39, %v2093_v12  ;;  %v2691_v12 = vpack.c.bf16 %v2610_v61, %v2607_v34  ;;  %v1966_v39 = vpop.permute.xlu1 %1965  ;;  %v14715_v34 = vpop.f32.mrf.mxu2 }
 0x398   : > { %v2270_v6 = vsel %vm2242_vm13, %v14346_v37, %v1966_v39  ;;  %18794 = vst [vmem:[#allocation70_spill] sm:$0xff] %v14715_v34  ;;  %v12536_v34 = vld [vmem:[#allocation9 + $0x8] sm:$0xff] }
 0x399   : > { %v14697_v56 = vsel %vm1746_vm2, %v2098_v21, %v2102_v14  ;;  %v2190_v14 = vsel %vm1746_vm2, %v2185_v55, %v2189_v45  ;;  %v2504_v21 = vunpack.c.l.bf16 %v14591_v43  ;;  %v2303_v37 = vsel %vm2275_vm14, %v2270_v6, %v2047_v36 }
 0x39a   : > { %v2613_v55 = vmax.f32 %v2517_v11, 0.0  ;;  %v2616_v45 = vmax.f32 %v2520_v32, 0.0  ;;  %3390 = vmatpush.bf16.msrb.mxu3 %v12536_v34 }
 0x39b   : > { %v2600_v61 = vmax.f32 %v2504_v21, 0.0 }
 0x39c   : > { %v2694_v6 = vpack.c.bf16 %v2616_v45, %v2613_v55  ;;  %v2523_v55 = vunpack.c.l.bf16 %v14153_v41 }
 0x39d   : > { %3491 = vmatmul.bf16.gmra.mxu2 %v2684_v8  ;;  %2174 = vrot.lane.b32.xlu2 %v14597_v57, %s13406_s27  ;;  %v2507_v57 = vunpack.c.h.bf16 %v14591_v43  ;;  %v14723_v43 = vld [vmem:[%s18558_s5] ss:$0 sm:$0xff] }
 0x39e   : > { %v14692_v50 = vpop.f32.mrf.mxu1  ;;  %v14694_v54 = vpop.f32.mrf.mxu0  ;;  %2219 = vrot.lane.b32.xlu0 %v14697_v56, %s13407_s12  ;;  %v2931_v26 = vadd.f32 %v14723_v43, %v14229_v29 }
 0x39f   : > { %18791 = vst [vmem:[#allocation67_spill] sm:$0xff] %v14694_v54  ;;  %2137 = vrot.lane.b32.xlu1 %v14580_v19, %s13405_s19  ;;  %v2603_v8 = vmax.f32 %v2507_v57, 0.0  ;;  %v2116_v39 = vpop.permute.xlu1 %2115  ;;  %v14738_v57 = vpop.f32.mrf.mxu2 }
 0x3a0   : > { %v2371_v36 = vsel %vm2242_vm13, %v14002_v63, %v2116_v39  ;;  %18797 = vst [vmem:[#allocation73_spill] sm:$0xff] %v14738_v57 }
 0x3a1   : > { %11400 = vmatmul.msk.bf16.gmra.mxu0 %vm2242_vm13, %v2691_v12  ;;  %v2153_v12 = vpop.permute.xlu2 %2152  ;;  %v2687_v60 = vpack.c.bf16 %v2603_v8, %v2600_v61 }
 0x3a2   : > { %v2414_v29 = vsel %vm2275_vm14, %v2371_v36, %v2153_v12  ;;  %v2526_v12 = vunpack.c.h.bf16 %v14153_v41  ;;  %v2936_v41 = vadd.f32 %v14723_v43, %v14254_v1 }
 0x3a6   : > { %v14711_v15 = vpop.f32.mrf.mxu1  ;;  %v14713_v20 = vpop.f32.mrf.mxu0  ;;  %2221 = vrot.lane.b32.xlu0 %v2190_v14, %s13407_s12  ;;  %s13330_s12 = scalar_lea.hbm %s19450_s16, 256 }
 0x3a7   : > { %18792 = vst [vmem:[#allocation68_spill] sm:$0xff] %v14711_v15  ;;  %v2084_v53 = vpop.permute.xlu0 %2083  ;;  %v14751_v36 = vpop.f32.mrf.mxu2  ;;  %p13332_p9 = scmp.lt.s32.totalorder %s13330_s12, %s13326_s2 }
 0x3a8   : > { %18793 = vst [vmem:[#allocation69_spill] sm:$0xff] %v14713_v20  ;;  %v14727_v25 = vsel %vm2308_vm15, %v2303_v37, %v2084_v53 }
 0x3a9   : > { %2994 = vmatmul.bf16.gmra.mxu3 %v14727_v25  ;;  %v2049_v32 = vpop.permute.xlu2 %2048  ;;  %18800 = vst [vmem:[#allocation76_spill] sm:$0xff] %v14751_v36  ;;  %p13333_p3 = por %p13332_p9, %p13331_p10 }
 0x3ab   : > { %p13334_p11 = pnand %p13333_p3, %p13329_p8 }
 0x3ad   : > { %3496 = vmatmul.bf16.gmra.mxu2 %v2687_v60  ;;  %v12535_v60 = vld [vmem:[#allocation9] sm:$0xff] }
 0x3ae   : > { %v3019_v14 = vpop.f32.mrf.mxu1  ;;  %v14732_v15 = vpop.f32.mrf.mxu0  ;;  %3391 = vmatpush.bf16.msrb.mxu3 %v12535_v60 }
 0x3af   : > { %18795 = vst [vmem:[#allocation71_spill] sm:$0xff] %v14732_v15  ;;  %v14736_v21 = vadd.f32 %v3019_v14, %v2931_v26  ;;  %v12575_v26 = vld [vmem:[#allocation12 + $0x20] sm:$0xff] }
 0x3b0   : > { %v2200_v11 = vpop.permute.xlu0 %2199  ;;  %5257 = vmatpush.bf16.msra.mxu1 %v12575_v26  ;;  %v18823_v15 = vld [vmem:[#allocation39_spill] sm:$0xff] }
 0x3b1   : > { %18796 = vst [vmem:[#allocation72_spill] sm:$0xff] %v14736_v21  ;;  %11401 = vmatmul.msk.bf16.gmra.mxu0 %vm2242_vm13, %v2694_v6  ;;  %v1968_v53 = vpop.permute.xlu1 %1967  ;;  %v2450_v37 = vsel %vm2308_vm15, %v2414_v29, %v2200_v11  ;;  %v2155_v26 = vpop.permute.xlu2 %2154 }
 0x3b2   : > { %3038 = vmatmul.bf16.gmra.mxu1 %v2450_v37  ;;  %v2510_v61 = vunpack.c.l.bf16 %v2450_v37  ;;  %v2513_v8 = vunpack.c.h.bf16 %v2450_v37  ;;  %v2272_v34 = vsel %vm2242_vm13, %v14470_v46, %v1968_v53  ;;  %v2619_v46 = vmax.f32 %v2523_v55, 0.0 }
 0x3b3   : > { %v2305_v11 = vsel %vm2275_vm14, %v2272_v34, %v2049_v32  ;;  %v2622_v53 = vmax.f32 %v2526_v12, 0.0 }
 0x3b4   : > { %v2606_v45 = vmax.f32 %v2510_v61, 0.0  ;;  %v2609_v14 = vmax.f32 %v2513_v8, 0.0 }
 0x3b5   : > { %v2697_v34 = vpack.c.bf16 %v2622_v53, %v2619_v46  ;;  %v2529_v53 = vunpack.c.l.bf16 %v14185_v2 }
 0x3b6   : > { %v14743_v63 = vpop.f32.mrf.mxu1  ;;  %v14745_v39 = vpop.f32.mrf.mxu0  ;;  %v2690_v60 = vpack.c.bf16 %v2609_v14, %v2606_v45 }
 0x3b7   : > { %18798 = vst [vmem:[#allocation74_spill] sm:$0xff] %v14743_v63 }
 0x3b8   : > { %18799 = vst [vmem:[#allocation75_spill] sm:$0xff] %v14745_v39  ;;  %v2086_v6 = vpop.permute.xlu0 %2085 }
 0x3b9   : > { %v2118_v29 = vpop.permute.xlu1 %2117  ;;  %v14755_v37 = vsel %vm2308_vm15, %v2305_v11, %v2086_v6 }
 0x3ba   : > { %2999 = vmatmul.bf16.gmra.mxu3 %v14755_v37  ;;  %v2374_v8 = vsel %vm2242_vm13, %v14057_v52, %v2118_v29  ;;  %v2051_v29 = vpop.permute.xlu2 %2050 }
 0x3bb   : > { %v2416_v55 = vsel %vm2275_vm14, %v2374_v8, %v2155_v26 }
 0x3bd   : > { %3501 = vmatmul.bf16.gmra.mxu2 %v2690_v60  ;;  %v2532_v60 = vunpack.c.h.bf16 %v14185_v2 }
 0x3be   : > { %v3024_v61 = vpop.f32.mrf.mxu1  ;;  %v14764_v32 = vpop.f32.mrf.mxu0 }
 0x3bf   : > { %v14762_v36 = vadd.f32 %v3024_v61, %v2936_v41  ;;  %18802 = vst [vmem:[#allocation78_spill] sm:$0xff] %v14764_v32 }
 0x3c0   : > { %v14766_v6 = vpop.f32.mrf.mxu2  ;;  %v2202_v11 = vpop.permute.xlu0 %2201 }
 0x3c1   : > { %18801 = vst [vmem:[#allocation77_spill] sm:$0xff] %v14762_v36  ;;  %11402 = vmatmul.msk.bf16.gmra.mxu0 %vm2242_vm13, %v2697_v34  ;;  %v1970_v1 = vpop.permute.xlu1 %1969  ;;  %v2453_v12 = vsel %vm2308_vm15, %v2416_v55, %v2202_v11 }
 0x3c2   : > { %18803 = vst [vmem:[#allocation79_spill] sm:$0xff] %v14766_v6  ;;  %3043 = vmatmul.bf16.gmra.mxu1 %v2453_v12  ;;  %v2516_v45 = vunpack.c.l.bf16 %v2453_v12  ;;  %v2519_v14 = vunpack.c.h.bf16 %v2453_v12  ;;  %v2274_v41 = vsel %vm2242_vm13, %v14504_v47, %v1970_v1  ;;  %v2625_v47 = vmax.f32 %v2529_v53, 0.0 }
 0x3c3   : > { %v2307_v11 = vsel %vm2275_vm14, %v2274_v41, %v2051_v29  ;;  %v2628_v1 = vmax.f32 %v2532_v60, 0.0  ;;  %v2941_v6 = vadd.f32 %v14723_v43, %v14305_v16  ;;  %v2488_v53 = vunpack.c.h.bf16 %v14019_v48 }
 0x3c4   : > { %v2612_v61 = vmax.f32 %v2516_v45, 0.0  ;;  %v2615_v26 = vmax.f32 %v2519_v14, 0.0 }
 0x3c5   : > { %v2700_v41 = vpack.c.bf16 %v2628_v1, %v2625_v47 }
 0x3c6   : > { %v14771_v52 = vpop.f32.mrf.mxu1  ;;  %v14775_v46 = vpop.f32.mrf.mxu0  ;;  %v2693_v57 = vpack.c.bf16 %v2615_v26, %v2612_v61 }
 0x3c7   : > { %18804 = vst [vmem:[#allocation80_spill] sm:$0xff] %v14771_v52 }
 0x3c8   : > { %18805 = vst [vmem:[#allocation81_spill] sm:$0xff] %v14775_v46  ;;  %v14779_v8 = vpop.f32.mrf.mxu2  ;;  %v2088_v34 = vpop.permute.xlu0 %2087 }
 0x3c9   : > { %18806 = vst [vmem:[#allocation82_spill] sm:$0xff] %v14779_v8  ;;  %v14783_v55 = vsel %vm2308_vm15, %v2307_v11, %v2088_v34  ;;  %v2120_v12 = vpop.permute.xlu1 %2119  ;;  %v2157_v34 = vpop.permute.xlu2 %2156  ;;  %v2485_v11 = vunpack.c.l.bf16 %v14019_v48  ;;  %v2535_v48 = vunpack.c.l.bf16 %v14199_v33 }
 0x3ca   : > { %3004 = vmatmul.bf16.gmra.mxu3 %v14783_v55  ;;  %v2377_v45 = vsel %vm2242_vm13, %v14137_v38, %v2120_v12  ;;  %v2584_v12 = vmax.f32 %v2488_v53, 0.0 }
 0x3cb   : > { %v2418_v16 = vsel %vm2275_vm14, %v2377_v45, %v2157_v34  ;;  %v2581_v26 = vmax.f32 %v2485_v11, 0.0  ;;  %v2946_v11 = vadd.f32 %v14723_v43, %v14340_v22 }
 0x3cd   : > { %3506 = vmatmul.bf16.gmra.mxu2 %v2693_v57  ;;  %v12574_v57 = vld [vmem:[#allocation12 + $0x18] sm:$0xff] }
 0x3ce   : > { %v3029_v2 = vpop.f32.mrf.mxu1  ;;  %v14792_v29 = vpop.f32.mrf.mxu0  ;;  %5258 = vmatpush.bf16.msra.mxu1 %v12574_v57 }
 0x3cf   : > { %v14790_v14 = vadd.f32 %v3029_v2, %v2941_v6  ;;  %18808 = vst [vmem:[#allocation84_spill] sm:$0xff] %v14792_v29  ;;  %v2538_v2 = vunpack.c.h.bf16 %v14199_v33 }
 0x3d0   : > { %v14796_v60 = vpop.f32.mrf.mxu2  ;;  %v2204_v8 = vpop.permute.xlu0 %2203 }
 0x3d1   : > { %18807 = vst [vmem:[#allocation83_spill] sm:$0xff] %v14790_v14  ;;  %11403 = vmatmul.msk.bf16.gmra.mxu0 %vm2242_vm13, %v2700_v41  ;;  %v2456_v38 = vsel %vm2308_vm15, %v2418_v16, %v2204_v8  ;;  %v2677_v8 = vpack.c.bf16 %v2584_v12, %v2581_v26  ;;  %v2122_v34 = vpop.permute.xlu1 %2121  ;;  %v2631_v16 = vmax.f32 %v2535_v48, 0.0 }
 0x3d2   : > { %18809 = vst [vmem:[#allocation85_spill] sm:$0xff] %v14796_v60  ;;  %3048 = vmatmul.bf16.gmra.mxu1 %v2456_v38  ;;  %v2522_v6 = vunpack.c.l.bf16 %v2456_v38  ;;  %v2525_v61 = vunpack.c.h.bf16 %v2456_v38  ;;  %v2634_v38 = vmax.f32 %v2538_v2, 0.0  ;;  %v2380_v57 = vsel %vm2242_vm13, %v14156_v24, %v2122_v34  ;;  %v12586_v2 = vld [vmem:[#allocation12 + $0x78] sm:$0xff] }
 0x3d3   : > { %v2494_v24 = vunpack.c.h.bf16 %v14047_v23  ;;  %5343 = vmatpush.bf16.msra.mxu3 %v12586_v2 }
 0x3d4   : > { %v2618_v41 = vmax.f32 %v2522_v6, 0.0  ;;  %v2621_v60 = vmax.f32 %v2525_v61, 0.0  ;;  %v2159_v61 = vpop.permute.xlu2 %2158  ;;  %v2703_v26 = vpack.c.bf16 %v2634_v38, %v2631_v16  ;;  %v2541_v38 = vunpack.c.l.bf16 %v14275_v51 }
 0x3d5   : > { %v2420_v12 = vsel %vm2275_vm14, %v2380_v57, %v2159_v61  ;;  %v2590_v34 = vmax.f32 %v2494_v24, 0.0 }
 0x3d6   : > { %v14801_v47 = vpop.f32.mrf.mxu1  ;;  %v14803_v1 = vpop.f32.mrf.mxu0  ;;  %v2696_v53 = vpack.c.bf16 %v2621_v60, %v2618_v41  ;;  %v2491_v60 = vunpack.c.l.bf16 %v14047_v23  ;;  %v2637_v23 = vmax.f32 %v2541_v38, 0.0 }
 0x3d7   : > { %18810 = vst [vmem:[#allocation86_spill] sm:$0xff] %v14801_v47 }
 0x3d8   : > { %18811 = vst [vmem:[#allocation87_spill] sm:$0xff] %v14803_v1  ;;  %v14807_v45 = vpop.f32.mrf.mxu2  ;;  %v2206_v1 = vpop.permute.xlu0 %2205 }
 0x3d9   : > { %18812 = vst [vmem:[#allocation88_spill] sm:$0xff] %v14807_v45  ;;  %v2459_v22 = vsel %vm2308_vm15, %v2420_v12, %v2206_v1 }
 0x3da   : > { %3392 = vmatmul.bf16.vlgmr.msrb.gmra.mxu3 %v2677_v8  ;;  %v2531_v41 = vunpack.c.h.bf16 %v2459_v22  ;;  %v2587_v8 = vmax.f32 %v2491_v60, 0.0 }
 0x3dc   : > { %v2627_v57 = vmax.f32 %v2531_v41, 0.0  ;;  %v2680_v61 = vpack.c.bf16 %v2590_v34, %v2587_v8  ;;  %v2161_v2 = vpop.permute.xlu2 %2160  ;;  %v2497_v8 = vunpack.c.l.bf16 %v14072_v27  ;;  %v2500_v34 = vunpack.c.h.bf16 %v14072_v27 }
 0x3dd   : > { %3511 = vmatmul.bf16.gmra.mxu2 %v2696_v53 }
 0x3de   : > { %v3034_v58 = vpop.f32.mrf.mxu1  ;;  %v14815_v6 = vpop.f32.mrf.mxu0 }
 0x3df   : > { %v14813_v33 = vadd.f32 %v3034_v58, %v2946_v11  ;;  %v2528_v58 = vunpack.c.l.bf16 %v2459_v22  ;;  %v2544_v11 = vunpack.c.h.bf16 %v14275_v51 }
 0x3e0   : > { %v14818_v48 = vpop.f32.mrf.mxu2  ;;  %v2208_v60 = vpop.permute.xlu0 %2207 }
 0x3e1   : > { %18813 = vst [vmem:[#allocation89_spill] sm:$0xff] %v14813_v33  ;;  %11404 = vmatmul.msk.bf16.gmra.mxu0 %vm2242_vm13, %v2703_v26  ;;  %v2624_v53 = vmax.f32 %v2528_v58, 0.0  ;;  %v2124_v26 = vpop.permute.xlu1 %2123  ;;  %v2640_v12 = vmax.f32 %v2544_v11, 0.0  ;;  %v2593_v11 = vmax.f32 %v2497_v8, 0.0 }
 0x3e2   : > { %18814 = vst [vmem:[#allocation90_spill] sm:$0xff] %v14818_v48  ;;  %3053 = vmatmul.bf16.gmra.mxu1 %v2459_v22  ;;  %v2383_v22 = vsel %vm2242_vm13, %v14175_v59, %v2124_v26  ;;  %v2550_v26 = vunpack.c.h.bf16 %v14313_v7 }
 0x3e3   : > { %v2699_v48 = vpack.c.bf16 %v2627_v57, %v2624_v53  ;;  %v2706_v45 = vpack.c.bf16 %v2640_v12, %v2637_v23  ;;  %v2422_v51 = vsel %vm2275_vm14, %v2383_v22, %v2161_v2  ;;  %v2596_v53 = vmax.f32 %v2500_v34, 0.0 }
 0x3e4   : > { %v2462_v41 = vsel %vm2308_vm15, %v2422_v51, %v2208_v60  ;;  %v2646_v2 = vmax.f32 %v2550_v26, 0.0  ;;  %v12585_v26 = vld [vmem:[#allocation12 + $0x70] sm:$0xff] }
 0x3e5   : > { %v2534_v59 = vunpack.c.l.bf16 %v2462_v41  ;;  %v2537_v38 = vunpack.c.h.bf16 %v2462_v41  ;;  %v2683_v22 = vpack.c.bf16 %v2596_v53, %v2593_v11  ;;  %v18818_v11 = vld [vmem:[#allocation28_spill] sm:$0xff]  ;;  %5344 = vmatpush.bf16.msra.mxu3 %v12585_v26 }
 0x3e6   : > { %v14824_v16 = vpop.f32.mrf.mxu0  ;;  %v2503_v53 = vunpack.c.l.bf16 %v18818_v11 }
 0x3e7   : > { %v2633_v23 = vmax.f32 %v2537_v38, 0.0 }
 0x3e8   : > { %v14828_v1 = vpop.f32.mrf.mxu2  ;;  %v2210_v8 = vpop.permute.xlu0 %2209 }
 0x3e9   : > { %18815 = vst [vmem:[#allocation91_spill] sm:$0xff] %v14828_v1  ;;  %v2126_v60 = vpop.permute.xlu1 %2125 }
 0x3ea   : > { %3397 = vmatmul.bf16.gmra.mxu3 %v2680_v61  ;;  %v2547_v61 = vunpack.c.l.bf16 %v14313_v7 }
 0x3ec   : > { %v2643_v27 = vmax.f32 %v2547_v61, 0.0  ;;  %v2506_v61 = vunpack.c.h.bf16 %v18818_v11 }
 0x3ed   : > { %3516 = vmatmul.bf16.gmra.mxu2 %v2699_v48  ;;  %v12573_v48 = vld [vmem:[#allocation12 + $0x10] sm:$0xff] }
 0x3ee   : > { %v14832_v24 = vpop.f32.mrf.mxu0  ;;  %5259 = vmatpush.bf16.msra.mxu1 %v12573_v48  ;;  %v2163_v48 = vpop.permute.xlu2 %2162 }
 0x3f0   : > { %v14835_v58 = vpop.f32.mrf.mxu2 }
 0x3f1   : > { %18816 = vst [vmem:[#allocation92_spill] sm:$0xff] %v14835_v58  ;;  %11405 = vmatmul.msk.bf16.gmra.mxu0 %vm2242_vm13, %v2706_v45  ;;  %v2630_v45 = vmax.f32 %v2534_v59, 0.0  ;;  %v2709_v58 = vpack.c.bf16 %v2646_v2, %v2643_v27  ;;  %v2553_v27 = vunpack.c.l.bf16 %v14352_v4  ;;  %v2556_v2 = vunpack.c.h.bf16 %v14352_v4 }
 0x3f2   : > { %3058 = vmatmul.bf16.gmra.mxu1 %v2462_v41  ;;  %v2386_v41 = vsel %vm2242_vm13, %v14202_v18, %v2126_v60 }
 0x3f3   : > { %v2702_v51 = vpack.c.bf16 %v2633_v23, %v2630_v45  ;;  %v2424_v7 = vsel %vm2275_vm14, %v2386_v41, %v2163_v48  ;;  %v2599_v23 = vmax.f32 %v2503_v53, 0.0  ;;  %v2128_v48 = vpop.permute.xlu1 %2127  ;;  %v2652_v11 = vmax.f32 %v2556_v2, 0.0  ;;  %v2212_v53 = vpop.permute.xlu0 %2211 }
 0x3f4   : > { %v2465_v38 = vsel %vm2308_vm15, %v2424_v7, %v2210_v8  ;;  %v2649_v7 = vmax.f32 %v2553_v27, 0.0 }
 0x3f5   : > { %v2540_v18 = vunpack.c.l.bf16 %v2465_v38  ;;  %v2543_v45 = vunpack.c.h.bf16 %v2465_v38 }
 0x3f6   : > { %v14841_v57 = vpop.f32.mrf.mxu0  ;;  %v2712_v1 = vpack.c.bf16 %v2652_v11, %v2649_v7  ;;  %v2562_v7 = vunpack.c.h.bf16 %v14488_v9 }
 0x3f8   : > { %v14845_v12 = vpop.f32.mrf.mxu2 }
 0x3f9   : > { %18817 = vst [vmem:[#allocation93_spill] sm:$0xff] %v14845_v12  ;;  %v2165_v12 = vpop.permute.xlu2 %2164 }
 0x3fa   : > { %3402 = vmatmul.bf16.gmra.mxu3 %v2683_v22  ;;  %v2602_v22 = vmax.f32 %v2506_v61, 0.0 }
 0x3fc   : > { %v2686_v8 = vpack.c.bf16 %v2602_v22, %v2599_v23  ;;  %v18819_v23 = vld [vmem:[#allocation29_spill] sm:$0xff] }
 0x3fd   : > { %3521 = vmatmul.bf16.gmra.mxu2 %v2702_v51  ;;  %v2639_v51 = vmax.f32 %v2543_v45, 0.0  ;;  %v2509_v22 = vunpack.c.l.bf16 %v18819_v23  ;;  %v2512_v27 = vunpack.c.h.bf16 %v18819_v23 }
 0x3fe   : > { %v14849_v34 = vpop.f32.mrf.mxu0 }
 0x400   : > { %v14852_v59 = vpop.f32.mrf.mxu2 }
 0x401   : > { %11406 = vmatmul.msk.bf16.gmra.mxu0 %vm2242_vm13, %v2709_v58  ;;  %v2636_v58 = vmax.f32 %v2540_v18, 0.0 }
 0x402   : > { %3063 = vmatmul.bf16.gmra.mxu1 %v2465_v38  ;;  %v2389_v38 = vsel %vm2242_vm13, %v14281_v30, %v2128_v48  ;;  %v12572_v30 = vld [vmem:[#allocation12 + $0x8] sm:$0xff] }
 0x403   : > { %v2705_v26 = vpack.c.bf16 %v2639_v51, %v2636_v58  ;;  %v2426_v4 = vsel %vm2275_vm14, %v2389_v38, %v2165_v12  ;;  %v2605_v51 = vmax.f32 %v2509_v22, 0.0  ;;  %5260 = vmatpush.bf16.msra.mxu1 %v12572_v30  ;;  %v2559_v12 = vunpack.c.l.bf16 %v14488_v9  ;;  %v2214_v30 = vpop.permute.xlu0 %2213  ;;  %v2167_v9 = vpop.permute.xlu2 %2166 }
 0x404   : > { %v2468_v45 = vsel %vm2308_vm15, %v2426_v4, %v2212_v53  ;;  %v2130_v53 = vpop.permute.xlu1 %2129  ;;  %v14881_v4 = vpop.f32.mrf.mxu3 }
 0x405   : > { %v2546_v2 = vunpack.c.l.bf16 %v2468_v45  ;;  %v2549_v58 = vunpack.c.h.bf16 %v2468_v45  ;;  %v2655_v23 = vmax.f32 %v2559_v12, 0.0 }
 0x406   : > { %v14858_v60 = vpop.f32.mrf.mxu0 }
 0x407   : > { %v2645_v11 = vmax.f32 %v2549_v58, 0.0 }
 0x408   : > { %v14862_v41 = vpop.f32.mrf.mxu2 }
 0x40a   : > { %3407 = vmatmul.bf16.gmra.mxu3 %v2686_v8  ;;  %v2608_v8 = vmax.f32 %v2512_v27, 0.0  ;;  %v2392_v27 = vsel %vm2242_vm13, %v14359_v10, %v2130_v53  ;;  %v12584_v10 = vld [vmem:[#allocation12 + $0x68] sm:$0xff] }
 0x40b   : > { %v2428_v58 = vsel %vm2275_vm14, %v2392_v27, %v2167_v9  ;;  %5345 = vmatpush.bf16.msra.mxu3 %v12584_v10  ;;  %v2568_v27 = vunpack.c.h.bf16 %v14539_v28  ;;  %v2216_v39 = vpop.permute.xlu0 %2215 }
 0x40c   : > { %v2689_v38 = vpack.c.bf16 %v2608_v8, %v2605_v51  ;;  %v2471_v51 = vsel %vm2308_vm15, %v2428_v58, %v2214_v30  ;;  %v18820_v8 = vld [vmem:[#allocation30_spill] sm:$0xff]  ;;  %v14900_v30 = vpop.f32.mrf.mxu1  ;;  %v2132_v32 = vpop.permute.xlu1 %2131 }
 0x40d   : > { %3526 = vmatmul.bf16.gmra.mxu2 %v2705_v26  ;;  %v2515_v12 = vunpack.c.l.bf16 %v18820_v8  ;;  %18822 = vst [vmem:[#allocation29_spill] sm:$0xff] %v14900_v30 }
 0x40e   : > { %v14866_v61 = vpop.f32.mrf.mxu0 }
 0x40f   : > { %v2611_v53 = vmax.f32 %v2515_v12, 0.0 }
 0x410   : > { %v14869_v18 = vpop.f32.mrf.mxu2 }
 0x411   : > { %11407 = vmatmul.msk.bf16.gmra.mxu0 %vm2242_vm13, %v2712_v1  ;;  %v2642_v1 = vmax.f32 %v2546_v2, 0.0 }
 0x412   : > { %3068 = vmatmul.bf16.gmra.mxu1 %v2468_v45  ;;  %v2658_v45 = vmax.f32 %v2562_v7, 0.0  ;;  %v2518_v7 = vunpack.c.h.bf16 %v18820_v8 }
 0x413   : > { %v2708_v22 = vpack.c.bf16 %v2645_v11, %v2642_v1  ;;  %v2552_v1 = vunpack.c.l.bf16 %v2471_v51  ;;  %v2555_v11 = vunpack.c.h.bf16 %v2471_v51 }
 0x414   : > { %v2715_v2 = vpack.c.bf16 %v2658_v45, %v2655_v23  ;;  %v2614_v23 = vmax.f32 %v2518_v7, 0.0  ;;  %v2395_v7 = vsel %vm2242_vm13, %v14379_v42, %v2132_v32  ;;  %v18825_v32 = vld [vmem:[#allocation31_spill] sm:$0xff] }
 0x415   : > { %v2648_v9 = vmax.f32 %v2552_v1, 0.0  ;;  %v2951_v1 = vadd.f32 %v14723_v43, %v18823_v15 }
 0x416   : > { %v14875_v48 = vpop.f32.mrf.mxu0  ;;  %v2692_v8 = vpack.c.bf16 %v2614_v23, %v2611_v53 }
 0x418   : > { %v14879_v26 = vpop.f32.mrf.mxu2 }
 0x41a   : > { %3412 = vmatmul.bf16.gmra.mxu3 %v2689_v38  ;;  %v14894_v38 = vpop.f32.mrf.mxu3 }
 0x41b   : > { %18821 = vst [vmem:[#allocation28_spill] sm:$0xff] %v14894_v38  ;;  %v2664_v38 = vmax.f32 %v2568_v27, 0.0 }
 0x41d   : > { %3531 = vmatmul.bf16.gmra.mxu2 %v2708_v22  ;;  %v2565_v22 = vunpack.c.l.bf16 %v14539_v28 }
 0x41e   : > { %v14885_v29 = vpop.f32.mrf.mxu0 }
 0x420   : > { %v14888_v46 = vpop.f32.mrf.mxu2 }
 0x421   : > { %11408 = vmatmul.msk.bf16.gmra.mxu0 %vm2242_vm13, %v2715_v2  ;;  %v2651_v2 = vmax.f32 %v2555_v11, 0.0  ;;  %v2169_v11 = vpop.permute.xlu2 %2168 }
 0x422   : > { %3073 = vmatmul.bf16.gmra.mxu1 %v2471_v51  ;;  %v2661_v51 = vmax.f32 %v2565_v22, 0.0  ;;  %v2430_v23 = vsel %vm2275_vm14, %v2395_v7, %v2169_v11 }
 0x423   : > { %v2711_v12 = vpack.c.bf16 %v2651_v2, %v2648_v9  ;;  %v2474_v42 = vsel %vm2308_vm15, %v2430_v23, %v2216_v39  ;;  %v2521_v9 = vunpack.c.l.bf16 %v18825_v32  ;;  %v2524_v2 = vunpack.c.h.bf16 %v18825_v32 }
 0x424   : > { %v2718_v20 = vpack.c.bf16 %v2664_v38, %v2661_v51  ;;  %v2558_v15 = vunpack.c.l.bf16 %v2474_v42 }
 0x425   : > { %v2617_v51 = vmax.f32 %v2521_v9, 0.0  ;;  %v2620_v7 = vmax.f32 %v2524_v2, 0.0 }
 0x426   : > { %v14896_v45 = vpop.f32.mrf.mxu0  ;;  %v2654_v39 = vmax.f32 %v2558_v15, 0.0  ;;  %v12594_v15 = vld [vmem:[#allocation12 + $0xb8] sm:$0xff] }
 0x427   : > { %v2695_v54 = vpack.c.bf16 %v2620_v7, %v2617_v51  ;;  %5432 = vmatpush.bf16.msra.mxu2 %v12594_v15 }
 0x428   : > { %v14902_v58 = vpop.f32.mrf.mxu2 }
 0x429   : > { %v2171_v47 = vpop.permute.xlu2 %2170 }
 0x42a   : > { %3417 = vmatmul.bf16.gmra.mxu3 %v2692_v8  ;;  %v12571_v8 = vld [vmem:[#allocation12] sm:$0xff] }
 0x42b   : > { %5261 = vmatpush.bf16.msra.mxu1 %v12571_v8  ;;  %v2218_v8 = vpop.permute.xlu0 %2217 }
 0x42c   : > { %v14906_v10 = vpop.f32.mrf.mxu3 }
 0x42d   : > { %3536 = vmatmul.bf16.gmra.mxu2 %v2711_v12  ;;  %v2561_v12 = vunpack.c.h.bf16 %v2474_v42 }
 0x42e   : > { %v14908_v28 = vpop.f32.mrf.mxu0 }
 0x42f   : > { %v3039_v53 = vpop.f32.mrf.mxu1 }
 0x430   : > { %v14913_v22 = vpop.f32.mrf.mxu2  ;;  %v14915_v27 = vadd.f32 %v3039_v53, %v2951_v1  ;;  %v2571_v1 = vunpack.c.l.bf16 %v14580_v19  ;;  %v2657_v53 = vmax.f32 %v2561_v12, 0.0  ;;  %v18827_v12 = vld [vmem:[#allocation41_spill] sm:$0xff] }
 0x431   : > { %11409 = vmatmul.msk.bf16.gmra.mxu0 %vm2242_vm13, %v2718_v20  ;;  %v2574_v20 = vunpack.c.h.bf16 %v14580_v19 }
 0x432   : > { %18824 = vst [vmem:[#allocation30_spill] sm:$0xff] %v14915_v27  ;;  %3078 = vmatmul.bf16.gmra.mxu1 %v2474_v42  ;;  %v2134_v27 = vpop.permute.xlu1 %2133  ;;  %v2667_v42 = vmax.f32 %v2571_v1, 0.0  ;;  %v2714_v9 = vpack.c.bf16 %v2657_v53, %v2654_v39 }
 0x433   : > { %v2670_v30 = vmax.f32 %v2574_v20, 0.0  ;;  %v2398_v2 = vsel %vm2242_vm13, %v14497_v17, %v2134_v27  ;;  %v18829_v27 = vld [vmem:[#allocation32_spill] sm:$0xff] }
 0x434   : > { %v14921_v38 = vpop.f32.mrf.mxu3  ;;  %v2432_v1 = vsel %vm2275_vm14, %v2398_v2, %v2171_v47  ;;  %v2527_v39 = vunpack.c.l.bf16 %v18829_v27  ;;  %v2530_v53 = vunpack.c.h.bf16 %v18829_v27  ;;  %v2577_v47 = vunpack.c.l.bf16 %v14613_v5 }
 0x435   : > { %v2721_v51 = vpack.c.bf16 %v2670_v30, %v2667_v42  ;;  %v2477_v17 = vsel %vm2308_vm15, %v2432_v1, %v2218_v8  ;;  %v12593_v30 = vld [vmem:[#allocation12 + $0xb0] sm:$0xff]  ;;  %v12602_v42 = vld [vmem:[#allocation12 + $0xf8] sm:$0xff]  ;;  %v2580_v2 = vunpack.c.h.bf16 %v14613_v5 }
 0x436   : > { %v14923_v11 = vpop.f32.mrf.mxu0  ;;  %v2623_v15 = vmax.f32 %v2527_v39, 0.0  ;;  %5433 = vmatpush.bf16.msra.mxu2 %v12593_v30  ;;  %5521 = vmatpush.bf16.msrb.mxu0 %v12602_v42  ;;  %v2673_v13 = vmax.f32 %v2577_v47, 0.0 }
 0x437   : > { %v14927_v23 = vpop.f32.mrf.mxu1  ;;  %v2676_v14 = vmax.f32 %v2580_v2, 0.0  ;;  %v18832_v2 = vld [vmem:[#allocation44_spill] sm:$0xff] }
 0x438   : > { %18826 = vst [vmem:[#allocation39_spill] sm:$0xff] %v14927_v23  ;;  %v14929_v32 = vpop.f32.mrf.mxu2  ;;  %v2956_v23 = vadd.f32 %v14723_v43, %v18827_v12  ;;  %v2567_v12 = vunpack.c.h.bf16 %v2477_v17 }
 0x439   : > { %v2724_v30 = vpack.c.bf16 %v2676_v14, %v2673_v13  ;;  %v12590_v13 = vld [vmem:[#allocation12 + $0x98] sm:$0xff]  ;;  %v12599_v14 = vld [vmem:[#allocation12 + $0xe0] sm:$0xff] }
 0x43a   : > { %3422 = vmatmul.bf16.gmra.mxu3 %v2695_v54  ;;  %v2663_v1 = vmax.f32 %v2567_v12, 0.0  ;;  %v2136_v5 = vpop.permute.xlu1 %2135  ;;  %v2220_v12 = vpop.permute.xlu0 %2219 }
 0x43d   : > { %3541 = vmatmul.bf16.gmra.mxu2 %v2714_v9  ;;  %v14933_v33 = vpop.f32.mrf.mxu3  ;;  %v2564_v9 = vunpack.c.l.bf16 %v2477_v17 }
 0x43e   : > { %v14935_v19 = vpop.f32.mrf.mxu0 }
 0x43f   : > { %v3044_v7 = vpop.f32.mrf.mxu1  ;;  %v2660_v8 = vmax.f32 %v2564_v9, 0.0  ;;  %v2401_v9 = vsel %vm2242_vm13, %v14550_v3, %v2136_v5 }
 0x440   : > { %v14940_v54 = vpop.f32.mrf.mxu2  ;;  %v14942_v20 = vadd.f32 %v3044_v7, %v2956_v23  ;;  %v2626_v23 = vmax.f32 %v2530_v53, 0.0  ;;  %v12591_v53 = vld [vmem:[#allocation12 + $0xa0] sm:$0xff] }
 0x441   : > { %11410 = vmatmul.msk.bf16.gmra.mxu0 %vm2242_vm13, %v2721_v51  ;;  %v2717_v39 = vpack.c.bf16 %v2663_v1, %v2660_v8  ;;  %v12583_v8 = vld [vmem:[#allocation12 + $0x60] sm:$0xff]  ;;  %v18833_v1 = vld [vmem:[#allocation34_spill] sm:$0xff] }
 0x442   : > { %18828 = vst [vmem:[#allocation31_spill] sm:$0xff] %v14942_v20  ;;  %3083 = vmatmul.bf16.gmra.mxu1 %v2477_v17  ;;  %v12592_v20 = vld [vmem:[#allocation12 + $0xa8] sm:$0xff]  ;;  %v12601_v17 = vld [vmem:[#allocation12 + $0xf0] sm:$0xff]  ;;  %v2698_v52 = vpack.c.bf16 %v2626_v23, %v2623_v15  ;;  %v2961_v15 = vadd.f32 %v14723_v43, %v18832_v2  ;;  %v2533_v3 = vunpack.c.l.bf16 %v18833_v1  ;;  %5346 = vmatpush.bf16.msra.mxu3 %v12583_v8  ;;  %v2222_v63 = vpop.permute.xlu0 %2221 }
 0x443   : > { %5434 = vmatpush.bf16.msra.mxu2 %v12592_v20  ;;  %5522 = vmatpush.bf16.msrb.mxu0 %v12601_v17  ;;  %v2173_v20 = vpop.permute.xlu2 %2172  ;;  %v2536_v17 = vunpack.c.h.bf16 %v18833_v1  ;;  %v12589_v2 = vld [vmem:[#allocation12 + $0x90] sm:$0xff]  ;;  %v12588_v8 = vld [vmem:[#allocation12 + $0x88] sm:$0xff] }
 0x444   : > { %v2434_v23 = vsel %vm2275_vm14, %v2401_v9, %v2173_v20  ;;  %v12598_v20 = vld [vmem:[#allocation12 + $0xd8] sm:$0xff] }
 0x445   : > { %v14950_v7 = vpop.f32.mrf.mxu3  ;;  %v2632_v36 = vmax.f32 %v2536_v17, 0.0  ;;  %v2138_v17 = vpop.permute.xlu1 %2137 }
 0x446   : > { %v14952_v51 = vpop.f32.mrf.mxu0 }
 0x447   : > { %v14954_v27 = vpop.f32.mrf.mxu1  ;;  %5523 = vmatpush.bf16.msrb.mxu0 %v12600_v0  ;;  %5435 = vmatpush.bf16.msra.mxu2 %v12591_v53  ;;  %v2480_v0 = vsel %vm2308_vm15, %v2434_v23, %v2220_v12 }
 0x448   : > { %18830 = vst [vmem:[#allocation41_spill] sm:$0xff] %v14954_v27  ;;  %v14956_v44 = vpop.f32.mrf.mxu2  ;;  %v2570_v53 = vunpack.c.l.bf16 %v2480_v0  ;;  %v2573_v9 = vunpack.c.h.bf16 %v2480_v0  ;;  %v2629_v27 = vmax.f32 %v2533_v3, 0.0 }
 0x44a   : > { %3427 = vmatmul.bf16.gmra.mxu3 %v2698_v52  ;;  %v2701_v3 = vpack.c.bf16 %v2632_v36, %v2629_v27  ;;  %v18839_v36 = vld [vmem:[#allocation46_spill] sm:$0xff] }
 0x44b   : > { %5524 = vmatpush.bf16.msrb.mxu0 %v12599_v14  ;;  %5436 = vmatpush.bf16.msra.mxu2 %v12590_v13  ;;  %v12597_v13 = vld [vmem:[#allocation12 + $0xd0] sm:$0xff]  ;;  %v2966_v27 = vadd.f32 %v14723_v43, %v18839_v36 }
 0x44d   : > { %3546 = vmatmul.bf16.gmra.mxu2 %v2717_v39  ;;  %v14960_v42 = vpop.f32.mrf.mxu3 }
 0x44e   : > { %18831 = vst [vmem:[#allocation32_spill] sm:$0xff] %v14960_v42  ;;  %v14962_v47 = vpop.f32.mrf.mxu0 }
 0x44f   : > { %v3049_v52 = vpop.f32.mrf.mxu1  ;;  %5525 = vmatpush.bf16.msrb.mxu0 %v12598_v20  ;;  %5437 = vmatpush.bf16.msra.mxu2 %v12589_v2  ;;  %v14988_v20 = vld [vmem:[%s18556_s3] ss:$0 sm:$0xff] }
 0x450   : > { %v14969_v5 = vpop.f32.mrf.mxu2  ;;  %v14971_v39 = vadd.f32 %v3049_v52, %v2961_v15  ;;  %v18837_v15 = vld [vmem:[#allocation45_spill] sm:$0xff]  ;;  %v2669_v52 = vmax.f32 %v2573_v9, 0.0  ;;  %v12596_v9 = vld [vmem:[#allocation12 + $0xc8] sm:$0xff] }
 0x451   : > { %11411 = vmatmul.msk.bf16.gmra.mxu0 %vm2242_vm13, %v2724_v30  ;;  %v2963_v12 = vadd.f32 %v14723_v43, %v18837_v15  ;;  %v2666_v30 = vmax.f32 %v2570_v53, 0.0  ;;  %v12587_v53 = vld [vmem:[#allocation12 + $0x80] sm:$0xff]  ;;  %v2404_v15 = vsel %vm2242_vm13, %v14697_v56, %v2138_v17 }
 0x452   : > { %18834 = vst [vmem:[#allocation44_spill] sm:$0xff] %v14971_v39  ;;  %3088 = vmatmul.bf16.gmra.mxu1 %v2480_v0  ;;  %v2175_v39 = vpop.permute.xlu2 %2174  ;;  %v12595_v56 = vld [vmem:[#allocation12 + $0xc0] sm:$0xff] }
 0x453   : > { %5526 = vmatpush.bf16.msrb.mxu0 %v12597_v13  ;;  %5438 = vmatpush.bf16.msra.mxu2 %v12588_v8  ;;  %v2720_v2 = vpack.c.bf16 %v2669_v52, %v2666_v30  ;;  %v18840_v13 = vld [vmem:[#allocation36_spill] sm:$0xff]  ;;  %v2436_v30 = vsel %vm2275_vm14, %v2404_v15, %v2175_v39 }
 0x454   : > { %v2542_v17 = vunpack.c.h.bf16 %v18840_v13 }
 0x455   : > { %v14975_v49 = vpop.f32.mrf.mxu3 }
 0x456   : > { %18835 = vst [vmem:[#allocation34_spill] sm:$0xff] %v14975_v49  ;;  %v14977_v1 = vpop.f32.mrf.mxu0  ;;  %v2638_v21 = vmax.f32 %v2542_v17, 0.0 }
 0x457   : > { %18836 = vst [vmem:[#allocation94_spill] sm:$0xff] %v14977_v1  ;;  %v3051_v23 = vpop.f32.mrf.mxu1  ;;  %5527 = vmatpush.bf16.msrb.mxu0 %v12596_v9  ;;  %5439 = vmatpush.bf16.msra.mxu2 %v12587_v53 }
 0x458   : > { %v14981_v14 = vpop.f32.mrf.mxu2  ;;  %v14983_v0 = vadd.f32 %v3051_v23, %v2963_v12 }
 0x45a   : > { %18838 = vst [vmem:[#allocation45_spill] sm:$0xff] %v14983_v0  ;;  %3432 = vmatmul.bf16.gmra.mxu3 %v2701_v3  ;;  %v2539_v3 = vunpack.c.l.bf16 %v18840_v13  ;;  %v12610_v0 = vld [vmem:[#allocation12 + $0x138] sm:$0xff]  ;;  %v18843_v13 = vld [vmem:[#allocation47_spill] sm:$0xff] }
 0x45b   : > { %5610 = vmatpush.bf16.msrb.mxu1 %v12610_v0  ;;  %5528 = vmatpush.bf16.msrb.mxu0 %v12595_v56 }
 0x45c   : > { %v2635_v36 = vmax.f32 %v2539_v3, 0.0 }
 0x45d   : > { %3551 = vmatmul.bf16.gmra.mxu2 %v2720_v2  ;;  %v3393_v12 = vpop.f32.mrf.mxu3 }
 0x45e   : > { %v3394_v23 = vadd.f32 %v14988_v20, %v3393_v12  ;;  %v14997_v52 = vpop.f32.mrf.mxu0  ;;  %v2483_v12 = vsel %vm2308_vm15, %v2436_v30, %v2222_v63  ;;  %v2704_v3 = vpack.c.bf16 %v2638_v21, %v2635_v36 }
 0x45f   : > { %18841 = vst [vmem:[#allocation46_spill] sm:$0xff] %v14997_v52  ;;  %v3054_v8 = vpop.f32.mrf.mxu1  ;;  %v2576_v39 = vunpack.c.l.bf16 %v2483_v12  ;;  %v2579_v15 = vunpack.c.h.bf16 %v2483_v12 }
 0x460   : > { %v3483_v2 = vadd.f32 %v14852_v59, %v3394_v23  ;;  %v15001_v9 = vpop.f32.mrf.mxu2  ;;  %v15003_v40 = vadd.f32 %v3054_v8, %v2966_v27  ;;  %v2968_v59 = vadd.f32 %v14723_v43, %v18843_v13 }
 0x461   : > { %v2672_v8 = vmax.f32 %v2576_v39, 0.0  ;;  %v2675_v63 = vmax.f32 %v2579_v15, 0.0  ;;  %v18846_v39 = vmov 0 }
 0x462   : > { %18842 = vst [vmem:[#allocation36_spill] sm:$0xff] %v15003_v40  ;;  %v3572_v53 = vadd.f32 %v14815_v6, %v3483_v2  ;;  %3093 = vmatmul.bf16.gmra.mxu1 %v2483_v12  ;;  %v18847_v39 = vsel %vm15020_vm1, 4294967295, %v18846_v39 }
 0x463   : > { %18848 = vst [vmem:[#allocation96_spill] sm:$0xff] %v18847_v39  ;;  %v2723_v15 = vpack.c.bf16 %v2675_v63, %v2672_v8 }
 0x464   : > { %v3651_v49 = vmax.f32 %v3572_v53, 0.0 }
 0x465   : > { %v3395_v52 = vpop.f32.mrf.mxu3 }
 0x466   : > { %v3683_v23 = vpack.c.bf16 %v3651_v49, %v3651_v49  ;;  %v3396_v27 = vadd.f32 %v14988_v20, %v3395_v52  ;;  %v15015_v17 = vpop.f32.mrf.mxu0  ;;  %v4154_v52 = vld [vmem:[#allocation3 + $0x8] sm:$0x1] }
 0x467   : > { %v3056_v0 = vpop.f32.mrf.mxu1  ;;  %18845 = vst [vmem:[#allocation95_spill] sm:$0xff] %v15015_v17  ;;  %v4318_v36 = vunpack.c.l.b16 %v4154_v52 }
 0x468   : > { %v3716_v30 = vshrl.u32 %v3683_v23, 16  ;;  %v3485_v6 = vadd.f32 %v14862_v41, %v3396_v27  ;;  %v15011_v56 = vpop.f32.mrf.mxu2  ;;  %v15013_v2 = vadd.f32 %v3056_v0, %v2968_v59  ;;  %v3719_v53 = vshll.u32 %v3683_v23, 16  ;;  %v4038_v41 = vld [vmem:[#allocation3 + $0xc] sm:$0xf]  ;;  %v18849_v27 = vld [vmem:[#allocation48_spill] sm:$0xff] }
 0x469   : > { %v2971_v23 = vadd.f32 %v14723_v43, %v18849_v27 }
 0x46a   : > { %18844 = vst [vmem:[#allocation47_spill] sm:$0xff] %v15013_v2  ;;  %v3718_v12 = vrot.slane %v3716_v30, 7  ;;  %v3574_v49 = vadd.f32 %v14824_v16, %v3485_v6  ;;  %3437 = vmatmul.bf16.gmra.mxu3 %v2704_v3  ;;  %v15029_v6 = vld [vmem:[#allocation3] sm:$0xff]  ;;  %v18850_v3 = vld [vmem:[#allocation43_spill] sm:$0xff] }
 0x46b   : > { %v2545_v2 = vunpack.c.l.bf16 %v18850_v3  ;;  %v2548_v8 = vunpack.c.h.bf16 %v18850_v3 }
 0x46c   : > { %v3721_v13 = vor.u32 %v3719_v53, %v3718_v12  ;;  %v3652_v59 = vmax.f32 %v3574_v49, 0.0  ;;  %v12582_v53 = vld [vmem:[#allocation12 + $0x58] sm:$0xff] }
 0x46d   : > { %3556 = vmatmul.bf16.gmra.mxu2 %v2723_v15  ;;  %v3398_v21 = vpop.f32.mrf.mxu3  ;;  %5347 = vmatpush.bf16.msra.mxu3 %v12582_v53  ;;  %v2641_v3 = vmax.f32 %v2545_v2, 0.0 }
 0x46e   : > { %v4039_v16 = vsel %vm15020_vm1, %v3721_v13, %v4038_v41  ;;  %v3684_v0 = vpack.c.bf16 %v3652_v59, %v3652_v59  ;;  %v3399_v30 = vadd.f32 %v14988_v20, %v3398_v21  ;;  %v15038_v41 = vpack.c.b16 %v4318_v36, %v4318_v36  ;;  %v15047_v40 = vpop.f32.mrf.mxu0 }
 0x46f   : > { %4040 = vst [vmem:[#allocation3 + $0xc] sm:$0xf] %v4039_v16  ;;  %v3059_v63 = vpop.f32.mrf.mxu1  ;;  %v18852_v16 = vmov 0 }
 0x470   : > { %v3724_v49 = vshrl.u32 %v3684_v0, 16  ;;  %v3488_v52 = vadd.f32 %v14869_v18, %v3399_v30  ;;  %v15034_v15 = vpop.f32.mrf.mxu2  ;;  %v15036_v27 = vadd.f32 %v3059_v63, %v2971_v23  ;;  %v3727_v59 = vshll.u32 %v3684_v0, 16  ;;  %v4044_v30 = vld [vmem:[#allocation3 + $0x14] sm:$0x1]  ;;  %18855 = vst [vmem:[#allocation97_spill] sm:$0xff] %v15047_v40 }
 0x471   : > { %v18853_v16 = vsel %vm15043_vm6, 4294967295, %v18852_v16  ;;  %v2644_v18 = vmax.f32 %v2548_v8, 0.0  ;;  %v3722_v23 = vrot.slane %v3718_v12, 4 }
 0x472   : > { %18851 = vst [vmem:[#allocation48_spill] sm:$0xff] %v15036_v27  ;;  %v3726_v13 = vrot.slane %v3724_v49, 7  ;;  %v3577_v21 = vadd.f32 %v14832_v24, %v3488_v52  ;;  %5262 = vmatmul.bf16.vlgmr.msra.gmra.mxu1 %v15029_v6  ;;  %v18856_v49 = vld [vmem:[#allocation50_spill] sm:$0xff]  ;;  %v4558_v52 = vrot.slane %v15029_v6, 1  ;;  %v4559_v27 = vrot.slane %v15038_v41, 1 }
 0x473   : > { %18854 = vst [vmem:[#allocation43_spill] sm:$0xff] %v18853_v16  ;;  %v2973_v0 = vadd.f32 %v14723_v43, %v18856_v49  ;;  %v2707_v40 = vpack.c.bf16 %v2644_v18, %v2641_v3  ;;  %v18859_v3 = vld [vmem:[#allocation51_spill] sm:$0xff] }
 0x474   : > { %v3729_v36 = vor.u32 %v3727_v59, %v3726_v13  ;;  %v3731_v63 = vrot.slane %v3726_v13, 4  ;;  %v3653_v53 = vmax.f32 %v3577_v21, 0.0 }
 0x475   : > { %v3400_v24 = vpop.f32.mrf.mxu3 }
 0x476   : > { %v3730_v17 = vsel %vm13856_vm10, %v3722_v23, %v3729_v36  ;;  %v4045_v2 = vsel %vm15043_vm6, %v3731_v63, %v4044_v30  ;;  %v3685_v8 = vpack.c.bf16 %v3653_v53, %v3653_v53  ;;  %v3401_v12 = vadd.f32 %v14988_v20, %v3400_v24  ;;  %v4047_v36 = vld [vmem:[#allocation3 + $0x18] sm:$0xf]  ;;  %v15065_v53 = vpop.f32.mrf.mxu0 }
 0x477   : > { %4041 = vst [vmem:[#allocation3 + $0x10] sm:$0xf] %v3730_v17  ;;  %v3061_v13 = vpop.f32.mrf.mxu1  ;;  %v4560_v30 = vsel %vm1971_vm3, %v4558_v52, %v4559_v27 }
 0x478   : > { %4046 = vst [vmem:[#allocation3 + $0x14] sm:$0x1] %v4045_v2  ;;  %v3733_v59 = vshrl.u32 %v3685_v8, 16  ;;  %v3490_v43 = vadd.f32 %v14879_v26, %v3401_v12  ;;  %v15059_v21 = vpop.f32.mrf.mxu2  ;;  %v15061_v49 = vadd.f32 %v3061_v13, %v2973_v0  ;;  %v3736_v1 = vshll.u32 %v3685_v8, 16  ;;  %v15070_v26 = vld [vmem:[%s18558_s5] ss:$0 sm:$0xff] }
 0x479   : > { %18858 = vst [vmem:[#allocation98_spill] sm:$0xff] %v15065_v53  ;;  %v2976_v18 = vadd.f32 %v15070_v26, %v18859_v3  ;;  %v18860_v0 = vld [vmem:[#allocation49_spill] sm:$0xff] }
 0x47a   : > { %18857 = vst [vmem:[#allocation50_spill] sm:$0xff] %v15061_v49  ;;  %v3735_v42 = vrot.slane %v3733_v59, 7  ;;  %v3579_v23 = vadd.f32 %v14841_v57, %v3490_v43  ;;  %3442 = vmatmul.bf16.gmra.mxu3 %v2707_v40  ;;  %v2551_v52 = vunpack.c.l.bf16 %v18860_v0  ;;  %v2554_v2 = vunpack.c.h.bf16 %v18860_v0  ;;  %v12609_v13 = vld [vmem:[#allocation12 + $0x130] sm:$0xff]  ;;  %v4051_v49 = vld [vmem:[#allocation3 + $0x20] sm:$0x1] }
 0x47b   : > { %5611 = vmatpush.bf16.msrb.mxu1 %v12609_v13 }
 0x47c   : > { %v3738_v63 = vor.u32 %v3736_v1, %v3735_v42  ;;  %v3654_v17 = vmax.f32 %v3579_v23, 0.0  ;;  %v2647_v3 = vmax.f32 %v2551_v52, 0.0  ;;  %v3739_v0 = vrot.slane %v3735_v42, 4 }
 0x47d   : > { %5440 = vmatmul.bf16.vlgmr.msra.gmra.mxu2 %v4560_v30  ;;  %v3403_v24 = vpop.f32.mrf.mxu3 }
 0x47e   : > { %v4048_v40 = vsel %vm15020_vm1, %v3738_v63, %v4047_v36  ;;  %v3686_v57 = vpack.c.bf16 %v3654_v17, %v3654_v17  ;;  %v3404_v27 = vadd.f32 %v14988_v20, %v3403_v24  ;;  %v15077_v1 = vld [vmem:[#allocation3 + $0xc] sm:$0xff]  ;;  %v15098_v42 = vpop.f32.mrf.mxu0 }
 0x47f   : > { %4049 = vst [vmem:[#allocation3 + $0x18] sm:$0xf] %v4048_v40  ;;  %v3064_v8 = vpop.f32.mrf.mxu1  ;;  %v4157_v12 = vld [vmem:[#allocation3 + $0x14] sm:$0x1]  ;;  %5529 = vmatmul.bf16.vlgmr.msrb.gmra.mxu0 %v15077_v1  ;;  %v2650_v40 = vmax.f32 %v2554_v2, 0.0 }
 0x480   : > { %v3741_v59 = vshrl.u32 %v3686_v57, 16  ;;  %v3493_v43 = vadd.f32 %v14888_v46, %v3404_v27  ;;  %v15082_v23 = vpop.f32.mrf.mxu2  ;;  %v15084_v30 = vadd.f32 %v3064_v8, %v2976_v18  ;;  %v4319_v36 = vunpack.c.l.b16 %v4157_v12  ;;  %v18863_v18 = vld [vmem:[#allocation52_spill] sm:$0xff] }
 0x481   : > { %18861 = vst [vmem:[#allocation51_spill] sm:$0xff] %v15082_v23  ;;  %v3744_v17 = vshll.u32 %v3686_v57, 16  ;;  %v2978_v8 = vadd.f32 %v15070_v26, %v18863_v18 }
 0x482   : > { %18862 = vst [vmem:[#allocation49_spill] sm:$0xff] %v15084_v30  ;;  %v3743_v63 = vrot.slane %v3741_v59, 7  ;;  %v3582_v24 = vadd.f32 %v14849_v34, %v3493_v43  ;;  %5267 = vmatmul.bf16.gmra.mxu1 %v15077_v1  ;;  %v15089_v23 = vpack.c.b16 %v4319_v36, %v4319_v36  ;;  %v2710_v59 = vpack.c.bf16 %v2650_v40, %v2647_v3 }
 0x484   : > { %v3746_v53 = vor.u32 %v3744_v17, %v3743_v63  ;;  %v3748_v46 = vrot.slane %v3743_v63, 4  ;;  %v3655_v27 = vmax.f32 %v3582_v24, 0.0 }
 0x485   : > { %v3405_v12 = vpop.f32.mrf.mxu3 }
 0x486   : > { %v3747_v57 = vsel %vm13856_vm10, %v3739_v0, %v3746_v53  ;;  %v4052_v34 = vsel %vm15043_vm6, %v3748_v46, %v4051_v49  ;;  %v3687_v13 = vpack.c.bf16 %v3655_v27, %v3655_v27  ;;  %v3406_v52 = vadd.f32 %v14988_v20, %v3405_v12  ;;  %v4054_v27 = vld [vmem:[#allocation3 + $0x24] sm:$0xf] }
 0x487   : > { %4050 = vst [vmem:[#allocation3 + $0x1c] sm:$0xf] %v3747_v57  ;;  %v3066_v2 = vpop.f32.mrf.mxu1  ;;  %v4562_v53 = vrot.slane %v15089_v23, 1  ;;  %v4561_v46 = vrot.slane %v15077_v1, 1 }
 0x488   : > { %4053 = vst [vmem:[#allocation3 + $0x20] sm:$0x1] %v4052_v34  ;;  %v3750_v43 = vshrl.u32 %v3687_v13, 16  ;;  %v3495_v36 = vadd.f32 %v14902_v58, %v3406_v52  ;;  %v15101_v63 = vpop.f32.mrf.mxu2  ;;  %v15103_v17 = vadd.f32 %v3066_v2, %v2978_v8  ;;  %v3753_v49 = vshll.u32 %v3687_v13, 16 }
 0x489   : > { %v15109_v40 = vsel %vm1971_vm3, %v4561_v46, %v4562_v53  ;;  %v2981_v8 = vadd.f32 %v15070_v26, %v14659_v35  ;;  %v2557_v13 = vunpack.c.l.bf16 %v14528_v62  ;;  %v2560_v52 = vunpack.c.h.bf16 %v14528_v62 }
 0x48a   : > { %18864 = vst [vmem:[#allocation52_spill] sm:$0xff] %v15103_v17  ;;  %v3752_v24 = vrot.slane %v3750_v43, 7  ;;  %v3584_v0 = vadd.f32 %v14858_v60, %v3495_v36  ;;  %3447 = vmatmul.bf16.gmra.mxu3 %v2710_v59  ;;  %v12581_v43 = vld [vmem:[#allocation12 + $0x50] sm:$0xff] }
 0x48b   : > { %18865 = vst [vmem:[#allocation99_spill] sm:$0xff] %v15109_v40  ;;  %5348 = vmatpush.bf16.msra.mxu3 %v12581_v43 }
 0x48c   : > { %v3755_v18 = vor.u32 %v3753_v49, %v3752_v24  ;;  %v3656_v3 = vmax.f32 %v3584_v0, 0.0  ;;  %v15127_v0 = vpop.f32.mrf.mxu0 }
 0x48d   : > { %5445 = vmatmul.bf16.gmra.mxu2 %v15109_v40  ;;  %v3408_v58 = vpop.f32.mrf.mxu3 }
 0x48e   : > { %v4055_v12 = vsel %vm15020_vm1, %v3755_v18, %v4054_v27  ;;  %v3688_v57 = vpack.c.bf16 %v3656_v3, %v3656_v3  ;;  %v3409_v60 = vadd.f32 %v14988_v20, %v3408_v58  ;;  %v15117_v34 = vld [vmem:[#allocation3 + $0x18] sm:$0xff]  ;;  %v2653_v3 = vmax.f32 %v2557_v13, 0.0 }
 0x48f   : > { %4056 = vst [vmem:[#allocation3 + $0x24] sm:$0xf] %v4055_v12  ;;  %v3069_v2 = vpop.f32.mrf.mxu1  ;;  %v4160_v59 = vld [vmem:[#allocation3 + $0x20] sm:$0x1]  ;;  %5534 = vmatmul.bf16.gmra.mxu0 %v15117_v34  ;;  %v2656_v58 = vmax.f32 %v2560_v52, 0.0  ;;  %v3756_v12 = vrot.slane %v3752_v24, 4 }
 0x490   : > { %v3758_v36 = vshrl.u32 %v3688_v57, 16  ;;  %v3498_v53 = vadd.f32 %v14913_v22, %v3409_v60  ;;  %v15122_v35 = vpop.f32.mrf.mxu2  ;;  %v15124_v49 = vadd.f32 %v3069_v2, %v2981_v8  ;;  %v4320_v46 = vunpack.c.l.b16 %v4160_v59  ;;  %v4058_v22 = vld [vmem:[#allocation3 + $0x2c] sm:$0x1] }
 0x491   : > { %v3761_v18 = vshll.u32 %v3688_v57, 16 }
 0x492   : > { %18866 = vst [vmem:[#allocation100_spill] sm:$0xff] %v15124_v49  ;;  %v3760_v27 = vrot.slane %v3758_v36, 7  ;;  %v3587_v62 = vadd.f32 %v14866_v61, %v3498_v53  ;;  %5272 = vmatmul.bf16.gmra.mxu1 %v15117_v34  ;;  %v15131_v2 = vpack.c.b16 %v4320_v46, %v4320_v46  ;;  %v2713_v53 = vpack.c.bf16 %v2656_v58, %v2653_v3 }
 0x493   : > { %v2986_v3 = vadd.f32 %v15070_v26, %v14692_v50 }
 0x494   : > { %v3763_v60 = vor.u32 %v3761_v18, %v3760_v27  ;;  %v3765_v17 = vrot.slane %v3760_v27, 4  ;;  %v3657_v8 = vmax.f32 %v3587_v62, 0.0  ;;  %v4565_v46 = vrot.slane %v15131_v2, 1 }
 0x495   : > { %v3410_v49 = vpop.f32.mrf.mxu3 }
 0x496   : > { %v3764_v59 = vsel %vm13856_vm10, %v3756_v12, %v3763_v60  ;;  %v4059_v57 = vsel %vm15043_vm6, %v3765_v17, %v4058_v22  ;;  %v3689_v43 = vpack.c.bf16 %v3657_v8, %v3657_v8  ;;  %v3411_v61 = vadd.f32 %v14988_v20, %v3410_v49  ;;  %v4061_v49 = vld [vmem:[#allocation3 + $0x30] sm:$0xf]  ;;  %v15146_v12 = vpop.f32.mrf.mxu0 }
 0x497   : > { %4057 = vst [vmem:[#allocation3 + $0x28] sm:$0xf] %v3764_v59  ;;  %v15138_v13 = vpop.f32.mrf.mxu1  ;;  %v4564_v17 = vrot.slane %v15117_v34, 1 }
 0x498   : > { %18867 = vst [vmem:[#allocation101_spill] sm:$0xff] %v15138_v13  ;;  %v3767_v24 = vshrl.u32 %v3689_v43, 16  ;;  %v3500_v52 = vadd.f32 %v14929_v32, %v3411_v61  ;;  %v15141_v36 = vpop.f32.mrf.mxu2  ;;  %v3770_v18 = vshll.u32 %v3689_v43, 16  ;;  %v2563_v43 = vunpack.c.l.bf16 %v14727_v25  ;;  %v4065_v13 = vld [vmem:[#allocation3 + $0x38] sm:$0x1] }
 0x499   : > { %4060 = vst [vmem:[#allocation3 + $0x2c] sm:$0x1] %v4059_v57  ;;  %v15149_v8 = vsel %vm1971_vm3, %v4564_v17, %v4565_v46  ;;  %v2566_v61 = vunpack.c.h.bf16 %v14727_v25 }
 0x49a   : > { %v3769_v27 = vrot.slane %v3767_v24, 7  ;;  %v3589_v62 = vadd.f32 %v14875_v48, %v3500_v52  ;;  %3452 = vmatmul.bf16.gmra.mxu3 %v2713_v53  ;;  %18868 = vst [vmem:[#allocation102_spill] sm:$0xff] %v15149_v8  ;;  %v12608_v53 = vld [vmem:[#allocation12 + $0x128] sm:$0xff]  ;;  %v2659_v25 = vmax.f32 %v2563_v43, 0.0 }
 0x49b   : > { %5612 = vmatpush.bf16.msrb.mxu1 %v12608_v53 }
 0x49c   : > { %v3772_v22 = vor.u32 %v3770_v18, %v3769_v27  ;;  %v3658_v60 = vmax.f32 %v3589_v62, 0.0 }
 0x49d   : > { %5450 = vmatmul.bf16.gmra.mxu2 %v15149_v8  ;;  %v3413_v32 = vpop.f32.mrf.mxu3 }
 0x49e   : > { %v4062_v48 = vsel %vm15020_vm1, %v3772_v22, %v4061_v49  ;;  %v3690_v58 = vpack.c.bf16 %v3658_v60, %v3658_v60  ;;  %v3414_v59 = vadd.f32 %v14988_v20, %v3413_v32  ;;  %v15157_v57 = vld [vmem:[#allocation3 + $0x24] sm:$0xff]  ;;  %v2662_v32 = vmax.f32 %v2566_v61, 0.0 }
 0x49f   : > { %4063 = vst [vmem:[#allocation3 + $0x30] sm:$0xf] %v4062_v48  ;;  %v3074_v24 = vpop.f32.mrf.mxu1  ;;  %5539 = vmatmul.bf16.gmra.mxu0 %v15157_v57  ;;  %v3773_v48 = vrot.slane %v3769_v27, 4  ;;  %v4387_v40 = vshrl.u32 %v15157_v57, 16 }
 0x4a0   : > { %v4163_v52 = vld [vmem:[#allocation3 + $0x2c] sm:$0x1]  ;;  %v3775_v46 = vshrl.u32 %v3690_v58, 16  ;;  %v3503_v18 = vadd.f32 %v14940_v54, %v3414_v59  ;;  %v15162_v50 = vpop.f32.mrf.mxu2  ;;  %v15164_v62 = vadd.f32 %v3074_v24, %v2986_v3  ;;  %v3778_v22 = vshll.u32 %v3690_v58, 16  ;;  %v15171_v3 = vpop.f32.mrf.mxu0 }
 0x4a1   : > { %v4321_v17 = vunpack.c.l.b16 %v4163_v52 }
 0x4a2   : > { %18869 = vst [vmem:[#allocation103_spill] sm:$0xff] %v15164_v62  ;;  %v3777_v49 = vrot.slane %v3775_v46, 7  ;;  %v3592_v60 = vadd.f32 %v14885_v29, %v3503_v18  ;;  %5277 = vmatmul.bf16.gmra.mxu1 %v15157_v57  ;;  %v2716_v18 = vpack.c.bf16 %v2662_v32, %v2659_v25  ;;  %v2991_v25 = vadd.f32 %v15070_v26, %v14881_v4 }
 0x4a3   : > { %v15169_v8 = vpack.c.b16 %v4321_v17, %v4321_v17 }
 0x4a4   : > { %v3780_v30 = vor.u32 %v3778_v22, %v3777_v49  ;;  %v3782_v54 = vrot.slane %v3777_v49, 4  ;;  %v3659_v59 = vmax.f32 %v3592_v60, 0.0  ;;  %v4068_v60 = vld [vmem:[#allocation3 + $0x3c] sm:$0xf] }
 0x4a5   : > { %v3415_v24 = vpop.f32.mrf.mxu3  ;;  %v4568_v17 = vrot.slane %v15169_v8, 1 }
 0x4a6   : > { %v3781_v52 = vsel %vm13856_vm10, %v3773_v48, %v3780_v30  ;;  %v4066_v29 = vsel %vm15043_vm6, %v3782_v54, %v4065_v13  ;;  %v3691_v58 = vpack.c.bf16 %v3659_v59, %v3659_v59  ;;  %v3416_v43 = vadd.f32 %v14988_v20, %v3415_v24 }
 0x4a7   : > { %4064 = vst [vmem:[#allocation3 + $0x34] sm:$0xf] %v3781_v52  ;;  %v15178_v27 = vpop.f32.mrf.mxu1  ;;  %v4567_v13 = vrot.slane %v15157_v57, 1 }
 0x4a8   : > { %18870 = vst [vmem:[#allocation104_spill] sm:$0xff] %v15178_v27  ;;  %v3784_v61 = vshrl.u32 %v3691_v58, 16  ;;  %v3505_v53 = vadd.f32 %v14956_v44, %v3416_v43  ;;  %v15181_v46 = vpop.f32.mrf.mxu2  ;;  %v3787_v30 = vshll.u32 %v3691_v58, 16  ;;  %v2572_v58 = vunpack.c.h.bf16 %v14755_v37  ;;  %v15199_v43 = vpop.f32.mrf.mxu0  ;;  %v4072_v27 = vld [vmem:[#allocation3 + $0x44] sm:$0x1] }
 0x4a9   : > { %4067 = vst [vmem:[#allocation3 + $0x38] sm:$0x1] %v4066_v29  ;;  %v15187_v59 = vsel %vm1971_vm3, %v4567_v13, %v4568_v17  ;;  %v2569_v29 = vunpack.c.l.bf16 %v14755_v37 }
 0x4aa   : > { %v3786_v49 = vrot.slane %v3784_v61, 7  ;;  %v3594_v22 = vadd.f32 %v14896_v45, %v3505_v53  ;;  %3457 = vmatmul.bf16.gmra.mxu3 %v2716_v18  ;;  %18871 = vst [vmem:[#allocation105_spill] sm:$0xff] %v15187_v59  ;;  %v12580_v18 = vld [vmem:[#allocation12 + $0x48] sm:$0xff] }
 0x4ab   : > { %5349 = vmatpush.bf16.msra.mxu3 %v12580_v18 }
 0x4ac   : > { %v3789_v48 = vor.u32 %v3787_v30, %v3786_v49  ;;  %v3660_v54 = vmax.f32 %v3594_v22, 0.0 }
 0x4ad   : > { %5455 = vmatmul.bf16.gmra.mxu2 %v15187_v59  ;;  %v3418_v44 = vpop.f32.mrf.mxu3 }
 0x4ae   : > { %v4069_v32 = vsel %vm15020_vm1, %v3789_v48, %v4068_v60  ;;  %v3692_v24 = vpack.c.bf16 %v3660_v54, %v3660_v54  ;;  %v3419_v45 = vadd.f32 %v14988_v20, %v3418_v44  ;;  %v15195_v52 = vld [vmem:[#allocation3 + $0x30] sm:$0xff]  ;;  %v2665_v54 = vmax.f32 %v2569_v29, 0.0 }
 0x4af   : > { %4070 = vst [vmem:[#allocation3 + $0x3c] sm:$0xf] %v4069_v32  ;;  %v3079_v61 = vpop.f32.mrf.mxu1  ;;  %5544 = vmatmul.bf16.gmra.mxu0 %v15195_v52  ;;  %v2668_v44 = vmax.f32 %v2572_v58, 0.0  ;;  %v3790_v32 = vrot.slane %v3786_v49, 4 }
 0x4b0   : > { %v4166_v53 = vld [vmem:[#allocation3 + $0x38] sm:$0x1]  ;;  %v3792_v17 = vshrl.u32 %v3692_v24, 16  ;;  %v3508_v4 = vadd.f32 %v14969_v5, %v3419_v45  ;;  %v15202_v30 = vpop.f32.mrf.mxu2  ;;  %v15204_v22 = vadd.f32 %v3079_v61, %v2991_v25  ;;  %v3795_v48 = vshll.u32 %v3692_v24, 16 }
 0x4b1   : > { %v4322_v13 = vunpack.c.l.b16 %v4166_v53 }
 0x4b2   : > { %18872 = vst [vmem:[#allocation106_spill] sm:$0xff] %v15204_v22  ;;  %v3794_v60 = vrot.slane %v3792_v17, 7  ;;  %v3597_v37 = vadd.f32 %v14908_v28, %v3508_v4  ;;  %5282 = vmatmul.bf16.gmra.mxu1 %v15195_v52  ;;  %v2719_v17 = vpack.c.bf16 %v2668_v44, %v2665_v54  ;;  %v2996_v44 = vadd.f32 %v15070_v26, %v14906_v10 }
 0x4b3   : > { %v15209_v59 = vpack.c.b16 %v4322_v13, %v4322_v13  ;;  %v15222_v13 = vpop.f32.mrf.mxu0 }
 0x4b4   : > { %v3797_v62 = vor.u32 %v3795_v48, %v3794_v60  ;;  %v3799_v5 = vrot.slane %v3794_v60, 4  ;;  %v3661_v45 = vmax.f32 %v3597_v37, 0.0  ;;  %v4570_v37 = vrot.slane %v15195_v52, 1 }
 0x4b5   : > { %v3420_v25 = vpop.f32.mrf.mxu3  ;;  %v4571_v4 = vrot.slane %v15209_v59, 1 }
 0x4b6   : > { %v3798_v61 = vsel %vm13856_vm10, %v3790_v32, %v3797_v62  ;;  %v4073_v24 = vsel %vm15043_vm6, %v3799_v5, %v4072_v27  ;;  %v3693_v53 = vpack.c.bf16 %v3661_v45, %v3661_v45  ;;  %v3421_v28 = vadd.f32 %v14988_v20, %v3420_v25  ;;  %v12579_v62 = vld [vmem:[#allocation12 + $0x40] sm:$0xff]  ;;  %v4075_v32 = vld [vmem:[#allocation3 + $0x48] sm:$0xf] }
 0x4b7   : > { %4071 = vst [vmem:[#allocation3 + $0x40] sm:$0xf] %v3798_v61  ;;  %v15216_v29 = vpop.f32.mrf.mxu1  ;;  %5350 = vmatpush.bf16.msra.mxu3 %v12579_v62 }
 0x4b8   : > { %18873 = vst [vmem:[#allocation107_spill] sm:$0xff] %v15216_v29  ;;  %v3801_v49 = vshrl.u32 %v3693_v53, 16  ;;  %v3510_v58 = vadd.f32 %v14981_v14, %v3421_v28  ;;  %v15219_v18 = vpop.f32.mrf.mxu2  ;;  %v3804_v27 = vshll.u32 %v3693_v53, 16  ;;  %v15227_v14 = vsel %vm1971_vm3, %v4570_v37, %v4571_v4 }
 0x4b9   : > { %4074 = vst [vmem:[#allocation3 + $0x44] sm:$0x1] %v4073_v24  ;;  %v2575_v53 = vunpack.c.l.bf16 %v14783_v55  ;;  %v2578_v28 = vunpack.c.h.bf16 %v14783_v55 }
 0x4ba   : > { %v3803_v60 = vrot.slane %v3801_v49, 7  ;;  %v3599_v48 = vadd.f32 %v14923_v11, %v3510_v58  ;;  %3462 = vmatmul.bf16.gmra.mxu3 %v2719_v17  ;;  %18874 = vst [vmem:[#allocation108_spill] sm:$0xff] %v15227_v14  ;;  %v12607_v17 = vld [vmem:[#allocation12 + $0x120] sm:$0xff] }
 0x4bb   : > { %5613 = vmatpush.bf16.msrb.mxu1 %v12607_v17  ;;  %v2671_v55 = vmax.f32 %v2575_v53, 0.0 }
 0x4bc   : > { %v3806_v5 = vor.u32 %v3804_v27, %v3803_v60  ;;  %v3662_v45 = vmax.f32 %v3599_v48, 0.0 }
 0x4bd   : > { %5460 = vmatmul.bf16.gmra.mxu2 %v15227_v14  ;;  %v3423_v54 = vpop.f32.mrf.mxu3 }
 0x4be   : > { %v4076_v25 = vsel %vm15020_vm1, %v3806_v5, %v4075_v32  ;;  %v3694_v11 = vpack.c.bf16 %v3662_v45, %v3662_v45  ;;  %v3424_v61 = vadd.f32 %v14988_v20, %v3423_v54  ;;  %v15235_v24 = vld [vmem:[#allocation3 + $0x3c] sm:$0xff]  ;;  %v2674_v45 = vmax.f32 %v2578_v28, 0.0 }
 0x4bf   : > { %4077 = vst [vmem:[#allocation3 + $0x48] sm:$0xf] %v4076_v25  ;;  %v3084_v49 = vpop.f32.mrf.mxu1  ;;  %5549 = vmatmul.bf16.gmra.mxu0 %v15235_v24  ;;  %v3807_v54 = vrot.slane %v3803_v60, 4  ;;  %v15247_v25 = vpop.f32.mrf.mxu0 }
 0x4c0   : > { %v4169_v58 = vld [vmem:[#allocation3 + $0x44] sm:$0x1]  ;;  %v3809_v4 = vshrl.u32 %v3694_v11, 16  ;;  %v3513_v62 = vadd.f32 %v15001_v9, %v3424_v61  ;;  %v15240_v10 = vpop.f32.mrf.mxu2  ;;  %v15242_v27 = vadd.f32 %v3084_v49, %v2996_v44  ;;  %v3812_v32 = vshll.u32 %v3694_v11, 16  ;;  %v4079_v9 = vld [vmem:[#allocation3 + $0x50] sm:$0x1] }
 0x4c1   : > { %v4323_v48 = vunpack.c.l.b16 %v4169_v58  ;;  %v2998_v58 = vadd.f32 %v15070_v26, %v14921_v38 }
 0x4c2   : > { %18875 = vst [vmem:[#allocation109_spill] sm:$0xff] %v15242_v27  ;;  %v3811_v37 = vrot.slane %v3809_v4, 7  ;;  %v3602_v5 = vadd.f32 %v14935_v19, %v3513_v62  ;;  %5287 = vmatmul.bf16.gmra.mxu1 %v15235_v24  ;;  %v2722_v4 = vpack.c.bf16 %v2674_v45, %v2671_v55  ;;  %v4353_v55 = vshll.u32 %v15029_v6, 16 }
 0x4c3   : > { %v15249_v49 = vpack.c.b16 %v4323_v48, %v4323_v48 }
 0x4c4   : > { %v3814_v61 = vor.u32 %v3812_v32, %v3811_v37  ;;  %v3816_v29 = vrot.slane %v3811_v37, 4  ;;  %v3663_v44 = vmax.f32 %v3602_v5, 0.0 }
 0x4c5   : > { %v3425_v17 = vpop.f32.mrf.mxu3  ;;  %v4574_v32 = vrot.slane %v15249_v49, 1 }
 0x4c6   : > { %v3815_v19 = vsel %vm13856_vm10, %v3807_v54, %v3814_v61  ;;  %v4080_v11 = vsel %vm15043_vm6, %v3816_v29, %v4079_v9  ;;  %v3695_v53 = vpack.c.bf16 %v3663_v44, %v3663_v44  ;;  %v3426_v60 = vadd.f32 %v14988_v20, %v3425_v17  ;;  %v4082_v61 = vld [vmem:[#allocation3 + $0x54] sm:$0xf] }
 0x4c7   : > { %4078 = vst [vmem:[#allocation3 + $0x4c] sm:$0xf] %v3815_v19  ;;  %v3086_v28 = vpop.f32.mrf.mxu1  ;;  %v4573_v9 = vrot.slane %v15235_v24, 1  ;;  %v15272_v17 = vpop.f32.mrf.mxu0 }
 0x4c8   : > { %4081 = vst [vmem:[#allocation3 + $0x50] sm:$0x1] %v4080_v11  ;;  %v3818_v62 = vshrl.u32 %v3695_v53, 16  ;;  %v3515_v48 = vadd.f32 %v15011_v56, %v3426_v60  ;;  %v15259_v37 = vpop.f32.mrf.mxu2  ;;  %v15261_v38 = vadd.f32 %v3086_v28, %v2998_v58  ;;  %v3821_v54 = vshll.u32 %v3695_v53, 16 }
 0x4c9   : > { %v15268_v56 = vsel %vm1971_vm3, %v4573_v9, %v4574_v32  ;;  %v3001_v58 = vadd.f32 %v15070_v26, %v14933_v33  ;;  %v4351_v28 = vshrl.u32 %v15029_v6, 16  ;;  %v4358_v33 = vshll.u32 %v15038_v41, 16 }
 0x4ca   : > { %18876 = vst [vmem:[#allocation110_spill] sm:$0xff] %v15261_v38  ;;  %v3820_v5 = vrot.slane %v3818_v62, 7  ;;  %v3604_v29 = vadd.f32 %v14952_v51, %v3515_v48  ;;  %3467 = vmatmul.bf16.gmra.mxu3 %v2722_v4  ;;  %v4355_v62 = vrot.slane %v4353_v55, 1 }
 0x4cb   : > { %18877 = vst [vmem:[#allocation111_spill] sm:$0xff] %v15268_v56 }
 0x4cc   : > { %v3823_v45 = vor.u32 %v3821_v54, %v3820_v5  ;;  %v3664_v44 = vmax.f32 %v3604_v29, 0.0  ;;  %v3824_v55 = vrot.slane %v3820_v5, 4  ;;  %v4356_v41 = vor.u32 %v4355_v62, %v4351_v28 }
 0x4cd   : > { %5465 = vmatmul.bf16.gmra.mxu2 %v15268_v56  ;;  %v3428_v19 = vpop.f32.mrf.mxu3 }
 0x4ce   : > { %v4083_v51 = vsel %vm15020_vm1, %v3823_v45, %v4082_v61  ;;  %v3696_v11 = vpack.c.bf16 %v3664_v44, %v3664_v44  ;;  %v3429_v53 = vadd.f32 %v14988_v20, %v3428_v19  ;;  %v15278_v60 = vld [vmem:[#allocation3 + $0x48] sm:$0xff]  ;;  %v4086_v19 = vld [vmem:[#allocation3 + $0x5c] sm:$0x1] }
 0x4cf   : > { %4084 = vst [vmem:[#allocation3 + $0x54] sm:$0xf] %v4083_v51  ;;  %v3089_v4 = vpop.f32.mrf.mxu1  ;;  %v4172_v48 = vld [vmem:[#allocation3 + $0x50] sm:$0x1]  ;;  %5554 = vmatmul.bf16.gmra.mxu0 %v15278_v60  ;;  %v4360_v51 = vrot.slane %v4358_v33, 1  ;;  %v15299_v28 = vpop.f32.mrf.mxu0 }
 0x4d0   : > { %v3826_v32 = vshrl.u32 %v3696_v11, 16  ;;  %v3518_v54 = vadd.f32 %v15034_v15, %v3429_v53  ;;  %v15283_v29 = vpop.f32.mrf.mxu2  ;;  %v15285_v9 = vadd.f32 %v3089_v4, %v3001_v58  ;;  %v4324_v61 = vunpack.c.l.b16 %v4172_v48 }
 0x4d1   : > { %v3829_v44 = vshll.u32 %v3696_v11, 16  ;;  %v3003_v58 = vadd.f32 %v15070_v26, %v14950_v7  ;;  %v4361_v33 = vsel %vm1746_vm2, %v4356_v41, %v4360_v51 }
 0x4d2   : > { %18878 = vst [vmem:[#allocation112_spill] sm:$0xff] %v15285_v9  ;;  %v3828_v45 = vrot.slane %v3826_v32, 7  ;;  %v3607_v6 = vadd.f32 %v14962_v47, %v3518_v54  ;;  %5292 = vmatmul.bf16.gmra.mxu1 %v15278_v60  ;;  %v15290_v53 = vpack.c.b16 %v4324_v61, %v4324_v61 }
 0x4d4   : > { %v3831_v38 = vor.u32 %v3829_v44, %v3828_v45  ;;  %v3833_v27 = vrot.slane %v3828_v45, 4  ;;  %v3665_v15 = vmax.f32 %v3607_v6, 0.0  ;;  %v18880_v44 = vld [vmem:[#allocation94_spill] sm:$0xff] }
 0x4d5   : > { %v3430_v4 = vpop.f32.mrf.mxu3 }
 0x4d6   : > { %v3832_v11 = vsel %vm13856_vm10, %v3824_v55, %v3831_v38  ;;  %v4087_v47 = vsel %vm15043_vm6, %v3833_v27, %v4086_v19  ;;  %v3697_v48 = vpack.c.bf16 %v3665_v15, %v3665_v15  ;;  %v3431_v5 = vadd.f32 %v14988_v20, %v3430_v4  ;;  %v4089_v19 = vld [vmem:[#allocation3 + $0x60] sm:$0xf] }
 0x4d7   : > { %4085 = vst [vmem:[#allocation3 + $0x58] sm:$0xf] %v3832_v11  ;;  %v3091_v62 = vpop.f32.mrf.mxu1  ;;  %v4577_v38 = vrot.slane %v15290_v53, 1  ;;  %v4576_v55 = vrot.slane %v15278_v60, 1  ;;  %v18882_v4 = vld [vmem:[#allocation32_spill] sm:$0xff] }
 0x4d8   : > { %4088 = vst [vmem:[#allocation3 + $0x5c] sm:$0x1] %v4087_v47  ;;  %v3835_v32 = vshrl.u32 %v3697_v48, 16  ;;  %v3520_v7 = vadd.f32 %v15059_v21, %v3431_v5  ;;  %v15303_v54 = vpop.f32.mrf.mxu2  ;;  %v15305_v61 = vadd.f32 %v3091_v62, %v3003_v58  ;;  %v3838_v45 = vshll.u32 %v3697_v48, 16 }
 0x4d9   : > { %v15311_v51 = vsel %vm1971_vm3, %v4576_v55, %v4577_v38  ;;  %v4365_v58 = vshll.u32 %v15077_v1, 16  ;;  %v3006_v11 = vadd.f32 %v15070_v26, %v18882_v4  ;;  %v15328_v4 = vpop.f32.mrf.mxu0 }
 0x4da   : > { %18879 = vst [vmem:[#allocation113_spill] sm:$0xff] %v15305_v61  ;;  %v3837_v27 = vrot.slane %v3835_v32, 7  ;;  %v3609_v6 = vadd.f32 %v18880_v44, %v3520_v7  ;;  %5351 = vmatmul.bf16.vlgmr.msra.gmra.mxu3 %v4361_v33  ;;  %v12606_v7 = vld [vmem:[#allocation12 + $0x118] sm:$0xff] }
 0x4db   : > { %18881 = vst [vmem:[#allocation94_spill] sm:$0xff] %v15311_v51  ;;  %5614 = vmatpush.bf16.msrb.mxu1 %v12606_v7  ;;  %v18885_v61 = vld [vmem:[#allocation46_spill] sm:$0xff] }
 0x4dc   : > { %v3840_v15 = vor.u32 %v3838_v45, %v3837_v27  ;;  %v3666_v41 = vmax.f32 %v3609_v6, 0.0  ;;  %v18883_v45 = vld [vmem:[#allocation51_spill] sm:$0xff] }
 0x4dd   : > { %5470 = vmatmul.bf16.gmra.mxu2 %v15311_v51  ;;  %v3433_v21 = vpop.f32.mrf.mxu3 }
 0x4de   : > { %v4090_v47 = vsel %vm15020_vm1, %v3840_v15, %v4089_v19  ;;  %v3698_v48 = vpack.c.bf16 %v3666_v41, %v3666_v41  ;;  %v3434_v5 = vadd.f32 %v14988_v20, %v3433_v21  ;;  %v15320_v62 = vld [vmem:[#allocation3 + $0x54] sm:$0xff]  ;;  %v4367_v19 = vrot.slane %v4365_v58, 1 }
 0x4df   : > { %4091 = vst [vmem:[#allocation3 + $0x60] sm:$0xf] %v4090_v47  ;;  %v3094_v33 = vpop.f32.mrf.mxu1  ;;  %v4175_v32 = vld [vmem:[#allocation3 + $0x5c] sm:$0x1]  ;;  %5559 = vmatmul.bf16.gmra.mxu0 %v15320_v62  ;;  %v4370_v15 = vshll.u32 %v15089_v23, 16  ;;  %v18886_v58 = vld [vmem:[#allocation34_spill] sm:$0xff] }
 0x4e0   : > { %v3843_v38 = vshrl.u32 %v3698_v48, 16  ;;  %v3523_v44 = vadd.f32 %v18883_v45, %v3434_v5  ;;  %v15323_v6 = vpop.f32.mrf.mxu2  ;;  %v15325_v55 = vadd.f32 %v3094_v33, %v3006_v11  ;;  %v4325_v41 = vunpack.c.l.b16 %v4175_v32  ;;  %v4093_v45 = vld [vmem:[#allocation3 + $0x68] sm:$0x1] }
 0x4e1   : > { %v3846_v47 = vshll.u32 %v3698_v48, 16  ;;  %v3841_v5 = vrot.slane %v3837_v27, 4  ;;  %v4363_v11 = vshrl.u32 %v15077_v1, 16  ;;  %v3008_v23 = vadd.f32 %v15070_v26, %v18886_v58 }
 0x4e2   : > { %18884 = vst [vmem:[#allocation32_spill] sm:$0xff] %v15325_v55  ;;  %v3845_v21 = vrot.slane %v3843_v38, 7  ;;  %v3612_v9 = vadd.f32 %v18885_v61, %v3523_v44  ;;  %5297 = vmatmul.bf16.gmra.mxu1 %v15320_v62  ;;  %v15334_v51 = vpack.c.b16 %v4325_v41, %v4325_v41  ;;  %v4372_v38 = vrot.slane %v4370_v15, 1 }
 0x4e3   : > { %v4368_v7 = vor.u32 %v4367_v19, %v4363_v11 }
 0x4e4   : > { %v3848_v33 = vor.u32 %v3846_v47, %v3845_v21  ;;  %v3850_v55 = vrot.slane %v3845_v21, 4  ;;  %v3667_v22 = vmax.f32 %v3612_v9, 0.0  ;;  %v4580_v19 = vrot.slane %v15334_v51, 1  ;;  %v15352_v47 = vpop.f32.mrf.mxu0 }
 0x4e5   : > { %v3435_v32 = vpop.f32.mrf.mxu3  ;;  %v15350_v15 = vsel %vm1746_vm2, %v4368_v7, %v4372_v38 }
 0x4e6   : > { %v3849_v61 = vsel %vm13856_vm10, %v3841_v5, %v3848_v33  ;;  %v4094_v27 = vsel %vm15043_vm6, %v3850_v55, %v4093_v45  ;;  %v3699_v48 = vpack.c.bf16 %v3667_v22, %v3667_v22  ;;  %v3436_v1 = vadd.f32 %v14988_v20, %v3435_v32  ;;  %18888 = vst [vmem:[#allocation46_spill] sm:$0xff] %v15350_v15  ;;  %v18889_v20 = vld [vmem:[#allocation95_spill] sm:$0xff] }
 0x4e7   : > { %4092 = vst [vmem:[#allocation3 + $0x64] sm:$0xf] %v3849_v61  ;;  %v3096_v44 = vpop.f32.mrf.mxu1  ;;  %v4579_v45 = vrot.slane %v15320_v62, 1  ;;  %v4377_v32 = vshll.u32 %v15117_v34, 16  ;;  %v15367_v61 = vld [vmem:[%s18556_s3] ss:$0 sm:$0xff] }
 0x4e8   : > { %4095 = vst [vmem:[#allocation3 + $0x68] sm:$0x1] %v4094_v27  ;;  %v3852_v9 = vshrl.u32 %v3699_v48, 16  ;;  %v3525_v41 = vadd.f32 %v15101_v63, %v3436_v1  ;;  %v15344_v21 = vpop.f32.mrf.mxu2  ;;  %v15346_v26 = vadd.f32 %v3096_v44, %v3008_v23  ;;  %v3855_v55 = vshll.u32 %v3699_v48, 16  ;;  %v4096_v63 = vld [vmem:[#allocation3 + $0x6c] sm:$0xf] }
 0x4e9   : > { %v15358_v58 = vsel %vm1971_vm3, %v4579_v45, %v4580_v19 }
 0x4ea   : > { %18887 = vst [vmem:[#allocation51_spill] sm:$0xff] %v15346_v26  ;;  %v3854_v22 = vrot.slane %v3852_v9, 7  ;;  %v3614_v5 = vadd.f32 %v18889_v20, %v3525_v41  ;;  %5356 = vmatmul.bf16.gmra.mxu3 %v15350_v15  ;;  %v12618_v9 = vld [vmem:[#allocation12 + $0x178] sm:$0xff]  ;;  %v4379_v20 = vrot.slane %v4377_v32, 1 }
 0x4eb   : > { %18890 = vst [vmem:[#allocation34_spill] sm:$0xff] %v15358_v58  ;;  %5699 = vmatpush.bf16.msrb.mxu3 %v12618_v9  ;;  %v4100_v26 = vld [vmem:[#allocation3 + $0x74] sm:$0x1] }
 0x4ec   : > { %v3857_v11 = vor.u32 %v3855_v55, %v3854_v22  ;;  %v3668_v33 = vmax.f32 %v3614_v5, 0.0  ;;  %v4382_v5 = vshll.u32 %v15131_v2, 16 }
 0x4ed   : > { %5475 = vmatmul.bf16.gmra.mxu2 %v15358_v58  ;;  %v3438_v23 = vpop.f32.mrf.mxu3  ;;  %v15381_v58 = vpop.f32.mrf.mxu0 }
 0x4ee   : > { %v4097_v7 = vsel %vm15020_vm1, %v3857_v11, %v4096_v63  ;;  %v3700_v38 = vpack.c.bf16 %v3668_v33, %v3668_v33  ;;  %v3439_v27 = vadd.f32 %v15367_v61, %v3438_v23  ;;  %v15370_v48 = vld [vmem:[#allocation3 + $0x60] sm:$0xff]  ;;  %v18891_v33 = vld [vmem:[#allocation97_spill] sm:$0xff]  ;;  %v4384_v9 = vrot.slane %v4382_v5, 1 }
 0x4ef   : > { %4098 = vst [vmem:[#allocation3 + $0x6c] sm:$0xf] %v4097_v7  ;;  %v15372_v1 = vpop.f32.mrf.mxu1  ;;  %v4178_v44 = vld [vmem:[#allocation3 + $0x68] sm:$0x1]  ;;  %5564 = vmatmul.bf16.gmra.mxu0 %v15370_v48  ;;  %v3858_v7 = vrot.slane %v3854_v22, 4 }
 0x4f0   : > { %v3860_v41 = vshrl.u32 %v3700_v38, 16  ;;  %v3528_v19 = vadd.f32 %v15122_v35, %v3439_v27  ;;  %v15375_v55 = vpop.f32.mrf.mxu2  ;;  %v4326_v45 = vunpack.c.l.b16 %v4178_v44  ;;  %v3863_v11 = vshll.u32 %v3700_v38, 16 }
 0x4f1   : > { %v4375_v35 = vshrl.u32 %v15117_v34, 16 }
 0x4f2   : > { %v3862_v63 = vrot.slane %v3860_v41, 7  ;;  %v3617_v23 = vadd.f32 %v18891_v33, %v3528_v19  ;;  %5302 = vmatmul.bf16.gmra.mxu1 %v15370_v48  ;;  %v15384_v32 = vpack.c.b16 %v4326_v45, %v4326_v45 }
 0x4f3   : > { %v4380_v44 = vor.u32 %v4379_v20, %v4375_v35 }
 0x4f4   : > { %v3865_v27 = vor.u32 %v3863_v11, %v3862_v63  ;;  %v3867_v56 = vrot.slane %v3862_v63, 4  ;;  %v3669_v14 = vmax.f32 %v3617_v23, 0.0  ;;  %v4583_v20 = vrot.slane %v15384_v32, 1 }
 0x4f5   : > { %v3440_v2 = vpop.f32.mrf.mxu3  ;;  %v15398_v5 = vsel %vm1746_vm2, %v4380_v44, %v4384_v9  ;;  %v4389_v44 = vshll.u32 %v15157_v57, 16 }
 0x4f6   : > { %v3866_v38 = vsel %vm13856_vm10, %v3858_v7, %v3865_v27  ;;  %v4101_v41 = vsel %vm15043_vm6, %v3867_v56, %v4100_v26  ;;  %v3701_v22 = vpack.c.bf16 %v3669_v14, %v3669_v14  ;;  %v3441_v19 = vadd.f32 %v15367_v61, %v3440_v2  ;;  %18892 = vst [vmem:[#allocation95_spill] sm:$0xff] %v15398_v5  ;;  %v18893_v56 = vld [vmem:[#allocation98_spill] sm:$0xff]  ;;  %v4103_v7 = vld [vmem:[#allocation3 + $0x78] sm:$0xf] }
 0x4f7   : > { %4099 = vst [vmem:[#allocation3 + $0x70] sm:$0xf] %v3866_v38  ;;  %v15391_v33 = vpop.f32.mrf.mxu1  ;;  %v4582_v26 = vrot.slane %v15370_v48, 1 }
 0x4f8   : > { %4102 = vst [vmem:[#allocation3 + $0x74] sm:$0x1] %v4101_v41  ;;  %v3869_v34 = vshrl.u32 %v3701_v22, 16  ;;  %v3530_v45 = vadd.f32 %v15141_v36, %v3441_v19  ;;  %v15394_v63 = vpop.f32.mrf.mxu2  ;;  %v3872_v23 = vshll.u32 %v3701_v22, 16 }
 0x4f9   : > { %v15404_v36 = vsel %vm1971_vm3, %v4582_v26, %v4583_v20  ;;  %v12605_v20 = vld [vmem:[#allocation12 + $0x110] sm:$0xff]  ;;  %v4391_v26 = vrot.slane %v4389_v44, 1 }
 0x4fa   : > { %v3871_v11 = vrot.slane %v3869_v34, 7  ;;  %v3619_v14 = vadd.f32 %v18893_v56, %v3530_v45  ;;  %5361 = vmatmul.bf16.gmra.mxu3 %v15398_v5  ;;  %18894 = vst [vmem:[#allocation97_spill] sm:$0xff] %v15404_v36  ;;  %5615 = vmatpush.bf16.msrb.mxu1 %v12605_v20 }
 0x4fc   : > { %v3874_v35 = vor.u32 %v3872_v23, %v3871_v11  ;;  %v3670_v27 = vmax.f32 %v3619_v14, 0.0  ;;  %v15407_v38 = vpop.f32.mrf.mxu0 }
 0x4fd   : > { %5480 = vmatmul.bf16.gmra.mxu2 %v15404_v36  ;;  %v3443_v2 = vpop.f32.mrf.mxu3  ;;  %18895 = vst [vmem:[#allocation98_spill] sm:$0xff] %v15407_v38  ;;  %v3875_v36 = vrot.slane %v3871_v11, 4  ;;  %v4107_v38 = vld [vmem:[#allocation3 + $0x80] sm:$0x1] }
 0x4fe   : > { %v4104_v9 = vsel %vm15020_vm1, %v3874_v35, %v4103_v7  ;;  %v3702_v41 = vpack.c.bf16 %v3670_v27, %v3670_v27  ;;  %v3444_v22 = vadd.f32 %v15367_v61, %v3443_v2  ;;  %v15413_v19 = vld [vmem:[#allocation3 + $0x6c] sm:$0xff]  ;;  %v4394_v7 = vshll.u32 %v15169_v8, 16 }
 0x4ff   : > { %4105 = vst [vmem:[#allocation3 + $0x78] sm:$0xf] %v4104_v9  ;;  %v15415_v34 = vpop.f32.mrf.mxu1  ;;  %v4181_v45 = vld [vmem:[#allocation3 + $0x74] sm:$0x1]  ;;  %5569 = vmatmul.bf16.gmra.mxu0 %v15413_v19  ;;  %v4392_v8 = vor.u32 %v4391_v26, %v4387_v40 }
 0x500   : > { %v3877_v23 = vshrl.u32 %v3702_v41, 16  ;;  %v3533_v56 = vadd.f32 %v15162_v50, %v3444_v22  ;;  %v15418_v14 = vpop.f32.mrf.mxu2  ;;  %v4327_v35 = vunpack.c.l.b16 %v4181_v45  ;;  %v3880_v2 = vshll.u32 %v3702_v41, 16 }
 0x501   : > { %18896 = vst [vmem:[#allocation114_spill] sm:$0xff] %v15418_v14  ;;  %v4396_v45 = vrot.slane %v4394_v7, 1 }
 0x502   : > { %v3879_v27 = vrot.slane %v3877_v23, 7  ;;  %v3622_v9 = vadd.f32 %v15098_v42, %v3533_v56  ;;  %5307 = vmatmul.bf16.gmra.mxu1 %v15413_v19  ;;  %v15425_v5 = vpack.c.b16 %v4327_v35, %v4327_v35 }
 0x503   : > { %v15441_v26 = vsel %vm1746_vm2, %v4392_v8, %v4396_v45 }
 0x504   : > { %v3882_v50 = vor.u32 %v3880_v2, %v3879_v27  ;;  %v3884_v22 = vrot.slane %v3879_v27, 4  ;;  %v3671_v14 = vmax.f32 %v3622_v9, 0.0  ;;  %v15427_v15 = vpop.f32.mrf.mxu0  ;;  %v4586_v40 = vrot.slane %v15425_v5, 1  ;;  %v4110_v27 = vld [vmem:[#allocation3 + $0x84] sm:$0xf] }
 0x505   : > { %v3445_v44 = vpop.f32.mrf.mxu3  ;;  %18897 = vst [vmem:[#allocation115_spill] sm:$0xff] %v15427_v15 }
 0x506   : > { %v3883_v41 = vsel %vm13856_vm10, %v3875_v36, %v3882_v50  ;;  %v4108_v42 = vsel %vm15043_vm6, %v3884_v22, %v4107_v38  ;;  %v3703_v11 = vpack.c.bf16 %v3671_v14, %v3671_v14  ;;  %v3446_v20 = vadd.f32 %v15367_v61, %v3445_v44 }
 0x507   : > { %4106 = vst [vmem:[#allocation3 + $0x7c] sm:$0xf] %v3883_v41  ;;  %v15434_v57 = vpop.f32.mrf.mxu1  ;;  %v4585_v14 = vrot.slane %v15413_v19, 1  ;;  %v4401_v44 = vshll.u32 %v15195_v52, 16 }
 0x508   : > { %4109 = vst [vmem:[#allocation3 + $0x80] sm:$0x1] %v4108_v42  ;;  %v3886_v23 = vshrl.u32 %v3703_v11, 16  ;;  %v3535_v56 = vadd.f32 %v15181_v46, %v3446_v20  ;;  %v15437_v35 = vpop.f32.mrf.mxu2  ;;  %v3889_v7 = vshll.u32 %v3703_v11, 16  ;;  %v12617_v20 = vld [vmem:[#allocation12 + $0x170] sm:$0xff] }
 0x509   : > { %v15447_v46 = vsel %vm1971_vm3, %v4585_v14, %v4586_v40  ;;  %5700 = vmatpush.bf16.msrb.mxu3 %v12617_v20 }
 0x50a   : > { %v3888_v36 = vrot.slane %v3886_v23, 7  ;;  %v3624_v38 = vadd.f32 %v15127_v0, %v3535_v56  ;;  %5366 = vmatmul.bf16.gmra.mxu3 %v15441_v26  ;;  %18898 = vst [vmem:[#allocation116_spill] sm:$0xff] %v15447_v46 }
 0x50c   : > { %v3891_v2 = vor.u32 %v3889_v7, %v3888_v36  ;;  %v3672_v9 = vmax.f32 %v3624_v38, 0.0  ;;  %v15450_v22 = vpop.f32.mrf.mxu0  ;;  %v4403_v7 = vrot.slane %v4401_v44, 1  ;;  %v4406_v38 = vshll.u32 %v15209_v59, 16 }
 0x50d   : > { %5485 = vmatmul.bf16.gmra.mxu2 %v15447_v46  ;;  %v3448_v50 = vpop.f32.mrf.mxu3  ;;  %18899 = vst [vmem:[#allocation117_spill] sm:$0xff] %v15450_v22  ;;  %v4399_v46 = vshrl.u32 %v15195_v52, 16 }
 0x50e   : > { %v4111_v0 = vsel %vm15020_vm1, %v3891_v2, %v4110_v27  ;;  %v3704_v8 = vpack.c.bf16 %v3672_v9, %v3672_v9  ;;  %v3449_v45 = vadd.f32 %v15367_v61, %v3448_v50  ;;  %v15456_v41 = vld [vmem:[#allocation3 + $0x78] sm:$0xff]  ;;  %v3892_v50 = vrot.slane %v3888_v36, 4 }
 0x50f   : > { %4112 = vst [vmem:[#allocation3 + $0x84] sm:$0xf] %v4111_v0  ;;  %v15458_v42 = vpop.f32.mrf.mxu1  ;;  %v4184_v11 = vld [vmem:[#allocation3 + $0x80] sm:$0x1]  ;;  %5574 = vmatmul.bf16.gmra.mxu0 %v15456_v41  ;;  %v4114_v0 = vld [vmem:[#allocation3 + $0x8c] sm:$0x1]  ;;  %v4404_v59 = vor.u32 %v4403_v7, %v4399_v46 }
 0x510   : > { %v3894_v23 = vshrl.u32 %v3704_v8, 16  ;;  %v3538_v56 = vadd.f32 %v15202_v30, %v3449_v45  ;;  %v15461_v40 = vpop.f32.mrf.mxu2  ;;  %v4328_v14 = vunpack.c.l.b16 %v4184_v11  ;;  %v3897_v2 = vshll.u32 %v3704_v8, 16 }
 0x511   : > { %18900 = vst [vmem:[#allocation118_spill] sm:$0xff] %v15461_v40  ;;  %v4408_v11 = vrot.slane %v4406_v38, 1 }
 0x512   : > { %v3896_v27 = vrot.slane %v3894_v23, 7  ;;  %v3627_v9 = vadd.f32 %v15146_v12, %v3538_v56  ;;  %5312 = vmatmul.bf16.gmra.mxu1 %v15456_v41  ;;  %v15468_v40 = vpack.c.b16 %v4328_v14, %v4328_v14 }
 0x513   : > { %v15484_v7 = vsel %vm1746_vm2, %v4404_v59, %v4408_v11 }
 0x514   : > { %v3899_v30 = vor.u32 %v3897_v2, %v3896_v27  ;;  %v3901_v45 = vrot.slane %v3896_v27, 4  ;;  %v3673_v22 = vmax.f32 %v3627_v9, 0.0  ;;  %v15470_v15 = vpop.f32.mrf.mxu0  ;;  %v4589_v46 = vrot.slane %v15468_v40, 1  ;;  %v4117_v9 = vld [vmem:[#allocation3 + $0x90] sm:$0xf] }
 0x515   : > { %v3450_v44 = vpop.f32.mrf.mxu3  ;;  %18901 = vst [vmem:[#allocation119_spill] sm:$0xff] %v15470_v15  ;;  %v4588_v2 = vrot.slane %v15456_v41, 1 }
 0x516   : > { %v3900_v8 = vsel %vm13856_vm10, %v3892_v50, %v3899_v30  ;;  %v4115_v12 = vsel %vm15043_vm6, %v3901_v45, %v4114_v0  ;;  %v3705_v36 = vpack.c.bf16 %v3673_v22, %v3673_v22  ;;  %v3451_v20 = vadd.f32 %v15367_v61, %v3450_v44 }
 0x517   : > { %4113 = vst [vmem:[#allocation3 + $0x88] sm:$0xf] %v3900_v8  ;;  %v15477_v52 = vpop.f32.mrf.mxu1  ;;  %v4413_v44 = vshll.u32 %v15235_v24, 16 }
 0x518   : > { %4116 = vst [vmem:[#allocation3 + $0x8c] sm:$0x1] %v4115_v12  ;;  %v3903_v23 = vshrl.u32 %v3705_v36, 16  ;;  %v3540_v56 = vadd.f32 %v15219_v18, %v3451_v20  ;;  %v15480_v14 = vpop.f32.mrf.mxu2  ;;  %v3906_v27 = vshll.u32 %v3705_v36, 16  ;;  %v15490_v18 = vsel %vm1971_vm3, %v4588_v2, %v4589_v46  ;;  %v12604_v20 = vld [vmem:[#allocation12 + $0x108] sm:$0xff] }
 0x519   : > { %18902 = vst [vmem:[#allocation120_spill] sm:$0xff] %v15490_v18  ;;  %5616 = vmatpush.bf16.msrb.mxu1 %v12604_v20 }
 0x51a   : > { %v3905_v38 = vrot.slane %v3903_v23, 7  ;;  %v3629_v22 = vadd.f32 %v15171_v3, %v3540_v56  ;;  %5371 = vmatmul.bf16.gmra.mxu3 %v15484_v7 }
 0x51c   : > { %v3908_v50 = vor.u32 %v3906_v27, %v3905_v38  ;;  %v3674_v0 = vmax.f32 %v3629_v22, 0.0  ;;  %v15493_v45 = vpop.f32.mrf.mxu0  ;;  %v4415_v27 = vrot.slane %v4413_v44, 1  ;;  %v4418_v22 = vshll.u32 %v15249_v49, 16 }
 0x51d   : > { %5490 = vmatmul.bf16.gmra.mxu2 %v15490_v18  ;;  %v3453_v30 = vpop.f32.mrf.mxu3  ;;  %18903 = vst [vmem:[#allocation121_spill] sm:$0xff] %v15493_v45  ;;  %v4411_v18 = vshrl.u32 %v15235_v24, 16 }
 0x51e   : > { %v4118_v3 = vsel %vm15020_vm1, %v3908_v50, %v4117_v9  ;;  %v3706_v59 = vpack.c.bf16 %v3674_v0, %v3674_v0  ;;  %v3454_v11 = vadd.f32 %v15367_v61, %v3453_v30  ;;  %v15499_v8 = vld [vmem:[#allocation3 + $0x84] sm:$0xff]  ;;  %v3909_v30 = vrot.slane %v3905_v38, 4 }
 0x51f   : > { %4119 = vst [vmem:[#allocation3 + $0x90] sm:$0xf] %v4118_v3  ;;  %v15501_v12 = vpop.f32.mrf.mxu1  ;;  %v4187_v36 = vld [vmem:[#allocation3 + $0x8c] sm:$0x1]  ;;  %5579 = vmatmul.bf16.gmra.mxu0 %v15499_v8  ;;  %v4121_v3 = vld [vmem:[#allocation3 + $0x98] sm:$0x1]  ;;  %v4416_v49 = vor.u32 %v4415_v27, %v4411_v18 }
 0x520   : > { %v3911_v23 = vshrl.u32 %v3706_v59, 16  ;;  %v3543_v56 = vadd.f32 %v15240_v10, %v3454_v11  ;;  %v15504_v46 = vpop.f32.mrf.mxu2  ;;  %v4329_v2 = vunpack.c.l.b16 %v4187_v36  ;;  %v3914_v50 = vshll.u32 %v3706_v59, 16 }
 0x521   : > { %18904 = vst [vmem:[#allocation122_spill] sm:$0xff] %v15504_v46  ;;  %v4420_v36 = vrot.slane %v4418_v22, 1 }
 0x522   : > { %v3913_v9 = vrot.slane %v3911_v23, 7  ;;  %v3632_v0 = vadd.f32 %v15199_v43, %v3543_v56  ;;  %5317 = vmatmul.bf16.gmra.mxu1 %v15499_v8  ;;  %v15511_v46 = vpack.c.b16 %v4329_v2, %v4329_v2 }
 0x523   : > { %v15527_v27 = vsel %vm1746_vm2, %v4416_v49, %v4420_v36 }
 0x524   : > { %v3916_v10 = vor.u32 %v3914_v50, %v3913_v9  ;;  %v3918_v11 = vrot.slane %v3913_v9, 4  ;;  %v3675_v45 = vmax.f32 %v3632_v0, 0.0  ;;  %v15513_v15 = vpop.f32.mrf.mxu0  ;;  %v4592_v18 = vrot.slane %v15511_v46, 1  ;;  %v4124_v0 = vld [vmem:[#allocation3 + $0x9c] sm:$0xf] }
 0x525   : > { %v3455_v44 = vpop.f32.mrf.mxu3  ;;  %18905 = vst [vmem:[#allocation123_spill] sm:$0xff] %v15513_v15  ;;  %v4591_v50 = vrot.slane %v15499_v8, 1 }
 0x526   : > { %v3917_v59 = vsel %vm13856_vm10, %v3909_v30, %v3916_v10  ;;  %v4122_v43 = vsel %vm15043_vm6, %v3918_v11, %v4121_v3  ;;  %v3707_v38 = vpack.c.bf16 %v3675_v45, %v3675_v45  ;;  %v3456_v20 = vadd.f32 %v15367_v61, %v3455_v44 }
 0x527   : > { %4120 = vst [vmem:[#allocation3 + $0x94] sm:$0xf] %v3917_v59  ;;  %v15520_v24 = vpop.f32.mrf.mxu1  ;;  %v4425_v44 = vshll.u32 %v15278_v60, 16 }
 0x528   : > { %4123 = vst [vmem:[#allocation3 + $0x98] sm:$0x1] %v4122_v43  ;;  %v3920_v23 = vshrl.u32 %v3707_v38, 16  ;;  %v3545_v56 = vadd.f32 %v15259_v37, %v3456_v20  ;;  %v15523_v2 = vpop.f32.mrf.mxu2  ;;  %v3923_v9 = vshll.u32 %v3707_v38, 16  ;;  %v15533_v37 = vsel %vm1971_vm3, %v4591_v50, %v4592_v18  ;;  %v12616_v20 = vld [vmem:[#allocation12 + $0x168] sm:$0xff] }
 0x529   : > { %18906 = vst [vmem:[#allocation124_spill] sm:$0xff] %v15533_v37  ;;  %5701 = vmatpush.bf16.msrb.mxu3 %v12616_v20 }
 0x52a   : > { %v3922_v22 = vrot.slane %v3920_v23, 7  ;;  %v3634_v45 = vadd.f32 %v15222_v13, %v3545_v56  ;;  %5376 = vmatmul.bf16.gmra.mxu3 %v15527_v27 }
 0x52c   : > { %v3925_v30 = vor.u32 %v3923_v9, %v3922_v22  ;;  %v3676_v3 = vmax.f32 %v3634_v45, 0.0  ;;  %v15536_v11 = vpop.f32.mrf.mxu0  ;;  %v4427_v9 = vrot.slane %v4425_v44, 1  ;;  %v4430_v45 = vshll.u32 %v15290_v53, 16 }
 0x52d   : > { %5495 = vmatmul.bf16.gmra.mxu2 %v15533_v37  ;;  %v3458_v10 = vpop.f32.mrf.mxu3  ;;  %18907 = vst [vmem:[#allocation125_spill] sm:$0xff] %v15536_v11  ;;  %v4423_v37 = vshrl.u32 %v15278_v60, 16 }
 0x52e   : > { %v4125_v13 = vsel %vm15020_vm1, %v3925_v30, %v4124_v0  ;;  %v3708_v49 = vpack.c.bf16 %v3676_v3, %v3676_v3  ;;  %v3459_v36 = vadd.f32 %v15367_v61, %v3458_v10  ;;  %v15542_v59 = vld [vmem:[#allocation3 + $0x90] sm:$0xff]  ;;  %v3926_v10 = vrot.slane %v3922_v22, 4 }
 0x52f   : > { %4126 = vst [vmem:[#allocation3 + $0x9c] sm:$0xf] %v4125_v13  ;;  %v15544_v43 = vpop.f32.mrf.mxu1  ;;  %v4190_v38 = vld [vmem:[#allocation3 + $0x98] sm:$0x1]  ;;  %5584 = vmatmul.bf16.gmra.mxu0 %v15542_v59  ;;  %v4128_v13 = vld [vmem:[#allocation3 + $0xa4] sm:$0x1]  ;;  %v4428_v53 = vor.u32 %v4427_v9, %v4423_v37 }
 0x530   : > { %v3928_v23 = vshrl.u32 %v3708_v49, 16  ;;  %v3548_v56 = vadd.f32 %v15283_v29, %v3459_v36  ;;  %v15547_v18 = vpop.f32.mrf.mxu2  ;;  %v4330_v50 = vunpack.c.l.b16 %v4190_v38  ;;  %v3931_v30 = vshll.u32 %v3708_v49, 16 }
 0x531   : > { %18908 = vst [vmem:[#allocation126_spill] sm:$0xff] %v15547_v18  ;;  %v4432_v38 = vrot.slane %v4430_v45, 1 }
 0x532   : > { %v3930_v0 = vrot.slane %v3928_v23, 7  ;;  %v3637_v3 = vadd.f32 %v15247_v25, %v3548_v56  ;;  %5322 = vmatmul.bf16.gmra.mxu1 %v15542_v59  ;;  %v15554_v18 = vpack.c.b16 %v4330_v50, %v4330_v50 }
 0x533   : > { %v15570_v9 = vsel %vm1746_vm2, %v4428_v53, %v4432_v38 }
 0x534   : > { %v3933_v29 = vor.u32 %v3931_v30, %v3930_v0  ;;  %v3935_v36 = vrot.slane %v3930_v0, 4  ;;  %v3677_v11 = vmax.f32 %v3637_v3, 0.0  ;;  %v15556_v15 = vpop.f32.mrf.mxu0  ;;  %v4595_v37 = vrot.slane %v15554_v18, 1  ;;  %v4131_v3 = vld [vmem:[#allocation3 + $0xa8] sm:$0xf] }
 0x535   : > { %v3460_v44 = vpop.f32.mrf.mxu3  ;;  %18909 = vst [vmem:[#allocation127_spill] sm:$0xff] %v15556_v15  ;;  %v4594_v30 = vrot.slane %v15542_v59, 1 }
 0x536   : > { %v3934_v49 = vsel %vm13856_vm10, %v3926_v10, %v3933_v29  ;;  %v4129_v25 = vsel %vm15043_vm6, %v3935_v36, %v4128_v13  ;;  %v3709_v22 = vpack.c.bf16 %v3677_v11, %v3677_v11  ;;  %v3461_v20 = vadd.f32 %v15367_v61, %v3460_v44 }
 0x537   : > { %4127 = vst [vmem:[#allocation3 + $0xa0] sm:$0xf] %v3934_v49  ;;  %v15563_v60 = vpop.f32.mrf.mxu1  ;;  %v4437_v36 = vshll.u32 %v15320_v62, 16 }
 0x538   : > { %4130 = vst [vmem:[#allocation3 + $0xa4] sm:$0x1] %v4129_v25  ;;  %v3937_v23 = vshrl.u32 %v3709_v22, 16  ;;  %v3550_v56 = vadd.f32 %v15303_v54, %v3461_v20  ;;  %v15566_v50 = vpop.f32.mrf.mxu2  ;;  %v3940_v0 = vshll.u32 %v3709_v22, 16  ;;  %v15576_v54 = vsel %vm1971_vm3, %v4594_v30, %v4595_v37  ;;  %v12603_v20 = vld [vmem:[#allocation12 + $0x100] sm:$0xff] }
 0x539   : > { %18910 = vst [vmem:[#allocation128_spill] sm:$0xff] %v15566_v50  ;;  %v4442_v30 = vshll.u32 %v15334_v51, 16  ;;  %5617 = vmatpush.bf16.msrb.mxu1 %v12603_v20 }
 0x53a   : > { %v3939_v45 = vrot.slane %v3937_v23, 7  ;;  %v3639_v11 = vadd.f32 %v15272_v17, %v3550_v56  ;;  %5381 = vmatmul.bf16.gmra.mxu3 %v15570_v9  ;;  %18911 = vst [vmem:[#allocation129_spill] sm:$0xff] %v15576_v54  ;;  %v12626_v23 = vld [vmem:[#allocation12 + $0x1b8] sm:$0xff] }
 0x53b   : > { %5788 = vmatpush.bf16.msrb.mxu2 %v12626_v23  ;;  %v4444_v20 = vrot.slane %v4442_v30, 1 }
 0x53c   : > { %v3942_v10 = vor.u32 %v3940_v0, %v3939_v45  ;;  %v3678_v13 = vmax.f32 %v3639_v11, 0.0  ;;  %v15583_v38 = vpop.f32.mrf.mxu0  ;;  %v4439_v11 = vrot.slane %v4437_v36, 1 }
 0x53d   : > { %5500 = vmatmul.bf16.gmra.mxu2 %v15576_v54  ;;  %v3463_v29 = vpop.f32.mrf.mxu3  ;;  %18912 = vst [vmem:[#allocation130_spill] sm:$0xff] %v15583_v38  ;;  %v4135_v54 = vld [vmem:[#allocation3 + $0xb0] sm:$0x1] }
 0x53e   : > { %v4132_v44 = vsel %vm15020_vm1, %v3942_v10, %v4131_v3  ;;  %v3710_v53 = vpack.c.bf16 %v3678_v13, %v3678_v13  ;;  %v3464_v17 = vadd.f32 %v15367_v61, %v3463_v29  ;;  %v15585_v49 = vld [vmem:[#allocation3 + $0x9c] sm:$0xff]  ;;  %v12634_v38 = vld [vmem:[#allocation12 + $0x1f8] sm:$0xff] }
 0x53f   : > { %4133 = vst [vmem:[#allocation3 + $0xa8] sm:$0xf] %v4132_v44  ;;  %v15587_v25 = vpop.f32.mrf.mxu1  ;;  %v4193_v22 = vld [vmem:[#allocation3 + $0xa4] sm:$0x1]  ;;  %5589 = vmatmul.bf16.gmra.mxu0 %v15585_v49  ;;  %v3943_v44 = vrot.slane %v3939_v45, 4 }
 0x540   : > { %v3945_v56 = vshrl.u32 %v3710_v53, 16  ;;  %v3553_v37 = vadd.f32 %v15323_v6, %v3464_v17  ;;  %v15590_v0 = vpop.f32.mrf.mxu2  ;;  %v4331_v3 = vunpack.c.l.b16 %v4193_v22  ;;  %v3948_v13 = vshll.u32 %v3710_v53, 16  ;;  %v12625_v17 = vld [vmem:[#allocation12 + $0x1b0] sm:$0xff]  ;;  %5877 = vmatpush.bf16.msra.mxu0 %v12634_v38 }
 0x541   : > { %18913 = vst [vmem:[#allocation131_spill] sm:$0xff] %v15590_v0  ;;  %v4435_v6 = vshrl.u32 %v15320_v62, 16  ;;  %5789 = vmatpush.bf16.msrb.mxu2 %v12625_v17  ;;  %v4138_v17 = vld [vmem:[#allocation3 + $0xb4] sm:$0xf] }
 0x542   : > { %v3947_v10 = vrot.slane %v3945_v56, 7  ;;  %v3642_v29 = vadd.f32 %v15299_v28, %v3553_v37  ;;  %5327 = vmatmul.bf16.gmra.mxu1 %v15585_v49  ;;  %v15597_v50 = vpack.c.b16 %v4331_v3, %v4331_v3  ;;  %v12624_v56 = vld [vmem:[#allocation12 + $0x1a8] sm:$0xff]  ;;  %v12633_v37 = vld [vmem:[#allocation12 + $0x1f0] sm:$0xff] }
 0x543   : > { %v4440_v22 = vor.u32 %v4439_v11, %v4435_v6  ;;  %v12632_v6 = vld [vmem:[#allocation12 + $0x1e8] sm:$0xff] }
 0x544   : > { %v3950_v0 = vor.u32 %v3948_v13, %v3947_v10  ;;  %v3952_v15 = vrot.slane %v3947_v10, 4  ;;  %v3679_v36 = vmax.f32 %v3642_v29, 0.0  ;;  %v15609_v38 = vpop.f32.mrf.mxu0  ;;  %v12615_v10 = vld [vmem:[#allocation12 + $0x160] sm:$0xff]  ;;  %5878 = vmatpush.bf16.msra.mxu0 %v12633_v37 }
 0x545   : > { %v3465_v51 = vpop.f32.mrf.mxu3  ;;  %5790 = vmatpush.bf16.msrb.mxu2 %v12624_v56  ;;  %5702 = vmatpush.bf16.msrb.mxu3 %v12615_v10  ;;  %v12622_v56 = vld [vmem:[#allocation12 + $0x198] sm:$0xff] }
 0x546   : > { %v3951_v28 = vsel %vm13856_vm10, %v3943_v44, %v3950_v0  ;;  %v4136_v45 = vsel %vm15043_vm6, %v3952_v15, %v4135_v54  ;;  %v3711_v53 = vpack.c.bf16 %v3679_v36, %v3679_v36  ;;  %v3466_v62 = vadd.f32 %v15367_v61, %v3465_v51  ;;  %v12623_v44 = vld [vmem:[#allocation12 + $0x1a0] sm:$0xff] }
 0x547   : > { %4134 = vst [vmem:[#allocation3 + $0xac] sm:$0xf] %v3951_v28  ;;  %v15604_v23 = vpop.f32.mrf.mxu1  ;;  %v4598_v0 = vrot.slane %v15597_v50, 1  ;;  %v15613_v15 = vsel %vm1746_vm2, %v4440_v22, %v4444_v20  ;;  %v4449_v20 = vshll.u32 %v15370_v48, 16 }
 0x548   : > { %4137 = vst [vmem:[#allocation3 + $0xb0] sm:$0x1] %v4136_v45  ;;  %v3954_v3 = vshrl.u32 %v3711_v53, 16  ;;  %v3555_v11 = vadd.f32 %v15344_v21, %v3466_v62  ;;  %v15607_v30 = vpop.f32.mrf.mxu2  ;;  %v3957_v13 = vshll.u32 %v3711_v53, 16  ;;  %v4597_v21 = vrot.slane %v15585_v49, 1  ;;  %5879 = vmatpush.bf16.msra.mxu0 %v12632_v6 }
 0x549   : > { %5791 = vmatpush.bf16.msrb.mxu2 %v12623_v44 }
 0x54a   : > { %v3956_v54 = vrot.slane %v3954_v3, 7  ;;  %v3644_v29 = vadd.f32 %v15328_v4, %v3555_v11  ;;  %5386 = vmatmul.bf16.gmra.mxu3 %v15613_v15  ;;  %v15619_v28 = vsel %vm1971_vm3, %v4597_v21, %v4598_v0  ;;  %v12631_v11 = vld [vmem:[#allocation12 + $0x1e0] sm:$0xff]  ;;  %v4454_v21 = vshll.u32 %v15384_v32, 16 }
 0x54b   : > { %18914 = vst [vmem:[#allocation132_spill] sm:$0xff] %v15619_v28 }
 0x54c   : > { %v3959_v36 = vor.u32 %v3957_v13, %v3956_v54  ;;  %v3680_v51 = vmax.f32 %v3644_v29, 0.0  ;;  %v4451_v29 = vrot.slane %v4449_v20, 1  ;;  %5880 = vmatpush.bf16.msra.mxu0 %v12631_v11  ;;  %v4447_v20 = vshrl.u32 %v15370_v48, 16  ;;  %v12620_v48 = vld [vmem:[#allocation12 + $0x188] sm:$0xff] }
 0x54d   : > { %5505 = vmatmul.bf16.gmra.mxu2 %v15619_v28  ;;  %v3468_v22 = vpop.f32.mrf.mxu3  ;;  %v4142_v28 = vld [vmem:[#allocation3 + $0xbc] sm:$0x1] }
 0x54e   : > { %v4139_v4 = vsel %vm15020_vm1, %v3959_v36, %v4138_v17  ;;  %v3712_v45 = vpack.c.bf16 %v3680_v51, %v3680_v51  ;;  %v3469_v53 = vadd.f32 %v15367_v61, %v3468_v22  ;;  %v15626_v62 = vld [vmem:[#allocation3 + $0xa8] sm:$0xff]  ;;  %v15636_v51 = vpop.f32.mrf.mxu0  ;;  %5792 = vmatpush.bf16.msrb.mxu2 %v12622_v56 }
 0x54f   : > { %4140 = vst [vmem:[#allocation3 + $0xb4] sm:$0xf] %v4139_v4  ;;  %v15628_v37 = vpop.f32.mrf.mxu1  ;;  %v4196_v3 = vld [vmem:[#allocation3 + $0xb0] sm:$0x1]  ;;  %5594 = vmatmul.bf16.gmra.mxu0 %v15626_v62  ;;  %v12621_v22 = vld [vmem:[#allocation12 + $0x190] sm:$0xff] }
 0x550   : > { %v3962_v0 = vshrl.u32 %v3712_v45, 16  ;;  %v3558_v10 = vadd.f32 %v15375_v55, %v3469_v53  ;;  %v15631_v13 = vpop.f32.mrf.mxu2  ;;  %v4332_v6 = vunpack.c.l.b16 %v4196_v3  ;;  %v3965_v44 = vshll.u32 %v3712_v45, 16  ;;  %18916 = vst [vmem:[#allocation134_spill] sm:$0xff] %v15636_v51  ;;  %v12630_v55 = vld [vmem:[#allocation12 + $0x1d8] sm:$0xff] }
 0x551   : > { %18915 = vst [vmem:[#allocation133_spill] sm:$0xff] %v15631_v13  ;;  %v12642_v4 = vld [vmem:[#allocation12 + $0x238] sm:$0xff]  ;;  %v3960_v53 = vrot.slane %v3956_v54, 4  ;;  %5881 = vmatpush.bf16.msra.mxu0 %v12630_v55 }
 0x552   : > { %v3964_v17 = vrot.slane %v3962_v0, 7  ;;  %v3647_v36 = vadd.f32 %v15352_v47, %v3558_v10  ;;  %5332 = vmatmul.bf16.gmra.mxu1 %v15626_v62  ;;  %v15640_v11 = vpack.c.b16 %v4332_v6, %v4332_v6  ;;  %v4452_v47 = vor.u32 %v4451_v29, %v4447_v20  ;;  %5793 = vmatpush.bf16.msrb.mxu2 %v12621_v22  ;;  %v12629_v6 = vld [vmem:[#allocation12 + $0x1d0] sm:$0xff]  ;;  %v12628_v20 = vld [vmem:[#allocation12 + $0x1c8] sm:$0xff] }
 0x553   : > { %5966 = vmatpush.bf16.msra.mxu1 %v12642_v4  ;;  %v4456_v0 = vrot.slane %v4454_v21, 1  ;;  %v15652_v29 = vld [vmem:[%s18560_s7] ss:$0 sm:$0xff]  ;;  %v4600_v4 = vrot.slane %v15626_v62, 1 }
 0x554   : > { %v3967_v13 = vor.u32 %v3965_v44, %v3964_v17  ;;  %v3969_v32 = vrot.slane %v3964_v17, 4  ;;  %v3681_v3 = vmax.f32 %v3647_v36, 0.0 }
 0x555   : > { %v3470_v45 = vpop.f32.mrf.mxu3  ;;  %5882 = vmatpush.bf16.msra.mxu0 %v12629_v6 }
 0x556   : > { %v3968_v56 = vsel %vm13856_vm10, %v3960_v53, %v3967_v13  ;;  %v4143_v10 = vsel %vm15043_vm6, %v3969_v32, %v4142_v28  ;;  %v3713_v54 = vpack.c.bf16 %v3681_v3, %v3681_v3  ;;  %v3471_v51 = vadd.f32 %v15367_v61, %v3470_v45  ;;  %5794 = vmatpush.bf16.msrb.mxu2 %v12620_v48  ;;  %v12619_v53 = vld [vmem:[#allocation12 + $0x180] sm:$0xff]  ;;  %v15666_v45 = vpop.f32.mrf.mxu0 }
 0x557   : > { %4141 = vst [vmem:[#allocation3 + $0xb8] sm:$0xf] %v3968_v56  ;;  %v15647_v17 = vpop.f32.mrf.mxu1  ;;  %v4601_v28 = vrot.slane %v15640_v11, 1  ;;  %v15659_v61 = vsel %vm1746_vm2, %v4452_v47, %v4456_v0  ;;  %v4461_v0 = vshll.u32 %v15413_v19, 16 }
 0x558   : > { %4144 = vst [vmem:[#allocation3 + $0xbc] sm:$0x1] %v4143_v10  ;;  %v3971_v21 = vshrl.u32 %v3713_v54, 16  ;;  %v3560_v13 = vadd.f32 %v15394_v63, %v3471_v51  ;;  %v15656_v44 = vpop.f32.mrf.mxu2  ;;  %v3974_v22 = vshll.u32 %v3713_v54, 16  ;;  %v4145_v63 = vld [vmem:[#allocation3 + $0xc0] sm:$0xf]  ;;  %v5264_v51 = vadd.f32 %v15652_v29, %v15372_v1 }
 0x559   : > { %v15669_v47 = vsel %vm1971_vm3, %v4600_v4, %v4601_v28  ;;  %5883 = vmatpush.bf16.msra.mxu0 %v12628_v20  ;;  %v12614_v28 = vld [vmem:[#allocation12 + $0x158] sm:$0xff] }
 0x55a   : > { %v3973_v36 = vrot.slane %v3971_v21, 7  ;;  %v3649_v55 = vadd.f32 %v15381_v58, %v3560_v13  ;;  %5391 = vmatmul.bf16.gmra.mxu3 %v15659_v61  ;;  %18917 = vst [vmem:[#allocation135_spill] sm:$0xff] %v15669_v47  ;;  %5795 = vmatpush.bf16.msrb.mxu2 %v12619_v53  ;;  %v12627_v21 = vld [vmem:[#allocation12 + $0x1c0] sm:$0xff]  ;;  %v5266_v53 = vadd.f32 %v15652_v29, %v15391_v33 }
 0x55b   : > { %5703 = vmatpush.bf16.msrb.mxu3 %v12614_v28 }
 0x55c   : > { %v3976_v32 = vor.u32 %v3974_v22, %v3973_v36  ;;  %v3682_v3 = vmax.f32 %v3649_v55, 0.0  ;;  %v4463_v22 = vrot.slane %v4461_v0, 1  ;;  %v4466_v55 = vshll.u32 %v15425_v5, 16 }
 0x55d   : > { %5510 = vmatmul.bf16.gmra.mxu2 %v15669_v47  ;;  %v5352_v58 = vpop.f32.mrf.mxu3  ;;  %5884 = vmatpush.bf16.msra.mxu0 %v12627_v21 }
 0x55e   : > { %v4146_v56 = vsel %vm15020_vm1, %v3976_v32, %v4145_v63  ;;  %v3714_v10 = vpack.c.bf16 %v3682_v3, %v3682_v3  ;;  %v15675_v54 = vadd.f32 %v5352_v58, %v5264_v51  ;;  %v15677_v1 = vld [vmem:[#allocation3 + $0xb4] sm:$0xff]  ;;  %v4149_v51 = vld [vmem:[#allocation3 + $0xc8] sm:$0x1]  ;;  %v4459_v3 = vshrl.u32 %v15413_v19, 16  ;;  %v15695_v33 = vpop.f32.mrf.mxu0 }
 0x55f   : > { %4147 = vst [vmem:[#allocation3 + $0xc0] sm:$0xf] %v4146_v56  ;;  %v15679_v48 = vpop.f32.mrf.mxu1  ;;  %v4199_v6 = vld [vmem:[#allocation3 + $0xbc] sm:$0x1]  ;;  %5599 = vmatmul.bf16.gmra.mxu0 %v15677_v1  ;;  %v3977_v58 = vrot.slane %v3973_v36, 4  ;;  %v4468_v21 = vrot.slane %v4466_v55, 1  ;;  %v5269_v55 = vadd.f32 %v15652_v29, %v15415_v34 }
 0x560   : > { %v3979_v13 = vshrl.u32 %v3714_v10, 16  ;;  %v4333_v4 = vunpack.c.l.b16 %v4199_v6  ;;  %v3982_v63 = vshll.u32 %v3714_v10, 16  ;;  %v15686_v32 = vpop.f32.mrf.mxu2  ;;  %v4464_v6 = vor.u32 %v4463_v22, %v4459_v3 }
 0x561   : > { %v4603_v22 = vrot.slane %v15677_v1, 1 }
 0x562   : > { %v3981_v20 = vrot.slane %v3979_v13, 7  ;;  %5337 = vmatmul.bf16.gmra.mxu1 %v15677_v1  ;;  %v15689_v39 = vpack.c.b16 %v4333_v4, %v4333_v4  ;;  %v15703_v4 = vsel %vm1746_vm2, %v4464_v6, %v4468_v21  ;;  %v18920_v6 = vld [vmem:[#allocation46_spill] sm:$0xff]  ;;  %v12641_v21 = vld [vmem:[#allocation12 + $0x230] sm:$0xff] }
 0x563   : > { %5967 = vmatpush.bf16.msra.mxu1 %v12641_v21 }
 0x564   : > { %v3984_v56 = vor.u32 %v3982_v63, %v3981_v20  ;;  %v3986_v0 = vrot.slane %v3981_v20, 4  ;;  %v4604_v36 = vrot.slane %v15689_v39, 1 }
 0x565   : > { %v5354_v5 = vpop.f32.mrf.mxu3 }
 0x566   : > { %v3985_v10 = vsel %vm13856_vm10, %v3977_v58, %v3984_v56  ;;  %v4150_v13 = vsel %vm15043_vm6, %v3986_v0, %v4149_v51  ;;  %v15697_v28 = vadd.f32 %v5354_v5, %v5266_v53  ;;  %v15710_v20 = vsel %vm1971_vm3, %v4603_v22, %v4604_v36  ;;  %v15722_v0 = vpop.f32.mrf.mxu0 }
 0x567   : > { %4148 = vst [vmem:[#allocation3 + $0xc4] sm:$0xf] %v3985_v10  ;;  %v15699_v19 = vpop.f32.mrf.mxu1  ;;  %v4473_v51 = vshll.u32 %v15456_v41, 16  ;;  %v4478_v5 = vshll.u32 %v15468_v40, 16  ;;  %v4471_v10 = vshrl.u32 %v15456_v41, 16  ;;  %v13064_v41 = vld [vmem:[#allocation3 + $0x18] sm:$0xff] }
 0x568   : > { %4151 = vst [vmem:[#allocation3 + $0xc8] sm:$0x1] %v4150_v13  ;;  %v15712_v63 = vpop.f32.mrf.mxu2  ;;  %v5271_v13 = vadd.f32 %v15652_v29, %v15434_v57  ;;  %v5274_v57 = vadd.f32 %v15652_v29, %v15458_v42  ;;  %v4483_v42 = vshrl.u32 %v15499_v8, 16 }
 0x569   : > { %18918 = vst [vmem:[#allocation136_spill] sm:$0xff] %v15710_v20  ;;  %v4475_v34 = vrot.slane %v4473_v51, 1 }
 0x56a   : > { %5396 = vmatmul.bf16.gmra.mxu3 %v15703_v4  ;;  %18919 = vst [vmem:[#allocation137_spill] sm:$0xff] %v15722_v0 }
 0x56b   : > { %v4476_v22 = vor.u32 %v4475_v34, %v4471_v10  ;;  %v18923_v10 = vld [vmem:[#allocation95_spill] sm:$0xff] }
 0x56d   : > { %5515 = vmatmul.bf16.gmra.mxu2 %v15710_v20  ;;  %v5357_v53 = vpop.f32.mrf.mxu3 }
 0x56e   : > { %v15716_v3 = vadd.f32 %v5357_v53, %v5269_v55  ;;  %v15718_v58 = vld [vmem:[#allocation3 + $0xc0] sm:$0xff]  ;;  %v4480_v55 = vrot.slane %v4478_v5, 1  ;;  %v15739_v51 = vpop.f32.mrf.mxu0  ;;  %v4485_v5 = vshll.u32 %v15499_v8, 16  ;;  %v5279_v8 = vadd.f32 %v15652_v29, %v15501_v12 }
 0x56f   : > { %v15720_v56 = vpop.f32.mrf.mxu1  ;;  %5604 = vmatmul.bf16.gmra.mxu0 %v15718_v58  ;;  %18922 = vst [vmem:[#allocation138_spill] sm:$0xff] %v15739_v51  ;;  %v4495_v12 = vshrl.u32 %v15542_v59, 16 }
 0x570   : > { %v15732_v16 = vpop.f32.mrf.mxu2  ;;  %v15737_v40 = vsel %vm1746_vm2, %v4476_v22, %v4480_v55  ;;  %v4487_v22 = vrot.slane %v4485_v5, 1  ;;  %v4490_v55 = vshll.u32 %v15511_v46, 16 }
 0x571   : > { %18921 = vst [vmem:[#allocation46_spill] sm:$0xff] %v15732_v16 }
 0x572   : > { %5618 = vmatmul.bf16.vlgmr.msrb.gmra.mxu1 %v18920_v6  ;;  %v4488_v20 = vor.u32 %v4487_v22, %v4483_v42  ;;  %v4492_v47 = vrot.slane %v4490_v55, 1 }
 0x574   : > { %v15764_v5 = vsel %vm1746_vm2, %v4488_v20, %v4492_v47  ;;  %v4502_v20 = vshll.u32 %v15554_v18, 16  ;;  %v13066_v18 = vld [vmem:[#allocation3 + $0x30] sm:$0xff] }
 0x575   : > { %v5359_v36 = vpop.f32.mrf.mxu3 }
 0x576   : > { %v15730_v53 = vadd.f32 %v5359_v36, %v5271_v13  ;;  %v12613_v13 = vld [vmem:[#allocation12 + $0x150] sm:$0xff] }
 0x577   : > { %v15734_v31 = vpop.f32.mrf.mxu1  ;;  %5704 = vmatpush.bf16.msrb.mxu3 %v12613_v13  ;;  %v4497_v13 = vshll.u32 %v15542_v59, 16 }
 0x578   : > { %v15750_v36 = vpop.f32.mrf.mxu2 }
 0x579   : > { %18924 = vst [vmem:[#allocation95_spill] sm:$0xff] %v15750_v36  ;;  %v4499_v47 = vrot.slane %v4497_v13, 1 }
 0x57a   : > { %5401 = vmatmul.bf16.gmra.mxu3 %v15737_v40 }
 0x57d   : > { %5796 = vmatmul.bf16.vlgmr.msrb.gmra.mxu2 %v13064_v41  ;;  %v5362_v34 = vpop.f32.mrf.mxu3  ;;  %v5276_v41 = vadd.f32 %v15652_v29, %v15477_v52  ;;  %v13065_v52 = vld [vmem:[#allocation3 + $0x24] sm:$0xff] }
 0x57e   : > { %v15745_v6 = vadd.f32 %v5362_v34, %v5274_v57  ;;  %v15757_v57 = vpop.f32.mrf.mxu0 }
 0x57f   : > { %v15747_v21 = vpop.f32.mrf.mxu1  ;;  %5885 = vmatmul.bf16.vlgmr.msra.gmra.mxu0 %v18923_v10  ;;  %18925 = vst [vmem:[#allocation139_spill] sm:$0xff] %v15757_v57 }
 0x580   : > { %v15767_v46 = vpop.f32.mrf.mxu2 }
 0x581   : > { %18926 = vst [vmem:[#allocation140_spill] sm:$0xff] %v15767_v46 }
 0x582   : > { %5623 = vmatmul.bf16.gmra.mxu1 %v18923_v10 }
 0x585   : > { %v5364_v34 = vpop.f32.mrf.mxu3 }
 0x586   : > { %v15759_v51 = vadd.f32 %v5364_v34, %v5276_v41  ;;  %v15772_v22 = vpop.f32.mrf.mxu0  ;;  %v12640_v41 = vld [vmem:[#allocation12 + $0x228] sm:$0xff]  ;;  %v5281_v34 = vadd.f32 %v15652_v29, %v15520_v24  ;;  %v5284_v24 = vadd.f32 %v15652_v29, %v15544_v43  ;;  %v4507_v43 = vshrl.u32 %v15585_v49, 16 }
 0x587   : > { %v15761_v16 = vpop.f32.mrf.mxu1  ;;  %18927 = vst [vmem:[#allocation141_spill] sm:$0xff] %v15772_v22  ;;  %5968 = vmatpush.bf16.msra.mxu1 %v12640_v41  ;;  %v4504_v22 = vrot.slane %v4502_v20, 1 }
 0x58a   : > { %5406 = vmatmul.bf16.gmra.mxu3 %v15764_v5 }
 0x58d   : > { %5801 = vmatmul.bf16.gmra.mxu2 %v13065_v52  ;;  %v5367_v10 = vpop.f32.mrf.mxu3  ;;  %v15784_v52 = vpop.f32.mrf.mxu2 }
 0x58e   : > { %v15774_v55 = vadd.f32 %v5367_v10, %v5279_v8  ;;  %18928 = vst [vmem:[#allocation142_spill] sm:$0xff] %v15784_v52  ;;  %v4500_v10 = vor.u32 %v4499_v47, %v4495_v12  ;;  %v15790_v13 = vpop.f32.mrf.mxu0  ;;  %v4509_v47 = vshll.u32 %v15585_v49, 16 }
 0x58f   : > { %v15776_v42 = vpop.f32.mrf.mxu1  ;;  %5890 = vmatmul.bf16.gmra.mxu0 %v15441_v26  ;;  %18929 = vst [vmem:[#allocation143_spill] sm:$0xff] %v15790_v13 }
 0x592   : > { %5628 = vmatmul.bf16.gmra.mxu1 %v15441_v26  ;;  %v15793_v26 = vsel %vm1746_vm2, %v4500_v10, %v4504_v22  ;;  %v12612_v22 = vld [vmem:[#allocation12 + $0x148] sm:$0xff]  ;;  %v4514_v10 = vshll.u32 %v15597_v50, 16 }
 0x593   : > { %5705 = vmatpush.bf16.msrb.mxu3 %v12612_v22 }
 0x595   : > { %v5369_v8 = vpop.f32.mrf.mxu3  ;;  %v15801_v12 = vpop.f32.mrf.mxu2 }
 0x596   : > { %v15786_v46 = vadd.f32 %v5369_v8, %v5281_v34  ;;  %18930 = vst [vmem:[#allocation144_spill] sm:$0xff] %v15801_v12  ;;  %v4511_v8 = vrot.slane %v4509_v47, 1  ;;  %v15807_v13 = vpop.f32.mrf.mxu0  ;;  %v4516_v12 = vrot.slane %v4514_v10, 1  ;;  %v4521_v10 = vshll.u32 %v15626_v62, 16 }
 0x597   : > { %v15788_v57 = vpop.f32.mrf.mxu1  ;;  %18931 = vst [vmem:[#allocation145_spill] sm:$0xff] %v15807_v13 }
 0x59a   : > { %5411 = vmatmul.bf16.gmra.mxu3 %v15793_v26 }
 0x59d   : > { %5806 = vmatmul.bf16.gmra.mxu2 %v13066_v18  ;;  %v5372_v41 = vpop.f32.mrf.mxu3  ;;  %v15817_v47 = vpop.f32.mrf.mxu2 }
 0x59e   : > { %v15799_v20 = vadd.f32 %v5372_v41, %v5284_v24  ;;  %v5286_v24 = vadd.f32 %v15652_v29, %v15563_v60  ;;  %v4512_v41 = vor.u32 %v4511_v8, %v4507_v43  ;;  %18932 = vst [vmem:[#allocation146_spill] sm:$0xff] %v15817_v47  ;;  %v15825_v22 = vpop.f32.mrf.mxu0  ;;  %v13067_v60 = vld [vmem:[#allocation3 + $0x3c] sm:$0xff] }
 0x59f   : > { %v15803_v34 = vpop.f32.mrf.mxu1  ;;  %5895 = vmatmul.bf16.gmra.mxu0 %v15484_v7  ;;  %18933 = vst [vmem:[#allocation147_spill] sm:$0xff] %v15825_v22  ;;  %v4519_v22 = vshrl.u32 %v15626_v62, 16 }
 0x5a0   : > { %v15820_v50 = vsel %vm1746_vm2, %v4512_v41, %v4516_v12  ;;  %v4523_v12 = vrot.slane %v4521_v10, 1  ;;  %v12639_v41 = vld [vmem:[#allocation12 + $0x220] sm:$0xff] }
 0x5a1   : > { %5969 = vmatpush.bf16.msra.mxu1 %v12639_v41 }
 0x5a2   : > { %5633 = vmatmul.bf16.gmra.mxu1 %v15484_v7  ;;  %v5289_v7 = vadd.f32 %v15652_v29, %v15587_v25 }
 0x5a5   : > { %v5374_v18 = vpop.f32.mrf.mxu3  ;;  %v15835_v25 = vpop.f32.mrf.mxu2 }
 0x5a6   : > { %v15813_v52 = vadd.f32 %v5374_v18, %v5286_v24  ;;  %v4526_v18 = vshll.u32 %v15640_v11, 16  ;;  %18934 = vst [vmem:[#allocation148_spill] sm:$0xff] %v15835_v25  ;;  %v15840_v13 = vpop.f32.mrf.mxu0  ;;  %v12611_v11 = vld [vmem:[#allocation12 + $0x140] sm:$0xff] }
 0x5a7   : > { %v15815_v36 = vpop.f32.mrf.mxu1  ;;  %18935 = vst [vmem:[#allocation149_spill] sm:$0xff] %v15840_v13  ;;  %5706 = vmatpush.bf16.msrb.mxu3 %v12611_v11  ;;  %v5296_v11 = vadd.f32 %v15652_v29, %v15647_v17  ;;  %v13069_v17 = vld [vmem:[#allocation3 + $0x54] sm:$0xff] }
 0x5a8   : > { %v4528_v47 = vrot.slane %v4526_v18, 1  ;;  %v4533_v18 = vshll.u32 %v15677_v1, 16 }
 0x5aa   : > { %5416 = vmatmul.bf16.gmra.mxu3 %v15820_v50 }
 0x5ad   : > { %5811 = vmatmul.bf16.gmra.mxu2 %v13067_v60  ;;  %v5377_v8 = vpop.f32.mrf.mxu3  ;;  %v5291_v60 = vadd.f32 %v15652_v29, %v15604_v23  ;;  %v5294_v23 = vadd.f32 %v15652_v29, %v15628_v37  ;;  %v15852_v41 = vpop.f32.mrf.mxu2  ;;  %v4531_v37 = vshrl.u32 %v15677_v1, 16 }
 0x5ae   : > { %v15828_v43 = vadd.f32 %v5377_v8, %v5289_v7  ;;  %v4524_v8 = vor.u32 %v4523_v12, %v4519_v22  ;;  %18936 = vst [vmem:[#allocation150_spill] sm:$0xff] %v15852_v41  ;;  %v13068_v22 = vld [vmem:[#allocation3 + $0x48] sm:$0xff]  ;;  %v15859_v13 = vpop.f32.mrf.mxu0 }
 0x5af   : > { %v15830_v24 = vpop.f32.mrf.mxu1  ;;  %5900 = vmatmul.bf16.gmra.mxu0 %v15527_v27  ;;  %18937 = vst [vmem:[#allocation151_spill] sm:$0xff] %v15859_v13 }
 0x5b2   : > { %5638 = vmatmul.bf16.gmra.mxu1 %v15527_v27  ;;  %v15847_v27 = vsel %vm1746_vm2, %v4524_v8, %v4528_v47  ;;  %v4535_v47 = vrot.slane %v4533_v18, 1  ;;  %v4538_v8 = vshll.u32 %v15689_v39, 16 }
 0x5b4   : > { %v4536_v41 = vor.u32 %v4535_v47, %v4531_v37 }
 0x5b5   : > { %v5379_v7 = vpop.f32.mrf.mxu3  ;;  %v15869_v25 = vpop.f32.mrf.mxu2 }
 0x5b6   : > { %v15842_v0 = vadd.f32 %v5379_v7, %v5291_v60  ;;  %18938 = vst [vmem:[#allocation152_spill] sm:$0xff] %v15869_v25  ;;  %v15876_v39 = vpop.f32.mrf.mxu0 }
 0x5b7   : > { %v15844_v10 = vpop.f32.mrf.mxu1  ;;  %18939 = vst [vmem:[#allocation153_spill] sm:$0xff] %v15876_v39 }
 0x5ba   : > { %5421 = vmatmul.bf16.gmra.mxu3 %v15847_v27 }
 0x5bd   : > { %5816 = vmatmul.bf16.gmra.mxu2 %v13068_v22  ;;  %v5382_v12 = vpop.f32.mrf.mxu3 }
 0x5be   : > { %v15855_v60 = vadd.f32 %v5382_v12, %v5294_v23  ;;  %v4540_v23 = vrot.slane %v4538_v8, 1 }
 0x5bf   : > { %v15857_v7 = vpop.f32.mrf.mxu1  ;;  %5905 = vmatmul.bf16.gmra.mxu0 %v15570_v9 }
 0x5c0   : > { %v15874_v18 = vsel %vm1746_vm2, %v4536_v41, %v4540_v23  ;;  %v12638_v41 = vld [vmem:[#allocation12 + $0x218] sm:$0xff]  ;;  %v15891_v23 = vpop.f32.mrf.mxu0 }
 0x5c1   : > { %18942 = vst [vmem:[#allocation156_spill] sm:$0xff] %v15891_v23  ;;  %5970 = vmatpush.bf16.msra.mxu1 %v12638_v41  ;;  %v18951_v23 = vld [vmem:[#allocation102_spill] sm:$0xff] }
 0x5c2   : > { %5643 = vmatmul.bf16.gmra.mxu1 %v15570_v9  ;;  %v5299_v9 = vadd.f32 %v15652_v29, %v15679_v48 }
 0x5c5   : > { %v5384_v22 = vpop.f32.mrf.mxu3 }
 0x5c6   : > { %v15867_v12 = vadd.f32 %v5384_v22, %v5296_v11  ;;  %v15886_v11 = vpop.f32.mrf.mxu2  ;;  %v5301_v22 = vadd.f32 %v15652_v29, %v15699_v19 }
 0x5c7   : > { %v15871_v13 = vpop.f32.mrf.mxu1  ;;  %18941 = vst [vmem:[#allocation155_spill] sm:$0xff] %v15886_v11  ;;  %v5304_v11 = vadd.f32 %v15652_v29, %v15720_v56 }
 0x5ca   : > { %5426 = vmatmul.bf16.gmra.mxu3 %v15874_v18 }
 0x5cd   : > { %5821 = vmatmul.bf16.gmra.mxu2 %v13069_v17  ;;  %v5387_v47 = vpop.f32.mrf.mxu3 }
 0x5ce   : > { %v15881_v8 = vadd.f32 %v5387_v47, %v5299_v9  ;;  %v18944_v47 = vld [vmem:[#allocation99_spill] sm:$0xff]  ;;  %v15898_v39 = vpop.f32.mrf.mxu2 }
 0x5cf   : > { %v15883_v37 = vpop.f32.mrf.mxu1  ;;  %5910 = vmatmul.bf16.gmra.mxu0 %v15613_v15  ;;  %18945 = vst [vmem:[#allocation99_spill] sm:$0xff] %v15898_v39 }
 0x5d0   : > { %18940 = vst [vmem:[#allocation154_spill] sm:$0xff] %v15881_v8  ;;  %v15902_v8 = vpop.f32.mrf.mxu0 }
 0x5d1   : > { %18946 = vst [vmem:[#allocation158_spill] sm:$0xff] %v15902_v8 }
 0x5d2   : > { %5648 = vmatmul.bf16.gmra.mxu1 %v15613_v15  ;;  %v13070_v15 = vld [vmem:[#allocation3 + $0x60] sm:$0xff] }
 0x5d5   : > { %v5389_v48 = vpop.f32.mrf.mxu3 }
 0x5d6   : > { %v15893_v17 = vadd.f32 %v5389_v48, %v5301_v22  ;;  %v12668_v22 = vld [vmem:[#allocation13 + $0x38] sm:$0xff]  ;;  %v5306_v48 = vadd.f32 %v15652_v29, %v15734_v31 }
 0x5d7   : > { %v15895_v9 = vpop.f32.mrf.mxu1  ;;  %7685 = vmatpush.bf16.msra.mxu3 %v12668_v22  ;;  %v13071_v22 = vld [vmem:[#allocation3 + $0x6c] sm:$0xff] }
 0x5d8   : > { %18943 = vst [vmem:[#allocation157_spill] sm:$0xff] %v15893_v17 }
 0x5da   : > { %5707 = vmatmul.bf16.vlgmr.msrb.gmra.mxu3 %v18944_v47  ;;  %v15912_v47 = vpop.f32.mrf.mxu2 }
 0x5db   : > { %18948 = vst [vmem:[#allocation160_spill] sm:$0xff] %v15912_v47  ;;  %v18952_v47 = vld [vmem:[#allocation98_spill] sm:$0xff] }
 0x5dd   : > { %5826 = vmatmul.bf16.gmra.mxu2 %v13070_v15  ;;  %v5392_v25 = vpop.f32.mrf.mxu3 }
 0x5de   : > { %v15904_v19 = vadd.f32 %v5392_v25, %v5304_v11  ;;  %v15918_v25 = vpop.f32.mrf.mxu0  ;;  %v18950_v11 = vld [vmem:[#allocation114_spill] sm:$0xff] }
 0x5df   : > { %v15906_v41 = vpop.f32.mrf.mxu1  ;;  %5915 = vmatmul.bf16.gmra.mxu0 %v15659_v61  ;;  %v5442_v8 = vadd.f32 %v18950_v11, %v15675_v54  ;;  %v5444_v54 = vadd.f32 %v15437_v35, %v15697_v28  ;;  %v18956_v35 = vld [vmem:[#allocation118_spill] sm:$0xff] }
 0x5e0   : > { %18947 = vst [vmem:[#allocation159_spill] sm:$0xff] %v15904_v19  ;;  %v5447_v28 = vadd.f32 %v18956_v35, %v15716_v3  ;;  %v12667_v3 = vld [vmem:[#allocation13 + $0x30] sm:$0xff]  ;;  %v5449_v35 = vadd.f32 %v15480_v14, %v15730_v53  ;;  %v18963_v14 = vld [vmem:[#allocation122_spill] sm:$0xff] }
 0x5e1   : > { %7686 = vmatpush.bf16.msra.mxu3 %v12667_v3  ;;  %v5452_v53 = vadd.f32 %v18963_v14, %v15745_v6  ;;  %v5319_v3 = vadd.f32 %v15652_v29, %v15803_v34  ;;  %v5454_v6 = vadd.f32 %v15523_v2, %v15759_v51  ;;  %v12636_v34 = vld [vmem:[#allocation12 + $0x208] sm:$0xff]  ;;  %v5321_v14 = vadd.f32 %v15652_v29, %v15815_v36 }
 0x5e2   : > { %5653 = vmatmul.bf16.gmra.mxu1 %v15659_v61  ;;  %v5309_v61 = vadd.f32 %v15652_v29, %v15747_v21  ;;  %v12637_v21 = vld [vmem:[#allocation12 + $0x210] sm:$0xff]  ;;  %v5324_v36 = vadd.f32 %v15652_v29, %v15830_v24 }
 0x5e3   : > { %5971 = vmatpush.bf16.msra.mxu1 %v12637_v21  ;;  %v13072_v21 = vld [vmem:[#allocation3 + $0x78] sm:$0xff] }
 0x5e5   : > { %v5394_v56 = vpop.f32.mrf.mxu3 }
 0x5e6   : > { %v15914_v15 = vadd.f32 %v5394_v56, %v5306_v48  ;;  %v5531_v48 = vadd.f32 %v18952_v47, %v5442_v8  ;;  %v15928_v56 = vpop.f32.mrf.mxu2  ;;  %v15935_v11 = vpop.f32.mrf.mxu0 }
 0x5e7   : > { %v15916_v39 = vpop.f32.mrf.mxu1  ;;  %18953 = vst [vmem:[#allocation114_spill] sm:$0xff] %v15928_v56  ;;  %5972 = vmatpush.bf16.msra.mxu1 %v12636_v34 }
 0x5e8   : > { %18949 = vst [vmem:[#allocation161_spill] sm:$0xff] %v15914_v15 }
 0x5e9   : > { %18954 = vst [vmem:[#allocation102_spill] sm:$0xff] %v15935_v11  ;;  %v18957_v11 = vld [vmem:[#allocation105_spill] sm:$0xff] }
 0x5ea   : > { %5712 = vmatmul.bf16.gmra.mxu3 %v18951_v23 }
 0x5ed   : > { %5831 = vmatmul.bf16.gmra.mxu2 %v13071_v22  ;;  %v5397_v31 = vpop.f32.mrf.mxu3  ;;  %v18955_v22 = vld [vmem:[#allocation115_spill] sm:$0xff] }
 0x5ee   : > { %v15925_v19 = vadd.f32 %v5397_v31, %v5309_v61  ;;  %v5311_v61 = vadd.f32 %v15652_v29, %v15761_v16  ;;  %v15945_v56 = vpop.f32.mrf.mxu2  ;;  %v15952_v16 = vpop.f32.mrf.mxu0 }
 0x5ef   : > { %v5619_v15 = vpop.f32.mrf.mxu1  ;;  %5920 = vmatmul.bf16.gmra.mxu0 %v15703_v4  ;;  %18958 = vst [vmem:[#allocation98_spill] sm:$0xff] %v15952_v16 }
 0x5f0   : > { %v15930_v17 = vadd.f32 %v5619_v15, %v5531_v48  ;;  %v5533_v15 = vadd.f32 %v18955_v22, %v5444_v54  ;;  %v18959_v54 = vld [vmem:[#allocation117_spill] sm:$0xff] }
 0x5f1   : > { %v5536_v22 = vadd.f32 %v18959_v54, %v5447_v28  ;;  %v18962_v54 = vld [vmem:[#allocation119_spill] sm:$0xff] }
 0x5f2   : > { %5658 = vmatmul.bf16.gmra.mxu1 %v15703_v4  ;;  %v5314_v4 = vadd.f32 %v15652_v29, %v15776_v42 }
 0x5f5   : > { %v5399_v8 = vpop.f32.mrf.mxu3 }
 0x5f6   : > { %v15940_v47 = vadd.f32 %v5399_v8, %v5311_v61  ;;  %v15963_v42 = vpop.f32.mrf.mxu2 }
 0x5f7   : > { %v5621_v31 = vpop.f32.mrf.mxu1  ;;  %18960 = vst [vmem:[#allocation115_spill] sm:$0xff] %v15963_v42 }
 0x5f8   : > { %v15943_v48 = vadd.f32 %v5621_v31, %v5533_v15 }
 0x5fa   : > { %5717 = vmatmul.bf16.gmra.mxu3 %v18957_v11 }
 0x5fd   : > { %5836 = vmatmul.bf16.gmra.mxu2 %v13072_v21  ;;  %v5402_v61 = vpop.f32.mrf.mxu3 }
 0x5fe   : > { %v15954_v8 = vadd.f32 %v5402_v61, %v5314_v4  ;;  %v5316_v4 = vadd.f32 %v15652_v29, %v15788_v57  ;;  %v15967_v61 = vpop.f32.mrf.mxu0  ;;  %v15979_v42 = vpop.f32.mrf.mxu2  ;;  %v13073_v57 = vld [vmem:[#allocation3 + $0x84] sm:$0xff] }
 0x5ff   : > { %v5624_v15 = vpop.f32.mrf.mxu1  ;;  %5925 = vmatmul.bf16.gmra.mxu0 %v15737_v40  ;;  %18961 = vst [vmem:[#allocation118_spill] sm:$0xff] %v15967_v61 }
 0x600   : > { %v15957_v31 = vadd.f32 %v5624_v15, %v5536_v22  ;;  %v5538_v22 = vadd.f32 %v18962_v54, %v5449_v35 }
 0x602   : > { %5663 = vmatmul.bf16.gmra.mxu1 %v15737_v40  ;;  %v18964_v40 = vld [vmem:[#allocation108_spill] sm:$0xff] }
 0x605   : > { %v5404_v21 = vpop.f32.mrf.mxu3 }
 0x606   : > { %v15969_v28 = vadd.f32 %v5404_v21, %v5316_v4  ;;  %v18965_v21 = vld [vmem:[#allocation121_spill] sm:$0xff] }
 0x607   : > { %v5626_v15 = vpop.f32.mrf.mxu1  ;;  %v5541_v35 = vadd.f32 %v18965_v21, %v5452_v53  ;;  %v18967_v53 = vld [vmem:[#allocation123_spill] sm:$0xff]  ;;  %v15997_v21 = vpop.f32.mrf.mxu2 }
 0x608   : > { %v15972_v16 = vadd.f32 %v5626_v15, %v5538_v22  ;;  %v15984_v22 = vpop.f32.mrf.mxu0  ;;  %18968 = vst [vmem:[#allocation117_spill] sm:$0xff] %v15997_v21 }
 0x609   : > { %18966 = vst [vmem:[#allocation105_spill] sm:$0xff] %v15984_v22  ;;  %v18969_v22 = vld [vmem:[#allocation126_spill] sm:$0xff] }
 0x60a   : > { %5722 = vmatmul.bf16.gmra.mxu3 %v18964_v40  ;;  %v5457_v2 = vadd.f32 %v18969_v22, %v15774_v55  ;;  %v12666_v55 = vld [vmem:[#allocation13 + $0x28] sm:$0xff] }
 0x60b   : > { %7687 = vmatpush.bf16.msra.mxu3 %v12666_v55 }
 0x60d   : > { %5841 = vmatmul.bf16.gmra.mxu2 %v13073_v57  ;;  %v5407_v61 = vpop.f32.mrf.mxu3  ;;  %v5543_v57 = vadd.f32 %v18967_v53, %v5454_v6  ;;  %v18972_v6 = vld [vmem:[#allocation125_spill] sm:$0xff] }
 0x60e   : > { %v15981_v4 = vadd.f32 %v5407_v61, %v5319_v3 }
 0x60f   : > { %v5629_v54 = vpop.f32.mrf.mxu1  ;;  %5930 = vmatmul.bf16.gmra.mxu0 %v15764_v5  ;;  %v16015_v22 = vpop.f32.mrf.mxu2 }
 0x610   : > { %v15986_v15 = vadd.f32 %v5629_v54, %v5541_v35  ;;  %v16003_v51 = vpop.f32.mrf.mxu0  ;;  %18973 = vst [vmem:[#allocation122_spill] sm:$0xff] %v16015_v22  ;;  %v18976_v22 = vld [vmem:[#allocation131_spill] sm:$0xff] }
 0x611   : > { %18970 = vst [vmem:[#allocation119_spill] sm:$0xff] %v16003_v51  ;;  %v5462_v21 = vadd.f32 %v18976_v22, %v15799_v20  ;;  %v5464_v20 = vadd.f32 %v15607_v30, %v15813_v52  ;;  %v18979_v30 = vld [vmem:[#allocation133_spill] sm:$0xff] }
 0x612   : > { %5668 = vmatmul.bf16.gmra.mxu1 %v15764_v5  ;;  %v18971_v5 = vld [vmem:[#allocation111_spill] sm:$0xff]  ;;  %v5467_v52 = vadd.f32 %v18979_v30, %v15828_v43 }
 0x613   : > { %v12665_v43 = vld [vmem:[#allocation13 + $0x20] sm:$0xff] }
 0x614   : > { %7688 = vmatpush.bf16.msra.mxu3 %v12665_v43 }
 0x615   : > { %v5409_v61 = vpop.f32.mrf.mxu3 }
 0x616   : > { %v15994_v3 = vadd.f32 %v5409_v61, %v5321_v14  ;;  %v5546_v61 = vadd.f32 %v18972_v6, %v5457_v2 }
 0x617   : > { %v5631_v35 = vpop.f32.mrf.mxu1 }
 0x618   : > { %v15999_v54 = vadd.f32 %v5631_v35, %v5543_v57  ;;  %v18974_v35 = vld [vmem:[#allocation128_spill] sm:$0xff]  ;;  %v16022_v24 = vpop.f32.mrf.mxu0 }
 0x619   : > { %v5459_v51 = vadd.f32 %v18974_v35, %v15786_v46  ;;  %v18977_v46 = vld [vmem:[#allocation94_spill] sm:$0xff] }
 0x61a   : > { %5727 = vmatmul.bf16.gmra.mxu3 %v18971_v5 }
 0x61d   : > { %5846 = vmatmul.bf16.gmra.mxu2 %v15542_v59  ;;  %v5412_v34 = vpop.f32.mrf.mxu3  ;;  %v5326_v59 = vadd.f32 %v15652_v29, %v15844_v10  ;;  %v5329_v10 = vadd.f32 %v15652_v29, %v15857_v7  ;;  %v12635_v7 = vld [vmem:[#allocation12 + $0x200] sm:$0xff] }
 0x61e   : > { %v16009_v14 = vadd.f32 %v5412_v34, %v5324_v36  ;;  %v18975_v34 = vld [vmem:[#allocation127_spill] sm:$0xff]  ;;  %5973 = vmatpush.bf16.msra.mxu1 %v12635_v7 }
 0x61f   : > { %v5634_v53 = vpop.f32.mrf.mxu1  ;;  %5935 = vmatmul.bf16.gmra.mxu0 %v15793_v26  ;;  %v5548_v6 = vadd.f32 %v18975_v34, %v5459_v51  ;;  %v18978_v51 = vld [vmem:[#allocation130_spill] sm:$0xff] }
 0x620   : > { %v16012_v57 = vadd.f32 %v5634_v53, %v5546_v61  ;;  %v16037_v35 = vpop.f32.mrf.mxu0 }
 0x622   : > { %5673 = vmatmul.bf16.gmra.mxu1 %v15793_v26  ;;  %v16032_v26 = vpop.f32.mrf.mxu2 }
 0x625   : > { %v5414_v2 = vpop.f32.mrf.mxu3 }
 0x626   : > { %v16024_v36 = vadd.f32 %v5414_v2, %v5326_v59  ;;  %v5551_v2 = vadd.f32 %v18978_v51, %v5462_v21  ;;  %v5553_v21 = vadd.f32 %v15609_v38, %v5464_v20 }
 0x627   : > { %v5636_v61 = vpop.f32.mrf.mxu1 }
 0x628   : > { %v16027_v53 = vadd.f32 %v5636_v61, %v5548_v6  ;;  %v16055_v51 = vpop.f32.mrf.mxu0 }
 0x62a   : > { %5732 = vmatmul.bf16.gmra.mxu3 %v18977_v46  ;;  %v16050_v22 = vpop.f32.mrf.mxu2 }
 0x62d   : > { %5851 = vmatmul.bf16.gmra.mxu2 %v15585_v49  ;;  %v5417_v55 = vpop.f32.mrf.mxu3  ;;  %v5331_v49 = vadd.f32 %v15652_v29, %v15871_v13  ;;  %v5334_v13 = vadd.f32 %v15652_v29, %v15883_v37 }
 0x62e   : > { %v16039_v59 = vadd.f32 %v5417_v55, %v5329_v10 }
 0x62f   : > { %v5639_v34 = vpop.f32.mrf.mxu1  ;;  %5940 = vmatmul.bf16.gmra.mxu0 %v15820_v50 }
 0x630   : > { %v16042_v6 = vadd.f32 %v5639_v34, %v5551_v2  ;;  %v16075_v30 = vpop.f32.mrf.mxu0 }
 0x632   : > { %5678 = vmatmul.bf16.gmra.mxu1 %v15820_v50  ;;  %v18980_v50 = vld [vmem:[#allocation34_spill] sm:$0xff]  ;;  %v16068_v20 = vpop.f32.mrf.mxu2 }
 0x635   : > { %v5419_v61 = vpop.f32.mrf.mxu3 }
 0x636   : > { %v16052_v10 = vadd.f32 %v5419_v61, %v5331_v49  ;;  %v18981_v49 = vld [vmem:[#allocation134_spill] sm:$0xff] }
 0x637   : > { %v5641_v55 = vpop.f32.mrf.mxu1  ;;  %v5556_v38 = vadd.f32 %v18981_v49, %v5467_v52 }
 0x638   : > { %v16057_v2 = vadd.f32 %v5641_v55, %v5553_v21  ;;  %v5469_v55 = vadd.f32 %v15656_v44, %v15842_v0  ;;  %v5472_v44 = vadd.f32 %v15686_v32, %v15855_v60  ;;  %v18984_v0 = vld [vmem:[#allocation97_spill] sm:$0xff]  ;;  %v5474_v32 = vadd.f32 %v15712_v63, %v15867_v12 }
 0x63a   : > { %5737 = vmatmul.bf16.gmra.mxu3 %v18980_v50 }
 0x63d   : > { %5856 = vmatmul.bf16.gmra.mxu2 %v15626_v62  ;;  %v5422_v34 = vpop.f32.mrf.mxu3  ;;  %v5336_v62 = vadd.f32 %v15652_v29, %v15895_v9  ;;  %v4202_v9 = vld [vmem:[#allocation3 + $0xc8] sm:$0x1] }
 0x63e   : > { %v16065_v7 = vadd.f32 %v5422_v34, %v5334_v13  ;;  %v5558_v13 = vadd.f32 %v15666_v45, %v5469_v55  ;;  %v5561_v55 = vadd.f32 %v15695_v33, %v5472_v44  ;;  %v5341_v33 = vadd.f32 %v15652_v29, %v15916_v39 }
 0x63f   : > { %v5644_v61 = vpop.f32.mrf.mxu1  ;;  %5945 = vmatmul.bf16.gmra.mxu0 %v15847_v27 }
 0x640   : > { %v16070_v21 = vadd.f32 %v5644_v61, %v5556_v38  ;;  %v16085_v38 = vpop.f32.mrf.mxu2  ;;  %v16092_v61 = vpop.f32.mrf.mxu0 }
 0x641   : > { %18983 = vst [vmem:[#allocation121_spill] sm:$0xff] %v16085_v38 }
 0x642   : > { %5683 = vmatmul.bf16.gmra.mxu1 %v15847_v27  ;;  %v5339_v27 = vadd.f32 %v15652_v29, %v15906_v41  ;;  %18985 = vst [vmem:[#allocation123_spill] sm:$0xff] %v16092_v61  ;;  %v18992_v61 = vld [vmem:[#allocation116_spill] sm:$0xff] }
 0x645   : > { %v5424_v37 = vpop.f32.mrf.mxu3 }
 0x646   : > { %v16080_v52 = vadd.f32 %v5424_v37, %v5336_v62  ;;  %v4629_v37 = vunpack.c.l.b16 %v4202_v9  ;;  %v18988_v9 = vld [vmem:[#allocation137_spill] sm:$0xff] }
 0x647   : > { %v5646_v34 = vpop.f32.mrf.mxu1 }
 0x648   : > { %v16083_v49 = vadd.f32 %v5646_v34, %v5558_v13  ;;  %v16104_v60 = vpop.f32.mrf.mxu2  ;;  %v16106_v41 = vpack.c.b16 %v4629_v37, %v4629_v37  ;;  %v16111_v44 = vpop.f32.mrf.mxu0  ;;  %v18990_v37 = vld [vmem:[#allocation154_spill] sm:$0xff] }
 0x649   : > { %18986 = vst [vmem:[#allocation126_spill] sm:$0xff] %v16104_v60 }
 0x64a   : > { %18982 = vst [vmem:[#allocation108_spill] sm:$0xff] %v16083_v49  ;;  %5742 = vmatmul.bf16.gmra.mxu3 %v18984_v0  ;;  %v4639_v12 = vshll.u32 %v16106_v41, 16  ;;  %v18991_v49 = vld [vmem:[#allocation46_spill] sm:$0xff] }
 0x64b   : > { %18987 = vst [vmem:[#allocation111_spill] sm:$0xff] %v16111_v44  ;;  %v5477_v60 = vadd.f32 %v18991_v49, %v18990_v37 }
 0x64c   : > { %v4641_v39 = vrot.slane %v4639_v12, 1  ;;  %v18996_v12 = vld [vmem:[#allocation157_spill] sm:$0xff] }
 0x64d   : > { %5861 = vmatmul.bf16.gmra.mxu2 %v15677_v1  ;;  %v5427_v43 = vpop.f32.mrf.mxu3  ;;  %v4634_v1 = vshll.u32 %v15718_v58, 16 }
 0x64e   : > { %v16095_v45 = vadd.f32 %v5427_v43, %v5339_v27  ;;  %v5563_v43 = vadd.f32 %v18988_v9, %v5474_v32 }
 0x64f   : > { %v5649_v62 = vpop.f32.mrf.mxu1  ;;  %5950 = vmatmul.bf16.gmra.mxu0 %v15874_v18  ;;  %v4636_v63 = vrot.slane %v4634_v1, 1 }
 0x650   : > { %v16098_v13 = vadd.f32 %v5649_v62, %v5561_v55  ;;  %v4632_v62 = vshrl.u32 %v15718_v58, 16  ;;  %v16123_v44 = vpop.f32.mrf.mxu2 }
 0x651   : > { %18993 = vst [vmem:[#allocation128_spill] sm:$0xff] %v16123_v44 }
 0x652   : > { %5688 = vmatmul.bf16.gmra.mxu1 %v15874_v18  ;;  %v4637_v29 = vor.u32 %v4636_v63, %v4632_v62  ;;  %v12664_v63 = vld [vmem:[#allocation13 + $0x18] sm:$0xff]  ;;  %v18997_v62 = vld [vmem:[#allocation95_spill] sm:$0xff] }
 0x653   : > { %v5479_v37 = vadd.f32 %v18997_v62, %v18996_v12  ;;  %7689 = vmatpush.bf16.msra.mxu3 %v12664_v63 }
 0x655   : > { %v5429_v34 = vpop.f32.mrf.mxu3 }
 0x656   : > { %v16113_v27 = vadd.f32 %v5429_v34, %v5341_v33  ;;  %v18994_v33 = vld [vmem:[#allocation138_spill] sm:$0xff] }
 0x657   : > { %v5651_v55 = vpop.f32.mrf.mxu1  ;;  %v5566_v34 = vadd.f32 %v18994_v33, %v5477_v60 }
 0x658   : > { %v16117_v18 = vadd.f32 %v5651_v55, %v5563_v43  ;;  %v4642_v43 = vsel %vm1746_vm2, %v4637_v29, %v4641_v39  ;;  %v16131_v55 = vpop.f32.mrf.mxu0  ;;  %v16143_v29 = vpop.f32.mrf.mxu2  ;;  %v19000_v39 = vld [vmem:[#allocation159_spill] sm:$0xff] }
 0x659   : > { %18995 = vst [vmem:[#allocation127_spill] sm:$0xff] %v16131_v55  ;;  %v19002_v55 = vld [vmem:[#allocation120_spill] sm:$0xff] }
 0x65a   : > { %18989 = vst [vmem:[#allocation125_spill] sm:$0xff] %v16117_v18  ;;  %5747 = vmatmul.bf16.gmra.mxu3 %v18992_v61 }
 0x65d   : > { %5866 = vmatmul.bf16.gmra.mxu2 %v15718_v58  ;;  %v5708_v32 = vpop.f32.mrf.mxu3 }
 0x65e   : > { %v16127_v1 = vadd.f32 %v5708_v32, %v15930_v17  ;;  %v18998_v32 = vld [vmem:[#allocation139_spill] sm:$0xff] }
 0x65f   : > { %v5654_v9 = vpop.f32.mrf.mxu1  ;;  %5955 = vmatmul.bf16.gmra.mxu0 %v4642_v43  ;;  %v5568_v60 = vadd.f32 %v18998_v32, %v5479_v37  ;;  %v19005_v37 = vld [vmem:[#allocation161_spill] sm:$0xff]  ;;  %v19006_v32 = vld [vmem:[#allocation142_spill] sm:$0xff] }
 0x660   : > { %v16133_v49 = vadd.f32 %v5654_v9, %v5566_v34  ;;  %v19001_v34 = vld [vmem:[#allocation140_spill] sm:$0xff]  ;;  %v16148_v38 = vpop.f32.mrf.mxu0 }
 0x661   : > { %v5482_v9 = vadd.f32 %v19001_v34, %v19000_v39  ;;  %19003 = vst [vmem:[#allocation94_spill] sm:$0xff] %v16148_v38  ;;  %v16159_v39 = vpop.f32.mrf.mxu2 }
 0x662   : > { %5693 = vmatmul.bf16.gmra.mxu1 %v4642_v43  ;;  %19007 = vst [vmem:[#allocation130_spill] sm:$0xff] %v16159_v39 }
 0x665   : > { %v5710_v18 = vpop.f32.mrf.mxu3 }
 0x666   : > { %v16138_v17 = vadd.f32 %v5710_v18, %v15943_v48  ;;  %v19004_v48 = vld [vmem:[#allocation141_spill] sm:$0xff] }
 0x667   : > { %v5656_v33 = vpop.f32.mrf.mxu1  ;;  %v5571_v18 = vadd.f32 %v19004_v48, %v5482_v9 }
 0x668   : > { %v16141_v44 = vadd.f32 %v5656_v33, %v5568_v60  ;;  %v5484_v60 = vadd.f32 %v19006_v32, %v19005_v37  ;;  %v12676_v33 = vld [vmem:[#allocation13 + $0x78] sm:$0xff]  ;;  %v16161_v34 = vpop.f32.mrf.mxu0  ;;  %v19012_v32 = vld [vmem:[#allocation124_spill] sm:$0xff] }
 0x669   : > { %7774 = vmatpush.bf16.msra.mxu2 %v12676_v33  ;;  %19008 = vst [vmem:[#allocation133_spill] sm:$0xff] %v16161_v34  ;;  %v19013_v34 = vld [vmem:[#allocation145_spill] sm:$0xff] }
 0x66a   : > { %18999 = vst [vmem:[#allocation131_spill] sm:$0xff] %v16141_v44  ;;  %5752 = vmatmul.bf16.gmra.mxu3 %v19002_v55 }
 0x66d   : > { %v5713_v43 = vpop.f32.mrf.mxu3 }
 0x66e   : > { %v16151_v63 = vadd.f32 %v5713_v43, %v15957_v31  ;;  %v19009_v43 = vld [vmem:[#allocation143_spill] sm:$0xff] }
 0x66f   : > { %v5659_v12 = vpop.f32.mrf.mxu1  ;;  %v5573_v9 = vadd.f32 %v19009_v43, %v5484_v60  ;;  %v12663_v43 = vld [vmem:[#allocation13 + $0x10] sm:$0xff] }
 0x670   : > { %v16154_v62 = vadd.f32 %v5659_v12, %v5571_v18  ;;  %v19011_v12 = vld [vmem:[#allocation144_spill] sm:$0xff]  ;;  %7690 = vmatpush.bf16.msra.mxu3 %v12663_v43 }
 0x671   : > { %v5487_v37 = vadd.f32 %v19011_v12, %v15925_v19 }
 0x672   : > { %5974 = vmatmul.bf16.vlgmr.msra.gmra.mxu1 %v18951_v23  ;;  %v16172_v23 = vpop.f32.mrf.mxu2 }
 0x673   : > { %v5576_v38 = vadd.f32 %v19013_v34, %v5487_v37 }
 0x675   : > { %v5715_v44 = vpop.f32.mrf.mxu3 }
 0x676   : > { %v16164_v31 = vadd.f32 %v5715_v44, %v15972_v16  ;;  %v16178_v16 = vpop.f32.mrf.mxu0 }
 0x677   : > { %v5661_v48 = vpop.f32.mrf.mxu1  ;;  %19014 = vst [vmem:[#allocation134_spill] sm:$0xff] %v16178_v16 }
 0x678   : > { %v16167_v18 = vadd.f32 %v5661_v48, %v5573_v9  ;;  %v19015_v9 = vld [vmem:[#allocation146_spill] sm:$0xff] }
 0x679   : > { %v5489_v48 = vadd.f32 %v19015_v9, %v15940_v47  ;;  %v19020_v47 = vld [vmem:[#allocation129_spill] sm:$0xff] }
 0x67a   : > { %19010 = vst [vmem:[#allocation34_spill] sm:$0xff] %v16167_v18  ;;  %5757 = vmatmul.bf16.gmra.mxu3 %v19012_v32  ;;  %v16189_v18 = vpop.f32.mrf.mxu2 }
 0x67d   : > { %v5718_v39 = vpop.f32.mrf.mxu3 }
 0x67e   : > { %v16175_v33 = vadd.f32 %v5718_v39, %v15986_v15  ;;  %v19016_v15 = vld [vmem:[#allocation147_spill] sm:$0xff] }
 0x67f   : > { %v5664_v44 = vpop.f32.mrf.mxu1  ;;  %v5578_v39 = vadd.f32 %v19016_v15, %v5489_v48 }
 0x680   : > { %v16180_v60 = vadd.f32 %v5664_v44, %v5576_v38  ;;  %v16193_v38 = vpop.f32.mrf.mxu0  ;;  %v19019_v44 = vld [vmem:[#allocation148_spill] sm:$0xff] }
 0x681   : > { %19018 = vst [vmem:[#allocation137_spill] sm:$0xff] %v16193_v38  ;;  %v5492_v16 = vadd.f32 %v19019_v44, %v15954_v8  ;;  %v19028_v38 = vld [vmem:[#allocation132_spill] sm:$0xff] }
 0x682   : > { %5979 = vmatmul.bf16.gmra.mxu1 %v18957_v11  ;;  %v16204_v15 = vpop.f32.mrf.mxu2 }
 0x683   : > { %19022 = vst [vmem:[#allocation154_spill] sm:$0xff] %v16204_v15 }
 0x685   : > { %v5720_v19 = vpop.f32.mrf.mxu3 }
 0x686   : > { %v16186_v12 = vadd.f32 %v5720_v19, %v15999_v54  ;;  %v19021_v54 = vld [vmem:[#allocation149_spill] sm:$0xff] }
 0x687   : > { %v5666_v34 = vpop.f32.mrf.mxu1  ;;  %v5581_v9 = vadd.f32 %v19021_v54, %v5492_v16 }
 0x688   : > { %v16191_v37 = vadd.f32 %v5666_v34, %v5578_v39  ;;  %v19023_v39 = vld [vmem:[#allocation150_spill] sm:$0xff]  ;;  %v16209_v8 = vpop.f32.mrf.mxu0 }
 0x689   : > { %v5494_v34 = vadd.f32 %v19023_v39, %v15969_v28  ;;  %19024 = vst [vmem:[#allocation46_spill] sm:$0xff] %v16209_v8 }
 0x68a   : > { %19017 = vst [vmem:[#allocation97_spill] sm:$0xff] %v16191_v37  ;;  %5762 = vmatmul.bf16.gmra.mxu3 %v19020_v47  ;;  %v12675_v37 = vld [vmem:[#allocation13 + $0x70] sm:$0xff]  ;;  %v16220_v28 = vpop.f32.mrf.mxu2 }
 0x68b   : > { %7775 = vmatpush.bf16.msra.mxu2 %v12675_v37  ;;  %19029 = vst [vmem:[#allocation138_spill] sm:$0xff] %v16220_v28 }
 0x68d   : > { %v5723_v11 = vpop.f32.mrf.mxu3 }
 0x68e   : > { %v16199_v43 = vadd.f32 %v5723_v11, %v16012_v57  ;;  %v19025_v11 = vld [vmem:[#allocation151_spill] sm:$0xff] }
 0x68f   : > { %v5669_v19 = vpop.f32.mrf.mxu1  ;;  %v5583_v16 = vadd.f32 %v19025_v11, %v5494_v34  ;;  %v12662_v11 = vld [vmem:[#allocation13 + $0x8] sm:$0xff] }
 0x690   : > { %v16202_v48 = vadd.f32 %v5669_v19, %v5581_v9  ;;  %v19027_v19 = vld [vmem:[#allocation152_spill] sm:$0xff]  ;;  %7691 = vmatpush.bf16.msra.mxu3 %v12662_v11 }
 0x691   : > { %v5497_v15 = vadd.f32 %v19027_v19, %v15981_v4 }
 0x692   : > { %5984 = vmatmul.bf16.gmra.mxu1 %v18964_v40  ;;  %v16222_v40 = vpop.f32.mrf.mxu0  ;;  %v16233_v4 = vpop.f32.mrf.mxu2 }
 0x693   : > { %19030 = vst [vmem:[#allocation157_spill] sm:$0xff] %v16222_v40 }
 0x694   : > { %19033 = vst [vmem:[#allocation95_spill] sm:$0xff] %v16233_v4  ;;  %v4205_v4 = vld [vmem:[#allocation3 + $0xd4] sm:$0x1] }
 0x695   : > { %v5725_v44 = vpop.f32.mrf.mxu3 }
 0x696   : > { %v16212_v57 = vadd.f32 %v5725_v44, %v16027_v53  ;;  %v19031_v53 = vld [vmem:[#allocation153_spill] sm:$0xff] }
 0x697   : > { %v5671_v54 = vpop.f32.mrf.mxu1  ;;  %v5586_v44 = vadd.f32 %v19031_v53, %v5497_v15  ;;  %v19037_v53 = vld [vmem:[#allocation99_spill] sm:$0xff] }
 0x698   : > { %v16215_v9 = vadd.f32 %v5671_v54, %v5583_v16  ;;  %v19032_v16 = vld [vmem:[#allocation155_spill] sm:$0xff] }
 0x699   : > { %v5499_v54 = vadd.f32 %v19032_v16, %v15994_v3  ;;  %v19038_v3 = vld [vmem:[#allocation135_spill] sm:$0xff] }
 0x69a   : > { %19026 = vst [vmem:[#allocation116_spill] sm:$0xff] %v16215_v9  ;;  %5767 = vmatmul.bf16.gmra.mxu3 %v19028_v38  ;;  %v16239_v40 = vpop.f32.mrf.mxu0 }
 0x69b   : > { %19035 = vst [vmem:[#allocation139_spill] sm:$0xff] %v16239_v40  ;;  %v4655_v40 = vunpack.c.l.b16 %v4205_v4 }
 0x69d   : > { %v5728_v39 = vpop.f32.mrf.mxu3 }
 0x69e   : > { %v16225_v37 = vadd.f32 %v5728_v39, %v16042_v6  ;;  %v19034_v6 = vld [vmem:[#allocation156_spill] sm:$0xff] }
 0x69f   : > { %v5674_v8 = vpop.f32.mrf.mxu1  ;;  %v5588_v39 = vadd.f32 %v19034_v6, %v5499_v54  ;;  %v16250_v54 = vpop.f32.mrf.mxu2 }
 0x6a0   : > { %v16228_v34 = vadd.f32 %v5674_v8, %v5586_v44  ;;  %v5502_v44 = vadd.f32 %v19037_v53, %v16009_v14  ;;  %19041 = vst [vmem:[#allocation120_spill] sm:$0xff] %v16250_v54  ;;  %v16256_v14 = vpack.c.b16 %v4655_v40, %v4655_v40 }
 0x6a2   : > { %5989 = vmatmul.bf16.gmra.mxu1 %v18971_v5  ;;  %v12570_v5 = vld [vmem:[#allocation3 + $0xcc] sm:$0xff] }
 0x6a3   : > { %5871 = vmatmul.bf16.gmra.mxu2 %v12570_v5  ;;  %v4660_v53 = vshll.u32 %v12570_v5, 16 }
 0x6a5   : > { %v5730_v19 = vpop.f32.mrf.mxu3 }
 0x6a6   : > { %v16236_v9 = vadd.f32 %v5730_v19, %v16057_v2  ;;  %v19040_v2 = vld [vmem:[#allocation158_spill] sm:$0xff] }
 0x6a7   : > { %v5676_v15 = vpop.f32.mrf.mxu1  ;;  %v5591_v19 = vadd.f32 %v19040_v2, %v5502_v44  ;;  %v4662_v44 = vrot.slane %v4660_v53, 1  ;;  %v4665_v2 = vshll.u32 %v16256_v14, 16 }
 0x6a8   : > { %v16241_v8 = vadd.f32 %v5676_v15, %v5588_v39  ;;  %v16254_v15 = vpop.f32.mrf.mxu0 }
 0x6a9   : > { %19042 = vst [vmem:[#allocation141_spill] sm:$0xff] %v16254_v15 }
 0x6aa   : > { %19036 = vst [vmem:[#allocation159_spill] sm:$0xff] %v16241_v8  ;;  %5772 = vmatmul.bf16.gmra.mxu3 %v19038_v3  ;;  %v19043_v8 = vld [vmem:[#allocation160_spill] sm:$0xff] }
 0x6ab   : > { %v5504_v28 = vadd.f32 %v19043_v8, %v16024_v36  ;;  %v16268_v36 = vpop.f32.mrf.mxu2 }
 0x6ad   : > { %v5733_v11 = vpop.f32.mrf.mxu3 }
 0x6ae   : > { %v16247_v16 = vadd.f32 %v5733_v11, %v16070_v21  ;;  %v4658_v21 = vshrl.u32 %v12570_v5, 16  ;;  %v12674_v11 = vld [vmem:[#allocation13 + $0x68] sm:$0xff] }
 0x6af   : > { %v5679_v6 = vpop.f32.mrf.mxu1  ;;  %7776 = vmatpush.bf16.msra.mxu2 %v12674_v11  ;;  %v19046_v5 = vld [vmem:[#allocation136_spill] sm:$0xff] }
 0x6b0   : > { %19039 = vst [vmem:[#allocation140_spill] sm:$0xff] %v16247_v16  ;;  %v16252_v39 = vadd.f32 %v5679_v6, %v5591_v19  ;;  %v4663_v4 = vor.u32 %v4662_v44, %v4658_v21  ;;  %v4667_v19 = vrot.slane %v4665_v2, 1  ;;  %v5593_v6 = vadd.f32 %v15918_v25, %v5504_v28  ;;  %v16273_v53 = vpop.f32.mrf.mxu0  ;;  %v19048_v25 = vld [vmem:[#allocation102_spill] sm:$0xff] }
 0x6b1   : > { %19047 = vst [vmem:[#allocation142_spill] sm:$0xff] %v16273_v53 }
 0x6b2   : > { %5994 = vmatmul.bf16.gmra.mxu1 %v18977_v46  ;;  %v4668_v15 = vsel %vm1746_vm2, %v4663_v4, %v4667_v19  ;;  %v19045_v46 = vld [vmem:[#allocation114_spill] sm:$0xff]  ;;  %v12661_v4 = vld [vmem:[#allocation13] sm:$0xff] }
 0x6b3   : > { %5960 = vmatmul.bf16.gmra.mxu0 %v4668_v15  ;;  %v5507_v8 = vadd.f32 %v19045_v46, %v16039_v59  ;;  %v5509_v15 = vadd.f32 %v15945_v56, %v16052_v10  ;;  %7692 = vmatpush.bf16.msra.mxu3 %v12661_v4  ;;  %v12684_v59 = vld [vmem:[#allocation13 + $0xb8] sm:$0xff]  ;;  %v16284_v19 = vpop.f32.mrf.mxu2  ;;  %v12673_v56 = vld [vmem:[#allocation13 + $0x60] sm:$0xff]  ;;  %v12683_v10 = vld [vmem:[#allocation13 + $0xb0] sm:$0xff] }
 0x6b4   : > { %19049 = vst [vmem:[#allocation143_spill] sm:$0xff] %v16284_v19  ;;  %7863 = vmatpush.bf16.msrb.mxu0 %v12684_v59  ;;  %v19051_v46 = vld [vmem:[#allocation98_spill] sm:$0xff]  ;;  %7777 = vmatpush.bf16.msra.mxu2 %v12673_v56  ;;  %v12681_v56 = vld [vmem:[#allocation13 + $0xa0] sm:$0xff] }
 0x6b5   : > { %v16262_v54 = vpop.f32.mrf.mxu3  ;;  %v5596_v28 = vadd.f32 %v19048_v25, %v5507_v8  ;;  %v5598_v8 = vadd.f32 %v19051_v46, %v5509_v15  ;;  %v4644_v25 = vrot.slane %v15718_v58, 1  ;;  %v12672_v59 = vld [vmem:[#allocation13 + $0x58] sm:$0xff] }
 0x6b7   : > { %v5681_v40 = vpop.f32.mrf.mxu1 }
 0x6b8   : > { %v16266_v16 = vadd.f32 %v5681_v40, %v5593_v6  ;;  %v16286_v6 = vpop.f32.mrf.mxu0  ;;  %v4645_v40 = vrot.slane %v16106_v41, 1  ;;  %7864 = vmatpush.bf16.msrb.mxu0 %v12683_v10  ;;  %v12682_v41 = vld [vmem:[#allocation13 + $0xa8] sm:$0xff]  ;;  %7778 = vmatpush.bf16.msra.mxu2 %v12672_v59  ;;  %v5514_v10 = vadd.f32 %v15979_v42, %v16080_v52  ;;  %v12680_v59 = vld [vmem:[#allocation13 + $0x98] sm:$0xff] }
 0x6b9   : > { %19050 = vst [vmem:[#allocation144_spill] sm:$0xff] %v16286_v6 }
 0x6ba   : > { %19044 = vst [vmem:[#allocation161_spill] sm:$0xff] %v16266_v16  ;;  %5777 = vmatmul.bf16.gmra.mxu3 %v19046_v5  ;;  %v19057_v16 = vld [vmem:[#allocation105_spill] sm:$0xff] }
 0x6bb   : > { %v16301_v15 = vpop.f32.mrf.mxu2 }
 0x6bc   : > { %19054 = vst [vmem:[#allocation145_spill] sm:$0xff] %v16301_v15  ;;  %7865 = vmatpush.bf16.msrb.mxu0 %v12682_v41  ;;  %v5603_v41 = vadd.f32 %v19057_v16, %v5514_v10 }
 0x6bd   : > { %v5738_v11 = vpop.f32.mrf.mxu3 }
 0x6be   : > { %v16276_v21 = vadd.f32 %v5738_v11, %v16098_v13 }
 0x6bf   : > { %v5684_v44 = vpop.f32.mrf.mxu1 }
 0x6c0   : > { %v16279_v2 = vadd.f32 %v5684_v44, %v5596_v28  ;;  %v19053_v44 = vld [vmem:[#allocation115_spill] sm:$0xff]  ;;  %7866 = vmatpush.bf16.msrb.mxu0 %v12681_v56  ;;  %v12679_v56 = vld [vmem:[#allocation13 + $0x90] sm:$0xff] }
 0x6c1   : > { %v5512_v4 = vadd.f32 %v19053_v44, %v16065_v7  ;;  %v12671_v44 = vld [vmem:[#allocation13 + $0x50] sm:$0xff] }
 0x6c2   : > { %5999 = vmatmul.bf16.gmra.mxu1 %v18980_v50  ;;  %v16296_v50 = vsel %vm1971_vm3, %v4644_v25, %v4645_v40  ;;  %v16307_v40 = vpop.f32.mrf.mxu0  ;;  %7779 = vmatpush.bf16.msra.mxu2 %v12671_v44  ;;  %v12669_v44 = vld [vmem:[#allocation13 + $0x40] sm:$0xff] }
 0x6c3   : > { %19056 = vst [vmem:[#allocation146_spill] sm:$0xff] %v16307_v40 }
 0x6c4   : > { %7867 = vmatpush.bf16.msrb.mxu0 %v12680_v59  ;;  %v12678_v59 = vld [vmem:[#allocation13 + $0x88] sm:$0xff] }
 0x6c5   : > { %v16288_v13 = vpop.f32.mrf.mxu3 }
 0x6c7   : > { %v5686_v11 = vpop.f32.mrf.mxu1 }
 0x6c8   : > { %v16293_v28 = vadd.f32 %v5686_v11, %v5598_v8  ;;  %v19055_v8 = vld [vmem:[#allocation118_spill] sm:$0xff]  ;;  %7868 = vmatpush.bf16.msrb.mxu0 %v12679_v56 }
 0x6c9   : > { %v5601_v11 = vadd.f32 %v19055_v8, %v5512_v4  ;;  %v12670_v4 = vld [vmem:[#allocation13 + $0x48] sm:$0xff] }
 0x6ca   : > { %19052 = vst [vmem:[#allocation124_spill] sm:$0xff] %v16293_v28  ;;  %5782 = vmatmul.bf16.gmra.mxu3 %v16296_v50  ;;  %v12643_v8 = vld [vmem:[#allocation3] sm:$0xff]  ;;  %7780 = vmatpush.bf16.msra.mxu2 %v12670_v4 }
 0x6cb   : > { %v6784_v42 = vshll.u32 %v12643_v8, 16  ;;  %v6782_v15 = vshrl.u32 %v12643_v8, 16 }
 0x6cc   : > { %7869 = vmatpush.bf16.msrb.mxu0 %v12678_v59 }
 0x6cd   : > { %v5743_v46 = vpop.f32.mrf.mxu3  ;;  %v6786_v6 = vrot.slane %v6784_v42, 1 }
 0x6ce   : > { %v16304_v58 = vadd.f32 %v5743_v46, %v16133_v49  ;;  %v6585_v49 = vld [vmem:[#allocation3 + $0x8] sm:$0x1]  ;;  %7781 = vmatpush.bf16.msra.mxu2 %v12669_v44  ;;  %v12677_v44 = vld [vmem:[#allocation13 + $0x80] sm:$0xff] }
 0x6cf   : > { %v5689_v25 = vpop.f32.mrf.mxu1  ;;  %v6749_v28 = vunpack.c.l.b16 %v6585_v49  ;;  %v19060_v49 = vld [vmem:[#allocation117_spill] sm:$0xff]  ;;  %v6787_v16 = vor.u32 %v6786_v6, %v6782_v15  ;;  %v19062_v6 = vld [vmem:[#allocation122_spill] sm:$0xff] }
 0x6d0   : > { %v16309_v7 = vadd.f32 %v5689_v25, %v5601_v11  ;;  %v16317_v11 = vpop.f32.mrf.mxu2  ;;  %v5517_v53 = vadd.f32 %v19060_v49, %v16095_v45  ;;  %7870 = vmatpush.bf16.msrb.mxu0 %v12677_v44  ;;  %v19065_v44 = vld [vmem:[#allocation53_spill] sm:$0xff] }
 0x6d1   : > { %v6765_v40 = vpack.c.b16 %v6749_v28, %v6749_v28 }
 0x6d2   : > { %6004 = vmatmul.bf16.gmra.mxu1 %v18984_v0  ;;  %v16321_v0 = vpop.f32.mrf.mxu0 }
 0x6d3   : > { %19059 = vst [vmem:[#allocation148_spill] sm:$0xff] %v16321_v0  ;;  %v6789_v19 = vshll.u32 %v6765_v40, 16  ;;  %v6990_v56 = vrot.slane %v6765_v40, 1 }
 0x6d5   : > { %v16314_v46 = vpop.f32.mrf.mxu3  ;;  %v6791_v10 = vrot.slane %v6789_v19, 1  ;;  %v5519_v19 = vadd.f32 %v19062_v6, %v16113_v27  ;;  %v5798_v27 = vadd.f32 %v16032_v26, %v16127_v1  ;;  %v16360_v26 = vld [vmem:[%s18558_s5] ss:$0 sm:$0xff] }
 0x6d6   : > { %v19066_v1 = vld [vmem:[#allocation33_spill] sm:$0xff] }
 0x6d7   : > { %v5691_v25 = vpop.f32.mrf.mxu1  ;;  %v6792_v28 = vsel %vm1746_vm2, %v6787_v16, %v6791_v10 }
 0x6d8   : > { %v16319_v52 = vadd.f32 %v5691_v25, %v5603_v41  ;;  %v19061_v25 = vld [vmem:[#allocation119_spill] sm:$0xff]  ;;  %7782 = vmatmul.bf16.vlgmr.msra.gmra.mxu2 %v6792_v28  ;;  %v16332_v45 = vpop.f32.mrf.mxu2 }
 0x6da   : > { %19058 = vst [vmem:[#allocation147_spill] sm:$0xff] %v16319_v52  ;;  %7693 = vmatmul.bf16.vlgmr.msra.gmra.mxu3 %v12643_v8  ;;  %v5606_v52 = vadd.f32 %v19061_v25, %v5517_v53  ;;  %v16337_v15 = vpop.f32.mrf.mxu0  ;;  %v12700_v25 = vld [vmem:[#allocation13 + $0x138] sm:$0xff] }
 0x6db   : > { %8041 = vmatpush.bf16.msrb.mxu3 %v12700_v25 }
 0x6dd   : > { %v5748_v4 = vpop.f32.mrf.mxu3 }
 0x6de   : > { %v16327_v41 = vadd.f32 %v5748_v4, %v16154_v62  ;;  %v6989_v62 = vrot.slane %v12643_v8, 1  ;;  %v5887_v8 = vadd.f32 %v16037_v35, %v5798_v27  ;;  %v5800_v35 = vadd.f32 %v16050_v22, %v16138_v17 }
 0x6df   : > { %v5694_v42 = vpop.f32.mrf.mxu1 }
 0x6e0   : > { %v16330_v0 = vadd.f32 %v5694_v42, %v5606_v52  ;;  %v6991_v53 = vsel %vm1971_vm3, %v6989_v62, %v6990_v56  ;;  %v5608_v52 = vadd.f32 %v16022_v24, %v5519_v19  ;;  %v16347_v4 = vpop.f32.mrf.mxu2  ;;  %v12692_v24 = vld [vmem:[#allocation13 + $0xf8] sm:$0xff]  ;;  %v19064_v42 = vld [vmem:[#allocation72_spill] sm:$0xff] }
 0x6e1   : > { %7871 = vmatmul.bf16.vlgmr.msrb.gmra.mxu0 %v6991_v53  ;;  %v3109_v6 = vadd.f32 %v19065_v44, %v19064_v42  ;;  %7952 = vmatpush.bf16.msrb.mxu1 %v12692_v24  ;;  %v19068_v56 = vld [vmem:[#allocation74_spill] sm:$0xff] }
 0x6e2   : > { %6009 = vmatmul.bf16.gmra.mxu1 %v18992_v61  ;;  %v16349_v61 = vpop.f32.mrf.mxu0  ;;  %v19070_v24 = vld [vmem:[#allocation54_spill] sm:$0xff] }
 0x6e5   : > { %v16339_v49 = vpop.f32.mrf.mxu3 }
 0x6e7   : > { %v5696_v16 = vpop.f32.mrf.mxu1 }
 0x6e8   : > { %v16343_v10 = vadd.f32 %v5696_v16, %v5608_v52  ;;  %v16371_v16 = vpop.f32.mrf.mxu2 }
 0x6ea   : > { %19063 = vst [vmem:[#allocation129_spill] sm:$0xff] %v16343_v10 }
 0x6ed   : > { %v5753_v28 = vpop.f32.mrf.mxu3 }
 0x6ee   : > { %v16352_v40 = vadd.f32 %v5753_v28, %v16180_v60  ;;  %v2933_v60 = vadd.f32 %v16360_v26, %v19066_v1 }
 0x6ef   : > { %v5975_v59 = vpop.f32.mrf.mxu1 }
 0x6f0   : > { %v5976_v19 = vadd.f32 %v5975_v59, %v5887_v8  ;;  %v3022_v53 = vadd.f32 %v19068_v56, %v2933_v60  ;;  %v5889_v8 = vadd.f32 %v16055_v51, %v5800_v35  ;;  %v16376_v59 = vpop.f32.mrf.mxu0  ;;  %v6471_v56 = vld [vmem:[#allocation3 + $0xc] sm:$0xf] }
 0x6f1   : > { %19069 = vst [vmem:[#allocation150_spill] sm:$0xff] %v16376_v59 }
 0x6f2   : > { %v16366_v62 = vadd.f32 %v5976_v19, %v3109_v6  ;;  %6014 = vmatmul.bf16.gmra.mxu1 %v19002_v55  ;;  %v3111_v22 = vadd.f32 %v19070_v24, %v3022_v53  ;;  %v5803_v55 = vadd.f32 %v16068_v20, %v16151_v63  ;;  %v19074_v63 = vld [vmem:[#allocation77_spill] sm:$0xff] }
 0x6f4   : > { %19067 = vst [vmem:[#allocation149_spill] sm:$0xff] %v16366_v62  ;;  %v6087_v52 = vmax.f32 %v16366_v62, 0.0 }
 0x6f5   : > { %v16373_v27 = vpop.f32.mrf.mxu3 }
 0x6f6   : > { %v6119_v28 = vpack.c.bf16 %v6087_v52, %v6087_v52 }
 0x6f7   : > { %v5977_v25 = vpop.f32.mrf.mxu1 }
 0x6f8   : > { %v6152_v17 = vshrl.u32 %v6119_v28, 16  ;;  %v5978_v42 = vadd.f32 %v5977_v25, %v5889_v8  ;;  %v6155_v6 = vshll.u32 %v6119_v28, 16  ;;  %v5892_v8 = vadd.f32 %v16075_v30, %v5803_v55  ;;  %v16390_v25 = vpop.f32.mrf.mxu2  ;;  %v19075_v28 = vld [vmem:[#allocation55_spill] sm:$0xff]  ;;  %v19080_v55 = vld [vmem:[#allocation80_spill] sm:$0xff] }
 0x6f9   : > { %19073 = vst [vmem:[#allocation152_spill] sm:$0xff] %v16390_v25  ;;  %v3114_v24 = vadd.f32 %v19075_v28, %v19074_v63 }
 0x6fa   : > { %v6154_v44 = vrot.slane %v6152_v17, 7  ;;  %v16381_v19 = vadd.f32 %v5978_v42, %v3111_v22  ;;  %v19076_v42 = vld [vmem:[#allocation35_spill] sm:$0xff] }
 0x6fc   : > { %19071 = vst [vmem:[#allocation151_spill] sm:$0xff] %v16381_v19  ;;  %v6157_v1 = vor.u32 %v6155_v6, %v6154_v44  ;;  %v6088_v60 = vmax.f32 %v16381_v19, 0.0  ;;  %v2938_v6 = vadd.f32 %v16360_v26, %v19076_v42  ;;  %v16396_v19 = vpop.f32.mrf.mxu0 }
 0x6fd   : > { %v5758_v52 = vpop.f32.mrf.mxu3  ;;  %19077 = vst [vmem:[#allocation132_spill] sm:$0xff] %v16396_v19 }
 0x6fe   : > { %v6472_v35 = vsel %vm15020_vm1, %v6157_v1, %v6471_v56  ;;  %v6120_v62 = vpack.c.bf16 %v6088_v60, %v6088_v60  ;;  %v16387_v53 = vadd.f32 %v5758_v52, %v16202_v48  ;;  %v19078_v1 = vld [vmem:[#allocation121_spill] sm:$0xff]  ;;  %v3027_v52 = vadd.f32 %v19080_v55, %v2938_v6  ;;  %v19084_v6 = vld [vmem:[#allocation56_spill] sm:$0xff]  ;;  %v19086_v55 = vld [vmem:[#allocation126_spill] sm:$0xff] }
 0x6ff   : > { %6473 = vst [vmem:[#allocation3 + $0xc] sm:$0xf] %v6472_v35  ;;  %v5980_v20 = vpop.f32.mrf.mxu1  ;;  %v5805_v48 = vadd.f32 %v19078_v1, %v16164_v31  ;;  %v6158_v35 = vrot.slane %v6154_v44, 4 }
 0x700   : > { %v6160_v22 = vshrl.u32 %v6120_v62, 16  ;;  %v5981_v17 = vadd.f32 %v5980_v20, %v5892_v8  ;;  %v6163_v56 = vshll.u32 %v6120_v62, 16  ;;  %v6475_v20 = vld [vmem:[#allocation3 + $0x14] sm:$0x1]  ;;  %v3116_v44 = vadd.f32 %v19084_v6, %v3027_v52 }
 0x702   : > { %v6162_v60 = vrot.slane %v6160_v22, 7  ;;  %v16400_v30 = vadd.f32 %v5981_v17, %v3114_v24  ;;  %6019 = vmatmul.bf16.gmra.mxu1 %v19012_v32  ;;  %v19083_v22 = vld [vmem:[#allocation123_spill] sm:$0xff] }
 0x703   : > { %v5894_v17 = vadd.f32 %v19083_v22, %v5805_v48  ;;  %v6478_v48 = vld [vmem:[#allocation3 + $0x18] sm:$0xf] }
 0x704   : > { %19079 = vst [vmem:[#allocation153_spill] sm:$0xff] %v16400_v30  ;;  %v6165_v63 = vor.u32 %v6163_v56, %v6162_v60  ;;  %v6167_v28 = vrot.slane %v6162_v60, 4  ;;  %v6089_v8 = vmax.f32 %v16400_v30, 0.0  ;;  %v16413_v56 = vpop.f32.mrf.mxu2  ;;  %v5808_v30 = vadd.f32 %v19086_v55, %v16175_v33  ;;  %v19092_v55 = vld [vmem:[#allocation57_spill] sm:$0xff] }
 0x705   : > { %v16405_v42 = vpop.f32.mrf.mxu3  ;;  %19085 = vst [vmem:[#allocation155_spill] sm:$0xff] %v16413_v56 }
 0x706   : > { %v6166_v19 = vsel %vm13856_vm10, %v6158_v35, %v6165_v63  ;;  %v6476_v62 = vsel %vm15043_vm6, %v6167_v28, %v6475_v20  ;;  %v6121_v24 = vpack.c.bf16 %v6089_v8, %v6089_v8  ;;  %v16419_v28 = vpop.f32.mrf.mxu0 }
 0x707   : > { %6474 = vst [vmem:[#allocation3 + $0x10] sm:$0xf] %v6166_v19  ;;  %v5982_v32 = vpop.f32.mrf.mxu1 }
 0x708   : > { %6477 = vst [vmem:[#allocation3 + $0x14] sm:$0x1] %v6476_v62  ;;  %v6169_v1 = vshrl.u32 %v6121_v24, 16  ;;  %v5983_v60 = vadd.f32 %v5982_v32, %v5894_v17  ;;  %v6172_v35 = vshll.u32 %v6121_v24, 16  ;;  %v19090_v17 = vld [vmem:[#allocation111_spill] sm:$0xff] }
 0x709   : > { %19088 = vst [vmem:[#allocation99_spill] sm:$0xff] %v16419_v28  ;;  %v5897_v33 = vadd.f32 %v19090_v17, %v5808_v30 }
 0x70a   : > { %v6171_v25 = vrot.slane %v6169_v1, 7  ;;  %v16417_v63 = vadd.f32 %v5983_v60, %v3116_v44  ;;  %v12699_v44 = vld [vmem:[#allocation13 + $0x130] sm:$0xff]  ;;  %v19091_v60 = vld [vmem:[#allocation83_spill] sm:$0xff] }
 0x70b   : > { %v12691_v1 = vld [vmem:[#allocation13 + $0xf0] sm:$0xff]  ;;  %8042 = vmatpush.bf16.msrb.mxu3 %v12699_v44 }
 0x70c   : > { %19087 = vst [vmem:[#allocation156_spill] sm:$0xff] %v16417_v63  ;;  %v6174_v8 = vor.u32 %v6172_v35, %v6171_v25  ;;  %v6090_v19 = vmax.f32 %v16417_v63, 0.0  ;;  %v3119_v35 = vadd.f32 %v19092_v55, %v19091_v60  ;;  %7953 = vmatpush.bf16.msrb.mxu1 %v12691_v1  ;;  %v16442_v60 = vpop.f32.mrf.mxu2 }
 0x70d   : > { %v5763_v20 = vpop.f32.mrf.mxu3  ;;  %19097 = vst [vmem:[#allocation160_spill] sm:$0xff] %v16442_v60 }
 0x70e   : > { %v6479_v52 = vsel %vm15020_vm1, %v6174_v8, %v6478_v48  ;;  %v6122_v62 = vpack.c.bf16 %v6090_v19, %v6090_v19  ;;  %v16425_v22 = vadd.f32 %v5763_v20, %v16228_v34  ;;  %v16428_v32 = vld [vmem:[#allocation3 + $0xc] sm:$0xff]  ;;  %v19094_v48 = vld [vmem:[#allocation128_spill] sm:$0xff] }
 0x70f   : > { %6480 = vst [vmem:[#allocation3 + $0x18] sm:$0xf] %v6479_v52  ;;  %v5985_v24 = vpop.f32.mrf.mxu1  ;;  %v6588_v6 = vld [vmem:[#allocation3 + $0x14] sm:$0x1]  ;;  %7698 = vmatmul.bf16.gmra.mxu3 %v16428_v32  ;;  %v19093_v8 = vld [vmem:[#allocation37_spill] sm:$0xff]  ;;  %v6796_v30 = vshll.u32 %v16428_v32, 16  ;;  %v5810_v20 = vadd.f32 %v19094_v48, %v16186_v12  ;;  %v16446_v12 = vpop.f32.mrf.mxu0 }
 0x710   : > { %19089 = vst [vmem:[#allocation135_spill] sm:$0xff] %v16425_v22  ;;  %v6177_v63 = vshrl.u32 %v6122_v62, 16  ;;  %v5986_v28 = vadd.f32 %v5985_v24, %v5897_v33  ;;  %v2943_v34 = vadd.f32 %v16360_v26, %v19093_v8  ;;  %v6750_v19 = vunpack.c.l.b16 %v6588_v6  ;;  %v19096_v33 = vld [vmem:[#allocation86_spill] sm:$0xff]  ;;  %v19099_v48 = vld [vmem:[#allocation127_spill] sm:$0xff] }
 0x711   : > { %v6180_v17 = vshll.u32 %v6122_v62, 16  ;;  %v6794_v6 = vshrl.u32 %v16428_v32, 16  ;;  %v6798_v8 = vrot.slane %v6796_v30, 1  ;;  %v6175_v22 = vrot.slane %v6171_v25, 4  ;;  %19098 = vst [vmem:[#allocation114_spill] sm:$0xff] %v16446_v12  ;;  %v19101_v12 = vld [vmem:[#allocation58_spill] sm:$0xff] }
 0x712   : > { %v6179_v52 = vrot.slane %v6177_v63, 7  ;;  %v16438_v56 = vadd.f32 %v5986_v28, %v3119_v35  ;;  %6024 = vmatmul.bf16.gmra.mxu1 %v19020_v47  ;;  %v3032_v24 = vadd.f32 %v19096_v33, %v2943_v34  ;;  %v6766_v55 = vpack.c.b16 %v6750_v19, %v6750_v19  ;;  %v6482_v63 = vld [vmem:[#allocation3 + $0x20] sm:$0x1] }
 0x713   : > { %v6992_v47 = vrot.slane %v16428_v32, 1  ;;  %v6799_v35 = vor.u32 %v6798_v8, %v6794_v6 }
 0x714   : > { %19095 = vst [vmem:[#allocation158_spill] sm:$0xff] %v16438_v56  ;;  %v6182_v44 = vor.u32 %v6180_v17, %v6179_v52  ;;  %v6184_v1 = vrot.slane %v6179_v52, 4  ;;  %v6091_v59 = vmax.f32 %v16438_v56, 0.0  ;;  %v6993_v62 = vrot.slane %v6766_v55, 1 }
 0x715   : > { %v16448_v28 = vpop.f32.mrf.mxu3  ;;  %v6801_v34 = vshll.u32 %v6766_v55, 16  ;;  %v5899_v52 = vadd.f32 %v19099_v48, %v5810_v20  ;;  %v3121_v60 = vadd.f32 %v19101_v12, %v3032_v24  ;;  %v16470_v12 = vpop.f32.mrf.mxu2  ;;  %v19107_v48 = vld [vmem:[#allocation59_spill] sm:$0xff] }
 0x716   : > { %v6183_v19 = vsel %vm13856_vm10, %v6175_v22, %v6182_v44  ;;  %v6483_v25 = vsel %vm15043_vm6, %v6184_v1, %v6482_v63  ;;  %v6123_v30 = vpack.c.bf16 %v6091_v59, %v6091_v59  ;;  %v16457_v17 = vsel %vm1971_vm3, %v6992_v47, %v6993_v62  ;;  %v6485_v63 = vld [vmem:[#allocation3 + $0x24] sm:$0xf] }
 0x717   : > { %6481 = vst [vmem:[#allocation3 + $0x1c] sm:$0xf] %v6183_v19  ;;  %v5987_v33 = vpop.f32.mrf.mxu1  ;;  %v6803_v56 = vrot.slane %v6801_v34, 1  ;;  %7876 = vmatmul.bf16.gmra.mxu0 %v16457_v17  ;;  %v5813_v59 = vadd.f32 %v16143_v29, %v16199_v43  ;;  %v19104_v29 = vld [vmem:[#allocation94_spill] sm:$0xff]  ;;  %v16480_v34 = vpop.f32.mrf.mxu0 }
 0x718   : > { %19100 = vst [vmem:[#allocation136_spill] sm:$0xff] %v16457_v17  ;;  %v6186_v6 = vshrl.u32 %v6123_v30, 16  ;;  %v5988_v55 = vadd.f32 %v5987_v33, %v5899_v52  ;;  %v6189_v8 = vshll.u32 %v6123_v30, 16  ;;  %v19106_v30 = vld [vmem:[#allocation89_spill] sm:$0xff] }
 0x719   : > { %6484 = vst [vmem:[#allocation3 + $0x20] sm:$0x1] %v6483_v25  ;;  %v16462_v22 = vsel %vm1746_vm2, %v6799_v35, %v6803_v56  ;;  %v5902_v43 = vadd.f32 %v19104_v29, %v5813_v59  ;;  %v3124_v52 = vadd.f32 %v19107_v48, %v19106_v30  ;;  %v19111_v29 = vld [vmem:[#allocation29_spill] sm:$0xff] }
 0x71a   : > { %19102 = vst [vmem:[#allocation102_spill] sm:$0xff] %v16462_v22  ;;  %v6188_v20 = vrot.slane %v6186_v6, 7  ;;  %v16466_v44 = vadd.f32 %v5988_v55, %v3121_v60  ;;  %7787 = vmatmul.bf16.gmra.mxu2 %v16462_v22  ;;  %v19108_v55 = vld [vmem:[#allocation38_spill] sm:$0xff]  ;;  %v6489_v22 = vld [vmem:[#allocation3 + $0x2c] sm:$0x1] }
 0x71b   : > { %19105 = vst [vmem:[#allocation115_spill] sm:$0xff] %v16480_v34 }
 0x71c   : > { %19103 = vst [vmem:[#allocation98_spill] sm:$0xff] %v16466_v44  ;;  %v6191_v1 = vor.u32 %v6189_v8, %v6188_v20  ;;  %v6092_v24 = vmax.f32 %v16466_v44, 0.0  ;;  %v6192_v44 = vrot.slane %v6188_v20, 4  ;;  %v19112_v20 = vld [vmem:[#allocation133_spill] sm:$0xff] }
 0x71d   : > { %v5768_v47 = vpop.f32.mrf.mxu3 }
 0x71e   : > { %v6486_v56 = vsel %vm15020_vm1, %v6191_v1, %v6485_v63  ;;  %v6124_v62 = vpack.c.bf16 %v6092_v24, %v6092_v24  ;;  %v16475_v35 = vadd.f32 %v5768_v47, %v16252_v39  ;;  %v16478_v60 = vld [vmem:[#allocation3 + $0x18] sm:$0xff]  ;;  %v2948_v39 = vadd.f32 %v16360_v26, %v19108_v55  ;;  %v19109_v1 = vld [vmem:[#allocation130_spill] sm:$0xff] }
 0x71f   : > { %6487 = vst [vmem:[#allocation3 + $0x24] sm:$0xf] %v6486_v56  ;;  %v5990_v19 = vpop.f32.mrf.mxu1  ;;  %7703 = vmatmul.bf16.gmra.mxu3 %v16478_v60  ;;  %v6808_v59 = vshll.u32 %v16478_v60, 16  ;;  %v5815_v24 = vadd.f32 %v19109_v1, %v16212_v57  ;;  %v6995_v57 = vrot.slane %v16478_v60, 1 }
 0x720   : > { %v6591_v25 = vld [vmem:[#allocation3 + $0x20] sm:$0x1]  ;;  %v6194_v33 = vshrl.u32 %v6124_v62, 16  ;;  %v5991_v6 = vadd.f32 %v5990_v19, %v5902_v43  ;;  %v6197_v47 = vshll.u32 %v6124_v62, 16  ;;  %v3037_v30 = vadd.f32 %v19111_v29, %v2948_v39 }
 0x721   : > { %v6751_v8 = vunpack.c.l.b16 %v6591_v25  ;;  %v6806_v19 = vshrl.u32 %v16478_v60, 16  ;;  %v6810_v48 = vrot.slane %v6808_v59, 1  ;;  %v16504_v59 = vpop.f32.mrf.mxu2  ;;  %v19114_v29 = vld [vmem:[#allocation60_spill] sm:$0xff] }
 0x722   : > { %v6196_v63 = vrot.slane %v6194_v33, 7  ;;  %v16490_v56 = vadd.f32 %v5991_v6, %v3124_v52  ;;  %6029 = vmatmul.bf16.gmra.mxu1 %v19028_v38 }
 0x723   : > { %v6767_v43 = vpack.c.b16 %v6751_v8, %v6751_v8  ;;  %v6811_v52 = vor.u32 %v6810_v48, %v6806_v19  ;;  %v5904_v8 = vadd.f32 %v19112_v20, %v5815_v24  ;;  %v3126_v19 = vadd.f32 %v19114_v29, %v3037_v30  ;;  %v16511_v48 = vpop.f32.mrf.mxu0  ;;  %v19117_v20 = vld [vmem:[#allocation134_spill] sm:$0xff] }
 0x724   : > { %19110 = vst [vmem:[#allocation118_spill] sm:$0xff] %v16490_v56  ;;  %v6199_v55 = vor.u32 %v6197_v47, %v6196_v63  ;;  %v6201_v25 = vrot.slane %v6196_v63, 4  ;;  %v6093_v17 = vmax.f32 %v16490_v56, 0.0  ;;  %v19118_v29 = vld [vmem:[#allocation30_spill] sm:$0xff] }
 0x725   : > { %v16496_v34 = vpop.f32.mrf.mxu3  ;;  %v6996_v62 = vrot.slane %v6767_v43, 1  ;;  %v6813_v33 = vshll.u32 %v6767_v43, 16 }
 0x726   : > { %v6200_v38 = vsel %vm13856_vm10, %v6192_v44, %v6199_v55  ;;  %v6490_v6 = vsel %vm15043_vm6, %v6201_v25, %v6489_v22  ;;  %v6125_v39 = vpack.c.bf16 %v6093_v17, %v6093_v17  ;;  %v5818_v22 = vadd.f32 %v16172_v23, %v16225_v37 }
 0x727   : > { %6488 = vst [vmem:[#allocation3 + $0x28] sm:$0xf] %v6200_v38  ;;  %v16507_v1 = vsel %vm1971_vm3, %v6995_v57, %v6996_v62  ;;  %v5992_v63 = vpop.f32.mrf.mxu1  ;;  %v6815_v47 = vrot.slane %v6813_v33, 1  ;;  %v6492_v62 = vld [vmem:[#allocation3 + $0x30] sm:$0xf] }
 0x728   : > { %19113 = vst [vmem:[#allocation105_spill] sm:$0xff] %v16507_v1  ;;  %v6203_v43 = vshrl.u32 %v6125_v39, 16  ;;  %7881 = vmatmul.bf16.gmra.mxu0 %v16507_v1  ;;  %v5993_v44 = vadd.f32 %v5992_v63, %v5904_v8  ;;  %v6206_v55 = vshll.u32 %v6125_v39, 16  ;;  %v5907_v23 = vadd.f32 %v19117_v20, %v5818_v22  ;;  %v12698_v63 = vld [vmem:[#allocation13 + $0x128] sm:$0xff] }
 0x729   : > { %6491 = vst [vmem:[#allocation3 + $0x2c] sm:$0x1] %v6490_v6  ;;  %v16514_v17 = vsel %vm1746_vm2, %v6811_v52, %v6815_v47  ;;  %v12690_v47 = vld [vmem:[#allocation13 + $0xe8] sm:$0xff]  ;;  %8043 = vmatpush.bf16.msrb.mxu3 %v12698_v63 }
 0x72a   : > { %19115 = vst [vmem:[#allocation117_spill] sm:$0xff] %v16514_v17  ;;  %v6205_v24 = vrot.slane %v6203_v43, 7  ;;  %v16518_v25 = vadd.f32 %v5993_v44, %v3126_v19  ;;  %7792 = vmatmul.bf16.gmra.mxu2 %v16514_v17  ;;  %v19119_v19 = vld [vmem:[#allocation61_spill] sm:$0xff]  ;;  %7954 = vmatpush.bf16.msrb.mxu1 %v12690_v47 }
 0x72b   : > { %v3129_v43 = vadd.f32 %v19119_v19, %v19118_v29  ;;  %v16544_v19 = vpop.f32.mrf.mxu0 }
 0x72c   : > { %19116 = vst [vmem:[#allocation119_spill] sm:$0xff] %v16518_v25  ;;  %v6208_v30 = vor.u32 %v6206_v55, %v6205_v24  ;;  %v6094_v57 = vmax.f32 %v16518_v25, 0.0  ;;  %v6209_v56 = vrot.slane %v6205_v24, 4  ;;  %v19123_v24 = vld [vmem:[#allocation137_spill] sm:$0xff] }
 0x72d   : > { %v5773_v33 = vpop.f32.mrf.mxu3 }
 0x72e   : > { %v6493_v38 = vsel %vm15020_vm1, %v6208_v30, %v6492_v62  ;;  %v6126_v6 = vpack.c.bf16 %v6094_v57, %v6094_v57  ;;  %v16525_v52 = vadd.f32 %v5773_v33, %v16279_v2  ;;  %v16528_v37 = vld [vmem:[#allocation3 + $0x24] sm:$0xff]  ;;  %v16535_v57 = vpop.f32.mrf.mxu2  ;;  %v5820_v33 = vadd.f32 %v16189_v18, %v16236_v9  ;;  %v6496_v18 = vld [vmem:[#allocation3 + $0x38] sm:$0x1] }
 0x72f   : > { %6494 = vst [vmem:[#allocation3 + $0x30] sm:$0xf] %v6493_v38  ;;  %v5995_v39 = vpop.f32.mrf.mxu1  ;;  %7708 = vmatmul.bf16.gmra.mxu3 %v16528_v37  ;;  %v19120_v30 = vld [vmem:[#allocation40_spill] sm:$0xff]  ;;  %v6820_v62 = vshll.u32 %v16528_v37, 16 }
 0x730   : > { %v6594_v8 = vld [vmem:[#allocation3 + $0x2c] sm:$0x1]  ;;  %v6211_v44 = vshrl.u32 %v6126_v6, 16  ;;  %v5996_v55 = vadd.f32 %v5995_v39, %v5907_v23  ;;  %v2953_v2 = vadd.f32 %v16360_v26, %v19120_v30  ;;  %v6214_v20 = vshll.u32 %v6126_v6, 16  ;;  %v19122_v23 = vld [vmem:[#allocation39_spill] sm:$0xff] }
 0x731   : > { %v6752_v22 = vunpack.c.l.b16 %v6594_v8  ;;  %v6818_v8 = vshrl.u32 %v16528_v37, 16  ;;  %v6822_v25 = vrot.slane %v6820_v62, 1  ;;  %v6998_v6 = vrot.slane %v16528_v37, 1 }
 0x732   : > { %v6213_v38 = vrot.slane %v6211_v44, 7  ;;  %v16540_v29 = vadd.f32 %v5996_v55, %v3129_v43  ;;  %6034 = vmatmul.bf16.gmra.mxu1 %v19038_v3  ;;  %v3042_v39 = vadd.f32 %v19122_v23, %v2953_v2  ;;  %v5909_v62 = vadd.f32 %v19123_v24, %v5820_v33 }
 0x733   : > { %v6768_v30 = vpack.c.b16 %v6752_v22, %v6752_v22  ;;  %v6823_v3 = vor.u32 %v6822_v25, %v6818_v8  ;;  %v19127_v8 = vld [vmem:[#allocation154_spill] sm:$0xff] }
 0x734   : > { %19121 = vst [vmem:[#allocation122_spill] sm:$0xff] %v16540_v29  ;;  %v6216_v63 = vor.u32 %v6214_v20, %v6213_v38  ;;  %v6218_v47 = vrot.slane %v6213_v38, 4  ;;  %v6095_v1 = vmax.f32 %v16540_v29, 0.0  ;;  %v19125_v29 = vld [vmem:[#allocation62_spill] sm:$0xff] }
 0x735   : > { %v16548_v9 = vpop.f32.mrf.mxu3  ;;  %v6999_v43 = vrot.slane %v6768_v30, 1  ;;  %v6825_v44 = vshll.u32 %v6768_v30, 16  ;;  %v3131_v17 = vadd.f32 %v19125_v29, %v3042_v39 }
 0x736   : > { %v6217_v55 = vsel %vm13856_vm10, %v6209_v56, %v6216_v63  ;;  %v6497_v2 = vsel %vm15043_vm6, %v6218_v47, %v6496_v18  ;;  %v6127_v22 = vpack.c.bf16 %v6095_v1, %v6095_v1  ;;  %v19126_v56 = vld [vmem:[#allocation140_spill] sm:$0xff] }
 0x737   : > { %6495 = vst [vmem:[#allocation3 + $0x34] sm:$0xf] %v6217_v55  ;;  %v16557_v38 = vsel %vm1971_vm3, %v6998_v6, %v6999_v43  ;;  %v5997_v20 = vpop.f32.mrf.mxu1  ;;  %v6827_v23 = vrot.slane %v6825_v44, 1  ;;  %v5823_v63 = vadd.f32 %v19127_v8, %v19126_v56  ;;  %v16569_v6 = vpop.f32.mrf.mxu2  ;;  %v6499_v44 = vld [vmem:[#allocation3 + $0x3c] sm:$0xf] }
 0x738   : > { %19124 = vst [vmem:[#allocation72_spill] sm:$0xff] %v16557_v38  ;;  %v6220_v25 = vshrl.u32 %v6127_v22, 16  ;;  %7886 = vmatmul.bf16.gmra.mxu0 %v16557_v38  ;;  %v5998_v30 = vadd.f32 %v5997_v20, %v5909_v62  ;;  %v6223_v47 = vshll.u32 %v6127_v22, 16  ;;  %v16572_v43 = vpop.f32.mrf.mxu0  ;;  %v19132_v62 = vld [vmem:[#allocation108_spill] sm:$0xff]  ;;  %v19134_v56 = vld [vmem:[#allocation31_spill] sm:$0xff] }
 0x739   : > { %6498 = vst [vmem:[#allocation3 + $0x38] sm:$0x1] %v6497_v2  ;;  %v16564_v1 = vsel %vm1746_vm2, %v6823_v3, %v6827_v23  ;;  %v19131_v2 = vld [vmem:[#allocation46_spill] sm:$0xff]  ;;  %v5736_v3 = vadd.f32 %v16262_v54, %v19132_v62  ;;  %v19135_v8 = vld [vmem:[#allocation63_spill] sm:$0xff] }
 0x73a   : > { %19128 = vst [vmem:[#allocation53_spill] sm:$0xff] %v16564_v1  ;;  %v6222_v33 = vrot.slane %v6220_v25, 7  ;;  %v16566_v18 = vadd.f32 %v5998_v30, %v3131_v17  ;;  %7797 = vmatmul.bf16.gmra.mxu2 %v16564_v1  ;;  %v5912_v24 = vadd.f32 %v19131_v2, %v5823_v63  ;;  %v19136_v54 = vld [vmem:[#allocation42_spill] sm:$0xff] }
 0x73b   : > { %19130 = vst [vmem:[#allocation74_spill] sm:$0xff] %v16572_v43  ;;  %v2958_v2 = vadd.f32 %v16360_v26, %v19136_v54 }
 0x73c   : > { %19129 = vst [vmem:[#allocation33_spill] sm:$0xff] %v16566_v18  ;;  %v6225_v29 = vor.u32 %v6223_v47, %v6222_v33  ;;  %v6096_v39 = vmax.f32 %v16566_v18, 0.0  ;;  %v3134_v47 = vadd.f32 %v19135_v8, %v19134_v56  ;;  %v19139_v56 = vld [vmem:[#allocation41_spill] sm:$0xff]  ;;  %v6226_v26 = vrot.slane %v6222_v33, 4 }
 0x73d   : > { %v5778_v55 = vpop.f32.mrf.mxu3  ;;  %v3047_v8 = vadd.f32 %v19139_v56, %v2958_v2  ;;  %v12688_v2 = vld [vmem:[#allocation13 + $0xd8] sm:$0xff] }
 0x73e   : > { %v6500_v17 = vsel %vm15020_vm1, %v6225_v29, %v6499_v44  ;;  %v6128_v22 = vpack.c.bf16 %v6096_v39, %v6096_v39  ;;  %v16580_v20 = vadd.f32 %v5778_v55, %v16309_v7  ;;  %v16582_v23 = vld [vmem:[#allocation3 + $0x30] sm:$0xff]  ;;  %v12689_v7 = vld [vmem:[#allocation13 + $0xe0] sm:$0xff] }
 0x73f   : > { %6501 = vst [vmem:[#allocation3 + $0x3c] sm:$0xf] %v6500_v17  ;;  %v6000_v25 = vpop.f32.mrf.mxu1  ;;  %7713 = vmatmul.bf16.gmra.mxu3 %v16582_v23  ;;  %v6832_v39 = vshll.u32 %v16582_v23, 16  ;;  %v19137_v44 = vld [vmem:[#allocation138_spill] sm:$0xff]  ;;  %7955 = vmatpush.bf16.msrb.mxu1 %v12689_v7  ;;  %v16597_v43 = vpop.f32.mrf.mxu2  ;;  %v19140_v7 = vld [vmem:[#allocation157_spill] sm:$0xff] }
 0x740   : > { %19133 = vst [vmem:[#allocation54_spill] sm:$0xff] %v16580_v20  ;;  %v6597_v30 = vld [vmem:[#allocation3 + $0x38] sm:$0x1]  ;;  %v6228_v18 = vshrl.u32 %v6128_v22, 16  ;;  %v6001_v63 = vadd.f32 %v6000_v25, %v5912_v24  ;;  %v5825_v55 = vadd.f32 %v19137_v44, %v5736_v3  ;;  %v6231_v17 = vshll.u32 %v6128_v22, 16 }
 0x741   : > { %v6753_v29 = vunpack.c.l.b16 %v6597_v30  ;;  %v6830_v25 = vshrl.u32 %v16582_v23, 16  ;;  %v6834_v1 = vrot.slane %v6832_v39, 1  ;;  %v7001_v22 = vrot.slane %v16582_v23, 1 }
 0x742   : > { %v6230_v62 = vrot.slane %v6228_v18, 7  ;;  %v16591_v38 = vadd.f32 %v6001_v63, %v3134_v47  ;;  %6039 = vmatmul.bf16.gmra.mxu1 %v19046_v5  ;;  %v6503_v18 = vld [vmem:[#allocation3 + $0x44] sm:$0x1]  ;;  %v5914_v44 = vadd.f32 %v19140_v7, %v5825_v55 }
 0x743   : > { %v6769_v24 = vpack.c.b16 %v6753_v29, %v6753_v29  ;;  %v6835_v47 = vor.u32 %v6834_v1, %v6830_v25  ;;  %7956 = vmatpush.bf16.msrb.mxu1 %v12688_v2  ;;  %v19142_v1 = vld [vmem:[#allocation65_spill] sm:$0xff] }
 0x744   : > { %19138 = vst [vmem:[#allocation77_spill] sm:$0xff] %v16591_v38  ;;  %v6233_v30 = vor.u32 %v6231_v17, %v6230_v62  ;;  %v6235_v54 = vrot.slane %v6230_v62, 4  ;;  %v6097_v20 = vmax.f32 %v16591_v38, 0.0  ;;  %v16607_v62 = vpop.f32.mrf.mxu0  ;;  %v6506_v2 = vld [vmem:[#allocation3 + $0x48] sm:$0xf] }
 0x745   : > { %v16599_v3 = vpop.f32.mrf.mxu3  ;;  %v7002_v5 = vrot.slane %v6769_v24, 1  ;;  %v6837_v63 = vshll.u32 %v6769_v24, 16  ;;  %v3136_v24 = vadd.f32 %v19142_v1, %v3047_v8 }
 0x746   : > { %v6234_v29 = vsel %vm13856_vm10, %v6226_v26, %v6233_v30  ;;  %v6504_v33 = vsel %vm15043_vm6, %v6235_v54, %v6503_v18  ;;  %v6129_v39 = vpack.c.bf16 %v6097_v20, %v6097_v20  ;;  %v19143_v20 = vld [vmem:[#allocation95_spill] sm:$0xff]  ;;  %v12687_v54 = vld [vmem:[#allocation13 + $0xd0] sm:$0xff] }
 0x747   : > { %6502 = vst [vmem:[#allocation3 + $0x40] sm:$0xf] %v6234_v29  ;;  %v16610_v17 = vsel %vm1971_vm3, %v7001_v22, %v7002_v5  ;;  %v6002_v56 = vpop.f32.mrf.mxu1  ;;  %v6839_v38 = vrot.slane %v6837_v63, 1  ;;  %v5828_v30 = vadd.f32 %v19143_v20, %v16276_v21  ;;  %7957 = vmatpush.bf16.msrb.mxu1 %v12687_v54  ;;  %v19147_v21 = vld [vmem:[#allocation125_spill] sm:$0xff]  ;;  %v12697_v20 = vld [vmem:[#allocation13 + $0x120] sm:$0xff] }
 0x748   : > { %19141 = vst [vmem:[#allocation55_spill] sm:$0xff] %v16610_v17  ;;  %v6237_v25 = vshrl.u32 %v6129_v39, 16  ;;  %7891 = vmatmul.bf16.gmra.mxu0 %v16610_v17  ;;  %v6003_v26 = vadd.f32 %v6002_v56, %v5914_v44  ;;  %v6240_v22 = vshll.u32 %v6129_v39, 16  ;;  %v12686_v44 = vld [vmem:[#allocation13 + $0xc8] sm:$0xff]  ;;  %v19150_v54 = vld [vmem:[#allocation67_spill] sm:$0xff]  ;;  %8044 = vmatpush.bf16.msrb.mxu3 %v12697_v20 }
 0x749   : > { %6505 = vst [vmem:[#allocation3 + $0x44] sm:$0x1] %v6504_v33  ;;  %v16617_v55 = vsel %vm1746_vm2, %v6835_v47, %v6839_v38  ;;  %v19146_v33 = vld [vmem:[#allocation139_spill] sm:$0xff]  ;;  %v5741_v38 = vadd.f32 %v16288_v13, %v19147_v21  ;;  %v6510_v20 = vld [vmem:[#allocation3 + $0x50] sm:$0x1] }
 0x74a   : > { %19144 = vst [vmem:[#allocation35_spill] sm:$0xff] %v16617_v55  ;;  %v6239_v18 = vrot.slane %v6237_v25, 7  ;;  %v16619_v5 = vadd.f32 %v6003_v26, %v3136_v24  ;;  %7802 = vmatmul.bf16.gmra.mxu2 %v16617_v55  ;;  %v5917_v7 = vadd.f32 %v19146_v33, %v5828_v30  ;;  %v16633_v24 = vpop.f32.mrf.mxu2  ;;  %v19149_v30 = vld [vmem:[#allocation44_spill] sm:$0xff] }
 0x74b   : > { %7958 = vmatpush.bf16.msrb.mxu1 %v12686_v44 }
 0x74c   : > { %19145 = vst [vmem:[#allocation121_spill] sm:$0xff] %v16619_v5  ;;  %v6242_v8 = vor.u32 %v6240_v22, %v6239_v18  ;;  %v6098_v63 = vmax.f32 %v16619_v5, 0.0  ;;  %v3139_v22 = vadd.f32 %v19150_v54, %v19149_v30  ;;  %v6243_v30 = vrot.slane %v6239_v18, 4 }
 0x74d   : > { %v5783_v29 = vpop.f32.mrf.mxu3 }
 0x74e   : > { %v6507_v47 = vsel %vm15020_vm1, %v6242_v8, %v6506_v2  ;;  %v6130_v39 = vpack.c.bf16 %v6098_v63, %v6098_v63  ;;  %v16629_v56 = vadd.f32 %v5783_v29, %v16330_v0  ;;  %v16631_v1 = vld [vmem:[#allocation3 + $0x3c] sm:$0xff]  ;;  %v16638_v8 = vpop.f32.mrf.mxu0 }
 0x74f   : > { %6508 = vst [vmem:[#allocation3 + $0x48] sm:$0xf] %v6507_v47  ;;  %v6005_v25 = vpop.f32.mrf.mxu1  ;;  %7718 = vmatmul.bf16.gmra.mxu3 %v16631_v1  ;;  %v6844_v63 = vshll.u32 %v16631_v1, 16  ;;  %v12685_v2 = vld [vmem:[#allocation13 + $0xc0] sm:$0xff]  ;;  %v19151_v29 = vld [vmem:[#allocation120_spill] sm:$0xff] }
 0x750   : > { %19148 = vst [vmem:[#allocation80_spill] sm:$0xff] %v16629_v56  ;;  %v6600_v26 = vld [vmem:[#allocation3 + $0x44] sm:$0x1]  ;;  %v6245_v13 = vshrl.u32 %v6130_v39, 16  ;;  %v6006_v33 = vadd.f32 %v6005_v25, %v5917_v7  ;;  %v5830_v21 = vadd.f32 %v19151_v29, %v5741_v38  ;;  %v6248_v5 = vshll.u32 %v6130_v39, 16  ;;  %7959 = vmatpush.bf16.msrb.mxu1 %v12685_v2 }
 0x751   : > { %v6754_v0 = vunpack.c.l.b16 %v6600_v26  ;;  %v6842_v7 = vshrl.u32 %v16631_v1, 16  ;;  %v6846_v25 = vrot.slane %v6844_v63, 1  ;;  %v7004_v56 = vrot.slane %v16631_v1, 1 }
 0x752   : > { %v6247_v47 = vrot.slane %v6245_v13, 7  ;;  %v16642_v17 = vadd.f32 %v6006_v33, %v3139_v22  ;;  %6044 = vmatmul.bf16.gmra.mxu1 %v16296_v50  ;;  %v16653_v18 = vpop.f32.mrf.mxu2 }
 0x753   : > { %v6770_v44 = vpack.c.b16 %v6754_v0, %v6754_v0  ;;  %v6847_v13 = vor.u32 %v6846_v25, %v6842_v7  ;;  %v19153_v0 = vld [vmem:[#allocation141_spill] sm:$0xff] }
 0x754   : > { %19152 = vst [vmem:[#allocation123_spill] sm:$0xff] %v16642_v17  ;;  %v6250_v54 = vor.u32 %v6248_v5, %v6247_v47  ;;  %v6252_v26 = vrot.slane %v6247_v47, 4  ;;  %v6099_v55 = vmax.f32 %v16642_v17, 0.0  ;;  %v5919_v63 = vadd.f32 %v19153_v0, %v5830_v21  ;;  %v19155_v47 = vld [vmem:[#allocation45_spill] sm:$0xff] }
 0x755   : > { %v7005_v38 = vrot.slane %v6770_v44, 1  ;;  %v6849_v39 = vshll.u32 %v6770_v44, 16  ;;  %v19156_v7 = vld [vmem:[#allocation69_spill] sm:$0xff]  ;;  %v5833_v21 = vadd.f32 %v16268_v36, %v16304_v58 }
 0x756   : > { %v6251_v22 = vsel %vm13856_vm10, %v6243_v30, %v6250_v54  ;;  %v6511_v50 = vsel %vm15043_vm6, %v6252_v26, %v6510_v20  ;;  %v6131_v33 = vpack.c.bf16 %v6099_v55, %v6099_v55  ;;  %v3141_v44 = vadd.f32 %v19156_v7, %v19155_v47  ;;  %v16661_v54 = vpop.f32.mrf.mxu0  ;;  %v16680_v7 = vpop.f32.mrf.mxu3 }
 0x757   : > { %6509 = vst [vmem:[#allocation3 + $0x4c] sm:$0xf] %v6251_v22  ;;  %v16656_v5 = vsel %vm1971_vm3, %v7004_v56, %v7005_v38  ;;  %v6007_v2 = vpop.f32.mrf.mxu1  ;;  %v6851_v29 = vrot.slane %v6849_v39, 1  ;;  %v13075_v38 = vld [vmem:[#allocation3 + $0xcc] sm:$0xff]  ;;  %v4671_v22 = vrot.slane %v16256_v14, 1 }
 0x758   : > { %19154 = vst [vmem:[#allocation56_spill] sm:$0xff] %v16656_v5  ;;  %v6254_v25 = vshrl.u32 %v6131_v33, 16  ;;  %7896 = vmatmul.bf16.gmra.mxu0 %v16656_v5  ;;  %v6008_v30 = vadd.f32 %v6007_v2, %v5919_v63  ;;  %v6257_v26 = vshll.u32 %v6131_v33, 16  ;;  %v4670_v39 = vrot.slane %v13075_v38, 1  ;;  %v19159_v63 = vld [vmem:[#allocation131_spill] sm:$0xff]  ;;  %v19160_v33 = vld [vmem:[#allocation142_spill] sm:$0xff] }
 0x759   : > { %6512 = vst [vmem:[#allocation3 + $0x50] sm:$0x1] %v6511_v50  ;;  %v16664_v55 = vsel %vm1746_vm2, %v6847_v13, %v6851_v29  ;;  %v5746_v13 = vadd.f32 %v16314_v46, %v19159_v63  ;;  %v6513_v2 = vld [vmem:[#allocation3 + $0x54] sm:$0xf]  ;;  %v5922_v29 = vadd.f32 %v19160_v33, %v5833_v21 }
 0x75a   : > { %19157 = vst [vmem:[#allocation126_spill] sm:$0xff] %v16664_v55  ;;  %v6256_v56 = vrot.slane %v6254_v25, 7  ;;  %v16668_v20 = vadd.f32 %v6008_v30, %v3141_v44  ;;  %7807 = vmatmul.bf16.gmra.mxu2 %v16664_v55  ;;  %v4672_v14 = vsel %vm1971_vm3, %v4670_v39, %v4671_v22  ;;  %v19161_v30 = vld [vmem:[#allocation36_spill] sm:$0xff]  ;;  %v16687_v21 = vpop.f32.mrf.mxu2  ;;  %v6517_v55 = vld [vmem:[#allocation3 + $0x5c] sm:$0x1] }
 0x75c   : > { %19158 = vst [vmem:[#allocation111_spill] sm:$0xff] %v16668_v20  ;;  %v6259_v50 = vor.u32 %v6257_v26, %v6256_v56  ;;  %v6100_v0 = vmax.f32 %v16668_v20, 0.0  ;;  %v19162_v26 = vld [vmem:[#allocation71_spill] sm:$0xff]  ;;  %v6260_v22 = vrot.slane %v6256_v56, 4 }
 0x75d   : > { %v3144_v38 = vadd.f32 %v19162_v26, %v19161_v30 }
 0x75e   : > { %v6514_v36 = vsel %vm15020_vm1, %v6259_v50, %v6513_v2  ;;  %v6132_v58 = vpack.c.bf16 %v6100_v0, %v6100_v0  ;;  %v16678_v47 = vld [vmem:[#allocation3 + $0x48] sm:$0xff]  ;;  %v19163_v0 = vld [vmem:[#allocation143_spill] sm:$0xff]  ;;  %v16692_v5 = vpop.f32.mrf.mxu0 }
 0x75f   : > { %6515 = vst [vmem:[#allocation3 + $0x54] sm:$0xf] %v6514_v36  ;;  %v6010_v44 = vpop.f32.mrf.mxu1  ;;  %7723 = vmatmul.bf16.gmra.mxu3 %v16678_v47  ;;  %v5835_v2 = vadd.f32 %v19163_v0, %v5746_v13  ;;  %v6856_v36 = vshll.u32 %v16678_v47, 16 }
 0x760   : > { %v6603_v25 = vld [vmem:[#allocation3 + $0x50] sm:$0x1]  ;;  %v6262_v46 = vshrl.u32 %v6132_v58, 16  ;;  %v6011_v63 = vadd.f32 %v6010_v44, %v5922_v29  ;;  %v6265_v20 = vshll.u32 %v6132_v58, 16  ;;  %19165 = vst [vmem:[#allocation57_spill] sm:$0xff] %v16692_v5  ;;  %v7007_v29 = vrot.slane %v16678_v47, 1 }
 0x761   : > { %v6755_v50 = vunpack.c.l.b16 %v6603_v25  ;;  %v6854_v44 = vshrl.u32 %v16678_v47, 16  ;;  %v6858_v25 = vrot.slane %v6856_v36, 1 }
 0x762   : > { %v6264_v33 = vrot.slane %v6262_v46, 7  ;;  %v16690_v17 = vadd.f32 %v6011_v63, %v3144_v38  ;;  %6049 = vmatmul.bf16.gmra.mxu1 %v4672_v14  ;;  %v19166_v46 = vld [vmem:[#allocation144_spill] sm:$0xff] }
 0x763   : > { %v6771_v39 = vpack.c.b16 %v6755_v50, %v6755_v50  ;;  %v5924_v58 = vadd.f32 %v19166_v46, %v5835_v2  ;;  %v6859_v38 = vor.u32 %v6858_v25, %v6854_v44  ;;  %v19169_v44 = vld [vmem:[#allocation75_spill] sm:$0xff] }
 0x764   : > { %19164 = vst [vmem:[#allocation83_spill] sm:$0xff] %v16690_v17  ;;  %v6267_v30 = vor.u32 %v6265_v20, %v6264_v33  ;;  %v6269_v13 = vrot.slane %v6264_v33, 4  ;;  %v6101_v26 = vmax.f32 %v16690_v17, 0.0  ;;  %v16708_v20 = vld [vmem:[%s18562_s9] ss:$0 sm:$0xff]  ;;  %v7694_v33 = vpop.f32.mrf.mxu3 }
 0x765   : > { %v7008_v0 = vrot.slane %v6771_v39, 1  ;;  %v6861_v63 = vshll.u32 %v6771_v39, 16  ;;  %v19168_v39 = vld [vmem:[#allocation47_spill] sm:$0xff] }
 0x766   : > { %v6268_v56 = vsel %vm13856_vm10, %v6260_v22, %v6267_v30  ;;  %v6518_v14 = vsel %vm15043_vm6, %v6269_v13, %v6517_v55  ;;  %v6133_v50 = vpack.c.bf16 %v6101_v26, %v6101_v26  ;;  %v3146_v25 = vadd.f32 %v19169_v44, %v19168_v39  ;;  %v19170_v30 = vld [vmem:[#allocation145_spill] sm:$0xff]  ;;  %v7872_v39 = vpop.f32.mrf.mxu0 }
 0x767   : > { %v16703_v5 = vsel %vm1971_vm3, %v7007_v29, %v7008_v0  ;;  %6516 = vst [vmem:[#allocation3 + $0x58] sm:$0xf] %v6268_v56  ;;  %v6012_v36 = vpop.f32.mrf.mxu1  ;;  %v6863_v2 = vrot.slane %v6861_v63, 1  ;;  %v7695_v29 = vadd.f32 %v16708_v20, %v7694_v33  ;;  %v5838_v13 = vadd.f32 %v19170_v30, %v16327_v41  ;;  %v7783_v0 = vpop.f32.mrf.mxu2  ;;  %v19173_v33 = vld [vmem:[#allocation34_spill] sm:$0xff]  ;;  %v6520_v30 = vld [vmem:[#allocation3 + $0x60] sm:$0xf] }
 0x768   : > { %19167 = vst [vmem:[#allocation37_spill] sm:$0xff] %v16703_v5  ;;  %v6271_v22 = vshrl.u32 %v6133_v50, 16  ;;  %7901 = vmatmul.bf16.gmra.mxu0 %v16703_v5  ;;  %v6013_v55 = vadd.f32 %v6012_v36, %v5924_v58  ;;  %v6274_v63 = vshll.u32 %v6133_v50, 16  ;;  %v5751_v41 = vadd.f32 %v16339_v49, %v19173_v33  ;;  %v19174_v50 = vld [vmem:[#allocation146_spill] sm:$0xff]  ;;  %v6524_v5 = vld [vmem:[#allocation3 + $0x68] sm:$0x1] }
 0x769   : > { %6519 = vst [vmem:[#allocation3 + $0x5c] sm:$0x1] %v6518_v14  ;;  %v16717_v26 = vsel %vm1746_vm2, %v6859_v38, %v6863_v2  ;;  %v7784_v14 = vadd.f32 %v7783_v0, %v7695_v29  ;;  %v12696_v0 = vld [vmem:[#allocation13 + $0x118] sm:$0xff] }
 0x76a   : > { %19171 = vst [vmem:[#allocation128_spill] sm:$0xff] %v16717_v26  ;;  %v6273_v46 = vrot.slane %v6271_v22, 7  ;;  %v16719_v56 = vadd.f32 %v6013_v55, %v3146_v25  ;;  %7812 = vmatmul.bf16.gmra.mxu2 %v16717_v26  ;;  %v5927_v25 = vadd.f32 %v19174_v50, %v5838_v13  ;;  %v5840_v33 = vadd.f32 %v16317_v11, %v5751_v41 }
 0x76b   : > { %v16723_v36 = vadd.f32 %v7872_v39, %v7784_v14  ;;  %8045 = vmatpush.bf16.msrb.mxu3 %v12696_v0  ;;  %v19178_v0 = vld [vmem:[#allocation148_spill] sm:$0xff] }
 0x76c   : > { %19172 = vst [vmem:[#allocation86_spill] sm:$0xff] %v16719_v56  ;;  %v6276_v44 = vor.u32 %v6274_v63, %v6273_v46  ;;  %v6102_v58 = vmax.f32 %v16719_v56, 0.0  ;;  %v19175_v63 = vld [vmem:[#allocation48_spill] sm:$0xff]  ;;  %v19176_v56 = vld [vmem:[#allocation78_spill] sm:$0xff]  ;;  %v6277_v50 = vrot.slane %v6273_v46, 4 }
 0x76d   : > { %v3149_v14 = vadd.f32 %v19176_v56, %v19175_v63 }
 0x76e   : > { %v6521_v38 = vsel %vm15020_vm1, %v6276_v44, %v6520_v30  ;;  %v6134_v2 = vpack.c.bf16 %v6102_v58, %v6102_v58  ;;  %v16730_v22 = vld [vmem:[#allocation3 + $0x54] sm:$0xff] }
 0x76f   : > { %6522 = vst [vmem:[#allocation3 + $0x60] sm:$0xf] %v6521_v38  ;;  %v6015_v55 = vpop.f32.mrf.mxu1  ;;  %7728 = vmatmul.bf16.gmra.mxu3 %v16730_v22  ;;  %v6868_v44 = vshll.u32 %v16730_v22, 16  ;;  %v7010_v56 = vrot.slane %v16730_v22, 1 }
 0x770   : > { %v6606_v29 = vld [vmem:[#allocation3 + $0x5c] sm:$0x1]  ;;  %v6279_v39 = vshrl.u32 %v6134_v2, 16  ;;  %v6016_v17 = vadd.f32 %v6015_v55, %v5927_v25  ;;  %v6282_v58 = vshll.u32 %v6134_v2, 16  ;;  %v6866_v25 = vshrl.u32 %v16730_v22, 16 }
 0x771   : > { %v6756_v49 = vunpack.c.l.b16 %v6606_v29  ;;  %v6870_v55 = vrot.slane %v6868_v44, 1 }
 0x772   : > { %v6281_v13 = vrot.slane %v6279_v39, 7  ;;  %v16737_v30 = vadd.f32 %v6016_v17, %v3149_v14  ;;  %7960 = vmatmul.bf16.vlgmr.msrb.gmra.mxu1 %v16428_v32  ;;  %v5929_v39 = vadd.f32 %v19178_v0, %v5840_v33 }
 0x773   : > { %v6772_v38 = vpack.c.b16 %v6756_v49, %v6756_v49  ;;  %v6871_v2 = vor.u32 %v6870_v55, %v6866_v25 }
 0x774   : > { %19177 = vst [vmem:[#allocation127_spill] sm:$0xff] %v16737_v30  ;;  %v6284_v63 = vor.u32 %v6282_v58, %v6281_v13  ;;  %v6286_v29 = vrot.slane %v6281_v13, 4  ;;  %v6103_v11 = vmax.f32 %v16737_v30, 0.0  ;;  %v19180_v58 = vld [vmem:[#allocation50_spill] sm:$0xff]  ;;  %v19181_v30 = vld [vmem:[#allocation81_spill] sm:$0xff] }
 0x775   : > { %v7011_v41 = vrot.slane %v6772_v38, 1  ;;  %v6873_v17 = vshll.u32 %v6772_v38, 16  ;;  %v3151_v26 = vadd.f32 %v19181_v30, %v19180_v58 }
 0x776   : > { %v6285_v32 = vsel %vm13856_vm10, %v6277_v50, %v6284_v63  ;;  %v6525_v46 = vsel %vm15043_vm6, %v6286_v29, %v6524_v5  ;;  %v6135_v14 = vpack.c.bf16 %v6103_v11, %v6103_v11  ;;  %v5843_v5 = vadd.f32 %v16332_v45, %v16352_v40  ;;  %v19183_v29 = vld [vmem:[#allocation97_spill] sm:$0xff] }
 0x777   : > { %v16749_v49 = vsel %vm1971_vm3, %v7010_v56, %v7011_v41  ;;  %6523 = vst [vmem:[#allocation3 + $0x64] sm:$0xf] %v6285_v32  ;;  %v6017_v44 = vpop.f32.mrf.mxu1  ;;  %v6875_v13 = vrot.slane %v6873_v17, 1  ;;  %v5756_v11 = vadd.f32 %v16373_v27, %v19183_v29  ;;  %v6527_v41 = vld [vmem:[#allocation3 + $0x6c] sm:$0xf]  ;;  %v12708_v17 = vld [vmem:[#allocation13 + $0x178] sm:$0xff] }
 0x778   : > { %19179 = vst [vmem:[#allocation58_spill] sm:$0xff] %v16749_v49  ;;  %v6288_v33 = vshrl.u32 %v6135_v14, 16  ;;  %7906 = vmatmul.bf16.gmra.mxu0 %v16749_v49  ;;  %v6018_v38 = vadd.f32 %v6017_v44, %v5929_v39  ;;  %v6291_v56 = vshll.u32 %v6135_v14, 16  ;;  %v19184_v32 = vld [vmem:[#allocation49_spill] sm:$0xff]  ;;  %8130 = vmatpush.bf16.msrb.mxu2 %v12708_v17 }
 0x779   : > { %6526 = vst [vmem:[#allocation3 + $0x68] sm:$0x1] %v6525_v46  ;;  %v16755_v50 = vsel %vm1746_vm2, %v6871_v2, %v6875_v13  ;;  %v5932_v2 = vadd.f32 %v16337_v15, %v5843_v5  ;;  %v19185_v46 = vld [vmem:[#allocation84_spill] sm:$0xff]  ;;  %v5845_v58 = vadd.f32 %v16347_v4, %v5756_v11 }
 0x77a   : > { %v6290_v25 = vrot.slane %v6288_v33, 7  ;;  %v16759_v55 = vadd.f32 %v6018_v38, %v3151_v26  ;;  %7817 = vmatmul.bf16.gmra.mxu2 %v16755_v50  ;;  %v3154_v14 = vadd.f32 %v19185_v46, %v19184_v32 }
 0x77c   : > { %19182 = vst [vmem:[#allocation94_spill] sm:$0xff] %v16759_v55  ;;  %v6293_v63 = vor.u32 %v6291_v56, %v6290_v25  ;;  %v6104_v30 = vmax.f32 %v16759_v55, 0.0  ;;  %v19204_v55 = vld [vmem:[#allocation70_spill] sm:$0xff] }
 0x77e   : > { %v6528_v0 = vsel %vm15020_vm1, %v6293_v63, %v6527_v41  ;;  %v6136_v39 = vpack.c.bf16 %v6104_v30, %v6104_v30  ;;  %v16768_v45 = vld [vmem:[#allocation3 + $0x60] sm:$0xff]  ;;  %v6294_v63 = vrot.slane %v6290_v25, 4 }
 0x77f   : > { %6529 = vst [vmem:[#allocation3 + $0x6c] sm:$0xf] %v6528_v0  ;;  %v6020_v40 = vpop.f32.mrf.mxu1  ;;  %7733 = vmatmul.bf16.gmra.mxu3 %v16768_v45  ;;  %v6880_v33 = vshll.u32 %v16768_v45, 16  ;;  %v7013_v30 = vrot.slane %v16768_v45, 1  ;;  %v6878_v29 = vshrl.u32 %v16768_v45, 16 }
 0x780   : > { %v6609_v26 = vld [vmem:[#allocation3 + $0x68] sm:$0x1]  ;;  %v6296_v44 = vshrl.u32 %v6136_v39, 16  ;;  %v6021_v13 = vadd.f32 %v6020_v40, %v5932_v2  ;;  %v6299_v38 = vshll.u32 %v6136_v39, 16  ;;  %v6531_v40 = vld [vmem:[#allocation3 + $0x74] sm:$0x1] }
 0x781   : > { %v6757_v27 = vunpack.c.l.b16 %v6609_v26  ;;  %v6882_v41 = vrot.slane %v6880_v33, 1  ;;  %v5934_v26 = vadd.f32 %v16349_v61, %v5845_v58 }
 0x782   : > { %v6298_v15 = vrot.slane %v6296_v44, 7  ;;  %v16775_v5 = vadd.f32 %v6021_v13, %v3154_v14  ;;  %7965 = vmatmul.bf16.gmra.mxu1 %v16478_v60  ;;  %v19188_v13 = vld [vmem:[#allocation52_spill] sm:$0xff] }
 0x783   : > { %v6773_v56 = vpack.c.b16 %v6757_v27, %v6757_v27  ;;  %v6883_v39 = vor.u32 %v6882_v41, %v6878_v29  ;;  %v19189_v27 = vld [vmem:[#allocation87_spill] sm:$0xff]  ;;  %v16800_v29 = vpop.f32.mrf.mxu3 }
 0x784   : > { %19186 = vst [vmem:[#allocation89_spill] sm:$0xff] %v16775_v5  ;;  %v6301_v0 = vor.u32 %v6299_v38, %v6298_v15  ;;  %v6303_v2 = vrot.slane %v6298_v15, 4  ;;  %v6105_v4 = vmax.f32 %v16775_v5, 0.0  ;;  %v3156_v33 = vadd.f32 %v19189_v27, %v19188_v13 }
 0x785   : > { %v7014_v11 = vrot.slane %v6773_v56, 1  ;;  %v6885_v17 = vshll.u32 %v6773_v56, 16  ;;  %v5848_v38 = vadd.f32 %v16371_v16, %v16387_v53  ;;  %19191 = vst [vmem:[#allocation130_spill] sm:$0xff] %v16800_v29 }
 0x786   : > { %v6302_v60 = vsel %vm13856_vm10, %v6294_v63, %v6301_v0  ;;  %v6532_v25 = vsel %vm15043_vm6, %v6303_v2, %v6531_v40  ;;  %v6137_v32 = vpack.c.bf16 %v6105_v4, %v6105_v4  ;;  %v19192_v2 = vld [vmem:[#allocation116_spill] sm:$0xff]  ;;  %v16805_v40 = vpop.f32.mrf.mxu0 }
 0x787   : > { %v16787_v46 = vsel %vm1971_vm3, %v7013_v30, %v7014_v11  ;;  %6530 = vst [vmem:[#allocation3 + $0x70] sm:$0xf] %v6302_v60  ;;  %v6022_v14 = vpop.f32.mrf.mxu1  ;;  %v6887_v44 = vrot.slane %v6885_v17, 1  ;;  %v5761_v4 = vadd.f32 %v16405_v42, %v19192_v2  ;;  %v6534_v11 = vld [vmem:[#allocation3 + $0x78] sm:$0xf] }
 0x788   : > { %19187 = vst [vmem:[#allocation59_spill] sm:$0xff] %v16787_v46  ;;  %v6305_v61 = vshrl.u32 %v6137_v32, 16  ;;  %7911 = vmatmul.bf16.gmra.mxu0 %v16787_v46  ;;  %v6023_v58 = vadd.f32 %v6022_v14, %v5934_v26  ;;  %v6308_v63 = vshll.u32 %v6137_v32, 16  ;;  %v19194_v26 = vld [vmem:[#allocation150_spill] sm:$0xff]  ;;  %v12695_v32 = vld [vmem:[#allocation13 + $0x110] sm:$0xff]  ;;  %v19195_v14 = vld [vmem:[#allocation100_spill] sm:$0xff] }
 0x789   : > { %6533 = vst [vmem:[#allocation3 + $0x74] sm:$0x1] %v6532_v25  ;;  %v16793_v15 = vsel %vm1746_vm2, %v6883_v39, %v6887_v44  ;;  %v5937_v39 = vadd.f32 %v19194_v26, %v5848_v38  ;;  %v19196_v44 = vld [vmem:[#allocation66_spill] sm:$0xff]  ;;  %8046 = vmatpush.bf16.msrb.mxu3 %v12695_v32  ;;  %v6538_v32 = vld [vmem:[#allocation3 + $0x80] sm:$0x1] }
 0x78a   : > { %v6307_v56 = vrot.slane %v6305_v61, 7  ;;  %v16797_v30 = vadd.f32 %v6023_v58, %v3156_v33  ;;  %7822 = vmatmul.bf16.gmra.mxu2 %v16793_v15  ;;  %19193 = vst [vmem:[#allocation29_spill] sm:$0xff] %v16805_v40  ;;  %v3159_v13 = vadd.f32 %v19196_v44, %v19195_v14  ;;  %v16818_v61 = vld [vmem:[%s18558_s5] ss:$0 sm:$0xff]  ;;  %v19197_v58 = vld [vmem:[#allocation64_spill] sm:$0xff] }
 0x78b   : > { %v2983_v38 = vadd.f32 %v16818_v61, %v19197_v58 }
 0x78c   : > { %19190 = vst [vmem:[#allocation38_spill] sm:$0xff] %v16797_v30  ;;  %v6310_v41 = vor.u32 %v6308_v63, %v6307_v56  ;;  %v6106_v0 = vmax.f32 %v16797_v30, 0.0  ;;  %v19198_v63 = vld [vmem:[#allocation152_spill] sm:$0xff]  ;;  %v6311_v30 = vrot.slane %v6307_v56, 4 }
 0x78e   : > { %v6535_v16 = vsel %vm15020_vm1, %v6310_v41, %v6534_v11  ;;  %v6138_v53 = vpack.c.bf16 %v6106_v0, %v6106_v0  ;;  %v16810_v17 = vld [vmem:[#allocation3 + $0x6c] sm:$0xff]  ;;  %v5850_v41 = vadd.f32 %v19198_v63, %v5761_v4  ;;  %v16830_v63 = vpop.f32.mrf.mxu2 }
 0x78f   : > { %6536 = vst [vmem:[#allocation3 + $0x78] sm:$0xf] %v6535_v16  ;;  %v6025_v60 = vpop.f32.mrf.mxu1  ;;  %7738 = vmatmul.bf16.gmra.mxu3 %v16810_v17  ;;  %v6892_v0 = vshll.u32 %v16810_v17, 16  ;;  %v6890_v14 = vshrl.u32 %v16810_v17, 16 }
 0x790   : > { %v6612_v25 = vld [vmem:[#allocation3 + $0x74] sm:$0x1]  ;;  %v6313_v27 = vshrl.u32 %v6138_v53, 16  ;;  %v6026_v42 = vadd.f32 %v6025_v60, %v5937_v39  ;;  %v6316_v11 = vshll.u32 %v6138_v53, 16  ;;  %v19200_v39 = vld [vmem:[#allocation101_spill] sm:$0xff]  ;;  %19201 = vst [vmem:[#allocation60_spill] sm:$0xff] %v16830_v63 }
 0x791   : > { %v6758_v33 = vunpack.c.l.b16 %v6612_v25  ;;  %v3072_v60 = vadd.f32 %v19200_v39, %v2983_v38  ;;  %v6894_v44 = vrot.slane %v6892_v0, 1  ;;  %v19202_v0 = vld [vmem:[#allocation132_spill] sm:$0xff] }
 0x792   : > { %v6315_v2 = vrot.slane %v6313_v27, 7  ;;  %v16824_v16 = vadd.f32 %v6026_v42, %v3159_v13  ;;  %7970 = vmatmul.bf16.gmra.mxu1 %v16528_v37  ;;  %v7699_v25 = vpop.f32.mrf.mxu3  ;;  %v7016_v13 = vrot.slane %v16810_v17, 1 }
 0x793   : > { %v6774_v26 = vpack.c.b16 %v6758_v33, %v6758_v33  ;;  %v6895_v37 = vor.u32 %v6894_v44, %v6890_v14  ;;  %v3161_v40 = vadd.f32 %v19204_v55, %v3072_v60  ;;  %v19207_v44 = vld [vmem:[#allocation155_spill] sm:$0xff] }
 0x794   : > { %19199 = vst [vmem:[#allocation133_spill] sm:$0xff] %v16824_v16  ;;  %v6318_v58 = vor.u32 %v6316_v11, %v6315_v2  ;;  %v6320_v5 = vrot.slane %v6315_v2, 4  ;;  %v6107_v4 = vmax.f32 %v16824_v16, 0.0  ;;  %v7877_v53 = vpop.f32.mrf.mxu0  ;;  %v5939_v2 = vadd.f32 %v19202_v0, %v5850_v41 }
 0x795   : > { %v7017_v27 = vrot.slane %v6774_v26, 1  ;;  %v6897_v42 = vshll.u32 %v6774_v26, 16 }
 0x796   : > { %v6319_v33 = vsel %vm13856_vm10, %v6311_v30, %v6318_v58  ;;  %v6539_v38 = vsel %vm15043_vm6, %v6320_v5, %v6538_v32  ;;  %v6139_v56 = vpack.c.bf16 %v6107_v4, %v6107_v4  ;;  %v19206_v5 = vld [vmem:[#allocation135_spill] sm:$0xff] }
 0x797   : > { %6537 = vst [vmem:[#allocation3 + $0x7c] sm:$0xf] %v6319_v33  ;;  %v16839_v11 = vsel %vm1971_vm3, %v7016_v13, %v7017_v27  ;;  %v6027_v39 = vpop.f32.mrf.mxu1  ;;  %v6899_v16 = vrot.slane %v6897_v42, 1  ;;  %v5853_v58 = vadd.f32 %v19207_v44, %v19206_v5  ;;  %v19209_v13 = vld [vmem:[#allocation159_spill] sm:$0xff]  ;;  %v7700_v42 = vadd.f32 %v16708_v20, %v7699_v25  ;;  %v19212_v5 = vld [vmem:[#allocation160_spill] sm:$0xff] }
 0x798   : > { %19203 = vst [vmem:[#allocation134_spill] sm:$0xff] %v16839_v11  ;;  %v6322_v14 = vshrl.u32 %v6139_v56, 16  ;;  %7916 = vmatmul.bf16.gmra.mxu0 %v16839_v11  ;;  %v6028_v26 = vadd.f32 %v6027_v39, %v5939_v2  ;;  %v6325_v4 = vshll.u32 %v6139_v56, 16  ;;  %v5766_v55 = vadd.f32 %v16448_v28, %v19209_v13  ;;  %v19210_v2 = vld [vmem:[#allocation99_spill] sm:$0xff]  ;;  %v12707_v13 = vld [vmem:[#allocation13 + $0x170] sm:$0xff] }
 0x799   : > { %6540 = vst [vmem:[#allocation3 + $0x80] sm:$0x1] %v6539_v38  ;;  %v16844_v30 = vsel %vm1746_vm2, %v6895_v37, %v6899_v16  ;;  %v6541_v16 = vld [vmem:[#allocation3 + $0x84] sm:$0xf]  ;;  %v5942_v39 = vadd.f32 %v19210_v2, %v5853_v58  ;;  %v19214_v11 = vld [vmem:[#allocation73_spill] sm:$0xff]  ;;  %8131 = vmatpush.bf16.msrb.mxu2 %v12707_v13 }
 0x79a   : > { %19205 = vst [vmem:[#allocation30_spill] sm:$0xff] %v16844_v30  ;;  %v6324_v41 = vrot.slane %v6322_v14, 7  ;;  %v16848_v32 = vadd.f32 %v6028_v26, %v3161_v40  ;;  %7827 = vmatmul.bf16.gmra.mxu2 %v16844_v30  ;;  %v7701_v60 = vpop.f32.mrf.mxu3  ;;  %v19211_v26 = vld [vmem:[#allocation68_spill] sm:$0xff]  ;;  %v5855_v44 = vadd.f32 %v19212_v5, %v5766_v55 }
 0x79b   : > { %v2988_v28 = vadd.f32 %v16818_v61, %v19211_v26  ;;  %v19215_v58 = vld [vmem:[#allocation104_spill] sm:$0xff]  ;;  %v7702_v13 = vadd.f32 %v16708_v20, %v7701_v60 }
 0x79c   : > { %19208 = vst [vmem:[#allocation61_spill] sm:$0xff] %v16848_v32  ;;  %v6327_v27 = vor.u32 %v6325_v4, %v6324_v41  ;;  %v6108_v33 = vmax.f32 %v16848_v32, 0.0  ;;  %v7879_v38 = vpop.f32.mrf.mxu0  ;;  %v19213_v32 = vld [vmem:[#allocation103_spill] sm:$0xff] }
 0x79d   : > { %v7788_v37 = vpop.f32.mrf.mxu2  ;;  %v3164_v63 = vadd.f32 %v19214_v11, %v19213_v32  ;;  %v6328_v11 = vrot.slane %v6324_v41, 4 }
 0x79e   : > { %v6542_v0 = vsel %vm15020_vm1, %v6327_v27, %v6541_v16  ;;  %v6140_v56 = vpack.c.bf16 %v6108_v33, %v6108_v33  ;;  %v7789_v40 = vadd.f32 %v7788_v37, %v7700_v42  ;;  %v16858_v14 = vld [vmem:[#allocation3 + $0x78] sm:$0xff]  ;;  %v3077_v33 = vadd.f32 %v19215_v58, %v2988_v28 }
 0x79f   : > { %6543 = vst [vmem:[#allocation3 + $0x84] sm:$0xf] %v6542_v0  ;;  %v6030_v25 = vpop.f32.mrf.mxu1  ;;  %7743 = vmatmul.bf16.gmra.mxu3 %v16858_v14  ;;  %v6904_v16 = vshll.u32 %v16858_v14, 16 }
 0x7a0   : > { %v6615_v4 = vld [vmem:[#allocation3 + $0x80] sm:$0x1]  ;;  %v6330_v30 = vshrl.u32 %v6140_v56, 16  ;;  %v6031_v27 = vadd.f32 %v6030_v25, %v5942_v39  ;;  %v16868_v37 = vadd.f32 %v7877_v53, %v7789_v40  ;;  %v6333_v0 = vshll.u32 %v6140_v56, 16  ;;  %v19217_v39 = vld [vmem:[#allocation114_spill] sm:$0xff] }
 0x7a1   : > { %v6759_v42 = vunpack.c.l.b16 %v6615_v4  ;;  %v5944_v5 = vadd.f32 %v19217_v39, %v5855_v44  ;;  %v6902_v25 = vshrl.u32 %v16858_v14, 16  ;;  %v6906_v4 = vrot.slane %v6904_v16, 1 }
 0x7a2   : > { %v6332_v55 = vrot.slane %v6330_v30, 7  ;;  %v16870_v2 = vadd.f32 %v6031_v27, %v3164_v63  ;;  %7975 = vmatmul.bf16.gmra.mxu1 %v16582_v23  ;;  %v7704_v32 = vpop.f32.mrf.mxu3  ;;  %v6545_v30 = vld [vmem:[#allocation3 + $0x8c] sm:$0x1]  ;;  %v7019_v40 = vrot.slane %v16858_v14, 1 }
 0x7a3   : > { %v6775_v26 = vpack.c.b16 %v6759_v42, %v6759_v42  ;;  %v6907_v27 = vor.u32 %v6906_v4, %v6902_v25  ;;  %v5858_v4 = vadd.f32 %v16470_v12, %v16475_v35 }
 0x7a4   : > { %19216 = vst [vmem:[#allocation40_spill] sm:$0xff] %v16870_v2  ;;  %v6335_v28 = vor.u32 %v6333_v0, %v6332_v55  ;;  %v6337_v58 = vrot.slane %v6332_v55, 4  ;;  %v6109_v53 = vmax.f32 %v16870_v2, 0.0  ;;  %v19218_v2 = vld [vmem:[#allocation76_spill] sm:$0xff] }
 0x7a5   : > { %v7790_v56 = vpop.f32.mrf.mxu2  ;;  %v7882_v63 = vpop.f32.mrf.mxu0  ;;  %v7020_v23 = vrot.slane %v6775_v26, 1  ;;  %v6909_v41 = vshll.u32 %v6775_v26, 16  ;;  %v3166_v29 = vadd.f32 %v19218_v2, %v3077_v33  ;;  %v19220_v33 = vld [vmem:[#allocation161_spill] sm:$0xff] }
 0x7a6   : > { %v6336_v44 = vsel %vm13856_vm10, %v6328_v11, %v6335_v28  ;;  %v6546_v42 = vsel %vm15043_vm6, %v6337_v58, %v6545_v30  ;;  %v6141_v16 = vpack.c.bf16 %v6109_v53, %v6109_v53  ;;  %v7791_v55 = vadd.f32 %v7790_v56, %v7702_v13  ;;  %v6548_v56 = vld [vmem:[#allocation3 + $0x90] sm:$0xf] }
 0x7a7   : > { %6544 = vst [vmem:[#allocation3 + $0x88] sm:$0xf] %v6336_v44  ;;  %v16883_v60 = vsel %vm1971_vm3, %v7019_v40, %v7020_v23  ;;  %v6032_v0 = vpop.f32.mrf.mxu1  ;;  %v6911_v39 = vrot.slane %v6909_v41, 1  ;;  %v5771_v2 = vadd.f32 %v16496_v34, %v19220_v33  ;;  %v19222_v44 = vld [vmem:[#allocation28_spill] sm:$0xff] }
 0x7a8   : > { %6547 = vst [vmem:[#allocation3 + $0x8c] sm:$0x1] %v6546_v42  ;;  %v6339_v46 = vshrl.u32 %v6141_v16, 16  ;;  %7921 = vmatmul.bf16.gmra.mxu0 %v16883_v60  ;;  %v6033_v26 = vadd.f32 %v6032_v0, %v5944_v5  ;;  %v16887_v25 = vadd.f32 %v7879_v38, %v7791_v55  ;;  %v6342_v58 = vshll.u32 %v6141_v16, 16  ;;  %v12694_v55 = vld [vmem:[#allocation13 + $0x108] sm:$0xff]  ;;  %v19223_v0 = vld [vmem:[#allocation106_spill] sm:$0xff] }
 0x7a9   : > { %v16890_v11 = vsel %vm1746_vm2, %v6907_v27, %v6911_v39  ;;  %v7705_v38 = vadd.f32 %v16708_v20, %v7704_v32  ;;  %v2993_v34 = vadd.f32 %v16818_v61, %v19222_v44  ;;  %v5860_v42 = vadd.f32 %v16504_v59, %v5771_v2  ;;  %v19224_v39 = vld [vmem:[#allocation79_spill] sm:$0xff]  ;;  %8047 = vmatpush.bf16.msrb.mxu3 %v12694_v55 }
 0x7aa   : > { %v6341_v28 = vrot.slane %v6339_v46, 7  ;;  %v16894_v13 = vadd.f32 %v6033_v26, %v3166_v29  ;;  %7832 = vmatmul.bf16.gmra.mxu2 %v16890_v11  ;;  %v7706_v53 = vpop.f32.mrf.mxu3  ;;  %v19221_v29 = vld [vmem:[#allocation115_spill] sm:$0xff]  ;;  %v3169_v26 = vadd.f32 %v19224_v39, %v19223_v0 }
 0x7ab   : > { %v5947_v27 = vadd.f32 %v19221_v29, %v5858_v4  ;;  %v19225_v4 = vld [vmem:[#allocation107_spill] sm:$0xff]  ;;  %v7707_v55 = vadd.f32 %v16708_v20, %v7706_v53 }
 0x7ac   : > { %19219 = vst [vmem:[#allocation39_spill] sm:$0xff] %v16894_v13  ;;  %v6344_v30 = vor.u32 %v6342_v58, %v6341_v28  ;;  %v6110_v5 = vmax.f32 %v16894_v13, 0.0 }
 0x7ad   : > { %v7793_v40 = vpop.f32.mrf.mxu2  ;;  %v7884_v23 = vpop.f32.mrf.mxu0 }
 0x7ae   : > { %v6549_v12 = vsel %vm15020_vm1, %v6344_v30, %v6548_v56  ;;  %v6142_v35 = vpack.c.bf16 %v6110_v5, %v6110_v5  ;;  %v7794_v46 = vadd.f32 %v7793_v40, %v7705_v38  ;;  %v16904_v41 = vld [vmem:[#allocation3 + $0x84] sm:$0xff]  ;;  %v3082_v38 = vadd.f32 %v19225_v4, %v2993_v34 }
 0x7af   : > { %6550 = vst [vmem:[#allocation3 + $0x90] sm:$0xf] %v6549_v12  ;;  %v6035_v32 = vpop.f32.mrf.mxu1  ;;  %v6618_v16 = vld [vmem:[#allocation3 + $0x8c] sm:$0x1]  ;;  %7748 = vmatmul.bf16.gmra.mxu3 %v16904_v41  ;;  %v6916_v5 = vshll.u32 %v16904_v41, 16  ;;  %v6345_v12 = vrot.slane %v6341_v28, 4 }
 0x7b0   : > { %v6347_v58 = vshrl.u32 %v6142_v35, 16  ;;  %v6036_v33 = vadd.f32 %v6035_v32, %v5947_v27  ;;  %v6760_v30 = vunpack.c.l.b16 %v6618_v16  ;;  %v16914_v61 = vadd.f32 %v7882_v63, %v7794_v46  ;;  %v6552_v46 = vld [vmem:[#allocation3 + $0x98] sm:$0x1] }
 0x7b1   : > { %v6350_v2 = vshll.u32 %v6142_v35, 16  ;;  %v5949_v27 = vadd.f32 %v16511_v48, %v5860_v42  ;;  %v6914_v44 = vshrl.u32 %v16904_v41, 16  ;;  %v6918_v32 = vrot.slane %v6916_v5, 1  ;;  %v19227_v5 = vld [vmem:[#allocation82_spill] sm:$0xff] }
 0x7b2   : > { %v6349_v59 = vrot.slane %v6347_v58, 7  ;;  %v16916_v56 = vadd.f32 %v6036_v33, %v3169_v26  ;;  %7980 = vmatmul.bf16.gmra.mxu1 %v16631_v1  ;;  %v6776_v40 = vpack.c.b16 %v6760_v30, %v6760_v30  ;;  %v7709_v29 = vpop.f32.mrf.mxu3  ;;  %v7022_v39 = vrot.slane %v16904_v41, 1 }
 0x7b3   : > { %v6919_v26 = vor.u32 %v6918_v32, %v6914_v44  ;;  %v5863_v32 = vadd.f32 %v16535_v57, %v16525_v52 }
 0x7b4   : > { %19226 = vst [vmem:[#allocation137_spill] sm:$0xff] %v16916_v56  ;;  %v6352_v34 = vor.u32 %v6350_v2, %v6349_v59  ;;  %v6354_v16 = vrot.slane %v6349_v59, 4  ;;  %v6111_v63 = vmax.f32 %v16916_v56, 0.0  ;;  %v7023_v1 = vrot.slane %v6776_v40, 1  ;;  %v13081_v56 = vld [vmem:[#allocation3 + $0x3c] sm:$0xff] }
 0x7b5   : > { %v7795_v35 = vpop.f32.mrf.mxu2  ;;  %v7887_v0 = vpop.f32.mrf.mxu0  ;;  %v6921_v28 = vshll.u32 %v6776_v40, 16  ;;  %v3171_v59 = vadd.f32 %v19227_v5, %v3082_v38  ;;  %v19229_v38 = vld [vmem:[#allocation124_spill] sm:$0xff] }
 0x7b6   : > { %v6353_v48 = vsel %vm13856_vm10, %v6345_v12, %v6352_v34  ;;  %v6553_v42 = vsel %vm15043_vm6, %v6354_v16, %v6552_v46  ;;  %v6143_v58 = vpack.c.bf16 %v6111_v63, %v6111_v63  ;;  %v7796_v33 = vadd.f32 %v7795_v35, %v7707_v55 }
 0x7b7   : > { %6551 = vst [vmem:[#allocation3 + $0x94] sm:$0xf] %v6353_v48  ;;  %v16929_v53 = vsel %vm1971_vm3, %v7022_v39, %v7023_v1  ;;  %v6037_v30 = vpop.f32.mrf.mxu1  ;;  %v6923_v4 = vrot.slane %v6921_v28, 1  ;;  %v5776_v63 = vadd.f32 %v16548_v9, %v19229_v38  ;;  %v6555_v39 = vld [vmem:[#allocation3 + $0x9c] sm:$0xf]  ;;  %v5952_v48 = vadd.f32 %v16544_v19, %v5863_v32 }
 0x7b8   : > { %6554 = vst [vmem:[#allocation3 + $0x98] sm:$0x1] %v6553_v42  ;;  %v6356_v2 = vshrl.u32 %v6143_v58, 16  ;;  %7926 = vmatmul.bf16.gmra.mxu0 %v16929_v53  ;;  %v6038_v40 = vadd.f32 %v6037_v30, %v5949_v27  ;;  %v16933_v44 = vadd.f32 %v7884_v23, %v7796_v33  ;;  %v6359_v16 = vshll.u32 %v6143_v58, 16  ;;  %v19230_v30 = vld [vmem:[#allocation109_spill] sm:$0xff] }
 0x7b9   : > { %v16936_v12 = vsel %vm1746_vm2, %v6919_v26, %v6923_v4  ;;  %v7710_v23 = vadd.f32 %v16708_v20, %v7709_v29  ;;  %v5865_v9 = vadd.f32 %v16569_v6, %v5776_v63  ;;  %v12706_v29 = vld [vmem:[#allocation13 + $0x168] sm:$0xff]  ;;  %v19231_v4 = vld [vmem:[#allocation85_spill] sm:$0xff] }
 0x7ba   : > { %v6358_v34 = vrot.slane %v6356_v2, 7  ;;  %v16940_v55 = vadd.f32 %v6038_v40, %v3171_v59  ;;  %7837 = vmatmul.bf16.gmra.mxu2 %v16936_v12  ;;  %v7711_v46 = vpop.f32.mrf.mxu3  ;;  %v3174_v5 = vadd.f32 %v19231_v4, %v19230_v30 }
 0x7bb   : > { %8132 = vmatpush.bf16.msrb.mxu2 %v12706_v29 }
 0x7bc   : > { %19228 = vst [vmem:[#allocation62_spill] sm:$0xff] %v16940_v55  ;;  %v6361_v35 = vor.u32 %v6359_v16, %v6358_v34  ;;  %v6112_v27 = vmax.f32 %v16940_v55, 0.0 }
 0x7bd   : > { %v7798_v1 = vpop.f32.mrf.mxu2  ;;  %v7889_v26 = vpop.f32.mrf.mxu0 }
 0x7be   : > { %v6556_v52 = vsel %vm15020_vm1, %v6361_v35, %v6555_v39  ;;  %v6144_v57 = vpack.c.bf16 %v6112_v27, %v6112_v27  ;;  %v7799_v28 = vadd.f32 %v7798_v1, %v7710_v23  ;;  %v16950_v42 = vld [vmem:[#allocation3 + $0x90] sm:$0xff]  ;;  %v6362_v35 = vrot.slane %v6358_v34, 4 }
 0x7bf   : > { %6557 = vst [vmem:[#allocation3 + $0x9c] sm:$0xf] %v6556_v52  ;;  %v6040_v58 = vpop.f32.mrf.mxu1  ;;  %v6621_v33 = vld [vmem:[#allocation3 + $0x98] sm:$0x1]  ;;  %7753 = vmatmul.bf16.gmra.mxu3 %v16950_v42  ;;  %v6928_v16 = vshll.u32 %v16950_v42, 16  ;;  %v19233_v27 = vld [vmem:[#allocation74_spill] sm:$0xff] }
 0x7c0   : > { %v6364_v59 = vshrl.u32 %v6144_v57, 16  ;;  %v6041_v2 = vadd.f32 %v6040_v58, %v5952_v48  ;;  %v6761_v40 = vunpack.c.l.b16 %v6621_v33  ;;  %v16957_v19 = vadd.f32 %v7887_v0, %v7799_v28  ;;  %v6559_v28 = vld [vmem:[#allocation3 + $0xa4] sm:$0x1] }
 0x7c1   : > { %v6367_v38 = vshll.u32 %v6144_v57, 16  ;;  %v5954_v39 = vadd.f32 %v19233_v27, %v5865_v9  ;;  %v6926_v1 = vshrl.u32 %v16950_v42, 16  ;;  %v6930_v52 = vrot.slane %v6928_v16, 1 }
 0x7c2   : > { %v6366_v32 = vrot.slane %v6364_v59, 7  ;;  %v16959_v6 = vadd.f32 %v6041_v2, %v3174_v5  ;;  %7985 = vmatmul.bf16.gmra.mxu1 %v16678_v47  ;;  %v6777_v63 = vpack.c.b16 %v6761_v40, %v6761_v40  ;;  %v7714_v23 = vpop.f32.mrf.mxu3  ;;  %v7712_v33 = vadd.f32 %v16708_v20, %v7711_v46 }
 0x7c3   : > { %v7025_v30 = vrot.slane %v16950_v42, 1  ;;  %v6931_v4 = vor.u32 %v6930_v52, %v6926_v1 }
 0x7c4   : > { %19232 = vst [vmem:[#allocation140_spill] sm:$0xff] %v16959_v6  ;;  %v6369_v48 = vor.u32 %v6367_v38, %v6366_v32  ;;  %v6371_v58 = vrot.slane %v6366_v32, 4  ;;  %v6113_v0 = vmax.f32 %v16959_v6, 0.0  ;;  %v7026_v47 = vrot.slane %v6777_v63, 1  ;;  %v19234_v32 = vld [vmem:[#allocation110_spill] sm:$0xff]  ;;  %v19235_v38 = vld [vmem:[#allocation88_spill] sm:$0xff] }
 0x7c5   : > { %v7800_v57 = vpop.f32.mrf.mxu2  ;;  %v7892_v29 = vpop.f32.mrf.mxu0  ;;  %v6933_v34 = vshll.u32 %v6777_v63, 16  ;;  %v3176_v27 = vadd.f32 %v19235_v38, %v19234_v32 }
 0x7c6   : > { %v6370_v9 = vsel %vm13856_vm10, %v6362_v35, %v6369_v48  ;;  %v6560_v5 = vsel %vm15043_vm6, %v6371_v58, %v6559_v28  ;;  %v6145_v59 = vpack.c.bf16 %v6113_v0, %v6113_v0  ;;  %v7801_v2 = vadd.f32 %v7800_v57, %v7712_v33  ;;  %v12716_v48 = vld [vmem:[#allocation13 + $0x1b8] sm:$0xff] }
 0x7c7   : > { %6558 = vst [vmem:[#allocation3 + $0xa0] sm:$0xf] %v6370_v9  ;;  %v16972_v46 = vsel %vm1971_vm3, %v7025_v30, %v7026_v47  ;;  %v6042_v40 = vpop.f32.mrf.mxu1  ;;  %v6935_v16 = vrot.slane %v6933_v34, 1  ;;  %v19236_v58 = vld [vmem:[#allocation54_spill] sm:$0xff]  ;;  %v19238_v30 = vld [vmem:[#allocation147_spill] sm:$0xff]  ;;  %8219 = vmatpush.bf16.msra.mxu0 %v12716_v48 }
 0x7c8   : > { %6561 = vst [vmem:[#allocation3 + $0xa4] sm:$0x1] %v6560_v5  ;;  %v6373_v1 = vshrl.u32 %v6145_v59, 16  ;;  %7931 = vmatmul.bf16.gmra.mxu0 %v16972_v46  ;;  %v6043_v63 = vadd.f32 %v6042_v40, %v5954_v39  ;;  %v16977_v35 = vadd.f32 %v7889_v26, %v7801_v2  ;;  %v5868_v33 = vadd.f32 %v16597_v43, %v19236_v58  ;;  %v6562_v9 = vld [vmem:[#allocation3 + $0xa8] sm:$0xf]  ;;  %v19240_v48 = vld [vmem:[#allocation90_spill] sm:$0xff] }
 0x7c9   : > { %v16980_v52 = vsel %vm1746_vm2, %v6931_v4, %v6935_v16  ;;  %v6376_v28 = vshll.u32 %v6145_v59, 16  ;;  %v5781_v47 = vadd.f32 %v16599_v3, %v19238_v30  ;;  %v7715_v39 = vadd.f32 %v16708_v20, %v7714_v23  ;;  %v12715_v43 = vld [vmem:[#allocation13 + $0x1b0] sm:$0xff] }
 0x7ca   : > { %v6375_v0 = vrot.slane %v6373_v1, 7  ;;  %v16984_v57 = vadd.f32 %v6043_v63, %v3176_v27  ;;  %7842 = vmatmul.bf16.gmra.mxu2 %v16980_v52  ;;  %v7716_v34 = vpop.f32.mrf.mxu3  ;;  %v5957_v32 = vadd.f32 %v16607_v62, %v5868_v33  ;;  %v12693_v1 = vld [vmem:[#allocation13 + $0x100] sm:$0xff]  ;;  %v19239_v63 = vld [vmem:[#allocation112_spill] sm:$0xff] }
 0x7cb   : > { %v5870_v3 = vadd.f32 %v16633_v24, %v5781_v47  ;;  %8220 = vmatpush.bf16.msra.mxu0 %v12715_v43  ;;  %v3179_v58 = vadd.f32 %v19240_v48, %v19239_v63  ;;  %8048 = vmatpush.bf16.msrb.mxu3 %v12693_v1  ;;  %v12714_v62 = vld [vmem:[#allocation13 + $0x1a8] sm:$0xff] }
 0x7cc   : > { %19237 = vst [vmem:[#allocation154_spill] sm:$0xff] %v16984_v57  ;;  %v6378_v26 = vor.u32 %v6376_v28, %v6375_v0  ;;  %v6114_v4 = vmax.f32 %v16984_v57, 0.0 }
 0x7cd   : > { %v7803_v5 = vpop.f32.mrf.mxu2  ;;  %v7894_v2 = vpop.f32.mrf.mxu0 }
 0x7ce   : > { %v6563_v59 = vsel %vm15020_vm1, %v6378_v26, %v6562_v9  ;;  %v6146_v40 = vpack.c.bf16 %v6114_v4, %v6114_v4  ;;  %v7804_v16 = vadd.f32 %v7803_v5, %v7715_v39  ;;  %v16994_v38 = vld [vmem:[#allocation3 + $0x9c] sm:$0xff]  ;;  %v6379_v5 = vrot.slane %v6375_v0, 4 }
 0x7cf   : > { %6564 = vst [vmem:[#allocation3 + $0xa8] sm:$0xf] %v6563_v59  ;;  %v6045_v27 = vpop.f32.mrf.mxu1  ;;  %v6624_v23 = vld [vmem:[#allocation3 + $0xa4] sm:$0x1]  ;;  %7758 = vmatmul.bf16.gmra.mxu3 %v16994_v38  ;;  %v6940_v39 = vshll.u32 %v16994_v38, 16  ;;  %v5959_v59 = vadd.f32 %v16638_v8, %v5870_v3  ;;  %8221 = vmatpush.bf16.msra.mxu0 %v12714_v62  ;;  %v12713_v8 = vld [vmem:[#allocation13 + $0x1a0] sm:$0xff] }
 0x7d0   : > { %v6381_v28 = vshrl.u32 %v6146_v40, 16  ;;  %v6046_v30 = vadd.f32 %v6045_v27, %v5957_v32  ;;  %v6762_v26 = vunpack.c.l.b16 %v6624_v23  ;;  %v17001_v33 = vadd.f32 %v7892_v29, %v7804_v16 }
 0x7d1   : > { %v6384_v47 = vshll.u32 %v6146_v40, 16  ;;  %v6938_v32 = vshrl.u32 %v16994_v38, 16  ;;  %v6942_v27 = vrot.slane %v6940_v39, 1  ;;  %v7717_v29 = vadd.f32 %v16708_v20, %v7716_v34  ;;  %v6566_v40 = vld [vmem:[#allocation3 + $0xb0] sm:$0x1] }
 0x7d2   : > { %v6383_v24 = vrot.slane %v6381_v28, 7  ;;  %v17003_v4 = vadd.f32 %v6046_v30, %v3179_v58  ;;  %7990 = vmatmul.bf16.gmra.mxu1 %v16730_v22  ;;  %v6778_v9 = vpack.c.b16 %v6762_v26, %v6762_v26  ;;  %v7719_v43 = vpop.f32.mrf.mxu3  ;;  %v7028_v22 = vrot.slane %v16994_v38, 1 }
 0x7d3   : > { %v6943_v58 = vor.u32 %v6942_v27, %v6938_v32  ;;  %8222 = vmatpush.bf16.msra.mxu0 %v12713_v8  ;;  %v19243_v32 = vld [vmem:[#allocation91_spill] sm:$0xff]  ;;  %v7720_v8 = vadd.f32 %v16708_v20, %v7719_v43 }
 0x7d4   : > { %19241 = vst [vmem:[#allocation46_spill] sm:$0xff] %v17003_v4  ;;  %v6386_v23 = vor.u32 %v6384_v47, %v6383_v24  ;;  %v6388_v1 = vrot.slane %v6383_v24, 4  ;;  %v6115_v16 = vmax.f32 %v17003_v4, 0.0  ;;  %v7029_v0 = vrot.slane %v6778_v9, 1  ;;  %v12705_v47 = vld [vmem:[#allocation13 + $0x160] sm:$0xff]  ;;  %v19242_v4 = vld [vmem:[#allocation113_spill] sm:$0xff] }
 0x7d5   : > { %v7805_v63 = vpop.f32.mrf.mxu2  ;;  %v17010_v48 = vpop.f32.mrf.mxu0  ;;  %v6945_v28 = vshll.u32 %v6778_v9, 16  ;;  %v3181_v9 = vadd.f32 %v19243_v32, %v19242_v4  ;;  %8133 = vmatpush.bf16.msrb.mxu2 %v12705_v47  ;;  %v12704_v4 = vld [vmem:[#allocation13 + $0x158] sm:$0xff] }
 0x7d6   : > { %v6387_v3 = vsel %vm13856_vm10, %v6379_v5, %v6386_v23  ;;  %v6567_v30 = vsel %vm15043_vm6, %v6388_v1, %v6566_v40  ;;  %v6147_v26 = vpack.c.bf16 %v6115_v16, %v6115_v16  ;;  %v7806_v34 = vadd.f32 %v7805_v63, %v7717_v29  ;;  %v12712_v23 = vld [vmem:[#allocation13 + $0x198] sm:$0xff]  ;;  %v19244_v16 = vld [vmem:[#allocation80_spill] sm:$0xff] }
 0x7d7   : > { %6565 = vst [vmem:[#allocation3 + $0xac] sm:$0xf] %v6387_v3  ;;  %v17018_v39 = vsel %vm1971_vm3, %v7028_v22, %v7029_v0  ;;  %v6047_v62 = vpop.f32.mrf.mxu1  ;;  %v6947_v24 = vrot.slane %v6945_v28, 1  ;;  %v5873_v40 = vadd.f32 %v16653_v18, %v19244_v16  ;;  %v19246_v28 = vld [vmem:[#allocation129_spill] sm:$0xff]  ;;  %8223 = vmatpush.bf16.msra.mxu0 %v12712_v23  ;;  %v6569_v18 = vld [vmem:[#allocation3 + $0xb4] sm:$0xf] }
 0x7d8   : > { %6568 = vst [vmem:[#allocation3 + $0xb0] sm:$0x1] %v6567_v30  ;;  %v6390_v27 = vshrl.u32 %v6147_v26, 16  ;;  %7936 = vmatmul.bf16.gmra.mxu0 %v17018_v39  ;;  %v6048_v5 = vadd.f32 %v6047_v62, %v5959_v59  ;;  %v17023_v1 = vadd.f32 %v7894_v2, %v7806_v34  ;;  %v6393_v22 = vshll.u32 %v6147_v26, 16  ;;  %v12711_v26 = vld [vmem:[#allocation13 + $0x190] sm:$0xff]  ;;  %v19248_v23 = vld [vmem:[#allocation92_spill] sm:$0xff] }
 0x7d9   : > { %v17026_v29 = vsel %vm1746_vm2, %v6943_v58, %v6947_v24  ;;  %v5786_v59 = vadd.f32 %v16680_v7, %v19246_v28  ;;  %8134 = vmatpush.bf16.msrb.mxu2 %v12704_v4  ;;  %v5962_v62 = vadd.f32 %v16661_v54, %v5873_v40  ;;  %v12710_v40 = vld [vmem:[#allocation13 + $0x188] sm:$0xff]  ;;  %v12732_v28 = vld [vmem:[#allocation13 + $0x238] sm:$0xff] }
 0x7da   : > { %v17030_v63 = vrot.slane %v6390_v27, 7  ;;  %v17032_v0 = vadd.f32 %v6048_v5, %v3181_v9  ;;  %7847 = vmatmul.bf16.gmra.mxu2 %v17026_v29  ;;  %v7721_v2 = vpop.f32.mrf.mxu3  ;;  %v12703_v9 = vld [vmem:[#allocation13 + $0x150] sm:$0xff]  ;;  %v19247_v5 = vld [vmem:[#allocation32_spill] sm:$0xff]  ;;  %8397 = vmatpush.bf16.msra.mxu3 %v12732_v28 }
 0x7db   : > { %v5875_v20 = vadd.f32 %v16687_v21, %v5786_v59  ;;  %8224 = vmatpush.bf16.msra.mxu0 %v12711_v26  ;;  %v3184_v16 = vadd.f32 %v19248_v23, %v19247_v5  ;;  %v19250_v26 = vld [vmem:[#allocation57_spill] sm:$0xff]  ;;  %v6573_v23 = vld [vmem:[#allocation3 + $0xbc] sm:$0x1] }
 0x7dc   : > { %19245 = vst [vmem:[#allocation108_spill] sm:$0xff] %v17032_v0  ;;  %v6395_v58 = vor.u32 %v6393_v22, %v17030_v63  ;;  %v6116_v3 = vmax.f32 %v17032_v0, 0.0  ;;  %v19252_v0 = vld [vmem:[#allocation93_spill] sm:$0xff] }
 0x7dd   : > { %v7808_v30 = vpop.f32.mrf.mxu2  ;;  %v17040_v34 = vpop.f32.mrf.mxu0  ;;  %8135 = vmatpush.bf16.msrb.mxu2 %v12703_v9 }
 0x7de   : > { %v6570_v24 = vsel %vm15020_vm1, %v6395_v58, %v6569_v18  ;;  %v6148_v7 = vpack.c.bf16 %v6116_v3, %v6116_v3  ;;  %v7809_v47 = vadd.f32 %v7808_v30, %v7720_v8  ;;  %v17045_v32 = vld [vmem:[#allocation3 + $0xa8] sm:$0xff]  ;;  %v12702_v8 = vld [vmem:[#allocation13 + $0x148] sm:$0xff] }
 0x7df   : > { %6571 = vst [vmem:[#allocation3 + $0xb4] sm:$0xf] %v6570_v24  ;;  %v6050_v43 = vpop.f32.mrf.mxu1  ;;  %v6627_v27 = vld [vmem:[#allocation3 + $0xb0] sm:$0x1]  ;;  %7763 = vmatmul.bf16.gmra.mxu3 %v17045_v32  ;;  %v6952_v58 = vshll.u32 %v17045_v32, 16  ;;  %v6396_v24 = vrot.slane %v17030_v63, 4  ;;  %8225 = vmatpush.bf16.msra.mxu0 %v12710_v40 }
 0x7e0   : > { %v6398_v22 = vshrl.u32 %v6148_v7, 16  ;;  %v6051_v4 = vadd.f32 %v6050_v43, %v5962_v62  ;;  %v6763_v54 = vunpack.c.l.b16 %v6627_v27  ;;  %v17053_v21 = vadd.f32 %v17010_v48, %v7809_v47  ;;  %v12709_v40 = vld [vmem:[#allocation13 + $0x180] sm:$0xff] }
 0x7e1   : > { %v6401_v3 = vshll.u32 %v6148_v7, 16  ;;  %v5964_v62 = vadd.f32 %v19250_v26, %v5875_v20  ;;  %v6950_v27 = vshrl.u32 %v17045_v32, 16  ;;  %v6954_v9 = vrot.slane %v6952_v58, 1  ;;  %v17064_v7 = vld [vmem:[%s18562_s9] ss:$0 sm:$0xff]  ;;  %8136 = vmatpush.bf16.msrb.mxu2 %v12702_v8  ;;  %v12724_v26 = vld [vmem:[#allocation13 + $0x1f8] sm:$0xff] }
 0x7e2   : > { %v6400_v59 = vrot.slane %v6398_v22, 7  ;;  %v17055_v18 = vadd.f32 %v6051_v4, %v3184_v16  ;;  %7995 = vmatmul.bf16.gmra.mxu1 %v16768_v45  ;;  %v6779_v30 = vpack.c.b16 %v6763_v54, %v6763_v54  ;;  %v7724_v43 = vpop.f32.mrf.mxu3  ;;  %v7722_v45 = vadd.f32 %v17064_v7, %v7721_v2 }
 0x7e3   : > { %v7031_v63 = vrot.slane %v17045_v32, 1  ;;  %v6955_v4 = vor.u32 %v6954_v9, %v6950_v27  ;;  %8226 = vmatpush.bf16.msra.mxu0 %v12709_v40  ;;  %8308 = vmatpush.bf16.msra.mxu1 %v12724_v26 }
 0x7e4   : > { %19249 = vst [vmem:[#allocation31_spill] sm:$0xff] %v17055_v18  ;;  %v6403_v5 = vor.u32 %v6401_v3, %v6400_v59  ;;  %v6405_v48 = vrot.slane %v6400_v59, 4  ;;  %v6117_v47 = vmax.f32 %v17055_v18, 0.0  ;;  %v7032_v22 = vrot.slane %v6779_v30, 1  ;;  %v12701_v3 = vld [vmem:[#allocation13 + $0x140] sm:$0xff] }
 0x7e5   : > { %v7810_v20 = vpop.f32.mrf.mxu2  ;;  %v7902_v16 = vpop.f32.mrf.mxu0  ;;  %v6957_v54 = vshll.u32 %v6779_v30, 16  ;;  %v19251_v18 = vld [vmem:[#allocation51_spill] sm:$0xff]  ;;  %8137 = vmatpush.bf16.msrb.mxu2 %v12701_v3 }
 0x7e6   : > { %v6404_v28 = vsel %vm13856_vm10, %v6396_v24, %v6403_v5  ;;  %v6574_v58 = vsel %vm15043_vm6, %v6405_v48, %v6573_v23  ;;  %v6149_v59 = vpack.c.bf16 %v6117_v47, %v6117_v47  ;;  %v7811_v2 = vadd.f32 %v7810_v20, %v7722_v45  ;;  %v6576_v20 = vld [vmem:[#allocation3 + $0xc0] sm:$0xf] }
 0x7e7   : > { %v3186_v57 = vadd.f32 %v19252_v0, %v19251_v18  ;;  %6572 = vst [vmem:[#allocation3 + $0xb8] sm:$0xf] %v6404_v28  ;;  %v17076_v6 = vsel %vm1971_vm3, %v7031_v63, %v7032_v22  ;;  %v6052_v30 = vpop.f32.mrf.mxu1  ;;  %v6959_v8 = vrot.slane %v6957_v54, 1  ;;  %v7725_v23 = vadd.f32 %v17064_v7, %v7724_v43 }
 0x7e8   : > { %6575 = vst [vmem:[#allocation3 + $0xbc] sm:$0x1] %v6574_v58  ;;  %v6407_v27 = vshrl.u32 %v6149_v59, 16  ;;  %7941 = vmatmul.bf16.gmra.mxu0 %v17076_v6  ;;  %v6053_v24 = vadd.f32 %v6052_v30, %v5964_v62  ;;  %v17080_v9 = vadd.f32 %v17040_v34, %v7811_v2  ;;  %v6410_v18 = vshll.u32 %v6149_v59, 16 }
 0x7e9   : > { %v17083_v5 = vsel %vm1746_vm2, %v6955_v4, %v6959_v8 }
 0x7ea   : > { %v6409_v0 = vrot.slane %v6407_v27, 7  ;;  %v17085_v48 = vadd.f32 %v6053_v24, %v3186_v57  ;;  %7852 = vmatmul.bf16.gmra.mxu2 %v17083_v5  ;;  %v7726_v45 = vpop.f32.mrf.mxu3 }
 0x7eb   : > { %v7727_v24 = vadd.f32 %v17064_v7, %v7726_v45 }
 0x7ec   : > { %19253 = vst [vmem:[#allocation63_spill] sm:$0xff] %v17085_v48  ;;  %v6412_v47 = vor.u32 %v6410_v18, %v6409_v0  ;;  %v6118_v62 = vmax.f32 %v17085_v48, 0.0  ;;  %v6413_v27 = vrot.slane %v6409_v0, 4 }
 0x7ed   : > { %v7813_v63 = vpop.f32.mrf.mxu2  ;;  %v7904_v34 = vpop.f32.mrf.mxu0 }
 0x7ee   : > { %v6577_v22 = vsel %vm15020_vm1, %v6412_v47, %v6576_v20  ;;  %v6150_v4 = vpack.c.bf16 %v6118_v62, %v6118_v62  ;;  %v7814_v54 = vadd.f32 %v7813_v63, %v7725_v23  ;;  %v17092_v40 = vld [vmem:[#allocation3 + $0xb4] sm:$0xff] }
 0x7ef   : > { %6578 = vst [vmem:[#allocation3 + $0xc0] sm:$0xf] %v6577_v22  ;;  %v7961_v57 = vpop.f32.mrf.mxu1  ;;  %v6630_v28 = vld [vmem:[#allocation3 + $0xbc] sm:$0x1]  ;;  %7768 = vmatmul.bf16.gmra.mxu3 %v17092_v40  ;;  %v6964_v2 = vshll.u32 %v17092_v40, 16  ;;  %v6962_v47 = vshrl.u32 %v17092_v40, 16 }
 0x7f0   : > { %v6415_v58 = vshrl.u32 %v6150_v4, 16  ;;  %v17095_v59 = vadd.f32 %v7961_v57, %v16723_v36  ;;  %v6764_v43 = vunpack.c.l.b16 %v6630_v28  ;;  %v17099_v3 = vadd.f32 %v7902_v16, %v7814_v54  ;;  %v6580_v22 = vld [vmem:[#allocation3 + $0xc8] sm:$0x1] }
 0x7f1   : > { %v6418_v30 = vshll.u32 %v6150_v4, 16  ;;  %v6966_v36 = vrot.slane %v6964_v2, 1  ;;  %v7034_v20 = vrot.slane %v17092_v40, 1 }
 0x7f2   : > { %v6417_v26 = vrot.slane %v6415_v58, 7  ;;  %8000 = vmatmul.bf16.gmra.mxu1 %v16810_v17  ;;  %v6780_v8 = vpack.c.b16 %v6764_v43, %v6764_v43  ;;  %v7729_v18 = vpop.f32.mrf.mxu3 }
 0x7f3   : > { %v6967_v57 = vor.u32 %v6966_v36, %v6962_v47 }
 0x7f4   : > { %v6420_v23 = vor.u32 %v6418_v30, %v6417_v26  ;;  %v6422_v62 = vrot.slane %v6417_v26, 4  ;;  %v7035_v63 = vrot.slane %v6780_v8, 1  ;;  %v6969_v4 = vshll.u32 %v6780_v8, 16 }
 0x7f5   : > { %v7815_v16 = vpop.f32.mrf.mxu2  ;;  %v7907_v54 = vpop.f32.mrf.mxu0  ;;  %v7730_v8 = vadd.f32 %v17064_v7, %v7729_v18 }
 0x7f6   : > { %v6421_v17 = vsel %vm13856_vm10, %v6413_v27, %v6420_v23  ;;  %v6581_v0 = vsel %vm15043_vm6, %v6422_v62, %v6580_v22  ;;  %v7816_v45 = vadd.f32 %v7815_v16, %v7727_v24  ;;  %v17110_v28 = vsel %vm1971_vm3, %v7034_v20, %v7035_v63  ;;  %v19256_v62 = vld [vmem:[#allocation102_spill] sm:$0xff]  ;;  %v12731_v20 = vld [vmem:[#allocation13 + $0x230] sm:$0xff] }
 0x7f7   : > { %19254 = vst [vmem:[#allocation42_spill] sm:$0xff] %v17110_v28  ;;  %v17112_v58 = vpop.f32.mrf.mxu1  ;;  %v6971_v43 = vrot.slane %v6969_v4, 1  ;;  %8398 = vmatpush.bf16.msra.mxu3 %v12731_v20  ;;  %v12723_v4 = vld [vmem:[#allocation13 + $0x1f0] sm:$0xff] }
 0x7f8   : > { %6579 = vst [vmem:[#allocation3 + $0xc4] sm:$0xf] %v6421_v17  ;;  %7946 = vmatmul.bf16.gmra.mxu0 %v17110_v28  ;;  %v17115_v2 = vadd.f32 %v7904_v34, %v7816_v45  ;;  %8309 = vmatpush.bf16.msra.mxu1 %v12723_v4  ;;  %v13079_v4 = vld [vmem:[#allocation3 + $0x24] sm:$0xff] }
 0x7f9   : > { %6582 = vst [vmem:[#allocation3 + $0xc8] sm:$0x1] %v6581_v0  ;;  %v17118_v26 = vsel %vm1746_vm2, %v6967_v57, %v6971_v43  ;;  %v13078_v0 = vld [vmem:[#allocation3 + $0x18] sm:$0xff] }
 0x7fa   : > { %19255 = vst [vmem:[#allocation138_spill] sm:$0xff] %v17118_v26  ;;  %7857 = vmatmul.bf16.gmra.mxu2 %v17118_v26  ;;  %v7731_v30 = vpop.f32.mrf.mxu3 }
 0x7fb   : > { %v7732_v22 = vadd.f32 %v17064_v7, %v7731_v30 }
 0x7fd   : > { %v7818_v27 = vpop.f32.mrf.mxu2  ;;  %v7909_v24 = vpop.f32.mrf.mxu0 }
 0x7fe   : > { %v7819_v47 = vadd.f32 %v7818_v27, %v7730_v8 }
 0x7ff   : > { %v7966_v36 = vpop.f32.mrf.mxu1  ;;  %8049 = vmatmul.bf16.vlgmr.msrb.gmra.mxu3 %v19256_v62  ;;  %v19258_v62 = vld [vmem:[#allocation117_spill] sm:$0xff] }
 0x800   : > { %v17123_v23 = vadd.f32 %v7966_v36, %v16868_v37  ;;  %v17126_v34 = vadd.f32 %v7907_v54, %v7819_v47  ;;  %v19257_v54 = vld [vmem:[#allocation136_spill] sm:$0xff] }
 0x802   : > { %8005 = vmatmul.bf16.gmra.mxu1 %v16858_v14  ;;  %v7734_v63 = vpop.f32.mrf.mxu3 }
 0x803   : > { %v7735_v43 = vadd.f32 %v17064_v7, %v7734_v63 }
 0x805   : > { %v7820_v16 = vpop.f32.mrf.mxu2  ;;  %v7912_v18 = vpop.f32.mrf.mxu0 }
 0x806   : > { %v7821_v57 = vadd.f32 %v7820_v16, %v7732_v22 }
 0x807   : > { %v7968_v17 = vpop.f32.mrf.mxu1 }
 0x808   : > { %8227 = vmatmul.bf16.vlgmr.msra.gmra.mxu0 %v13078_v0  ;;  %v17131_v37 = vadd.f32 %v7968_v17, %v16887_v25  ;;  %v17133_v45 = vadd.f32 %v7909_v24, %v7821_v57  ;;  %v19259_v0 = vld [vmem:[#allocation105_spill] sm:$0xff] }
 0x80a   : > { %8138 = vmatmul.bf16.vlgmr.msrb.gmra.mxu2 %v19257_v54  ;;  %v7736_v14 = vpop.f32.mrf.mxu3 }
 0x80b   : > { %v7737_v24 = vadd.f32 %v17064_v7, %v7736_v14 }
 0x80d   : > { %v7823_v8 = vpop.f32.mrf.mxu2  ;;  %v7914_v30 = vpop.f32.mrf.mxu0 }
 0x80e   : > { %v7824_v27 = vadd.f32 %v7823_v8, %v7735_v43 }
 0x80f   : > { %v7971_v47 = vpop.f32.mrf.mxu1  ;;  %8054 = vmatmul.bf16.gmra.mxu3 %v19258_v62 }
 0x810   : > { %v17138_v36 = vadd.f32 %v7971_v47, %v16914_v61  ;;  %v17141_v20 = vadd.f32 %v7912_v18, %v7824_v27  ;;  %v19260_v47 = vld [vmem:[#allocation53_spill] sm:$0xff] }
 0x812   : > { %8010 = vmatmul.bf16.gmra.mxu1 %v16904_v41  ;;  %v7739_v25 = vpop.f32.mrf.mxu3 }
 0x813   : > { %v7740_v54 = vadd.f32 %v17064_v7, %v7739_v25 }
 0x815   : > { %v7825_v22 = vpop.f32.mrf.mxu2  ;;  %v7917_v16 = vpop.f32.mrf.mxu0 }
 0x816   : > { %v7826_v57 = vadd.f32 %v7825_v22, %v7737_v24  ;;  %v12730_v24 = vld [vmem:[#allocation13 + $0x228] sm:$0xff] }
 0x817   : > { %v7973_v63 = vpop.f32.mrf.mxu1  ;;  %8399 = vmatpush.bf16.msra.mxu3 %v12730_v24 }
 0x818   : > { %8232 = vmatmul.bf16.gmra.mxu0 %v13079_v4  ;;  %v17146_v17 = vadd.f32 %v7973_v63, %v16933_v44  ;;  %v17148_v61 = vadd.f32 %v7914_v30, %v7826_v57  ;;  %v12722_v4 = vld [vmem:[#allocation13 + $0x1e8] sm:$0xff] }
 0x819   : > { %8310 = vmatpush.bf16.msra.mxu1 %v12722_v4 }
 0x81a   : > { %8143 = vmatmul.bf16.gmra.mxu2 %v19259_v0  ;;  %v7741_v18 = vpop.f32.mrf.mxu3  ;;  %v12718_v0 = vld [vmem:[#allocation13 + $0x1c8] sm:$0xff] }
 0x81b   : > { %v7742_v30 = vadd.f32 %v17064_v7, %v7741_v18 }
 0x81d   : > { %v7828_v41 = vpop.f32.mrf.mxu2  ;;  %v7919_v43 = vpop.f32.mrf.mxu0 }
 0x81e   : > { %v7829_v8 = vadd.f32 %v7828_v41, %v7740_v54  ;;  %v13080_v41 = vld [vmem:[#allocation3 + $0x30] sm:$0xff] }
 0x81f   : > { %v7976_v14 = vpop.f32.mrf.mxu1  ;;  %8059 = vmatmul.bf16.gmra.mxu3 %v19260_v47 }
 0x820   : > { %v17153_v27 = vadd.f32 %v7976_v14, %v16957_v19  ;;  %v17156_v22 = vadd.f32 %v7917_v16, %v7829_v8  ;;  %v19261_v16 = vld [vmem:[#allocation72_spill] sm:$0xff] }
 0x822   : > { %8015 = vmatmul.bf16.gmra.mxu1 %v16950_v42  ;;  %v7744_v44 = vpop.f32.mrf.mxu3 }
 0x823   : > { %v7745_v8 = vadd.f32 %v17064_v7, %v7744_v44 }
 0x825   : > { %v7830_v57 = vpop.f32.mrf.mxu2  ;;  %v7922_v25 = vpop.f32.mrf.mxu0 }
 0x826   : > { %v7831_v63 = vadd.f32 %v7830_v57, %v7742_v30  ;;  %v19262_v57 = vld [vmem:[#allocation35_spill] sm:$0xff] }
 0x827   : > { %v7978_v54 = vpop.f32.mrf.mxu1 }
 0x828   : > { %8237 = vmatmul.bf16.gmra.mxu0 %v13080_v41  ;;  %v17161_v19 = vadd.f32 %v7978_v54, %v16977_v35  ;;  %v17163_v14 = vadd.f32 %v7919_v43, %v7831_v63 }
 0x82a   : > { %8148 = vmatmul.bf16.gmra.mxu2 %v19261_v16  ;;  %v7746_v42 = vpop.f32.mrf.mxu3 }
 0x82b   : > { %v7747_v43 = vadd.f32 %v17064_v7, %v7746_v42 }
 0x82d   : > { %v7833_v24 = vpop.f32.mrf.mxu2  ;;  %v7924_v18 = vpop.f32.mrf.mxu0 }
 0x82e   : > { %v7834_v48 = vadd.f32 %v7833_v24, %v7745_v8 }
 0x82f   : > { %v7981_v55 = vpop.f32.mrf.mxu1  ;;  %8064 = vmatmul.bf16.gmra.mxu3 %v19262_v57 }
 0x830   : > { %v17168_v30 = vadd.f32 %v7981_v55, %v17001_v33  ;;  %v17171_v41 = vadd.f32 %v7922_v25, %v7834_v48  ;;  %v19263_v33 = vld [vmem:[#allocation55_spill] sm:$0xff] }
 0x832   : > { %8020 = vmatmul.bf16.gmra.mxu1 %v16994_v38  ;;  %v7749_v35 = vpop.f32.mrf.mxu3 }
 0x833   : > { %v7750_v25 = vadd.f32 %v17064_v7, %v7749_v35 }
 0x835   : > { %v7835_v63 = vpop.f32.mrf.mxu2  ;;  %v7927_v4 = vpop.f32.mrf.mxu0 }
 0x836   : > { %v7836_v54 = vadd.f32 %v7835_v63, %v7747_v43  ;;  %v19264_v43 = vld [vmem:[#allocation126_spill] sm:$0xff]  ;;  %v12729_v63 = vld [vmem:[#allocation13 + $0x220] sm:$0xff] }
 0x837   : > { %v7983_v44 = vpop.f32.mrf.mxu1  ;;  %8400 = vmatpush.bf16.msra.mxu3 %v12729_v63 }
 0x838   : > { %8242 = vmatmul.bf16.gmra.mxu0 %v13081_v56  ;;  %v17176_v8 = vadd.f32 %v7983_v44, %v17023_v1  ;;  %v17178_v55 = vadd.f32 %v7924_v18, %v7836_v54  ;;  %v12721_v56 = vld [vmem:[#allocation13 + $0x1e0] sm:$0xff] }
 0x839   : > { %8311 = vmatpush.bf16.msra.mxu1 %v12721_v56 }
 0x83a   : > { %8153 = vmatmul.bf16.gmra.mxu2 %v19263_v33  ;;  %v7751_v48 = vpop.f32.mrf.mxu3  ;;  %v19265_v33 = vld [vmem:[#allocation56_spill] sm:$0xff] }
 0x83b   : > { %v7752_v35 = vadd.f32 %v17064_v7, %v7751_v48 }
 0x83d   : > { %v7838_v24 = vpop.f32.mrf.mxu2  ;;  %v7929_v13 = vpop.f32.mrf.mxu0 }
 0x83e   : > { %v7839_v31 = vadd.f32 %v7838_v24, %v7750_v25  ;;  %v12720_v25 = vld [vmem:[#allocation13 + $0x1d8] sm:$0xff] }
 0x83f   : > { %v7986_v42 = vpop.f32.mrf.mxu1  ;;  %8069 = vmatmul.bf16.gmra.mxu3 %v19264_v43  ;;  %8312 = vmatpush.bf16.msra.mxu1 %v12720_v25 }
 0x840   : > { %v17183_v10 = vadd.f32 %v7986_v42, %v17053_v21  ;;  %v17186_v1 = vadd.f32 %v7927_v4, %v7839_v31  ;;  %v13082_v21 = vld [vmem:[#allocation3 + $0x48] sm:$0xff] }
 0x841   : > { %v12719_v31 = vld [vmem:[#allocation13 + $0x1d0] sm:$0xff] }
 0x842   : > { %8025 = vmatmul.bf16.gmra.mxu1 %v17045_v32  ;;  %v7754_v18 = vpop.f32.mrf.mxu3 }
 0x843   : > { %8313 = vmatpush.bf16.msra.mxu1 %v12719_v31  ;;  %v7755_v48 = vadd.f32 %v17064_v7, %v7754_v18 }
 0x845   : > { %v7840_v54 = vpop.f32.mrf.mxu2  ;;  %v7932_v44 = vpop.f32.mrf.mxu0 }
 0x846   : > { %v7841_v24 = vadd.f32 %v7840_v54, %v7752_v35 }
 0x847   : > { %v7988_v51 = vpop.f32.mrf.mxu1  ;;  %8314 = vmatpush.bf16.msra.mxu1 %v12718_v0 }
 0x848   : > { %8247 = vmatmul.bf16.gmra.mxu0 %v13082_v21  ;;  %v17191_v42 = vadd.f32 %v7988_v51, %v17080_v9  ;;  %v17193_v4 = vadd.f32 %v7929_v13, %v7841_v24  ;;  %v19267_v51 = vld [vmem:[#allocation128_spill] sm:$0xff]  ;;  %v12717_v9 = vld [vmem:[#allocation13 + $0x1c0] sm:$0xff] }
 0x84a   : > { %8158 = vmatmul.bf16.gmra.mxu2 %v19265_v33  ;;  %v7756_v63 = vpop.f32.mrf.mxu3 }
 0x84b   : > { %8315 = vmatpush.bf16.msra.mxu1 %v12717_v9  ;;  %v7757_v18 = vadd.f32 %v17064_v7, %v7756_v63 }
 0x84d   : > { %v7843_v56 = vpop.f32.mrf.mxu2  ;;  %v7934_v16 = vpop.f32.mrf.mxu0 }
 0x84e   : > { %v7844_v35 = vadd.f32 %v7843_v56, %v7755_v48  ;;  %v13083_v56 = vld [vmem:[#allocation3 + $0x54] sm:$0xff] }
 0x84f   : > { %v7991_v54 = vpop.f32.mrf.mxu1  ;;  %8074 = vmatmul.bf16.gmra.mxu3 %v19267_v51 }
 0x850   : > { %v17198_v25 = vadd.f32 %v7991_v54, %v17099_v3  ;;  %v17201_v13 = vadd.f32 %v7932_v44, %v7844_v35  ;;  %v19269_v54 = vld [vmem:[#allocation37_spill] sm:$0xff] }
 0x852   : > { %19266 = vst [vmem:[#allocation41_spill] sm:$0xff] %v17198_v25  ;;  %8030 = vmatmul.bf16.gmra.mxu1 %v17092_v40  ;;  %v7759_v24 = vpop.f32.mrf.mxu3 }
 0x853   : > { %v7760_v35 = vadd.f32 %v17064_v7, %v7759_v24 }
 0x855   : > { %v7845_v21 = vpop.f32.mrf.mxu2  ;;  %v7937_v31 = vpop.f32.mrf.mxu0 }
 0x856   : > { %v7846_v33 = vadd.f32 %v7845_v21, %v7757_v18  ;;  %v17216_v18 = vld [vmem:[#allocation3 + $0xc0] sm:$0xff] }
 0x857   : > { %v7993_v48 = vpop.f32.mrf.mxu1 }
 0x858   : > { %8252 = vmatmul.bf16.gmra.mxu0 %v13083_v56  ;;  %v17206_v3 = vadd.f32 %v7993_v48, %v17115_v2  ;;  %v17208_v0 = vadd.f32 %v7934_v16, %v7846_v33  ;;  %v12728_v2 = vld [vmem:[#allocation13 + $0x218] sm:$0xff] }
 0x859   : > { %8401 = vmatpush.bf16.msra.mxu3 %v12728_v2 }
 0x85a   : > { %19268 = vst [vmem:[#allocation157_spill] sm:$0xff] %v17206_v3  ;;  %8163 = vmatmul.bf16.gmra.mxu2 %v19269_v54  ;;  %v7761_v44 = vpop.f32.mrf.mxu3 }
 0x85b   : > { %v7762_v33 = vadd.f32 %v17064_v7, %v7761_v44 }
 0x85d   : > { %v7848_v28 = vpop.f32.mrf.mxu2  ;;  %v7939_v9 = vpop.f32.mrf.mxu0 }
 0x85e   : > { %v7849_v25 = vadd.f32 %v7848_v28, %v7760_v35  ;;  %v13084_v35 = vld [vmem:[#allocation3 + $0x60] sm:$0xff] }
 0x85f   : > { %v7996_v63 = vpop.f32.mrf.mxu1  ;;  %8079 = vmatmul.bf16.gmra.mxu3 %v16755_v50 }
 0x860   : > { %v17213_v26 = vadd.f32 %v7996_v63, %v17126_v34  ;;  %v17218_v21 = vadd.f32 %v7937_v31, %v7849_v25 }
 0x862   : > { %19270 = vst [vmem:[#allocation65_spill] sm:$0xff] %v17213_v26  ;;  %8035 = vmatmul.bf16.gmra.mxu1 %v17216_v18  ;;  %v7764_v16 = vpop.f32.mrf.mxu3 }
 0x863   : > { %v7765_v31 = vadd.f32 %v17064_v7, %v7764_v16  ;;  %v12758_v16 = vld [vmem:[#allocation15 + $0x38] sm:$0xff] }
 0x864   : > { %10084 = vmatpush.bf16.msra.mxu2 %v12758_v16  ;;  %v12727_v16 = vld [vmem:[#allocation13 + $0x210] sm:$0xff] }
 0x865   : > { %v7850_v24 = vpop.f32.mrf.mxu2  ;;  %v7942_v48 = vpop.f32.mrf.mxu0  ;;  %8402 = vmatpush.bf16.msra.mxu3 %v12727_v16 }
 0x866   : > { %v7851_v28 = vadd.f32 %v7850_v24, %v7762_v33 }
 0x867   : > { %v7998_v56 = vpop.f32.mrf.mxu1 }
 0x868   : > { %8257 = vmatmul.bf16.gmra.mxu0 %v13084_v35  ;;  %v17223_v34 = vadd.f32 %v7998_v56, %v17133_v45  ;;  %v17225_v63 = vadd.f32 %v7939_v9, %v7851_v28 }
 0x86a   : > { %19271 = vst [vmem:[#allocation95_spill] sm:$0xff] %v17223_v34  ;;  %8168 = vmatmul.bf16.gmra.mxu2 %v16749_v49  ;;  %v7766_v25 = vpop.f32.mrf.mxu3  ;;  %v13085_v49 = vld [vmem:[#allocation3 + $0x6c] sm:$0xff]  ;;  %v13086_v34 = vld [vmem:[#allocation3 + $0x78] sm:$0xff] }
 0x86b   : > { %v7767_v9 = vadd.f32 %v17064_v7, %v7766_v25 }
 0x86d   : > { %v7853_v2 = vpop.f32.mrf.mxu2  ;;  %v7944_v54 = vpop.f32.mrf.mxu0 }
 0x86e   : > { %v7854_v26 = vadd.f32 %v7853_v2, %v7765_v31 }
 0x86f   : > { %v8001_v44 = vpop.f32.mrf.mxu1  ;;  %8084 = vmatmul.bf16.gmra.mxu3 %v16793_v15 }
 0x870   : > { %v17230_v3 = vadd.f32 %v8001_v44, %v17141_v20  ;;  %v17233_v33 = vadd.f32 %v7942_v48, %v7854_v26  ;;  %v19274_v26 = vld [vmem:[#allocation59_spill] sm:$0xff] }
 0x872   : > { %19272 = vst [vmem:[#allocation139_spill] sm:$0xff] %v17230_v3  ;;  %8316 = vmatmul.bf16.vlgmr.msra.gmra.mxu1 %v19258_v62  ;;  %v7769_v45 = vpop.f32.mrf.mxu3 }
 0x873   : > { %v7770_v62 = vadd.f32 %v17064_v7, %v7769_v45  ;;  %v19278_v45 = vld [vmem:[#allocation60_spill] sm:$0xff] }
 0x875   : > { %v7855_v24 = vpop.f32.mrf.mxu2  ;;  %v7947_v28 = vpop.f32.mrf.mxu0 }
 0x876   : > { %v7856_v56 = vadd.f32 %v7855_v24, %v7767_v9  ;;  %v19275_v9 = vld [vmem:[#allocation130_spill] sm:$0xff] }
 0x877   : > { %v8003_v35 = vpop.f32.mrf.mxu1  ;;  %v7697_v24 = vadd.f32 %v17064_v7, %v19275_v9 }
 0x878   : > { %8262 = vmatmul.bf16.gmra.mxu0 %v13085_v49  ;;  %v17238_v31 = vadd.f32 %v8003_v35, %v17148_v61  ;;  %v17240_v20 = vadd.f32 %v7944_v54, %v7856_v56  ;;  %v19277_v61 = vld [vmem:[#allocation30_spill] sm:$0xff] }
 0x879   : > { %v7786_v35 = vadd.f32 %v19278_v45, %v7697_v24  ;;  %v19280_v24 = vld [vmem:[#allocation134_spill] sm:$0xff] }
 0x87a   : > { %19273 = vst [vmem:[#allocation125_spill] sm:$0xff] %v17238_v31  ;;  %8173 = vmatmul.bf16.gmra.mxu2 %v19274_v26  ;;  %v7771_v48 = vpop.f32.mrf.mxu3 }
 0x87d   : > { %v7858_v2 = vpop.f32.mrf.mxu2  ;;  %v7949_v25 = vpop.f32.mrf.mxu0 }
 0x87e   : > { %v7859_v44 = vadd.f32 %v7858_v2, %v7770_v62  ;;  %v7772_v62 = vadd.f32 %v17064_v7, %v7771_v48 }
 0x87f   : > { %v8006_v3 = vpop.f32.mrf.mxu1  ;;  %8089 = vmatmul.bf16.gmra.mxu3 %v19277_v61 }
 0x880   : > { %v17247_v49 = vadd.f32 %v8006_v3, %v17156_v22  ;;  %v17250_v54 = vadd.f32 %v7947_v28, %v7859_v44  ;;  %v19279_v3 = vld [vmem:[#allocation29_spill] sm:$0xff] }
 0x882   : > { %19276 = vst [vmem:[#allocation44_spill] sm:$0xff] %v17247_v49  ;;  %8321 = vmatmul.bf16.gmra.mxu1 %v19260_v47  ;;  %v8050_v56 = vpop.f32.mrf.mxu3  ;;  %v7875_v49 = vadd.f32 %v19279_v3, %v7786_v35  ;;  %v12757_v35 = vld [vmem:[#allocation15 + $0x30] sm:$0xff] }
 0x883   : > { %v8051_v2 = vadd.f32 %v8050_v56, %v17095_v59  ;;  %10085 = vmatpush.bf16.msra.mxu2 %v12757_v35 }
 0x884   : > { %v7964_v44 = vadd.f32 %v17112_v58, %v7875_v49 }
 0x885   : > { %v7860_v26 = vpop.f32.mrf.mxu2  ;;  %v8228_v9 = vpop.f32.mrf.mxu0 }
 0x886   : > { %v7861_v31 = vadd.f32 %v7860_v26, %v7772_v62 }
 0x887   : > { %v8008_v22 = vpop.f32.mrf.mxu1 }
 0x888   : > { %8267 = vmatmul.bf16.gmra.mxu0 %v13086_v34  ;;  %v17258_v28 = vadd.f32 %v8008_v22, %v17163_v14  ;;  %v17260_v47 = vadd.f32 %v7949_v25, %v7861_v31  ;;  %v13087_v22 = vld [vmem:[#allocation3 + $0x84] sm:$0xff] }
 0x88a   : > { %8178 = vmatmul.bf16.gmra.mxu2 %v19280_v24  ;;  %v8052_v7 = vpop.f32.mrf.mxu3 }
 0x88b   : > { %v8053_v48 = vadd.f32 %v8052_v7, %v7964_v44 }
 0x88d   : > { %v8139_v59 = vpop.f32.mrf.mxu2  ;;  %v8230_v16 = vpop.f32.mrf.mxu0 }
 0x88e   : > { %v8140_v56 = vadd.f32 %v8139_v59, %v8051_v2  ;;  %v12726_v59 = vld [vmem:[#allocation13 + $0x208] sm:$0xff] }
 0x88f   : > { %v8011_v26 = vpop.f32.mrf.mxu1  ;;  %8094 = vmatmul.bf16.gmra.mxu3 %v16890_v11 }
 0x890   : > { %v17265_v45 = vadd.f32 %v8011_v26, %v17171_v41  ;;  %v17268_v34 = vadd.f32 %v8228_v9, %v8140_v56  ;;  %8403 = vmatpush.bf16.msra.mxu3 %v12726_v59 }
 0x892   : > { %8326 = vmatmul.bf16.gmra.mxu1 %v19262_v57  ;;  %v8055_v14 = vpop.f32.mrf.mxu3 }
 0x893   : > { %v8056_v58 = vadd.f32 %v8055_v14, %v17123_v23 }
 0x895   : > { %v8141_v31 = vpop.f32.mrf.mxu2  ;;  %v8233_v25 = vpop.f32.mrf.mxu0 }
 0x896   : > { %v8142_v49 = vadd.f32 %v8141_v31, %v8053_v48 }
 0x897   : > { %v8013_v62 = vpop.f32.mrf.mxu1 }
 0x898   : > { %8272 = vmatmul.bf16.gmra.mxu0 %v13087_v22  ;;  %v17273_v2 = vadd.f32 %v8013_v62, %v17178_v55  ;;  %v17275_v41 = vadd.f32 %v8230_v16, %v8142_v49 }
 0x89a   : > { %8183 = vmatmul.bf16.gmra.mxu2 %v16883_v60  ;;  %v8057_v9 = vpop.f32.mrf.mxu3 }
 0x89b   : > { %v8058_v57 = vadd.f32 %v8057_v9, %v17131_v37 }
 0x89d   : > { %v8144_v3 = vpop.f32.mrf.mxu2  ;;  %v8235_v23 = vpop.f32.mrf.mxu0 }
 0x89e   : > { %v8145_v44 = vadd.f32 %v8144_v3, %v8056_v58  ;;  %v13088_v58 = vld [vmem:[#allocation3 + $0x90] sm:$0xff] }
 0x89f   : > { %v8016_v7 = vpop.f32.mrf.mxu1  ;;  %8099 = vmatmul.bf16.gmra.mxu3 %v16936_v12 }
 0x8a0   : > { %v17280_v48 = vadd.f32 %v8016_v7, %v17186_v1  ;;  %v17283_v55 = vadd.f32 %v8233_v25, %v8145_v44  ;;  %v12756_v7 = vld [vmem:[#allocation15 + $0x28] sm:$0xff] }
 0x8a1   : > { %10086 = vmatpush.bf16.msra.mxu2 %v12756_v7 }
 0x8a2   : > { %8331 = vmatmul.bf16.gmra.mxu1 %v19264_v43  ;;  %v8060_v16 = vpop.f32.mrf.mxu3 }
 0x8a3   : > { %v8061_v56 = vadd.f32 %v8060_v16, %v17138_v36 }
 0x8a5   : > { %v8146_v26 = vpop.f32.mrf.mxu2  ;;  %v8238_v14 = vpop.f32.mrf.mxu0 }
 0x8a6   : > { %v8147_v37 = vadd.f32 %v8146_v26, %v8058_v57 }
 0x8a7   : > { %v8018_v31 = vpop.f32.mrf.mxu1 }
 0x8a8   : > { %8277 = vmatmul.bf16.gmra.mxu0 %v13088_v58  ;;  %v17288_v1 = vadd.f32 %v8018_v31, %v17193_v4  ;;  %v17290_v49 = vadd.f32 %v8235_v23, %v8147_v37 }
 0x8aa   : > { %8188 = vmatmul.bf16.gmra.mxu2 %v16929_v53  ;;  %v8062_v25 = vpop.f32.mrf.mxu3 }
 0x8ab   : > { %v8063_v43 = vadd.f32 %v8062_v25, %v17146_v17 }
 0x8ad   : > { %v8149_v35 = vpop.f32.mrf.mxu2  ;;  %v8240_v57 = vpop.f32.mrf.mxu0 }
 0x8ae   : > { %v8150_v62 = vadd.f32 %v8149_v35, %v8061_v56 }
 0x8af   : > { %v8021_v22 = vpop.f32.mrf.mxu1  ;;  %8104 = vmatmul.bf16.gmra.mxu3 %v16980_v52 }
 0x8b0   : > { %v17295_v36 = vadd.f32 %v8021_v22, %v17201_v13  ;;  %v17298_v9 = vadd.f32 %v8238_v14, %v8150_v62 }
 0x8b2   : > { %8336 = vmatmul.bf16.gmra.mxu1 %v19267_v51  ;;  %v8065_v4 = vpop.f32.mrf.mxu3 }
 0x8b3   : > { %v8066_v3 = vadd.f32 %v8065_v4, %v17153_v27 }
 0x8b5   : > { %v8151_v23 = vpop.f32.mrf.mxu2  ;;  %v8243_v16 = vpop.f32.mrf.mxu0 }
 0x8b6   : > { %v8152_v44 = vadd.f32 %v8151_v23, %v8063_v43 }
 0x8b7   : > { %v8023_v17 = vpop.f32.mrf.mxu1 }
 0x8b8   : > { %8282 = vmatmul.bf16.gmra.mxu0 %v16994_v38  ;;  %v17304_v59 = vadd.f32 %v8023_v17, %v17208_v0  ;;  %v17306_v13 = vadd.f32 %v8240_v57, %v8152_v44  ;;  %v12725_v38 = vld [vmem:[#allocation13 + $0x200] sm:$0xff] }
 0x8b9   : > { %8404 = vmatpush.bf16.msra.mxu3 %v12725_v38 }
 0x8ba   : > { %8193 = vmatmul.bf16.gmra.mxu2 %v16972_v46  ;;  %v8067_v56 = vpop.f32.mrf.mxu3 }
 0x8bb   : > { %v8068_v51 = vadd.f32 %v8067_v56, %v17161_v19 }
 0x8bd   : > { %v8154_v26 = vpop.f32.mrf.mxu2  ;;  %v8245_v25 = vpop.f32.mrf.mxu0 }
 0x8be   : > { %v8155_v27 = vadd.f32 %v8154_v26, %v8066_v3 }
 0x8bf   : > { %v8026_v37 = vpop.f32.mrf.mxu1  ;;  %8109 = vmatmul.bf16.gmra.mxu3 %v17026_v29 }
 0x8c0   : > { %v17311_v14 = vadd.f32 %v8026_v37, %v17218_v21  ;;  %v17314_v0 = vadd.f32 %v8243_v16, %v8155_v27 }
 0x8c2   : > { %8341 = vmatmul.bf16.gmra.mxu1 %v16755_v50  ;;  %v8070_v31 = vpop.f32.mrf.mxu3 }
 0x8c3   : > { %v8071_v58 = vadd.f32 %v8070_v31, %v17168_v30  ;;  %v7065_v31 = vshll.u32 %v17216_v18, 16 }
 0x8c5   : > { %v8156_v43 = vpop.f32.mrf.mxu2  ;;  %v8248_v30 = vpop.f32.mrf.mxu0 }
 0x8c6   : > { %v8157_v19 = vadd.f32 %v8156_v43, %v8068_v51 }
 0x8c7   : > { %v8028_v35 = vpop.f32.mrf.mxu1 }
 0x8c8   : > { %8287 = vmatmul.bf16.gmra.mxu0 %v17045_v32  ;;  %v17320_v21 = vadd.f32 %v8028_v35, %v17225_v63  ;;  %v17322_v62 = vadd.f32 %v8245_v25, %v8157_v19  ;;  %v7067_v19 = vrot.slane %v7065_v31, 1 }
 0x8ca   : > { %8198 = vmatmul.bf16.gmra.mxu2 %v17018_v39  ;;  %v8072_v22 = vpop.f32.mrf.mxu3 }
 0x8cb   : > { %v17326_v50 = vadd.f32 %v8072_v22, %v17176_v8  ;;  %v12755_v8 = vld [vmem:[#allocation15 + $0x20] sm:$0xff]  ;;  %v7063_v22 = vshrl.u32 %v17216_v18, 16 }
 0x8cc   : > { %10087 = vmatpush.bf16.msra.mxu2 %v12755_v8 }
 0x8cd   : > { %v8159_v57 = vpop.f32.mrf.mxu2 }
 0x8ce   : > { %v8160_v4 = vadd.f32 %v8159_v57, %v8071_v58  ;;  %v19282_v58 = vld [vmem:[#allocation41_spill] sm:$0xff]  ;;  %v19283_v57 = vld [vmem:[#allocation42_spill] sm:$0xff] }
 0x8cf   : > { %v8031_v3 = vpop.f32.mrf.mxu1  ;;  %8114 = vmatmul.bf16.gmra.mxu3 %v17083_v5 }
 0x8d0   : > { %v17329_v23 = vadd.f32 %v8031_v3, %v17233_v33  ;;  %v17332_v32 = vadd.f32 %v8248_v30, %v8160_v4  ;;  %v7068_v4 = vor.u32 %v7067_v19, %v7063_v22  ;;  %v19284_v3 = vld [vmem:[#allocation157_spill] sm:$0xff] }
 0x8d2   : > { %8346 = vmatmul.bf16.gmra.mxu1 %v16793_v15  ;;  %v8075_v63 = vpop.f32.mrf.mxu3  ;;  %v6633_v15 = vld [vmem:[#allocation3 + $0xc8] sm:$0x1] }
 0x8d3   : > { %v8076_v44 = vadd.f32 %v8075_v63, %v17183_v10  ;;  %v7060_v27 = vunpack.c.l.b16 %v6633_v15 }
 0x8d5   : > { %v17336_v7 = vpop.f32.mrf.mxu2  ;;  %v7061_v38 = vpack.c.b16 %v7060_v27, %v7060_v27  ;;  %v17377_v27 = vld [vmem:[#allocation3 + $0xcc] sm:$0xff] }
 0x8d7   : > { %v8033_v17 = vpop.f32.mrf.mxu1  ;;  %v7070_v35 = vshll.u32 %v7061_v38, 16  ;;  %v7076_v31 = vrot.slane %v7061_v38, 1 }
 0x8d8   : > { %8292 = vmatmul.bf16.gmra.mxu0 %v17092_v40  ;;  %v17340_v16 = vadd.f32 %v8033_v17, %v17240_v20  ;;  %v19281_v40 = vld [vmem:[#allocation138_spill] sm:$0xff] }
 0x8d9   : > { %v7072_v30 = vrot.slane %v7070_v35, 1  ;;  %v19286_v35 = vld [vmem:[#allocation95_spill] sm:$0xff] }
 0x8da   : > { %8203 = vmatmul.bf16.gmra.mxu2 %v17076_v6  ;;  %v8077_v33 = vpop.f32.mrf.mxu3 }
 0x8db   : > { %v17344_v56 = vadd.f32 %v8077_v33, %v17191_v42  ;;  %v17369_v33 = vsel %vm1746_vm2, %v7068_v4, %v7072_v30 }
 0x8dd   : > { %v8164_v51 = vpop.f32.mrf.mxu2 }
 0x8de   : > { %v17346_v26 = vadd.f32 %v8164_v51, %v8076_v44  ;;  %v19285_v51 = vld [vmem:[#allocation65_spill] sm:$0xff] }
 0x8df   : > { %v8036_v10 = vpop.f32.mrf.mxu1  ;;  %8119 = vmatmul.bf16.gmra.mxu3 %v19281_v40 }
 0x8e0   : > { %v17349_v37 = vadd.f32 %v8036_v10, %v17250_v54 }
 0x8e2   : > { %8351 = vmatmul.bf16.gmra.mxu1 %v19277_v61  ;;  %v8080_v20 = vpop.f32.mrf.mxu3 }
 0x8e3   : > { %v8081_v42 = vadd.f32 %v8080_v20, %v19282_v58  ;;  %v12754_v58 = vld [vmem:[#allocation15 + $0x18] sm:$0xff] }
 0x8e4   : > { %10088 = vmatpush.bf16.msra.mxu2 %v12754_v58 }
 0x8e5   : > { %v17355_v25 = vpop.f32.mrf.mxu2 }
 0x8e7   : > { %v8038_v43 = vpop.f32.mrf.mxu1 }
 0x8e8   : > { %8297 = vmatmul.bf16.gmra.mxu0 %v17216_v18  ;;  %v17359_v54 = vadd.f32 %v8038_v43, %v17260_v47  ;;  %v7075_v43 = vrot.slane %v17216_v18, 1 }
 0x8ea   : > { %8208 = vmatmul.bf16.gmra.mxu2 %v19283_v57  ;;  %v8082_v61 = vpop.f32.mrf.mxu3 }
 0x8eb   : > { %v17364_v63 = vadd.f32 %v8082_v61, %v19284_v3  ;;  %v19288_v3 = vld [vmem:[#allocation139_spill] sm:$0xff] }
 0x8ed   : > { %v8169_v44 = vpop.f32.mrf.mxu2 }
 0x8ee   : > { %v17366_v8 = vadd.f32 %v8169_v44, %v8081_v42 }
 0x8ef   : > { %v8317_v17 = vpop.f32.mrf.mxu1  ;;  %8124 = vmatmul.bf16.gmra.mxu3 %v17369_v33 }
 0x8f0   : > { %v17372_v47 = vadd.f32 %v8317_v17, %v17268_v34 }
 0x8f2   : > { %8356 = vmatmul.bf16.gmra.mxu1 %v16890_v11  ;;  %v8085_v15 = vpop.f32.mrf.mxu3  ;;  %v17387_v11 = vsel %vm1971_vm3, %v7075_v43, %v7076_v31 }
 0x8f3   : > { %v8086_v10 = vadd.f32 %v8085_v15, %v19285_v51 }
 0x8f5   : > { %v17379_v20 = vpop.f32.mrf.mxu2 }
 0x8f7   : > { %v8319_v42 = vpop.f32.mrf.mxu1 }
 0x8f8   : > { %v17383_v19 = vadd.f32 %v8319_v42, %v17275_v41  ;;  %8302 = vmatmul.bf16.gmra.mxu0 %v17377_v27  ;;  %v19287_v41 = vld [vmem:[#allocation105_spill] sm:$0xff] }
 0x8fa   : > { %8213 = vmatmul.bf16.gmra.mxu2 %v17387_v11  ;;  %v8087_v34 = vpop.f32.mrf.mxu3 }
 0x8fb   : > { %v17391_v22 = vadd.f32 %v8087_v34, %v19286_v35 }
 0x8fd   : > { %v8174_v38 = vpop.f32.mrf.mxu2 }
 0x8fe   : > { %v17393_v61 = vadd.f32 %v8174_v38, %v8086_v10  ;;  %v19289_v10 = vld [vmem:[#allocation125_spill] sm:$0xff]  ;;  %v19292_v38 = vld [vmem:[#allocation44_spill] sm:$0xff] }
 0x8ff   : > { %v8322_v4 = vpop.f32.mrf.mxu1  ;;  %8405 = vmatmul.bf16.vlgmr.msra.gmra.mxu3 %v19287_v41  ;;  %v12753_v41 = vld [vmem:[#allocation15 + $0x10] sm:$0xff] }
 0x900   : > { %v17396_v18 = vadd.f32 %v8322_v4, %v17283_v55  ;;  %10089 = vmatpush.bf16.msra.mxu2 %v12753_v41 }
 0x902   : > { %8361 = vmatmul.bf16.gmra.mxu1 %v16936_v12  ;;  %v8090_v30 = vpop.f32.mrf.mxu3  ;;  %v19291_v12 = vld [vmem:[#allocation72_spill] sm:$0xff] }
 0x903   : > { %v8091_v44 = vadd.f32 %v8090_v30, %v19288_v3  ;;  %v8250_v3 = vpop.f32.mrf.mxu0 }
 0x905   : > { %v17401_v17 = vpop.f32.mrf.mxu2 }
 0x907   : > { %v8324_v15 = vpop.f32.mrf.mxu1 }
 0x908   : > { %v17404_v51 = vadd.f32 %v8324_v15, %v17290_v49 }
 0x90a   : > { %v8092_v31 = vpop.f32.mrf.mxu3 }
 0x90b   : > { %v17407_v58 = vadd.f32 %v8092_v31, %v19289_v10 }
 0x90d   : > { %19290 = vst [vmem:[#allocation67_spill] sm:$0xff] %v17407_v58  ;;  %v8179_v42 = vpop.f32.mrf.mxu2 }
 0x90e   : > { %v17409_v55 = vadd.f32 %v8179_v42, %v8091_v44 }
 0x90f   : > { %v8327_v43 = vpop.f32.mrf.mxu1  ;;  %8410 = vmatmul.bf16.gmra.mxu3 %v19291_v12  ;;  %v17431_v12 = vpop.f32.mrf.mxu0 }
 0x910   : > { %v17412_v34 = vadd.f32 %v8327_v43, %v17298_v9  ;;  %v19296_v43 = vld [vmem:[#allocation55_spill] sm:$0xff] }
 0x912   : > { %8366 = vmatmul.bf16.gmra.mxu1 %v16980_v52  ;;  %v8095_v35 = vpop.f32.mrf.mxu3 }
 0x913   : > { %v8096_v4 = vadd.f32 %v8095_v35, %v19292_v38 }
 0x915   : > { %v17417_v49 = vpop.f32.mrf.mxu2 }
 0x916   : > { %19293 = vst [vmem:[#allocation120_spill] sm:$0xff] %v17417_v49 }
 0x917   : > { %v8329_v30 = vpop.f32.mrf.mxu1 }
 0x918   : > { %v17420_v15 = vadd.f32 %v8329_v30, %v17306_v13  ;;  %v17440_v30 = vpop.f32.mrf.mxu0 }
 0x91a   : > { %v8097_v44 = vpop.f32.mrf.mxu3 }
 0x91b   : > { %v17423_v9 = vadd.f32 %v8097_v44, %v17258_v28 }
 0x91d   : > { %19294 = vst [vmem:[#allocation141_spill] sm:$0xff] %v17423_v9  ;;  %v8184_v31 = vpop.f32.mrf.mxu2  ;;  %v12764_v9 = vld [vmem:[#allocation15 + $0x68] sm:$0xff] }
 0x91e   : > { %v17425_v10 = vadd.f32 %v8184_v31, %v8096_v4 }
 0x91f   : > { %v8332_v52 = vpop.f32.mrf.mxu1  ;;  %8415 = vmatmul.bf16.gmra.mxu3 %v19296_v43  ;;  %v8162_v43 = vadd.f32 %v17336_v7, %v17326_v50 }
 0x920   : > { %19295 = vst [vmem:[#allocation45_spill] sm:$0xff] %v17425_v10  ;;  %v17428_v42 = vadd.f32 %v8332_v52, %v17314_v0 }
 0x922   : > { %8371 = vmatmul.bf16.gmra.mxu1 %v17026_v29  ;;  %v8100_v13 = vpop.f32.mrf.mxu3 }
 0x923   : > { %v8101_v35 = vadd.f32 %v8100_v13, %v17265_v45  ;;  %v19300_v45 = vld [vmem:[#allocation56_spill] sm:$0xff] }
 0x925   : > { %v17435_v38 = vpop.f32.mrf.mxu2 }
 0x926   : > { %19297 = vst [vmem:[#allocation69_spill] sm:$0xff] %v17435_v38 }
 0x927   : > { %v8334_v28 = vpop.f32.mrf.mxu1 }
 0x928   : > { %v17438_v41 = vadd.f32 %v8334_v28, %v17322_v62 }
 0x92a   : > { %v8102_v4 = vpop.f32.mrf.mxu3 }
 0x92b   : > { %v17443_v0 = vadd.f32 %v8102_v4, %v17273_v2  ;;  %v17457_v2 = vpop.f32.mrf.mxu0  ;;  %v12752_v4 = vld [vmem:[#allocation15 + $0x8] sm:$0xff] }
 0x92c   : > { %10090 = vmatpush.bf16.msra.mxu2 %v12752_v4 }
 0x92d   : > { %19298 = vst [vmem:[#allocation131_spill] sm:$0xff] %v17443_v0  ;;  %v8189_v44 = vpop.f32.mrf.mxu2 }
 0x92e   : > { %v17445_v31 = vadd.f32 %v8189_v44, %v8101_v35  ;;  %v8251_v35 = vadd.f32 %v8250_v3, %v8162_v43 }
 0x92f   : > { %v8337_v52 = vpop.f32.mrf.mxu1  ;;  %8420 = vmatmul.bf16.gmra.mxu3 %v19300_v45  ;;  %v19304_v45 = vld [vmem:[#allocation37_spill] sm:$0xff] }
 0x930   : > { %19299 = vst [vmem:[#allocation142_spill] sm:$0xff] %v17445_v31  ;;  %v17448_v29 = vadd.f32 %v8337_v52, %v17332_v32 }
 0x932   : > { %8376 = vmatmul.bf16.gmra.mxu1 %v17083_v5  ;;  %v8105_v62 = vpop.f32.mrf.mxu3 }
 0x933   : > { %v8106_v13 = vadd.f32 %v8105_v62, %v17280_v48  ;;  %v17468_v48 = vpop.f32.mrf.mxu0 }
 0x935   : > { %v17455_v28 = vpop.f32.mrf.mxu2 }
 0x936   : > { %19301 = vst [vmem:[#allocation36_spill] sm:$0xff] %v17455_v28 }
 0x937   : > { %v8339_v44 = vpop.f32.mrf.mxu1 }
 0x938   : > { %v17459_v0 = vadd.f32 %v8339_v44, %v8251_v35  ;;  %v6636_v44 = vld [vmem:[#allocation3 + $0xd4] sm:$0x1] }
 0x93a   : > { %v8107_v32 = vpop.f32.mrf.mxu3 }
 0x93b   : > { %v17462_v52 = vadd.f32 %v8107_v32, %v17288_v1  ;;  %v17477_v1 = vpop.f32.mrf.mxu0 }
 0x93d   : > { %19302 = vst [vmem:[#allocation71_spill] sm:$0xff] %v17462_v52  ;;  %v8194_v50 = vpop.f32.mrf.mxu2  ;;  %v19308_v52 = vld [vmem:[#allocation58_spill] sm:$0xff] }
 0x93e   : > { %v17464_v7 = vadd.f32 %v8194_v50, %v8106_v13 }
 0x93f   : > { %v17466_v5 = vpop.f32.mrf.mxu1  ;;  %8425 = vmatmul.bf16.gmra.mxu3 %v19304_v45 }
 0x940   : > { %19303 = vst [vmem:[#allocation143_spill] sm:$0xff] %v17464_v7 }
 0x942   : > { %8381 = vmatmul.bf16.gmra.mxu1 %v19281_v40  ;;  %v8110_v3 = vpop.f32.mrf.mxu3  ;;  %v7086_v40 = vunpack.c.l.b16 %v6636_v44  ;;  %v7089_v44 = vshrl.u32 %v17377_v27, 16 }
 0x943   : > { %v8111_v43 = vadd.f32 %v8110_v3, %v17295_v36  ;;  %v17491_v7 = vpop.f32.mrf.mxu0 }
 0x944   : > { %v17488_v3 = vpack.c.b16 %v7086_v40, %v7086_v40  ;;  %v12774_v40 = vld [vmem:[#allocation15 + $0xb8] sm:$0xff] }
 0x945   : > { %v17473_v62 = vpop.f32.mrf.mxu2  ;;  %10262 = vmatpush.bf16.msrb.mxu1 %v12774_v40  ;;  %v12772_v40 = vld [vmem:[#allocation15 + $0xa8] sm:$0xff] }
 0x946   : > { %19305 = vst [vmem:[#allocation144_spill] sm:$0xff] %v17473_v62  ;;  %v7091_v62 = vshll.u32 %v17377_v27, 16 }
 0x947   : > { %v17475_v35 = vpop.f32.mrf.mxu1 }
 0x94a   : > { %v8112_v4 = vpop.f32.mrf.mxu3 }
 0x94b   : > { %v17480_v13 = vadd.f32 %v8112_v4, %v17304_v59  ;;  %v17503_v10 = vpop.f32.mrf.mxu0 }
 0x94d   : > { %19306 = vst [vmem:[#allocation47_spill] sm:$0xff] %v17480_v13  ;;  %v8199_v32 = vpop.f32.mrf.mxu2 }
 0x94e   : > { %v17482_v50 = vadd.f32 %v8199_v32, %v8111_v43  ;;  %v12766_v43 = vld [vmem:[#allocation15 + $0x78] sm:$0xff]  ;;  %v12751_v32 = vld [vmem:[#allocation15] sm:$0xff] }
 0x94f   : > { %v17484_v45 = vpop.f32.mrf.mxu1  ;;  %8430 = vmatmul.bf16.gmra.mxu3 %v19308_v52  ;;  %v7093_v52 = vrot.slane %v7091_v62, 1  ;;  %10173 = vmatpush.bf16.msrb.mxu0 %v12766_v43 }
 0x950   : > { %19307 = vst [vmem:[#allocation75_spill] sm:$0xff] %v17482_v50  ;;  %10091 = vmatpush.bf16.msra.mxu2 %v12751_v32  ;;  %v12765_v50 = vld [vmem:[#allocation15 + $0x70] sm:$0xff] }
 0x951   : > { %v7094_v31 = vor.u32 %v7093_v52, %v7089_v44  ;;  %v19312_v44 = vld [vmem:[#allocation59_spill] sm:$0xff] }
 0x952   : > { %8386 = vmatmul.bf16.gmra.mxu1 %v17369_v33  ;;  %v8115_v36 = vpop.f32.mrf.mxu3  ;;  %v7096_v33 = vshll.u32 %v17488_v3, 16 }
 0x953   : > { %v8116_v59 = vadd.f32 %v8115_v36, %v17311_v14  ;;  %10174 = vmatpush.bf16.msrb.mxu0 %v12765_v50  ;;  %v12773_v14 = vld [vmem:[#allocation15 + $0xb0] sm:$0xff]  ;;  %v12763_v50 = vld [vmem:[#allocation15 + $0x60] sm:$0xff] }
 0x954   : > { %v7098_v38 = vrot.slane %v7096_v33, 1  ;;  %10263 = vmatpush.bf16.msrb.mxu1 %v12773_v14 }
 0x955   : > { %v17494_v4 = vpop.f32.mrf.mxu2 }
 0x956   : > { %19309 = vst [vmem:[#allocation145_spill] sm:$0xff] %v17494_v4  ;;  %v7099_v32 = vsel %vm1746_vm2, %v7094_v31, %v7098_v38  ;;  %v12770_v38 = vld [vmem:[#allocation15 + $0x98] sm:$0xff]  ;;  %v12761_v31 = vld [vmem:[#allocation15 + $0x50] sm:$0xff] }
 0x957   : > { %v17496_v13 = vpop.f32.mrf.mxu1  ;;  %10175 = vmatpush.bf16.msrb.mxu0 %v12764_v9  ;;  %v17516_v9 = vpop.f32.mrf.mxu0 }
 0x958   : > { %10264 = vmatpush.bf16.msrb.mxu1 %v12772_v40  ;;  %19314 = vst [vmem:[#allocation78_spill] sm:$0xff] %v17516_v9 }
 0x95a   : > { %v8117_v28 = vpop.f32.mrf.mxu3 }
 0x95b   : > { %v17501_v36 = vadd.f32 %v8117_v28, %v17320_v21  ;;  %10176 = vmatpush.bf16.msrb.mxu0 %v12763_v50  ;;  %v12771_v28 = vld [vmem:[#allocation15 + $0xa0] sm:$0xff] }
 0x95c   : > { %10265 = vmatpush.bf16.msrb.mxu1 %v12771_v28 }
 0x95d   : > { %19310 = vst [vmem:[#allocation34_spill] sm:$0xff] %v17501_v36  ;;  %v8204_v4 = vpop.f32.mrf.mxu2 }
 0x95e   : > { %v17505_v62 = vadd.f32 %v8204_v4, %v8116_v59  ;;  %v12762_v59 = vld [vmem:[#allocation15 + $0x58] sm:$0xff] }
 0x95f   : > { %v17507_v43 = vpop.f32.mrf.mxu1  ;;  %8435 = vmatmul.bf16.gmra.mxu3 %v19312_v44  ;;  %10177 = vmatpush.bf16.msrb.mxu0 %v12762_v59  ;;  %v12733_v44 = vld [vmem:[#allocation3] sm:$0xff]  ;;  %v17526_v9 = vpop.f32.mrf.mxu0 }
 0x960   : > { %19311 = vst [vmem:[#allocation146_spill] sm:$0xff] %v17505_v62  ;;  %10266 = vmatpush.bf16.msrb.mxu1 %v12770_v38  ;;  %10092 = vmatmul.bf16.vlgmr.msra.gmra.mxu2 %v12733_v44  ;;  %v12768_v38 = vld [vmem:[#allocation15 + $0x88] sm:$0xff]  ;;  %v9183_v62 = vshll.u32 %v12733_v44, 16 }
 0x961   : > { %19317 = vst [vmem:[#allocation81_spill] sm:$0xff] %v17526_v9  ;;  %v12782_v9 = vld [vmem:[#allocation15 + $0xf8] sm:$0xff] }
 0x962   : > { %8391 = vmatmul.bf16.gmra.mxu1 %v7099_v32  ;;  %v8120_v21 = vpop.f32.mrf.mxu3  ;;  %v12769_v32 = vld [vmem:[#allocation15 + $0x90] sm:$0xff]  ;;  %10351 = vmatpush.bf16.msrb.mxu3 %v12782_v9 }
 0x963   : > { %v8121_v52 = vadd.f32 %v8120_v21, %v17329_v23  ;;  %10178 = vmatpush.bf16.msrb.mxu0 %v12761_v31  ;;  %v8984_v23 = vld [vmem:[#allocation3 + $0x8] sm:$0x1]  ;;  %v12760_v21 = vld [vmem:[#allocation15 + $0x48] sm:$0xff]  ;;  %v9181_v31 = vshrl.u32 %v12733_v44, 16 }
 0x964   : > { %10267 = vmatpush.bf16.msrb.mxu1 %v12769_v32  ;;  %v9148_v28 = vunpack.c.l.b16 %v8984_v23 }
 0x965   : > { %v17512_v33 = vpop.f32.mrf.mxu2 }
 0x966   : > { %19313 = vst [vmem:[#allocation48_spill] sm:$0xff] %v17512_v33  ;;  %v9164_v36 = vpack.c.b16 %v9148_v28, %v9148_v28 }
 0x967   : > { %v17514_v4 = vpop.f32.mrf.mxu1  ;;  %10179 = vmatpush.bf16.msrb.mxu0 %v12760_v21  ;;  %v17535_v58 = vpop.f32.mrf.mxu0 }
 0x968   : > { %10268 = vmatpush.bf16.msrb.mxu1 %v12768_v38  ;;  %v9389_v38 = vrot.slane %v9164_v36, 1  ;;  %19319 = vst [vmem:[#allocation49_spill] sm:$0xff] %v17535_v58 }
 0x96a   : > { %v8122_v14 = vpop.f32.mrf.mxu3 }
 0x96b   : > { %v17519_v40 = vadd.f32 %v8122_v14, %v17340_v16  ;;  %v12759_v16 = vld [vmem:[#allocation15 + $0x40] sm:$0xff]  ;;  %v9185_v14 = vrot.slane %v9183_v62, 1 }
 0x96c   : > { %10180 = vmatpush.bf16.msrb.mxu0 %v12759_v16 }
 0x96d   : > { %19315 = vst [vmem:[#allocation148_spill] sm:$0xff] %v17519_v40  ;;  %v8209_v50 = vpop.f32.mrf.mxu2  ;;  %v9188_v40 = vshll.u32 %v9164_v36, 16  ;;  %v9186_v23 = vor.u32 %v9185_v14, %v9181_v31  ;;  %v12790_v36 = vld [vmem:[#allocation15 + $0x138] sm:$0xff] }
 0x96e   : > { %v17521_v33 = vadd.f32 %v8209_v50, %v8121_v52  ;;  %v12767_v52 = vld [vmem:[#allocation15 + $0x80] sm:$0xff]  ;;  %10440 = vmatpush.bf16.msrb.mxu2 %v12790_v36 }
 0x96f   : > { %v17523_v59 = vpop.f32.mrf.mxu1  ;;  %8440 = vmatmul.bf16.gmra.mxu3 %v19280_v24  ;;  %v9190_v50 = vrot.slane %v9188_v40, 1  ;;  %10269 = vmatpush.bf16.msrb.mxu1 %v12767_v52  ;;  %v9388_v24 = vrot.slane %v12733_v44, 1  ;;  %v17546_v52 = vpop.f32.mrf.mxu0 }
 0x970   : > { %19316 = vst [vmem:[#allocation50_spill] sm:$0xff] %v17521_v33 }
 0x971   : > { %v9191_v28 = vsel %vm1746_vm2, %v9186_v23, %v9190_v50  ;;  %v9390_v62 = vsel %vm1971_vm3, %v9388_v24, %v9389_v38  ;;  %19322 = vst [vmem:[#allocation87_spill] sm:$0xff] %v17546_v52 }
 0x972   : > { %v8125_v32 = vpop.f32.mrf.mxu3  ;;  %10181 = vmatmul.bf16.vlgmr.msrb.gmra.mxu0 %v9191_v28  ;;  %10270 = vmatmul.bf16.vlgmr.msrb.gmra.mxu1 %v9390_v62 }
 0x973   : > { %v8126_v33 = vadd.f32 %v8125_v32, %v17349_v37 }
 0x975   : > { %v17529_v21 = vpop.f32.mrf.mxu2 }
 0x976   : > { %19318 = vst [vmem:[#allocation97_spill] sm:$0xff] %v17529_v21  ;;  %v8874_v21 = vld [vmem:[#allocation3 + $0x14] sm:$0x1] }
 0x977   : > { %v17532_v49 = vpop.f32.mrf.mxu1  ;;  %v17553_v36 = vpop.f32.mrf.mxu0 }
 0x978   : > { %19325 = vst [vmem:[#allocation100_spill] sm:$0xff] %v17553_v36 }
 0x97a   : > { %v8127_v16 = vpop.f32.mrf.mxu3 }
 0x97b   : > { %v17538_v40 = vadd.f32 %v8127_v16, %v17359_v54 }
 0x97d   : > { %19320 = vst [vmem:[#allocation84_spill] sm:$0xff] %v17538_v40  ;;  %v8214_v37 = vpop.f32.mrf.mxu2 }
 0x97e   : > { %v17540_v31 = vadd.f32 %v8214_v37, %v8126_v33 }
 0x97f   : > { %v17542_v14 = vpop.f32.mrf.mxu1  ;;  %8445 = vmatmul.bf16.gmra.mxu3 %v16883_v60  ;;  %v8870_v60 = vld [vmem:[#allocation3 + $0xc] sm:$0xf] }
 0x980   : > { %19321 = vst [vmem:[#allocation52_spill] sm:$0xff] %v17540_v31 }
 0x982   : > { %v8406_v44 = vpop.f32.mrf.mxu3 }
 0x983   : > { %v8407_v32 = vadd.f32 %v8406_v44, %v17372_v47 }
 0x985   : > { %v8486_v23 = vmax.f32 %v8407_v32, 0.0 }
 0x987   : > { %v17548_v50 = vpop.f32.mrf.mxu1  ;;  %v8518_v54 = vpack.c.bf16 %v8486_v23, %v8486_v23 }
 0x988   : > { %19323 = vst [vmem:[#allocation116_spill] sm:$0xff] %v17548_v50 }
 0x989   : > { %v8551_v28 = vshrl.u32 %v8518_v54, 16  ;;  %v8554_v33 = vshll.u32 %v8518_v54, 16 }
 0x98a   : > { %v8408_v9 = vpop.f32.mrf.mxu3 }
 0x98b   : > { %v8553_v24 = vrot.slane %v8551_v28, 7  ;;  %v8409_v38 = vadd.f32 %v8408_v9, %v17383_v19 }
 0x98d   : > { %v8556_v62 = vor.u32 %v8554_v33, %v8553_v24  ;;  %v8487_v16 = vmax.f32 %v8409_v38, 0.0  ;;  %v8557_v9 = vrot.slane %v8553_v24, 4 }
 0x98f   : > { %v17551_v37 = vpop.f32.mrf.mxu1  ;;  %v8871_v44 = vsel %vm15020_vm1, %v8556_v62, %v8870_v60  ;;  %v8519_v32 = vpack.c.bf16 %v8487_v16, %v8487_v16  ;;  %8450 = vmatmul.bf16.gmra.mxu3 %v16929_v53 }
 0x990   : > { %19324 = vst [vmem:[#allocation150_spill] sm:$0xff] %v17551_v37 }
 0x991   : > { %8872 = vst [vmem:[#allocation3 + $0xc] sm:$0xf] %v8871_v44  ;;  %v8559_v23 = vshrl.u32 %v8519_v32, 16  ;;  %v8562_v54 = vshll.u32 %v8519_v32, 16  ;;  %v17565_v44 = vpop.f32.mrf.mxu0 }
 0x992   : > { %v8411_v40 = vpop.f32.mrf.mxu3  ;;  %19330 = vst [vmem:[#allocation64_spill] sm:$0xff] %v17565_v44 }
 0x993   : > { %v8561_v28 = vrot.slane %v8559_v23, 7  ;;  %v8412_v19 = vadd.f32 %v8411_v40, %v17396_v18  ;;  %v12781_v18 = vld [vmem:[#allocation15 + $0xf0] sm:$0xff] }
 0x994   : > { %10352 = vmatpush.bf16.msrb.mxu3 %v12781_v18 }
 0x995   : > { %v8564_v33 = vor.u32 %v8562_v54, %v8561_v28  ;;  %v8566_v38 = vrot.slane %v8561_v28, 4  ;;  %v8488_v31 = vmax.f32 %v8412_v19, 0.0 }
 0x997   : > { %v17559_v37 = vpop.f32.mrf.mxu1  ;;  %v8565_v62 = vsel %vm13856_vm10, %v8557_v9, %v8564_v33  ;;  %v8875_v53 = vsel %vm15043_vm6, %v8566_v38, %v8874_v21  ;;  %v8520_v60 = vpack.c.bf16 %v8488_v31, %v8488_v31 }
 0x998   : > { %19327 = vst [vmem:[#allocation66_spill] sm:$0xff] %v17559_v37  ;;  %v8877_v37 = vld [vmem:[#allocation3 + $0x18] sm:$0xf] }
 0x999   : > { %8873 = vst [vmem:[#allocation3 + $0x10] sm:$0xf] %v8565_v62  ;;  %v8568_v32 = vshrl.u32 %v8520_v60, 16  ;;  %v8571_v23 = vshll.u32 %v8520_v60, 16  ;;  %v12789_v62 = vld [vmem:[#allocation15 + $0x130] sm:$0xff]  ;;  %v17577_v18 = vpop.f32.mrf.mxu0 }
 0x99a   : > { %8876 = vst [vmem:[#allocation3 + $0x14] sm:$0x1] %v8875_v53  ;;  %v8413_v40 = vpop.f32.mrf.mxu3  ;;  %10441 = vmatpush.bf16.msrb.mxu2 %v12789_v62 }
 0x99b   : > { %v8570_v24 = vrot.slane %v8568_v32, 7  ;;  %v8414_v28 = vadd.f32 %v8413_v40, %v17404_v51  ;;  %19332 = vst [vmem:[#allocation101_spill] sm:$0xff] %v17577_v18 }
 0x99d   : > { %v8573_v54 = vor.u32 %v8571_v23, %v8570_v24  ;;  %v8489_v19 = vmax.f32 %v8414_v28, 0.0  ;;  %v8574_v28 = vrot.slane %v8570_v24, 4 }
 0x99f   : > { %v17568_v9 = vpop.f32.mrf.mxu1  ;;  %v8878_v21 = vsel %vm15020_vm1, %v8573_v54, %v8877_v37  ;;  %v8521_v31 = vpack.c.bf16 %v8489_v19, %v8489_v19  ;;  %8455 = vmatmul.bf16.gmra.mxu3 %v16972_v46 }
 0x9a0   : > { %19331 = vst [vmem:[#allocation152_spill] sm:$0xff] %v17568_v9  ;;  %v17573_v33 = vld [vmem:[#allocation3 + $0xc] sm:$0xff] }
 0x9a1   : > { %8879 = vst [vmem:[#allocation3 + $0x18] sm:$0xf] %v8878_v21  ;;  %v8987_v38 = vld [vmem:[#allocation3 + $0x14] sm:$0x1]  ;;  %v8576_v53 = vshrl.u32 %v8521_v31, 16  ;;  %10097 = vmatmul.bf16.gmra.mxu2 %v17573_v33  ;;  %v9195_v32 = vshll.u32 %v17573_v33, 16 }
 0x9a2   : > { %v9149_v51 = vunpack.c.l.b16 %v8987_v38  ;;  %v8416_v60 = vpop.f32.mrf.mxu3  ;;  %v8579_v37 = vshll.u32 %v8521_v31, 16  ;;  %v9193_v54 = vshrl.u32 %v17573_v33, 16  ;;  %v8881_v38 = vld [vmem:[#allocation3 + $0x20] sm:$0x1]  ;;  %v9391_v62 = vrot.slane %v17573_v33, 1 }
 0x9a3   : > { %v8578_v40 = vrot.slane %v8576_v53, 7  ;;  %v8417_v23 = vadd.f32 %v8416_v60, %v17412_v34  ;;  %v9197_v19 = vrot.slane %v9195_v32, 1 }
 0x9a4   : > { %v9165_v46 = vpack.c.b16 %v9149_v51, %v9149_v51 }
 0x9a5   : > { %v8581_v21 = vor.u32 %v8579_v37, %v8578_v40  ;;  %v8583_v9 = vrot.slane %v8578_v40, 4  ;;  %v8490_v44 = vmax.f32 %v8417_v23, 0.0  ;;  %v9198_v58 = vor.u32 %v9197_v19, %v9193_v54 }
 0x9a6   : > { %v9392_v52 = vrot.slane %v9165_v46, 1  ;;  %v9200_v18 = vshll.u32 %v9165_v46, 16 }
 0x9a7   : > { %v17581_v50 = vpop.f32.mrf.mxu1  ;;  %v8582_v31 = vsel %vm13856_vm10, %v8574_v28, %v8581_v21  ;;  %v8882_v34 = vsel %vm15043_vm6, %v8583_v9, %v8881_v38  ;;  %v8522_v24 = vpack.c.bf16 %v8490_v44, %v8490_v44  ;;  %v17597_v44 = vpop.f32.mrf.mxu0  ;;  %v8884_v28 = vld [vmem:[#allocation3 + $0x24] sm:$0xf] }
 0x9a8   : > { %8880 = vst [vmem:[#allocation3 + $0x1c] sm:$0xf] %v8582_v31  ;;  %v17589_v53 = vsel %vm1971_vm3, %v9391_v62, %v9392_v52  ;;  %v9202_v51 = vrot.slane %v9200_v18, 1 }
 0x9a9   : > { %19333 = vst [vmem:[#allocation132_spill] sm:$0xff] %v17589_v53  ;;  %v8585_v60 = vshrl.u32 %v8522_v24, 16  ;;  %10275 = vmatmul.bf16.gmra.mxu1 %v17589_v53  ;;  %v8588_v23 = vshll.u32 %v8522_v24, 16 }
 0x9aa   : > { %8883 = vst [vmem:[#allocation3 + $0x20] sm:$0x1] %v8882_v34  ;;  %v17593_v32 = vsel %vm1746_vm2, %v9198_v58, %v9202_v51  ;;  %v8418_v40 = vpop.f32.mrf.mxu3 }
 0x9ab   : > { %19334 = vst [vmem:[#allocation70_spill] sm:$0xff] %v17593_v32  ;;  %v8587_v37 = vrot.slane %v8585_v60, 7  ;;  %10186 = vmatmul.bf16.gmra.mxu0 %v17593_v32  ;;  %v8419_v9 = vadd.f32 %v8418_v40, %v17420_v15 }
 0x9ad   : > { %v8590_v46 = vor.u32 %v8588_v23, %v8587_v37  ;;  %v8491_v52 = vmax.f32 %v8419_v9, 0.0  ;;  %v8591_v40 = vrot.slane %v8587_v37, 4 }
 0x9af   : > { %v17599_v18 = vpop.f32.mrf.mxu1  ;;  %v8885_v54 = vsel %vm15020_vm1, %v8590_v46, %v8884_v28  ;;  %v8523_v19 = vpack.c.bf16 %v8491_v52, %v8491_v52  ;;  %8460 = vmatmul.bf16.gmra.mxu3 %v17018_v39  ;;  %v17604_v58 = vld [vmem:[#allocation3 + $0x18] sm:$0xff] }
 0x9b0   : > { %19335 = vst [vmem:[#allocation135_spill] sm:$0xff] %v17599_v18  ;;  %v9207_v31 = vshll.u32 %v17604_v58, 16  ;;  %v9205_v23 = vshrl.u32 %v17604_v58, 16  ;;  %v9394_v53 = vrot.slane %v17604_v58, 1  ;;  %v17611_v18 = vpop.f32.mrf.mxu0 }
 0x9b1   : > { %8886 = vst [vmem:[#allocation3 + $0x24] sm:$0xf] %v8885_v54  ;;  %v8990_v21 = vld [vmem:[#allocation3 + $0x20] sm:$0x1]  ;;  %v8593_v38 = vshrl.u32 %v8523_v19, 16  ;;  %10102 = vmatmul.bf16.gmra.mxu2 %v17604_v58  ;;  %v8596_v24 = vshll.u32 %v8523_v19, 16 }
 0x9b2   : > { %v9150_v15 = vunpack.c.l.b16 %v8990_v21  ;;  %v8421_v62 = vpop.f32.mrf.mxu3  ;;  %v9209_v39 = vrot.slane %v9207_v31, 1  ;;  %v8888_v54 = vld [vmem:[#allocation3 + $0x2c] sm:$0x1] }
 0x9b3   : > { %v8595_v34 = vrot.slane %v8593_v38, 7  ;;  %v8422_v51 = vadd.f32 %v8421_v62, %v17428_v42 }
 0x9b4   : > { %v9166_v60 = vpack.c.b16 %v9150_v15, %v9150_v15  ;;  %v9210_v21 = vor.u32 %v9209_v39, %v9205_v23 }
 0x9b5   : > { %v8598_v9 = vor.u32 %v8596_v24, %v8595_v34  ;;  %v8600_v46 = vrot.slane %v8595_v34, 4  ;;  %v8492_v52 = vmax.f32 %v8422_v51, 0.0  ;;  %v12780_v34 = vld [vmem:[#allocation15 + $0xe8] sm:$0xff] }
 0x9b6   : > { %v9395_v28 = vrot.slane %v9166_v60, 1  ;;  %v9212_v32 = vshll.u32 %v9166_v60, 16  ;;  %10353 = vmatpush.bf16.msrb.mxu3 %v12780_v34 }
 0x9b7   : > { %v8599_v19 = vsel %vm13856_vm10, %v8591_v40, %v8598_v9  ;;  %v8889_v42 = vsel %vm15043_vm6, %v8600_v46, %v8888_v54  ;;  %v8524_v37 = vpack.c.bf16 %v8492_v52, %v8492_v52  ;;  %v17617_v38 = vpop.f32.mrf.mxu1  ;;  %v8891_v9 = vld [vmem:[#allocation3 + $0x30] sm:$0xf]  ;;  %v12788_v54 = vld [vmem:[#allocation15 + $0x128] sm:$0xff] }
 0x9b8   : > { %8887 = vst [vmem:[#allocation3 + $0x28] sm:$0xf] %v8599_v19  ;;  %v17620_v15 = vsel %vm1971_vm3, %v9394_v53, %v9395_v28  ;;  %v9214_v62 = vrot.slane %v9212_v32, 1  ;;  %10442 = vmatpush.bf16.msrb.mxu2 %v12788_v54 }
 0x9b9   : > { %19336 = vst [vmem:[#allocation155_spill] sm:$0xff] %v17620_v15  ;;  %v8602_v31 = vshrl.u32 %v8524_v37, 16  ;;  %10280 = vmatmul.bf16.gmra.mxu1 %v17620_v15  ;;  %v8605_v40 = vshll.u32 %v8524_v37, 16 }
 0x9ba   : > { %8890 = vst [vmem:[#allocation3 + $0x2c] sm:$0x1] %v8889_v42  ;;  %v17624_v24 = vsel %vm1746_vm2, %v9210_v21, %v9214_v62  ;;  %v8423_v51 = vpop.f32.mrf.mxu3  ;;  %v17633_v21 = vpop.f32.mrf.mxu0 }
 0x9bb   : > { %19337 = vst [vmem:[#allocation159_spill] sm:$0xff] %v17624_v24  ;;  %v8604_v60 = vrot.slane %v8602_v31, 7  ;;  %10191 = vmatmul.bf16.gmra.mxu0 %v17624_v24  ;;  %v8424_v23 = vadd.f32 %v8423_v51, %v17438_v41 }
 0x9bc   : > { %19338 = vst [vmem:[#allocation99_spill] sm:$0xff] %v17633_v21 }
 0x9bd   : > { %v8607_v39 = vor.u32 %v8605_v40, %v8604_v60  ;;  %v8493_v53 = vmax.f32 %v8424_v23, 0.0  ;;  %v8608_v40 = vrot.slane %v8604_v60, 4 }
 0x9bf   : > { %v8892_v32 = vsel %vm15020_vm1, %v8607_v39, %v8891_v9  ;;  %v8525_v46 = vpack.c.bf16 %v8493_v53, %v8493_v53  ;;  %8465 = vmatmul.bf16.gmra.mxu3 %v17076_v6  ;;  %v17631_v52 = vld [vmem:[#allocation3 + $0x24] sm:$0xff]  ;;  %v17636_v42 = vpop.f32.mrf.mxu1 }
 0x9c0   : > { %8893 = vst [vmem:[#allocation3 + $0x30] sm:$0xf] %v8892_v32  ;;  %v9219_v62 = vshll.u32 %v17631_v52, 16  ;;  %v9217_v23 = vshrl.u32 %v17631_v52, 16  ;;  %v9397_v24 = vrot.slane %v17631_v52, 1 }
 0x9c1   : > { %v8993_v28 = vld [vmem:[#allocation3 + $0x2c] sm:$0x1]  ;;  %v8610_v19 = vshrl.u32 %v8525_v46, 16  ;;  %10107 = vmatmul.bf16.gmra.mxu2 %v17631_v52  ;;  %19339 = vst [vmem:[#allocation68_spill] sm:$0xff] %v17636_v42  ;;  %v8613_v34 = vshll.u32 %v8525_v46, 16 }
 0x9c2   : > { %v9151_v41 = vunpack.c.l.b16 %v8993_v28  ;;  %v8426_v37 = vpop.f32.mrf.mxu3  ;;  %v9221_v39 = vrot.slane %v9219_v62, 1  ;;  %v8895_v28 = vld [vmem:[#allocation3 + $0x38] sm:$0x1] }
 0x9c3   : > { %v8612_v31 = vrot.slane %v8610_v19, 7  ;;  %v8427_v6 = vadd.f32 %v8426_v37, %v17448_v29 }
 0x9c4   : > { %v9167_v51 = vpack.c.b16 %v9151_v41, %v9151_v41  ;;  %v9222_v42 = vor.u32 %v9221_v39, %v9217_v23  ;;  %v12779_v23 = vld [vmem:[#allocation15 + $0xe0] sm:$0xff]  ;;  %v8254_v39 = vadd.f32 %v17431_v12, %v17346_v26  ;;  %v8167_v26 = vadd.f32 %v17355_v25, %v17344_v56  ;;  %v8902_v56 = vld [vmem:[#allocation3 + $0x44] sm:$0x1] }
 0x9c5   : > { %v8615_v53 = vor.u32 %v8613_v34, %v8612_v31  ;;  %v8617_v9 = vrot.slane %v8612_v31, 4  ;;  %v8494_v32 = vmax.f32 %v8427_v6, 0.0  ;;  %10354 = vmatpush.bf16.msrb.mxu3 %v12779_v23 }
 0x9c6   : > { %v9398_v15 = vrot.slane %v9167_v51, 1  ;;  %v9224_v21 = vshll.u32 %v9167_v51, 16  ;;  %v17655_v51 = vpop.f32.mrf.mxu0 }
 0x9c7   : > { %v8616_v54 = vsel %vm13856_vm10, %v8608_v40, %v8615_v53  ;;  %v8896_v29 = vsel %vm15043_vm6, %v8617_v9, %v8895_v28  ;;  %v8526_v46 = vpack.c.bf16 %v8494_v32, %v8494_v32  ;;  %v17657_v40 = vpop.f32.mrf.mxu1  ;;  %v8343_v32 = vadd.f32 %v17466_v5, %v8254_v39 }
 0x9c8   : > { %8894 = vst [vmem:[#allocation3 + $0x34] sm:$0xf] %v8616_v54  ;;  %v17647_v60 = vsel %vm1971_vm3, %v9397_v24, %v9398_v15  ;;  %v9226_v19 = vrot.slane %v9224_v21, 1  ;;  %v8898_v21 = vld [vmem:[#allocation3 + $0x3c] sm:$0xf] }
 0x9c9   : > { %19340 = vst [vmem:[#allocation160_spill] sm:$0xff] %v17647_v60  ;;  %v8619_v41 = vshrl.u32 %v8526_v46, 16  ;;  %10285 = vmatmul.bf16.gmra.mxu1 %v17647_v60  ;;  %v8622_v34 = vshll.u32 %v8526_v46, 16  ;;  %v12778_v46 = vld [vmem:[#allocation15 + $0xd8] sm:$0xff] }
 0x9ca   : > { %8897 = vst [vmem:[#allocation3 + $0x38] sm:$0x1] %v8896_v29  ;;  %v17651_v37 = vsel %vm1746_vm2, %v9222_v42, %v9226_v19  ;;  %v8428_v62 = vpop.f32.mrf.mxu3  ;;  %10355 = vmatpush.bf16.msrb.mxu3 %v12778_v46 }
 0x9cb   : > { %v8621_v31 = vrot.slane %v8619_v41, 7  ;;  %10196 = vmatmul.bf16.gmra.mxu0 %v17651_v37  ;;  %v8429_v6 = vadd.f32 %v8428_v62, %v17459_v0 }
 0x9cd   : > { %v8624_v15 = vor.u32 %v8622_v34, %v8621_v31  ;;  %v8495_v24 = vmax.f32 %v8429_v6, 0.0  ;;  %v8625_v34 = vrot.slane %v8621_v31, 4  ;;  %v8256_v31 = vadd.f32 %v17440_v30, %v8167_v26 }
 0x9ce   : > { %v17672_v39 = vpop.f32.mrf.mxu0 }
 0x9cf   : > { %v8899_v42 = vsel %vm15020_vm1, %v8624_v15, %v8898_v21  ;;  %v8527_v53 = vpack.c.bf16 %v8495_v24, %v8495_v24  ;;  %8470 = vmatmul.bf16.gmra.mxu3 %v19283_v57  ;;  %v17664_v9 = vld [vmem:[#allocation3 + $0x30] sm:$0xff]  ;;  %v17674_v25 = vpop.f32.mrf.mxu1 }
 0x9d0   : > { %8900 = vst [vmem:[#allocation3 + $0x3c] sm:$0xf] %v8899_v42  ;;  %v9231_v29 = vshll.u32 %v17664_v9, 16  ;;  %v9229_v6 = vshrl.u32 %v17664_v9, 16  ;;  %v9400_v42 = vrot.slane %v17664_v9, 1 }
 0x9d1   : > { %v8996_v0 = vld [vmem:[#allocation3 + $0x38] sm:$0x1]  ;;  %v8627_v28 = vshrl.u32 %v8527_v53, 16  ;;  %10112 = vmatmul.bf16.gmra.mxu2 %v17664_v9  ;;  %v8630_v57 = vshll.u32 %v8527_v53, 16 }
 0x9d2   : > { %v9152_v54 = vunpack.c.l.b16 %v8996_v0  ;;  %v8431_v12 = vpop.f32.mrf.mxu3  ;;  %v9233_v15 = vrot.slane %v9231_v29, 1 }
 0x9d3   : > { %v8629_v19 = vrot.slane %v8627_v28, 7  ;;  %v8432_v41 = vadd.f32 %v8431_v12, %v8343_v32  ;;  %v12777_v32 = vld [vmem:[#allocation15 + $0xd0] sm:$0xff] }
 0x9d4   : > { %v9168_v62 = vpack.c.b16 %v9152_v54, %v9152_v54  ;;  %v9234_v0 = vor.u32 %v9233_v15, %v9229_v6  ;;  %10356 = vmatpush.bf16.msrb.mxu3 %v12777_v32 }
 0x9d5   : > { %v8632_v5 = vor.u32 %v8630_v57, %v8629_v19  ;;  %v8634_v24 = vrot.slane %v8629_v19, 4  ;;  %v8496_v21 = vmax.f32 %v8432_v41, 0.0  ;;  %v8345_v19 = vadd.f32 %v17475_v35, %v8256_v31  ;;  %v12776_v41 = vld [vmem:[#allocation15 + $0xc8] sm:$0xff]  ;;  %v12787_v31 = vld [vmem:[#allocation15 + $0x120] sm:$0xff] }
 0x9d6   : > { %v9401_v23 = vrot.slane %v9168_v62, 1  ;;  %v9236_v53 = vshll.u32 %v9168_v62, 16  ;;  %v8259_v35 = vadd.f32 %v17457_v2, %v17366_v8  ;;  %v8172_v2 = vadd.f32 %v17379_v20, %v17364_v63  ;;  %10443 = vmatpush.bf16.msrb.mxu2 %v12787_v31 }
 0x9d7   : > { %v8633_v28 = vsel %vm13856_vm10, %v8625_v34, %v8632_v5  ;;  %v8903_v54 = vsel %vm15043_vm6, %v8634_v24, %v8902_v56  ;;  %v8528_v12 = vpack.c.bf16 %v8496_v21, %v8496_v21  ;;  %v8905_v24 = vld [vmem:[#allocation3 + $0x48] sm:$0xf]  ;;  %v12775_v21 = vld [vmem:[#allocation15 + $0xc0] sm:$0xff] }
 0x9d8   : > { %8901 = vst [vmem:[#allocation3 + $0x40] sm:$0xf] %v8633_v28  ;;  %v17683_v29 = vsel %vm1971_vm3, %v9400_v42, %v9401_v23  ;;  %v9238_v46 = vrot.slane %v9236_v53, 1  ;;  %10357 = vmatpush.bf16.msrb.mxu3 %v12776_v41  ;;  %v17700_v53 = vpop.f32.mrf.mxu1  ;;  %v8348_v28 = vadd.f32 %v17484_v45, %v8259_v35 }
 0x9d9   : > { %19341 = vst [vmem:[#allocation103_spill] sm:$0xff] %v17683_v29  ;;  %v8636_v57 = vshrl.u32 %v8528_v12, 16  ;;  %10290 = vmatmul.bf16.gmra.mxu1 %v17683_v29  ;;  %v8639_v34 = vshll.u32 %v8528_v12, 16 }
 0x9da   : > { %8904 = vst [vmem:[#allocation3 + $0x44] sm:$0x1] %v8903_v54  ;;  %v17688_v30 = vsel %vm1746_vm2, %v9234_v0, %v9238_v46  ;;  %v8433_v26 = vpop.f32.mrf.mxu3  ;;  %v17698_v0 = vpop.f32.mrf.mxu0 }
 0x9db   : > { %v8638_v62 = vrot.slane %v8636_v57, 7  ;;  %10201 = vmatmul.bf16.gmra.mxu0 %v17688_v30  ;;  %v8434_v6 = vadd.f32 %v8433_v26, %v8345_v19 }
 0x9dc   : > { %10358 = vmatpush.bf16.msrb.mxu3 %v12775_v21  ;;  %v8909_v21 = vld [vmem:[#allocation3 + $0x50] sm:$0x1] }
 0x9dd   : > { %v8641_v15 = vor.u32 %v8639_v34, %v8638_v62  ;;  %v8497_v5 = vmax.f32 %v8434_v6, 0.0  ;;  %v8642_v41 = vrot.slane %v8638_v62, 4 }
 0x9df   : > { %v8906_v23 = vsel %vm15020_vm1, %v8641_v15, %v8905_v24  ;;  %v8529_v56 = vpack.c.bf16 %v8497_v5, %v8497_v5  ;;  %8475 = vmatmul.bf16.gmra.mxu3 %v17387_v11  ;;  %v17696_v42 = vld [vmem:[#allocation3 + $0x3c] sm:$0xff] }
 0x9e0   : > { %8907 = vst [vmem:[#allocation3 + $0x48] sm:$0xf] %v8906_v23  ;;  %v9243_v12 = vshll.u32 %v17696_v42, 16  ;;  %v9241_v34 = vshrl.u32 %v17696_v42, 16  ;;  %v9403_v35 = vrot.slane %v17696_v42, 1  ;;  %v8261_v23 = vadd.f32 %v17468_v48, %v8172_v2 }
 0x9e1   : > { %v8999_v32 = vld [vmem:[#allocation3 + $0x44] sm:$0x1]  ;;  %v8644_v54 = vshrl.u32 %v8529_v56, 16  ;;  %10117 = vmatmul.bf16.gmra.mxu2 %v17696_v42  ;;  %v8647_v19 = vshll.u32 %v8529_v56, 16 }
 0x9e2   : > { %v9153_v8 = vunpack.c.l.b16 %v8999_v32  ;;  %v8436_v11 = vpop.f32.mrf.mxu3  ;;  %v9245_v6 = vrot.slane %v9243_v12, 1  ;;  %v17714_v31 = vpop.f32.mrf.mxu0  ;;  %v8350_v48 = vadd.f32 %v17496_v13, %v8261_v23  ;;  %v8912_v13 = vld [vmem:[#allocation3 + $0x54] sm:$0xf] }
 0x9e3   : > { %v8646_v46 = vrot.slane %v8644_v54, 7  ;;  %v8437_v57 = vadd.f32 %v8436_v11, %v8348_v28  ;;  %v7102_v11 = vrot.slane %v17488_v3, 1  ;;  %v17723_v12 = vpop.f32.mrf.mxu1 }
 0x9e4   : > { %v9169_v26 = vpack.c.b16 %v9153_v8, %v9153_v8  ;;  %v9246_v63 = vor.u32 %v9245_v6, %v9241_v34  ;;  %v7101_v8 = vrot.slane %v17377_v27, 1  ;;  %v8264_v6 = vadd.f32 %v17477_v1, %v17393_v61 }
 0x9e5   : > { %v8649_v45 = vor.u32 %v8647_v19, %v8646_v46  ;;  %v8651_v15 = vrot.slane %v8646_v46, 4  ;;  %v8498_v5 = vmax.f32 %v8437_v57, 0.0  ;;  %v8177_v61 = vadd.f32 %v17401_v17, %v17391_v22 }
 0x9e6   : > { %v9404_v24 = vrot.slane %v9169_v26, 1  ;;  %v9248_v20 = vshll.u32 %v9169_v26, 16  ;;  %v7103_v27 = vsel %vm1971_vm3, %v7101_v8, %v7102_v11 }
 0x9e7   : > { %v8650_v56 = vsel %vm13856_vm10, %v8642_v41, %v8649_v45  ;;  %v8910_v62 = vsel %vm15043_vm6, %v8651_v15, %v8909_v21  ;;  %v8530_v32 = vpack.c.bf16 %v8498_v5, %v8498_v5 }
 0x9e8   : > { %8908 = vst [vmem:[#allocation3 + $0x4c] sm:$0xf] %v8650_v56  ;;  %v17717_v28 = vsel %vm1971_vm3, %v9403_v35, %v9404_v24  ;;  %v9250_v54 = vrot.slane %v9248_v20, 1  ;;  %v17736_v24 = vpop.f32.mrf.mxu2  ;;  %v8353_v35 = vadd.f32 %v17507_v43, %v8264_v6 }
 0x9e9   : > { %19342 = vst [vmem:[#allocation73_spill] sm:$0xff] %v17717_v28  ;;  %v8653_v2 = vshrl.u32 %v8530_v32, 16  ;;  %10295 = vmatmul.bf16.gmra.mxu1 %v17717_v28  ;;  %v8656_v26 = vshll.u32 %v8530_v32, 16 }
 0x9ea   : > { %8911 = vst [vmem:[#allocation3 + $0x50] sm:$0x1] %v8910_v62  ;;  %v17726_v46 = vsel %vm1746_vm2, %v9246_v63, %v9250_v54  ;;  %v8438_v19 = vpop.f32.mrf.mxu3  ;;  %v17742_v1 = vpop.f32.mrf.mxu0 }
 0x9eb   : > { %v8655_v57 = vrot.slane %v8653_v2, 7  ;;  %10206 = vmatmul.bf16.gmra.mxu0 %v17726_v46  ;;  %v8439_v41 = vadd.f32 %v8438_v19, %v8350_v48  ;;  %v17745_v48 = vpop.f32.mrf.mxu1 }
 0x9ed   : > { %v8658_v3 = vor.u32 %v8656_v26, %v8655_v57  ;;  %v8499_v34 = vmax.f32 %v8439_v41, 0.0  ;;  %v8659_v11 = vrot.slane %v8655_v57, 4 }
 0x9ef   : > { %v8913_v45 = vsel %vm15020_vm1, %v8658_v3, %v8912_v13  ;;  %v8531_v15 = vpack.c.bf16 %v8499_v34, %v8499_v34  ;;  %8480 = vmatmul.bf16.gmra.mxu3 %v7103_v27  ;;  %v17734_v5 = vld [vmem:[#allocation3 + $0x48] sm:$0xff]  ;;  %v8266_v27 = vadd.f32 %v17491_v7, %v8177_v61  ;;  %v8916_v3 = vld [vmem:[#allocation3 + $0x5c] sm:$0x1] }
 0x9f0   : > { %8914 = vst [vmem:[#allocation3 + $0x54] sm:$0xf] %v8913_v45  ;;  %v9255_v56 = vshll.u32 %v17734_v5, 16  ;;  %v9406_v43 = vrot.slane %v17734_v5, 1  ;;  %v9253_v2 = vshrl.u32 %v17734_v5, 16 }
 0x9f1   : > { %v9002_v21 = vld [vmem:[#allocation3 + $0x50] sm:$0x1]  ;;  %v8661_v63 = vshrl.u32 %v8531_v15, 16  ;;  %10122 = vmatmul.bf16.gmra.mxu2 %v17734_v5  ;;  %v8664_v32 = vshll.u32 %v8531_v15, 16 }
 0x9f2   : > { %v9154_v20 = vunpack.c.l.b16 %v9002_v21  ;;  %v8441_v23 = vpop.f32.mrf.mxu3  ;;  %v9257_v19 = vrot.slane %v9255_v56, 1  ;;  %v17760_v21 = vld [vmem:[%s18564_s11] ss:$0 sm:$0xff] }
 0x9f3   : > { %v8663_v62 = vrot.slane %v8661_v63, 7  ;;  %v8442_v54 = vadd.f32 %v8441_v23, %v8353_v35  ;;  %v10093_v35 = vpop.f32.mrf.mxu2  ;;  %v8355_v63 = vadd.f32 %v17514_v4, %v8266_v27 }
 0x9f4   : > { %v9170_v8 = vpack.c.b16 %v9154_v20, %v9154_v20  ;;  %v9258_v34 = vor.u32 %v9257_v19, %v9253_v2  ;;  %v10094_v61 = vadd.f32 %v17760_v21, %v10093_v35 }
 0x9f5   : > { %v8666_v26 = vor.u32 %v8664_v32, %v8663_v62  ;;  %v8668_v41 = vrot.slane %v8663_v62, 4  ;;  %v8500_v22 = vmax.f32 %v8442_v54, 0.0  ;;  %v10182_v62 = vpop.f32.mrf.mxu0 }
 0x9f6   : > { %v9407_v17 = vrot.slane %v9170_v8, 1  ;;  %v9260_v13 = vshll.u32 %v9170_v8, 16 }
 0x9f7   : > { %v8667_v6 = vsel %vm13856_vm10, %v8659_v11, %v8666_v26  ;;  %v8917_v57 = vsel %vm15043_vm6, %v8668_v41, %v8916_v3  ;;  %v8532_v45 = vpack.c.bf16 %v8500_v22, %v8500_v22  ;;  %v10183_v11 = vadd.f32 %v10182_v62, %v10094_v61  ;;  %v8919_v26 = vld [vmem:[#allocation3 + $0x60] sm:$0xf] }
 0x9f8   : > { %v17755_v15 = vsel %vm1971_vm3, %v9406_v43, %v9407_v17  ;;  %8915 = vst [vmem:[#allocation3 + $0x58] sm:$0xf] %v8667_v6  ;;  %v9262_v7 = vrot.slane %v9260_v13, 1  ;;  %v10271_v43 = vpop.f32.mrf.mxu1  ;;  %v8269_v41 = vadd.f32 %v17503_v10, %v17409_v55 }
 0x9f9   : > { %19343 = vst [vmem:[#allocation104_spill] sm:$0xff] %v17755_v15  ;;  %v8670_v20 = vshrl.u32 %v8532_v45, 16  ;;  %10300 = vmatmul.bf16.gmra.mxu1 %v17755_v15  ;;  %v8673_v54 = vshll.u32 %v8532_v45, 16  ;;  %v17769_v19 = vadd.f32 %v10271_v43, %v10183_v11  ;;  %v19344_v45 = vld [vmem:[#allocation67_spill] sm:$0xff] }
 0x9fa   : > { %8918 = vst [vmem:[#allocation3 + $0x5c] sm:$0x1] %v8917_v57  ;;  %v17766_v23 = vsel %vm1746_vm2, %v9258_v34, %v9262_v7  ;;  %v8443_v56 = vpop.f32.mrf.mxu3  ;;  %v12786_v34 = vld [vmem:[#allocation15 + $0x118] sm:$0xff]  ;;  %v8358_v13 = vadd.f32 %v17523_v59, %v8269_v41  ;;  %v19345_v7 = vld [vmem:[#allocation120_spill] sm:$0xff]  ;;  %v8923_v41 = vld [vmem:[#allocation3 + $0x68] sm:$0x1] }
 0x9fb   : > { %v8672_v32 = vrot.slane %v8670_v20, 7  ;;  %10211 = vmatmul.bf16.gmra.mxu0 %v17766_v23  ;;  %v8444_v8 = vadd.f32 %v8443_v56, %v8355_v63  ;;  %v8182_v55 = vadd.f32 %v19345_v7, %v19344_v45  ;;  %10444 = vmatpush.bf16.msrb.mxu2 %v12786_v34 }
 0x9fd   : > { %v8675_v2 = vor.u32 %v8673_v54, %v8672_v32  ;;  %v8501_v4 = vmax.f32 %v8444_v8, 0.0  ;;  %v8676_v56 = vrot.slane %v8672_v32, 4 }
 0x9ff   : > { %v8920_v22 = vsel %vm15020_vm1, %v8675_v2, %v8919_v26  ;;  %v8533_v17 = vpack.c.bf16 %v8501_v4, %v8501_v4  ;;  %10359 = vmatmul.bf16.vlgmr.msrb.gmra.mxu3 %v17573_v33  ;;  %v17776_v27 = vld [vmem:[#allocation3 + $0x54] sm:$0xff] }
 0xa00   : > { %8921 = vst [vmem:[#allocation3 + $0x60] sm:$0xf] %v8920_v22  ;;  %v9267_v35 = vshll.u32 %v17776_v27, 16  ;;  %v9409_v62 = vrot.slane %v17776_v27, 1  ;;  %v9265_v59 = vshrl.u32 %v17776_v27, 16  ;;  %v19346_v4 = vld [vmem:[#allocation78_spill] sm:$0xff] }
 0xa01   : > { %v9005_v3 = vld [vmem:[#allocation3 + $0x5c] sm:$0x1]  ;;  %v8678_v6 = vshrl.u32 %v8533_v17, 16  ;;  %10127 = vmatmul.bf16.gmra.mxu2 %v17776_v27  ;;  %v8681_v33 = vshll.u32 %v8533_v17, 16  ;;  %v8271_v26 = vadd.f32 %v19346_v4, %v8182_v55 }
 0xa02   : > { %v9155_v57 = vunpack.c.l.b16 %v9005_v3  ;;  %v8446_v10 = vpop.f32.mrf.mxu3  ;;  %v9269_v54 = vrot.slane %v9267_v35, 1 }
 0xa03   : > { %v8680_v63 = vrot.slane %v8678_v6, 7  ;;  %v8447_v20 = vadd.f32 %v8446_v10, %v8358_v13 }
 0xa04   : > { %v9171_v61 = vpack.c.b16 %v9155_v57, %v9155_v57  ;;  %v9270_v22 = vor.u32 %v9269_v54, %v9265_v59  ;;  %v8360_v57 = vadd.f32 %v17532_v49, %v8271_v26  ;;  %v19350_v26 = vld [vmem:[#allocation141_spill] sm:$0xff] }
 0xa05   : > { %v8683_v8 = vor.u32 %v8681_v33, %v8680_v63  ;;  %v8685_v11 = vrot.slane %v8680_v63, 4  ;;  %v8502_v43 = vmax.f32 %v8447_v20, 0.0 }
 0xa06   : > { %v9410_v2 = vrot.slane %v9171_v61, 1  ;;  %v9272_v3 = vshll.u32 %v9171_v61, 16  ;;  %v8926_v61 = vld [vmem:[#allocation3 + $0x6c] sm:$0xf] }
 0xa07   : > { %v8684_v17 = vsel %vm13856_vm10, %v8676_v56, %v8683_v8  ;;  %v8924_v32 = vsel %vm15043_vm6, %v8685_v11, %v8923_v41  ;;  %v8534_v34 = vpack.c.bf16 %v8502_v43, %v8502_v43  ;;  %v19348_v56 = vld [vmem:[#allocation45_spill] sm:$0xff] }
 0xa08   : > { %v17791_v13 = vsel %vm1971_vm3, %v9409_v62, %v9410_v2  ;;  %8922 = vst [vmem:[#allocation3 + $0x64] sm:$0xf] %v8684_v17  ;;  %v9274_v6 = vrot.slane %v9272_v3, 1  ;;  %v19349_v62 = vld [vmem:[#allocation81_spill] sm:$0xff] }
 0xa09   : > { %19347 = vst [vmem:[#allocation114_spill] sm:$0xff] %v17791_v13  ;;  %v8687_v45 = vshrl.u32 %v8534_v34, 16  ;;  %10305 = vmatmul.bf16.gmra.mxu1 %v17791_v13  ;;  %v8690_v35 = vshll.u32 %v8534_v34, 16  ;;  %v8274_v59 = vadd.f32 %v19349_v62, %v19348_v56  ;;  %v19351_v41 = vld [vmem:[#allocation69_spill] sm:$0xff]  ;;  %v8930_v62 = vld [vmem:[#allocation3 + $0x74] sm:$0x1] }
 0xa0a   : > { %8925 = vst [vmem:[#allocation3 + $0x68] sm:$0x1] %v8924_v32  ;;  %v17796_v7 = vsel %vm1746_vm2, %v9270_v22, %v9274_v6  ;;  %v8448_v55 = vpop.f32.mrf.mxu3  ;;  %v8187_v22 = vadd.f32 %v19351_v41, %v19350_v26 }
 0xa0b   : > { %v8689_v10 = vrot.slane %v8687_v45, 7  ;;  %10216 = vmatmul.bf16.gmra.mxu0 %v17796_v7  ;;  %v8449_v63 = vadd.f32 %v8448_v55, %v8360_v57  ;;  %v8363_v43 = vadd.f32 %v17542_v14, %v8274_v59 }
 0xa0d   : > { %v8692_v33 = vor.u32 %v8690_v35, %v8689_v10  ;;  %v8503_v20 = vmax.f32 %v8449_v63, 0.0  ;;  %v8693_v57 = vrot.slane %v8689_v10, 4 }
 0xa0f   : > { %v8927_v49 = vsel %vm15020_vm1, %v8692_v33, %v8926_v61  ;;  %v8535_v54 = vpack.c.bf16 %v8503_v20, %v8503_v20  ;;  %10364 = vmatmul.bf16.gmra.mxu3 %v17604_v58  ;;  %v17804_v8 = vld [vmem:[#allocation3 + $0x60] sm:$0xff]  ;;  %v19352_v61 = vld [vmem:[#allocation49_spill] sm:$0xff] }
 0xa10   : > { %8928 = vst [vmem:[#allocation3 + $0x6c] sm:$0xf] %v8927_v49  ;;  %v9279_v17 = vshll.u32 %v17804_v8, 16  ;;  %v9412_v45 = vrot.slane %v17804_v8, 1  ;;  %v9277_v55 = vshrl.u32 %v17804_v8, 16  ;;  %v8276_v56 = vadd.f32 %v19352_v61, %v8187_v22 }
 0xa11   : > { %v9008_v11 = vld [vmem:[#allocation3 + $0x68] sm:$0x1]  ;;  %v8695_v2 = vshrl.u32 %v8535_v54, 16  ;;  %10132 = vmatmul.bf16.gmra.mxu2 %v17804_v8  ;;  %v8698_v34 = vshll.u32 %v8535_v54, 16 }
 0xa12   : > { %v9156_v4 = vunpack.c.l.b16 %v9008_v11  ;;  %v8451_v3 = vpop.f32.mrf.mxu3  ;;  %v9281_v14 = vrot.slane %v9279_v17, 1 }
 0xa13   : > { %v8697_v32 = vrot.slane %v8695_v2, 7  ;;  %v8452_v6 = vadd.f32 %v8451_v3, %v8363_v43 }
 0xa14   : > { %v9172_v58 = vpack.c.b16 %v9156_v4, %v9156_v4  ;;  %v9282_v59 = vor.u32 %v9281_v14, %v9277_v55  ;;  %v19354_v4 = vld [vmem:[#allocation116_spill] sm:$0xff]  ;;  %v17829_v55 = vpop.f32.mrf.mxu1  ;;  %v19357_v14 = vld [vmem:[#allocation142_spill] sm:$0xff] }
 0xa15   : > { %v8700_v35 = vor.u32 %v8698_v34, %v8697_v32  ;;  %v8702_v63 = vrot.slane %v8697_v32, 4  ;;  %v8504_v33 = vmax.f32 %v8452_v6, 0.0  ;;  %v8365_v26 = vadd.f32 %v19354_v4, %v8276_v56  ;;  %v17827_v6 = vpop.f32.mrf.mxu2  ;;  %19356 = vst [vmem:[#allocation115_spill] sm:$0xff] %v17829_v55  ;;  %v17838_v56 = vpop.f32.mrf.mxu0  ;;  %v19362_v4 = vld [vmem:[#allocation36_spill] sm:$0xff] }
 0xa16   : > { %v9413_v20 = vrot.slane %v9172_v58, 1  ;;  %v9284_v49 = vshll.u32 %v9172_v58, 16  ;;  %19355 = vst [vmem:[#allocation161_spill] sm:$0xff] %v17827_v6  ;;  %v8937_v55 = vld [vmem:[#allocation3 + $0x80] sm:$0x1] }
 0xa17   : > { %v8701_v54 = vsel %vm13856_vm10, %v8693_v57, %v8700_v35  ;;  %v8931_v10 = vsel %vm15043_vm6, %v8702_v63, %v8930_v62  ;;  %v8536_v11 = vpack.c.bf16 %v8504_v33, %v8504_v33  ;;  %v19358_v35 = vld [vmem:[#allocation87_spill] sm:$0xff]  ;;  %19359 = vst [vmem:[#allocation28_spill] sm:$0xff] %v17838_v56 }
 0xa18   : > { %v17819_v43 = vsel %vm1971_vm3, %v9412_v45, %v9413_v20  ;;  %8929 = vst [vmem:[#allocation3 + $0x70] sm:$0xf] %v8701_v54  ;;  %v9286_v2 = vrot.slane %v9284_v49, 1  ;;  %v8933_v45 = vld [vmem:[#allocation3 + $0x78] sm:$0xf]  ;;  %v8279_v63 = vadd.f32 %v19358_v35, %v19357_v14  ;;  %v19360_v49 = vld [vmem:[#allocation150_spill] sm:$0xff] }
 0xa19   : > { %19353 = vst [vmem:[#allocation76_spill] sm:$0xff] %v17819_v43  ;;  %v8704_v41 = vshrl.u32 %v8536_v11, 16  ;;  %10310 = vmatmul.bf16.gmra.mxu1 %v17819_v43  ;;  %v8707_v32 = vshll.u32 %v8536_v11, 16 }
 0xa1a   : > { %8932 = vst [vmem:[#allocation3 + $0x74] sm:$0x1] %v8931_v10  ;;  %v17824_v22 = vsel %vm1746_vm2, %v9282_v59, %v9286_v2  ;;  %v8453_v3 = vpop.f32.mrf.mxu3  ;;  %v12785_v59 = vld [vmem:[#allocation15 + $0x110] sm:$0xff]  ;;  %v8368_v54 = vadd.f32 %v19360_v49, %v8279_v63  ;;  %v19361_v2 = vld [vmem:[#allocation131_spill] sm:$0xff] }
 0xa1b   : > { %v8706_v17 = vrot.slane %v8704_v41, 7  ;;  %10221 = vmatmul.bf16.gmra.mxu0 %v17824_v22  ;;  %v8454_v34 = vadd.f32 %v8453_v3, %v8365_v26  ;;  %v8192_v26 = vadd.f32 %v19362_v4, %v19361_v2  ;;  %10445 = vmatpush.bf16.msrb.mxu2 %v12785_v59 }
 0xa1d   : > { %v8709_v58 = vor.u32 %v8707_v32, %v8706_v17  ;;  %v8505_v57 = vmax.f32 %v8454_v34, 0.0 }
 0xa1f   : > { %v8934_v33 = vsel %vm15020_vm1, %v8709_v58, %v8933_v45  ;;  %v8537_v20 = vpack.c.bf16 %v8505_v57, %v8505_v57  ;;  %10369 = vmatmul.bf16.gmra.mxu3 %v17631_v52  ;;  %v17836_v61 = vld [vmem:[#allocation3 + $0x6c] sm:$0xff]  ;;  %v8710_v57 = vrot.slane %v8706_v17, 4 }
 0xa20   : > { %8935 = vst [vmem:[#allocation3 + $0x78] sm:$0xf] %v8934_v33  ;;  %v9291_v3 = vshll.u32 %v17836_v61, 16  ;;  %v9289_v14 = vshrl.u32 %v17836_v61, 16  ;;  %v9415_v4 = vrot.slane %v17836_v61, 1 }
 0xa21   : > { %v9011_v62 = vld [vmem:[#allocation3 + $0x74] sm:$0x1]  ;;  %v8712_v10 = vshrl.u32 %v8537_v20, 16  ;;  %10137 = vmatmul.bf16.gmra.mxu2 %v17836_v61  ;;  %v8715_v32 = vshll.u32 %v8537_v20, 16  ;;  %v19363_v20 = vld [vmem:[#allocation100_spill] sm:$0xff] }
 0xa22   : > { %v9157_v11 = vunpack.c.l.b16 %v9011_v62  ;;  %v8456_v41 = vpop.f32.mrf.mxu3  ;;  %v9293_v35 = vrot.slane %v9291_v3, 1 }
 0xa23   : > { %v8714_v52 = vrot.slane %v8712_v10, 7  ;;  %v8457_v34 = vadd.f32 %v8456_v41, %v8368_v54  ;;  %v8281_v54 = vadd.f32 %v19363_v20, %v8192_v26  ;;  %v8940_v20 = vld [vmem:[#allocation3 + $0x84] sm:$0xf] }
 0xa24   : > { %v9173_v58 = vpack.c.b16 %v9157_v11, %v9157_v11  ;;  %v10098_v45 = vpop.f32.mrf.mxu2  ;;  %v9294_v59 = vor.u32 %v9293_v35, %v9289_v14 }
 0xa25   : > { %v8717_v63 = vor.u32 %v8715_v32, %v8714_v52  ;;  %v8719_v33 = vrot.slane %v8714_v52, 4  ;;  %v8506_v49 = vmax.f32 %v8457_v34, 0.0  ;;  %v10099_v62 = vadd.f32 %v17760_v21, %v10098_v45  ;;  %v19365_v34 = vld [vmem:[#allocation66_spill] sm:$0xff] }
 0xa26   : > { %v10276_v2 = vpop.f32.mrf.mxu1  ;;  %v9416_v56 = vrot.slane %v9173_v58, 1  ;;  %v9296_v10 = vshll.u32 %v9173_v58, 16  ;;  %v8370_v45 = vadd.f32 %v19365_v34, %v8281_v54  ;;  %v19367_v54 = vld [vmem:[#allocation143_spill] sm:$0xff]  ;;  %v19369_v34 = vld [vmem:[#allocation152_spill] sm:$0xff] }
 0xa27   : > { %v8718_v17 = vsel %vm13856_vm10, %v8710_v57, %v8717_v63  ;;  %v8938_v11 = vsel %vm15043_vm6, %v8719_v33, %v8937_v55  ;;  %v8538_v41 = vpack.c.bf16 %v8506_v49, %v8506_v49 }
 0xa28   : > { %8936 = vst [vmem:[#allocation3 + $0x7c] sm:$0xf] %v8718_v17  ;;  %v10187_v3 = vpop.f32.mrf.mxu0  ;;  %v17854_v52 = vsel %vm1971_vm3, %v9415_v4, %v9416_v56  ;;  %v9298_v32 = vrot.slane %v9296_v10, 1  ;;  %v19368_v17 = vld [vmem:[#allocation64_spill] sm:$0xff] }
 0xa29   : > { %19364 = vst [vmem:[#allocation106_spill] sm:$0xff] %v17854_v52  ;;  %v8721_v14 = vshrl.u32 %v8538_v41, 16  ;;  %v10188_v58 = vadd.f32 %v10187_v3, %v10099_v62  ;;  %10315 = vmatmul.bf16.gmra.mxu1 %v17854_v52  ;;  %v8724_v55 = vshll.u32 %v8538_v41, 16 }
 0xa2a   : > { %8939 = vst [vmem:[#allocation3 + $0x80] sm:$0x1] %v8938_v11  ;;  %v17859_v26 = vsel %vm1746_vm2, %v9294_v59, %v9298_v32  ;;  %v8458_v57 = vpop.f32.mrf.mxu3  ;;  %v8284_v11 = vadd.f32 %v19368_v17, %v19367_v54 }
 0xa2b   : > { %19366 = vst [vmem:[#allocation79_spill] sm:$0xff] %v17859_v26  ;;  %v8723_v35 = vrot.slane %v8721_v14, 7  ;;  %10226 = vmatmul.bf16.gmra.mxu0 %v17859_v26  ;;  %v8459_v63 = vadd.f32 %v8458_v57, %v8370_v45  ;;  %v17862_v33 = vadd.f32 %v10276_v2, %v10188_v58 }
 0xa2c   : > { %v10100_v56 = vpop.f32.mrf.mxu2  ;;  %v8373_v45 = vadd.f32 %v19369_v34, %v8284_v11 }
 0xa2d   : > { %v8726_v49 = vor.u32 %v8724_v55, %v8723_v35  ;;  %v8507_v4 = vmax.f32 %v8459_v63, 0.0  ;;  %v10101_v10 = vadd.f32 %v17760_v21, %v10100_v56  ;;  %v19370_v55 = vld [vmem:[#allocation71_spill] sm:$0xff]  ;;  %v19371_v63 = vld [vmem:[#allocation144_spill] sm:$0xff]  ;;  %v8727_v52 = vrot.slane %v8723_v35, 4 }
 0xa2e   : > { %v10278_v62 = vpop.f32.mrf.mxu1  ;;  %v8197_v56 = vadd.f32 %v19371_v63, %v19370_v55  ;;  %v8944_v55 = vld [vmem:[#allocation3 + $0x8c] sm:$0x1] }
 0xa2f   : > { %v8941_v59 = vsel %vm15020_vm1, %v8726_v49, %v8940_v20  ;;  %v8539_v3 = vpack.c.bf16 %v8507_v4, %v8507_v4  ;;  %10374 = vmatmul.bf16.gmra.mxu3 %v17664_v9  ;;  %v17870_v41 = vld [vmem:[#allocation3 + $0x78] sm:$0xff] }
 0xa30   : > { %8942 = vst [vmem:[#allocation3 + $0x84] sm:$0xf] %v8941_v59  ;;  %v10189_v2 = vpop.f32.mrf.mxu0  ;;  %v9303_v4 = vshll.u32 %v17870_v41, 16  ;;  %v9301_v11 = vshrl.u32 %v17870_v41, 16  ;;  %v9418_v63 = vrot.slane %v17870_v41, 1 }
 0xa31   : > { %v9014_v32 = vld [vmem:[#allocation3 + $0x80] sm:$0x1]  ;;  %v8729_v14 = vshrl.u32 %v8539_v3, 16  ;;  %v10190_v58 = vadd.f32 %v10189_v2, %v10101_v10  ;;  %10142 = vmatmul.bf16.gmra.mxu2 %v17870_v41  ;;  %v8732_v54 = vshll.u32 %v8539_v3, 16 }
 0xa32   : > { %v9158_v57 = vunpack.c.l.b16 %v9014_v32  ;;  %v8461_v49 = vpop.f32.mrf.mxu3  ;;  %v9305_v10 = vrot.slane %v9303_v4, 1 }
 0xa33   : > { %v8731_v9 = vrot.slane %v8729_v14, 7  ;;  %v8462_v20 = vadd.f32 %v8461_v49, %v8373_v45  ;;  %v17877_v59 = vadd.f32 %v10278_v62, %v10190_v58 }
 0xa34   : > { %v9174_v17 = vpack.c.b16 %v9158_v57, %v9158_v57  ;;  %v10103_v26 = vpop.f32.mrf.mxu2  ;;  %v9306_v14 = vor.u32 %v9305_v10, %v9301_v11  ;;  %v19372_v57 = vld [vmem:[#allocation101_spill] sm:$0xff] }
 0xa35   : > { %v8734_v2 = vor.u32 %v8732_v54, %v8731_v9  ;;  %v8736_v34 = vrot.slane %v8731_v9, 4  ;;  %v8508_v32 = vmax.f32 %v8462_v20, 0.0  ;;  %v10104_v6 = vadd.f32 %v17760_v21, %v10103_v26 }
 0xa36   : > { %v10281_v3 = vpop.f32.mrf.mxu1  ;;  %v9419_v43 = vrot.slane %v9174_v17, 1  ;;  %v9308_v45 = vshll.u32 %v9174_v17, 16  ;;  %v8286_v62 = vadd.f32 %v19372_v57, %v8197_v56 }
 0xa37   : > { %v8735_v35 = vsel %vm13856_vm10, %v8727_v52, %v8734_v2  ;;  %v8945_v58 = vsel %vm15043_vm6, %v8736_v34, %v8944_v55  ;;  %v8540_v54 = vpack.c.bf16 %v8508_v32, %v8508_v32 }
 0xa38   : > { %8943 = vst [vmem:[#allocation3 + $0x88] sm:$0xf] %v8735_v35  ;;  %v10192_v49 = vpop.f32.mrf.mxu0  ;;  %v17888_v26 = vsel %vm1971_vm3, %v9418_v63, %v9419_v43  ;;  %v9310_v4 = vrot.slane %v9308_v45, 1  ;;  %v8375_v9 = vadd.f32 %v17581_v50, %v8286_v62  ;;  %v8947_v63 = vld [vmem:[#allocation3 + $0x90] sm:$0xf]  ;;  %v19375_v45 = vld [vmem:[#allocation75_spill] sm:$0xff] }
 0xa39   : > { %19373 = vst [vmem:[#allocation107_spill] sm:$0xff] %v17888_v26  ;;  %v8738_v20 = vshrl.u32 %v8540_v54, 16  ;;  %v10193_v17 = vadd.f32 %v10192_v49, %v10104_v6  ;;  %10320 = vmatmul.bf16.gmra.mxu1 %v17888_v26  ;;  %v8741_v10 = vshll.u32 %v8540_v54, 16  ;;  %v8289_v57 = vadd.f32 %v17597_v44, %v19375_v45  ;;  %v12784_v54 = vld [vmem:[#allocation15 + $0x108] sm:$0xff]  ;;  %v19376_v49 = vld [vmem:[#allocation135_spill] sm:$0xff] }
 0xa3a   : > { %8946 = vst [vmem:[#allocation3 + $0x8c] sm:$0x1] %v8945_v58  ;;  %v17893_v56 = vsel %vm1746_vm2, %v9306_v14, %v9310_v4  ;;  %v8463_v52 = vpop.f32.mrf.mxu3  ;;  %v19377_v44 = vld [vmem:[#allocation47_spill] sm:$0xff]  ;;  %10446 = vmatpush.bf16.msrb.mxu2 %v12784_v54 }
 0xa3b   : > { %19374 = vst [vmem:[#allocation82_spill] sm:$0xff] %v17893_v56  ;;  %v8740_v11 = vrot.slane %v8738_v20, 7  ;;  %10231 = vmatmul.bf16.gmra.mxu0 %v17893_v56  ;;  %v8464_v2 = vadd.f32 %v8463_v52, %v8375_v9  ;;  %v17896_v34 = vadd.f32 %v10281_v3, %v10193_v17  ;;  %v8378_v4 = vadd.f32 %v19376_v49, %v8289_v57  ;;  %v19378_v52 = vld [vmem:[#allocation145_spill] sm:$0xff] }
 0xa3c   : > { %v10105_v43 = vpop.f32.mrf.mxu2 }
 0xa3d   : > { %v8743_v32 = vor.u32 %v8741_v10, %v8740_v11  ;;  %v8509_v55 = vmax.f32 %v8464_v2, 0.0  ;;  %v10106_v50 = vadd.f32 %v17760_v21, %v10105_v43  ;;  %v8202_v10 = vadd.f32 %v19378_v52, %v19377_v44 }
 0xa3e   : > { %v10283_v6 = vpop.f32.mrf.mxu1 }
 0xa3f   : > { %v8948_v14 = vsel %vm15020_vm1, %v8743_v32, %v8947_v63  ;;  %v8541_v62 = vpack.c.bf16 %v8509_v55, %v8509_v55  ;;  %10379 = vmatmul.bf16.gmra.mxu3 %v17696_v42  ;;  %v17904_v35 = vld [vmem:[#allocation3 + $0x84] sm:$0xff] }
 0xa40   : > { %8949 = vst [vmem:[#allocation3 + $0x90] sm:$0xf] %v8948_v14  ;;  %v10194_v3 = vpop.f32.mrf.mxu0  ;;  %v9315_v42 = vshll.u32 %v17904_v35, 16  ;;  %v8744_v14 = vrot.slane %v8740_v11, 4  ;;  %v9421_v56 = vrot.slane %v17904_v35, 1 }
 0xa41   : > { %v9017_v58 = vld [vmem:[#allocation3 + $0x8c] sm:$0x1]  ;;  %v8746_v9 = vshrl.u32 %v8541_v62, 16  ;;  %v10195_v20 = vadd.f32 %v10194_v3, %v10106_v50  ;;  %10147 = vmatmul.bf16.gmra.mxu2 %v17904_v35  ;;  %v8749_v2 = vshll.u32 %v8541_v62, 16  ;;  %v9313_v50 = vshrl.u32 %v17904_v35, 16 }
 0xa42   : > { %v9159_v17 = vunpack.c.l.b16 %v9017_v58  ;;  %v8466_v43 = vpop.f32.mrf.mxu3  ;;  %v9317_v3 = vrot.slane %v9315_v42, 1  ;;  %v8951_v62 = vld [vmem:[#allocation3 + $0x98] sm:$0x1] }
 0xa43   : > { %v8748_v32 = vrot.slane %v8746_v9, 7  ;;  %v8467_v55 = vadd.f32 %v8466_v43, %v8378_v4  ;;  %v17911_v45 = vadd.f32 %v10283_v6, %v10195_v20  ;;  %v8291_v6 = vadd.f32 %v17611_v18, %v8202_v10 }
 0xa44   : > { %v9175_v63 = vpack.c.b16 %v9159_v17, %v9159_v17  ;;  %v10108_v57 = vpop.f32.mrf.mxu2  ;;  %v9318_v9 = vor.u32 %v9317_v3, %v9313_v50 }
 0xa45   : > { %v8751_v49 = vor.u32 %v8749_v2, %v8748_v32  ;;  %v8753_v58 = vrot.slane %v8748_v32, 4  ;;  %v8510_v26 = vmax.f32 %v8467_v55, 0.0  ;;  %v10109_v44 = vadd.f32 %v17760_v21, %v10108_v57 }
 0xa46   : > { %v10286_v52 = vpop.f32.mrf.mxu1  ;;  %v9422_v54 = vrot.slane %v9175_v63, 1  ;;  %v9320_v4 = vshll.u32 %v9175_v63, 16  ;;  %v8380_v32 = vadd.f32 %v17617_v38, %v8291_v6 }
 0xa47   : > { %v8752_v11 = vsel %vm13856_vm10, %v8744_v14, %v8751_v49  ;;  %v8952_v20 = vsel %vm15043_vm6, %v8753_v58, %v8951_v62  ;;  %v8542_v17 = vpack.c.bf16 %v8510_v26, %v8510_v26  ;;  %v8954_v58 = vld [vmem:[#allocation3 + $0x9c] sm:$0xf]  ;;  %v19381_v62 = vld [vmem:[#allocation146_spill] sm:$0xff] }
 0xa48   : > { %8950 = vst [vmem:[#allocation3 + $0x94] sm:$0xf] %v8752_v11  ;;  %v10197_v2 = vpop.f32.mrf.mxu0  ;;  %v17922_v43 = vsel %vm1971_vm3, %v9421_v56, %v9422_v54  ;;  %v9322_v42 = vrot.slane %v9320_v4, 1  ;;  %v19382_v54 = vld [vmem:[#allocation99_spill] sm:$0xff] }
 0xa49   : > { %19379 = vst [vmem:[#allocation124_spill] sm:$0xff] %v17922_v43  ;;  %v8755_v55 = vshrl.u32 %v8542_v17, 16  ;;  %v10198_v63 = vadd.f32 %v10197_v2, %v10109_v44  ;;  %10325 = vmatmul.bf16.gmra.mxu1 %v17922_v43  ;;  %v8758_v57 = vshll.u32 %v8542_v17, 16  ;;  %v8294_v4 = vadd.f32 %v19382_v54, %v19381_v62  ;;  %v19383_v17 = vld [vmem:[#allocation68_spill] sm:$0xff] }
 0xa4a   : > { %8953 = vst [vmem:[#allocation3 + $0x98] sm:$0x1] %v8952_v20  ;;  %v17927_v18 = vsel %vm1746_vm2, %v9318_v9, %v9322_v42  ;;  %v8468_v10 = vpop.f32.mrf.mxu3 }
 0xa4b   : > { %19380 = vst [vmem:[#allocation109_spill] sm:$0xff] %v17927_v18  ;;  %v8757_v14 = vrot.slane %v8755_v55, 7  ;;  %10236 = vmatmul.bf16.gmra.mxu0 %v17927_v18  ;;  %v8469_v26 = vadd.f32 %v8468_v10, %v8380_v32  ;;  %v17930_v50 = vadd.f32 %v10286_v52, %v10198_v63  ;;  %v8383_v2 = vadd.f32 %v19383_v17, %v8294_v4  ;;  %v19384_v63 = vld [vmem:[#allocation34_spill] sm:$0xff]  ;;  %v19385_v10 = vld [vmem:[#allocation48_spill] sm:$0xff] }
 0xa4c   : > { %v10110_v56 = vpop.f32.mrf.mxu2 }
 0xa4d   : > { %v8760_v3 = vor.u32 %v8758_v57, %v8757_v14  ;;  %v8511_v49 = vmax.f32 %v8469_v26, 0.0  ;;  %v10111_v38 = vadd.f32 %v17760_v21, %v10110_v56  ;;  %v8207_v57 = vadd.f32 %v19385_v10, %v19384_v63  ;;  %v8958_v63 = vld [vmem:[#allocation3 + $0xa4] sm:$0x1] }
 0xa4e   : > { %v10288_v44 = vpop.f32.mrf.mxu1  ;;  %v8761_v54 = vrot.slane %v8757_v14, 4 }
 0xa4f   : > { %v8955_v9 = vsel %vm15020_vm1, %v8760_v3, %v8954_v58  ;;  %v8543_v6 = vpack.c.bf16 %v8511_v49, %v8511_v49  ;;  %10384 = vmatmul.bf16.gmra.mxu3 %v17734_v5  ;;  %v17938_v11 = vld [vmem:[#allocation3 + $0x90] sm:$0xff] }
 0xa50   : > { %8956 = vst [vmem:[#allocation3 + $0x9c] sm:$0xf] %v8955_v9  ;;  %v10199_v52 = vpop.f32.mrf.mxu0  ;;  %v9327_v3 = vshll.u32 %v17938_v11, 16  ;;  %v9325_v4 = vshrl.u32 %v17938_v11, 16  ;;  %v9424_v10 = vrot.slane %v17938_v11, 1 }
 0xa51   : > { %v9020_v20 = vld [vmem:[#allocation3 + $0x98] sm:$0x1]  ;;  %v8763_v42 = vshrl.u32 %v8543_v6, 16  ;;  %v10200_v32 = vadd.f32 %v10199_v52, %v10111_v38  ;;  %10152 = vmatmul.bf16.gmra.mxu2 %v17938_v11  ;;  %v8766_v26 = vshll.u32 %v8543_v6, 16 }
 0xa52   : > { %v9160_v55 = vunpack.c.l.b16 %v9020_v20  ;;  %v8471_v56 = vpop.f32.mrf.mxu3  ;;  %v9329_v38 = vrot.slane %v9327_v3, 1 }
 0xa53   : > { %v8765_v5 = vrot.slane %v8763_v42, 7  ;;  %v8472_v49 = vadd.f32 %v8471_v56, %v8383_v2  ;;  %v17945_v62 = vadd.f32 %v10288_v44, %v10200_v32  ;;  %v8296_v44 = vadd.f32 %v17655_v51, %v8207_v57 }
 0xa54   : > { %v9176_v58 = vpack.c.b16 %v9160_v55, %v9160_v55  ;;  %v10113_v9 = vpop.f32.mrf.mxu2  ;;  %v9330_v42 = vor.u32 %v9329_v38, %v9325_v4 }
 0xa55   : > { %v8768_v52 = vor.u32 %v8766_v26, %v8765_v5  ;;  %v8770_v17 = vrot.slane %v8765_v5, 4  ;;  %v8512_v20 = vmax.f32 %v8472_v49, 0.0  ;;  %v10114_v43 = vadd.f32 %v17760_v21, %v10113_v9 }
 0xa56   : > { %v10291_v6 = vpop.f32.mrf.mxu1  ;;  %v9425_v18 = vrot.slane %v9176_v58, 1  ;;  %v9332_v2 = vshll.u32 %v9176_v58, 16  ;;  %v8385_v5 = vadd.f32 %v17657_v40, %v8296_v44  ;;  %v12798_v40 = vld [vmem:[#allocation15 + $0x178] sm:$0xff] }
 0xa57   : > { %v8769_v14 = vsel %vm13856_vm10, %v8761_v54, %v8768_v52  ;;  %v8959_v32 = vsel %vm15043_vm6, %v8770_v17, %v8958_v63  ;;  %v8544_v55 = vpack.c.bf16 %v8512_v20, %v8512_v20  ;;  %v12806_v54 = vld [vmem:[#allocation15 + $0x1b8] sm:$0xff]  ;;  %v8961_v63 = vld [vmem:[#allocation3 + $0xa8] sm:$0xf]  ;;  %10529 = vmatpush.bf16.msra.mxu0 %v12798_v40 }
 0xa58   : > { %8957 = vst [vmem:[#allocation3 + $0xa0] sm:$0xf] %v8769_v14  ;;  %v10202_v26 = vpop.f32.mrf.mxu0  ;;  %v17956_v56 = vsel %vm1971_vm3, %v9424_v10, %v9425_v18  ;;  %v9334_v3 = vrot.slane %v9332_v2, 1  ;;  %10618 = vmatpush.bf16.msra.mxu1 %v12806_v54  ;;  %v19386_v2 = vld [vmem:[#allocation50_spill] sm:$0xff]  ;;  %v19387_v54 = vld [vmem:[#allocation148_spill] sm:$0xff] }
 0xa59   : > { %8960 = vst [vmem:[#allocation3 + $0xa4] sm:$0x1] %v8959_v32  ;;  %v8772_v49 = vshrl.u32 %v8544_v55, 16  ;;  %v10203_v58 = vadd.f32 %v10202_v26, %v10114_v43  ;;  %10330 = vmatmul.bf16.gmra.mxu1 %v17956_v56  ;;  %v8775_v4 = vshll.u32 %v8544_v55, 16  ;;  %v8299_v44 = vadd.f32 %v17672_v39, %v19386_v2 }
 0xa5a   : > { %v17961_v51 = vsel %vm1746_vm2, %v9330_v42, %v9334_v3  ;;  %v8473_v57 = vpop.f32.mrf.mxu3  ;;  %v12805_v42 = vld [vmem:[#allocation15 + $0x1b0] sm:$0xff]  ;;  %v12783_v3 = vld [vmem:[#allocation15 + $0x100] sm:$0xff] }
 0xa5b   : > { %v17963_v9 = vrot.slane %v8772_v49, 7  ;;  %10241 = vmatmul.bf16.gmra.mxu0 %v17961_v51  ;;  %v8474_v18 = vadd.f32 %v8473_v57, %v8385_v5  ;;  %v17966_v38 = vadd.f32 %v10291_v6, %v10203_v58  ;;  %v12797_v5 = vld [vmem:[#allocation15 + $0x170] sm:$0xff]  ;;  %v8388_v49 = vadd.f32 %v17674_v25, %v8299_v44  ;;  %10447 = vmatpush.bf16.msrb.mxu2 %v12783_v3 }
 0xa5c   : > { %v10115_v52 = vpop.f32.mrf.mxu2  ;;  %10619 = vmatpush.bf16.msra.mxu1 %v12805_v42  ;;  %10530 = vmatpush.bf16.msra.mxu0 %v12797_v5  ;;  %v8965_v5 = vld [vmem:[#allocation3 + $0xb0] sm:$0x1] }
 0xa5d   : > { %v8777_v43 = vor.u32 %v8775_v4, %v17963_v9  ;;  %v8513_v17 = vmax.f32 %v8474_v18, 0.0  ;;  %v10116_v20 = vadd.f32 %v17760_v21, %v10115_v52  ;;  %v19388_v4 = vld [vmem:[#allocation97_spill] sm:$0xff]  ;;  %v8778_v25 = vrot.slane %v17963_v9, 4  ;;  %v12803_v9 = vld [vmem:[#allocation15 + $0x1a0] sm:$0xff] }
 0xa5e   : > { %v10293_v10 = vpop.f32.mrf.mxu1  ;;  %v8212_v18 = vadd.f32 %v19388_v4, %v19387_v54 }
 0xa5f   : > { %v8962_v14 = vsel %vm15020_vm1, %v8777_v43, %v8961_v63  ;;  %v8545_v6 = vpack.c.bf16 %v8513_v17, %v8513_v17  ;;  %10389 = vmatmul.bf16.gmra.mxu3 %v17776_v27  ;;  %v17975_v32 = vld [vmem:[#allocation3 + $0x9c] sm:$0xff] }
 0xa60   : > { %8963 = vst [vmem:[#allocation3 + $0xa8] sm:$0xf] %v8962_v14  ;;  %v10204_v55 = vpop.f32.mrf.mxu0  ;;  %v9023_v26 = vld [vmem:[#allocation3 + $0xa4] sm:$0x1]  ;;  %v9339_v40 = vshll.u32 %v17975_v32, 16  ;;  %v9337_v44 = vshrl.u32 %v17975_v32, 16 }
 0xa61   : > { %v8780_v58 = vshrl.u32 %v8545_v6, 16  ;;  %v10205_v57 = vadd.f32 %v10204_v55, %v10116_v20  ;;  %10157 = vmatmul.bf16.gmra.mxu2 %v17975_v32  ;;  %v9161_v39 = vunpack.c.l.b16 %v9023_v26  ;;  %v8783_v52 = vshll.u32 %v8545_v6, 16  ;;  %v12804_v43 = vld [vmem:[#allocation15 + $0x1a8] sm:$0xff] }
 0xa62   : > { %v8476_v27 = vpop.f32.mrf.mxu3  ;;  %v9341_v14 = vrot.slane %v9339_v40, 1  ;;  %10620 = vmatpush.bf16.msra.mxu1 %v12804_v43  ;;  %v12796_v55 = vld [vmem:[#allocation15 + $0x168] sm:$0xff] }
 0xa63   : > { %v8782_v17 = vrot.slane %v8780_v58, 7  ;;  %v8477_v63 = vadd.f32 %v8476_v27, %v8388_v49  ;;  %v9177_v42 = vpack.c.b16 %v9161_v39, %v9161_v39  ;;  %v17982_v2 = vadd.f32 %v10293_v10, %v10205_v57  ;;  %10531 = vmatpush.bf16.msra.mxu0 %v12796_v55 }
 0xa64   : > { %v10118_v20 = vpop.f32.mrf.mxu2  ;;  %v9427_v49 = vrot.slane %v17975_v32, 1  ;;  %v9342_v10 = vor.u32 %v9341_v14, %v9337_v44  ;;  %v8301_v39 = vadd.f32 %v17698_v0, %v8212_v18  ;;  %v12802_v18 = vld [vmem:[#allocation15 + $0x198] sm:$0xff] }
 0xa65   : > { %v8785_v6 = vor.u32 %v8783_v52, %v8782_v17  ;;  %v8787_v26 = vrot.slane %v8782_v17, 4  ;;  %v8514_v54 = vmax.f32 %v8477_v63, 0.0  ;;  %v10119_v3 = vadd.f32 %v17760_v21, %v10118_v20  ;;  %v12795_v20 = vld [vmem:[#allocation15 + $0x160] sm:$0xff] }
 0xa66   : > { %v10296_v4 = vpop.f32.mrf.mxu1  ;;  %v9428_v58 = vrot.slane %v9177_v42, 1  ;;  %v9344_v57 = vshll.u32 %v9177_v42, 16  ;;  %10621 = vmatpush.bf16.msra.mxu1 %v12803_v9  ;;  %v8390_v42 = vadd.f32 %v17700_v53, %v8301_v39  ;;  %v12801_v9 = vld [vmem:[#allocation15 + $0x190] sm:$0xff]  ;;  %v19389_v39 = vld [vmem:[#allocation52_spill] sm:$0xff] }
 0xa67   : > { %v8786_v27 = vsel %vm13856_vm10, %v8778_v25, %v8785_v6  ;;  %v8966_v52 = vsel %vm15043_vm6, %v8787_v26, %v8965_v5  ;;  %v8546_v40 = vpack.c.bf16 %v8514_v54, %v8514_v54  ;;  %10532 = vmatpush.bf16.msra.mxu0 %v12795_v20  ;;  %v12794_v54 = vld [vmem:[#allocation15 + $0x158] sm:$0xff]  ;;  %v12793_v20 = vld [vmem:[#allocation15 + $0x150] sm:$0xff] }
 0xa68   : > { %8964 = vst [vmem:[#allocation3 + $0xac] sm:$0xf] %v8786_v27  ;;  %v10207_v43 = vpop.f32.mrf.mxu0  ;;  %v17994_v17 = vsel %vm1971_vm3, %v9427_v49, %v9428_v58  ;;  %v9346_v63 = vrot.slane %v9344_v57, 1  ;;  %v8304_v27 = vadd.f32 %v17714_v31, %v19389_v39 }
 0xa69   : > { %8967 = vst [vmem:[#allocation3 + $0xb0] sm:$0x1] %v8966_v52  ;;  %v8789_v44 = vshrl.u32 %v8546_v40, 16  ;;  %v10208_v0 = vadd.f32 %v10207_v43, %v10119_v3  ;;  %10335 = vmatmul.bf16.gmra.mxu1 %v17994_v17  ;;  %v8792_v6 = vshll.u32 %v8546_v40, 16 }
 0xa6a   : > { %v17999_v25 = vsel %vm1746_vm2, %v9342_v10, %v9346_v63  ;;  %v8478_v14 = vpop.f32.mrf.mxu3  ;;  %10622 = vmatpush.bf16.msra.mxu1 %v12802_v18  ;;  %v8968_v10 = vld [vmem:[#allocation3 + $0xb4] sm:$0xf]  ;;  %v12800_v18 = vld [vmem:[#allocation15 + $0x188] sm:$0xff] }
 0xa6b   : > { %v18001_v55 = vrot.slane %v8789_v44, 7  ;;  %10246 = vmatmul.bf16.gmra.mxu0 %v17999_v25  ;;  %v8479_v26 = vadd.f32 %v8478_v14, %v8390_v42  ;;  %v18004_v5 = vadd.f32 %v10296_v4, %v10208_v0  ;;  %v8393_v42 = vadd.f32 %v17723_v12, %v8304_v27  ;;  %v12814_v14 = vld [vmem:[#allocation15 + $0x1f8] sm:$0xff]  ;;  %v12792_v12 = vld [vmem:[#allocation15 + $0x148] sm:$0xff] }
 0xa6c   : > { %v10120_v53 = vpop.f32.mrf.mxu2  ;;  %10533 = vmatpush.bf16.msra.mxu0 %v12794_v54  ;;  %10707 = vmatpush.bf16.msra.mxu3 %v12814_v14 }
 0xa6d   : > { %v8794_v3 = vor.u32 %v8792_v6, %v18001_v55  ;;  %v8515_v49 = vmax.f32 %v8479_v26, 0.0  ;;  %v10121_v58 = vadd.f32 %v17760_v21, %v10120_v53  ;;  %v19390_v6 = vld [vmem:[#allocation84_spill] sm:$0xff]  ;;  %v8795_v39 = vrot.slane %v18001_v55, 4  ;;  %v12799_v55 = vld [vmem:[#allocation15 + $0x180] sm:$0xff] }
 0xa6e   : > { %v10298_v57 = vpop.f32.mrf.mxu1  ;;  %10623 = vmatpush.bf16.msra.mxu1 %v12801_v9  ;;  %v8217_v26 = vadd.f32 %v17736_v24, %v19390_v6  ;;  %v12822_v9 = vld [vmem:[#allocation15 + $0x238] sm:$0xff] }
 0xa6f   : > { %v8969_v52 = vsel %vm15020_vm1, %v8794_v3, %v8968_v10  ;;  %v8547_v40 = vpack.c.bf16 %v8515_v49, %v8515_v49  ;;  %10394 = vmatmul.bf16.gmra.mxu3 %v17804_v8  ;;  %v18013_v4 = vld [vmem:[#allocation3 + $0xa8] sm:$0xff]  ;;  %10796 = vmatpush.bf16.msra.mxu2 %v12822_v9 }
 0xa70   : > { %8970 = vst [vmem:[#allocation3 + $0xb4] sm:$0xf] %v8969_v52  ;;  %v10209_v43 = vpop.f32.mrf.mxu0  ;;  %v9026_v63 = vld [vmem:[#allocation3 + $0xb0] sm:$0x1]  ;;  %v9351_v53 = vshll.u32 %v18013_v4, 16  ;;  %10534 = vmatpush.bf16.msra.mxu0 %v12793_v20  ;;  %v9349_v52 = vshrl.u32 %v18013_v4, 16  ;;  %v8306_v6 = vadd.f32 %v17742_v1, %v8217_v26 }
 0xa71   : > { %v8797_v44 = vshrl.u32 %v8547_v40, 16  ;;  %v10210_v0 = vadd.f32 %v10209_v43, %v10121_v58  ;;  %10162 = vmatmul.bf16.gmra.mxu2 %v18013_v4  ;;  %v9162_v31 = vunpack.c.l.b16 %v9026_v63  ;;  %v8800_v8 = vshll.u32 %v8547_v40, 16 }
 0xa72   : > { %v8481_v54 = vpop.f32.mrf.mxu3  ;;  %v9353_v43 = vrot.slane %v9351_v53, 1  ;;  %10624 = vmatpush.bf16.msra.mxu1 %v12800_v18 }
 0xa73   : > { %v8799_v3 = vrot.slane %v8797_v44, 7  ;;  %v8482_v49 = vadd.f32 %v8481_v54, %v8393_v42  ;;  %v9178_v10 = vpack.c.b16 %v9162_v31, %v9162_v31  ;;  %v18020_v58 = vadd.f32 %v10298_v57, %v10210_v0  ;;  %v8972_v42 = vld [vmem:[#allocation3 + $0xbc] sm:$0x1] }
 0xa74   : > { %v10123_v27 = vpop.f32.mrf.mxu2  ;;  %v9430_v31 = vrot.slane %v18013_v4, 1  ;;  %v9354_v57 = vor.u32 %v9353_v43, %v9349_v52  ;;  %10535 = vmatpush.bf16.msra.mxu0 %v12792_v12 }
 0xa75   : > { %v8802_v24 = vor.u32 %v8800_v8, %v8799_v3  ;;  %v8804_v40 = vrot.slane %v8799_v3, 4  ;;  %v8516_v63 = vmax.f32 %v8482_v49, 0.0  ;;  %v10124_v20 = vadd.f32 %v17760_v21, %v10123_v27  ;;  %v12791_v49 = vld [vmem:[#allocation15 + $0x140] sm:$0xff] }
 0xa76   : > { %v10301_v44 = vpop.f32.mrf.mxu1  ;;  %v9431_v14 = vrot.slane %v9178_v10, 1  ;;  %v9356_v0 = vshll.u32 %v9178_v10, 16  ;;  %10625 = vmatpush.bf16.msra.mxu1 %v12799_v55  ;;  %v8395_v10 = vadd.f32 %v17745_v48, %v8306_v6 }
 0xa77   : > { %v8803_v18 = vsel %vm13856_vm10, %v8795_v39, %v8802_v24  ;;  %v8973_v8 = vsel %vm15043_vm6, %v8804_v40, %v8972_v42  ;;  %v8548_v54 = vpack.c.bf16 %v8516_v63, %v8516_v63  ;;  %v18045_v63 = vld [vmem:[%s18564_s11] ss:$0 sm:$0xff]  ;;  %v8975_v42 = vld [vmem:[#allocation3 + $0xc0] sm:$0xf] }
 0xa78   : > { %8971 = vst [vmem:[#allocation3 + $0xb8] sm:$0xf] %v8803_v18  ;;  %v10212_v21 = vpop.f32.mrf.mxu0  ;;  %v18032_v53 = vsel %vm1971_vm3, %v9430_v31, %v9431_v14  ;;  %v9358_v3 = vrot.slane %v9356_v0, 1  ;;  %10536 = vmatpush.bf16.msra.mxu0 %v12791_v49 }
 0xa79   : > { %8974 = vst [vmem:[#allocation3 + $0xbc] sm:$0x1] %v8973_v8  ;;  %v8806_v12 = vshrl.u32 %v8548_v54, 16  ;;  %v10213_v1 = vadd.f32 %v10212_v21, %v10124_v20  ;;  %10340 = vmatmul.bf16.gmra.mxu1 %v18032_v53  ;;  %v8809_v27 = vshll.u32 %v8548_v54, 16 }
 0xa7a   : > { %v18037_v26 = vsel %vm1746_vm2, %v9354_v57, %v9358_v3  ;;  %v8483_v9 = vpop.f32.mrf.mxu3 }
 0xa7b   : > { %v8808_v39 = vrot.slane %v8806_v12, 7  ;;  %10251 = vmatmul.bf16.gmra.mxu0 %v18037_v26  ;;  %v8484_v52 = vadd.f32 %v8483_v9, %v8395_v10  ;;  %v18040_v43 = vadd.f32 %v10301_v44, %v10213_v1 }
 0xa7c   : > { %v10125_v24 = vpop.f32.mrf.mxu2 }
 0xa7d   : > { %v8811_v40 = vor.u32 %v8809_v27, %v8808_v39  ;;  %v8517_v48 = vmax.f32 %v8484_v52, 0.0  ;;  %v10126_v20 = vadd.f32 %v18045_v63, %v10125_v24  ;;  %v8812_v12 = vrot.slane %v8808_v39, 4 }
 0xa7e   : > { %v10303_v31 = vpop.f32.mrf.mxu1 }
 0xa7f   : > { %v8976_v14 = vsel %vm15020_vm1, %v8811_v40, %v8975_v42  ;;  %v8549_v57 = vpack.c.bf16 %v8517_v48, %v8517_v48  ;;  %10399 = vmatmul.bf16.gmra.mxu3 %v17836_v61  ;;  %v18051_v44 = vld [vmem:[#allocation3 + $0xb4] sm:$0xff]  ;;  %v8979_v42 = vld [vmem:[#allocation3 + $0xc8] sm:$0x1] }
 0xa80   : > { %8977 = vst [vmem:[#allocation3 + $0xc0] sm:$0xf] %v8976_v14  ;;  %v10214_v0 = vpop.f32.mrf.mxu0  ;;  %v9029_v55 = vld [vmem:[#allocation3 + $0xbc] sm:$0x1]  ;;  %v9363_v3 = vshll.u32 %v18051_v44, 16  ;;  %v9433_v9 = vrot.slane %v18051_v44, 1 }
 0xa81   : > { %v8814_v6 = vshrl.u32 %v8549_v57, 16  ;;  %v10215_v18 = vadd.f32 %v10214_v0, %v10126_v20  ;;  %10167 = vmatmul.bf16.gmra.mxu2 %v18051_v44  ;;  %v9163_v8 = vunpack.c.l.b16 %v9029_v55  ;;  %v8817_v54 = vshll.u32 %v8549_v57, 16 }
 0xa82   : > { %v10360_v21 = vpop.f32.mrf.mxu3  ;;  %v9361_v27 = vshrl.u32 %v18051_v44, 16  ;;  %v9365_v52 = vrot.slane %v9363_v3, 1 }
 0xa83   : > { %v8816_v49 = vrot.slane %v8814_v6, 7  ;;  %v18056_v47 = vadd.f32 %v10360_v21, %v17769_v19  ;;  %v9179_v10 = vpack.c.b16 %v9163_v8, %v9163_v8  ;;  %v18058_v61 = vadd.f32 %v10303_v31, %v10215_v18 }
 0xa84   : > { %v10128_v1 = vpop.f32.mrf.mxu2  ;;  %v9366_v57 = vor.u32 %v9365_v52, %v9361_v27  ;;  %v12821_v52 = vld [vmem:[#allocation15 + $0x230] sm:$0xff] }
 0xa85   : > { %v8819_v24 = vor.u32 %v8817_v54, %v8816_v49  ;;  %v8821_v40 = vrot.slane %v8816_v49, 4  ;;  %v10129_v48 = vadd.f32 %v18045_v63, %v10128_v1  ;;  %v9434_v20 = vrot.slane %v9179_v10, 1  ;;  %v12813_v1 = vld [vmem:[#allocation15 + $0x1f0] sm:$0xff]  ;;  %10797 = vmatpush.bf16.msra.mxu2 %v12821_v52 }
 0xa86   : > { %v10306_v14 = vpop.f32.mrf.mxu1  ;;  %v9368_v19 = vshll.u32 %v9179_v10, 16  ;;  %10708 = vmatpush.bf16.msra.mxu3 %v12813_v1 }
 0xa87   : > { %v8820_v31 = vsel %vm13856_vm10, %v8812_v12, %v8819_v24  ;;  %v8980_v39 = vsel %vm15043_vm6, %v8821_v40, %v8979_v42  ;;  %v18068_v0 = vsel %vm1971_vm3, %v9433_v9, %v9434_v20  ;;  %v19391_v12 = vld [vmem:[#allocation70_spill] sm:$0xff] }
 0xa88   : > { %8978 = vst [vmem:[#allocation3 + $0xc4] sm:$0xf] %v8820_v31  ;;  %v10217_v55 = vpop.f32.mrf.mxu0  ;;  %v9370_v6 = vrot.slane %v9368_v19, 1  ;;  %v19392_v19 = vld [vmem:[#allocation132_spill] sm:$0xff] }
 0xa89   : > { %8981 = vst [vmem:[#allocation3 + $0xc8] sm:$0x1] %v8980_v39  ;;  %v10218_v18 = vadd.f32 %v10217_v55, %v10129_v48  ;;  %10345 = vmatmul.bf16.gmra.mxu1 %v18068_v0 }
 0xa8a   : > { %v18072_v8 = vsel %vm1746_vm2, %v9366_v57, %v9370_v6  ;;  %v18074_v54 = vpop.f32.mrf.mxu3 }
 0xa8b   : > { %10256 = vmatmul.bf16.gmra.mxu0 %v18072_v8  ;;  %v18077_v36 = vadd.f32 %v10306_v14, %v10218_v18  ;;  %v13090_v14 = vld [vmem:[#allocation3 + $0x18] sm:$0xff] }
 0xa8c   : > { %v10130_v16 = vpop.f32.mrf.mxu2 }
 0xa8d   : > { %v10131_v21 = vadd.f32 %v18045_v63, %v10130_v16 }
 0xa8e   : > { %v10308_v3 = vpop.f32.mrf.mxu1 }
 0xa8f   : > { %10404 = vmatmul.bf16.gmra.mxu3 %v17870_v41 }
 0xa90   : > { %v10219_v49 = vpop.f32.mrf.mxu0 }
 0xa91   : > { %v10220_v10 = vadd.f32 %v10219_v49, %v10131_v21  ;;  %10448 = vmatmul.bf16.vlgmr.msrb.gmra.mxu2 %v19391_v12  ;;  %v19393_v21 = vld [vmem:[#allocation159_spill] sm:$0xff] }
 0xa92   : > { %v10365_v9 = vpop.f32.mrf.mxu3 }
 0xa93   : > { %v18083_v27 = vadd.f32 %v10365_v9, %v17862_v33  ;;  %v18085_v24 = vadd.f32 %v10308_v3, %v10220_v10 }
 0xa94   : > { %v10133_v40 = vpop.f32.mrf.mxu2 }
 0xa95   : > { %v10134_v48 = vadd.f32 %v18045_v63, %v10133_v40  ;;  %v13091_v40 = vld [vmem:[#allocation3 + $0x24] sm:$0xff] }
 0xa96   : > { %v10311_v20 = vpop.f32.mrf.mxu1 }
 0xa98   : > { %v10222_v42 = vpop.f32.mrf.mxu0 }
 0xa99   : > { %v10223_v41 = vadd.f32 %v10222_v42, %v10134_v48  ;;  %10626 = vmatmul.bf16.vlgmr.msra.gmra.mxu1 %v13090_v14 }
 0xa9a   : > { %v10367_v57 = vpop.f32.mrf.mxu3 }
 0xa9b   : > { %10537 = vmatmul.bf16.vlgmr.msra.gmra.mxu0 %v19392_v19  ;;  %v18090_v31 = vadd.f32 %v10367_v57, %v17877_v59  ;;  %v18092_v33 = vadd.f32 %v10311_v20, %v10223_v41 }
 0xa9c   : > { %v10135_v39 = vpop.f32.mrf.mxu2 }
 0xa9d   : > { %v10136_v55 = vadd.f32 %v18045_v63, %v10135_v39  ;;  %v12812_v39 = vld [vmem:[#allocation15 + $0x1e8] sm:$0xff] }
 0xa9e   : > { %v10313_v6 = vpop.f32.mrf.mxu1  ;;  %10709 = vmatpush.bf16.msra.mxu3 %v12812_v39 }
 0xa9f   : > { %10409 = vmatmul.bf16.gmra.mxu3 %v17904_v35  ;;  %v19394_v35 = vld [vmem:[#allocation155_spill] sm:$0xff] }
 0xaa0   : > { %v10224_v18 = vpop.f32.mrf.mxu0 }
 0xaa1   : > { %v10225_v16 = vadd.f32 %v10224_v18, %v10136_v55  ;;  %10453 = vmatmul.bf16.gmra.mxu2 %v19393_v21 }
 0xaa2   : > { %v10370_v3 = vpop.f32.mrf.mxu3 }
 0xaa3   : > { %v18098_v49 = vadd.f32 %v10370_v3, %v17896_v34  ;;  %v18100_v10 = vadd.f32 %v10313_v6, %v10225_v16 }
 0xaa4   : > { %v10138_v59 = vpop.f32.mrf.mxu2 }
 0xaa5   : > { %v10139_v12 = vadd.f32 %v18045_v63, %v10138_v59 }
 0xaa6   : > { %v10316_v1 = vpop.f32.mrf.mxu1 }
 0xaa8   : > { %v10227_v9 = vpop.f32.mrf.mxu0 }
 0xaa9   : > { %v10228_v52 = vadd.f32 %v10227_v9, %v10139_v12  ;;  %10631 = vmatmul.bf16.gmra.mxu1 %v13091_v40  ;;  %v13092_v9 = vld [vmem:[#allocation3 + $0x30] sm:$0xff] }
 0xaaa   : > { %v10372_v48 = vpop.f32.mrf.mxu3 }
 0xaab   : > { %10542 = vmatmul.bf16.gmra.mxu0 %v19394_v35  ;;  %v18105_v20 = vadd.f32 %v10372_v48, %v17911_v45  ;;  %v18107_v42 = vadd.f32 %v10316_v1, %v10228_v52  ;;  %v12820_v45 = vld [vmem:[#allocation15 + $0x228] sm:$0xff] }
 0xaac   : > { %v10140_v34 = vpop.f32.mrf.mxu2  ;;  %10798 = vmatpush.bf16.msra.mxu2 %v12820_v45 }
 0xaad   : > { %v10141_v41 = vadd.f32 %v18045_v63, %v10140_v34 }
 0xaae   : > { %v10318_v14 = vpop.f32.mrf.mxu1 }
 0xaaf   : > { %10414 = vmatmul.bf16.gmra.mxu3 %v17938_v11 }
 0xab0   : > { %v10229_v57 = vpop.f32.mrf.mxu0 }
 0xab1   : > { %v10230_v19 = vadd.f32 %v10229_v57, %v10141_v41  ;;  %10458 = vmatmul.bf16.gmra.mxu2 %v17651_v37 }
 0xab2   : > { %v10375_v55 = vpop.f32.mrf.mxu3 }
 0xab3   : > { %v18113_v6 = vadd.f32 %v10375_v55, %v17930_v50  ;;  %v18115_v18 = vadd.f32 %v10318_v14, %v10230_v19 }
 0xab4   : > { %v10143_v16 = vpop.f32.mrf.mxu2 }
 0xab5   : > { %v10144_v3 = vadd.f32 %v18045_v63, %v10143_v16 }
 0xab6   : > { %v10321_v59 = vpop.f32.mrf.mxu1 }
 0xab8   : > { %v10232_v12 = vpop.f32.mrf.mxu0 }
 0xab9   : > { %v10233_v1 = vadd.f32 %v10232_v12, %v10144_v3  ;;  %10636 = vmatmul.bf16.gmra.mxu1 %v13092_v9  ;;  %v13093_v12 = vld [vmem:[#allocation3 + $0x3c] sm:$0xff] }
 0xaba   : > { %v10377_v52 = vpop.f32.mrf.mxu3 }
 0xabb   : > { %10547 = vmatmul.bf16.gmra.mxu0 %v17647_v60  ;;  %v18120_v40 = vadd.f32 %v10377_v52, %v17945_v62  ;;  %v18122_v50 = vadd.f32 %v10321_v59, %v10233_v1  ;;  %v13096_v60 = vld [vmem:[#allocation3 + $0x60] sm:$0xff] }
 0xabc   : > { %v10145_v48 = vpop.f32.mrf.mxu2 }
 0xabd   : > { %v10146_v34 = vadd.f32 %v18045_v63, %v10145_v48 }
 0xabe   : > { %v10323_v41 = vpop.f32.mrf.mxu1 }
 0xabf   : > { %10419 = vmatmul.bf16.gmra.mxu3 %v17975_v32 }
 0xac0   : > { %v10234_v14 = vpop.f32.mrf.mxu0 }
 0xac1   : > { %v10235_v57 = vadd.f32 %v10234_v14, %v10146_v34  ;;  %10463 = vmatmul.bf16.gmra.mxu2 %v17688_v30 }
 0xac2   : > { %v10380_v19 = vpop.f32.mrf.mxu3 }
 0xac3   : > { %v18128_v39 = vadd.f32 %v10380_v19, %v17966_v38  ;;  %v18130_v55 = vadd.f32 %v10323_v41, %v10235_v57  ;;  %v12811_v41 = vld [vmem:[#allocation15 + $0x1e0] sm:$0xff]  ;;  %v12810_v19 = vld [vmem:[#allocation15 + $0x1d8] sm:$0xff] }
 0xac4   : > { %v10148_v62 = vpop.f32.mrf.mxu2  ;;  %10710 = vmatpush.bf16.msra.mxu3 %v12811_v41  ;;  %v13094_v41 = vld [vmem:[#allocation3 + $0x48] sm:$0xff] }
 0xac5   : > { %v10149_v45 = vadd.f32 %v18045_v63, %v10148_v62 }
 0xac6   : > { %v10326_v16 = vpop.f32.mrf.mxu1 }
 0xac8   : > { %v10237_v3 = vpop.f32.mrf.mxu0  ;;  %10711 = vmatpush.bf16.msra.mxu3 %v12810_v19 }
 0xac9   : > { %v10238_v59 = vadd.f32 %v10237_v3, %v10149_v45  ;;  %10641 = vmatmul.bf16.gmra.mxu1 %v13093_v12 }
 0xaca   : > { %v10382_v1 = vpop.f32.mrf.mxu3 }
 0xacb   : > { %10552 = vmatmul.bf16.gmra.mxu0 %v17683_v29  ;;  %v18135_v9 = vadd.f32 %v10382_v1, %v17982_v2  ;;  %v18137_v52 = vadd.f32 %v10326_v16, %v10238_v59  ;;  %v12819_v2 = vld [vmem:[#allocation15 + $0x220] sm:$0xff]  ;;  %v12809_v1 = vld [vmem:[#allocation15 + $0x1d0] sm:$0xff] }
 0xacc   : > { %v10150_v38 = vpop.f32.mrf.mxu2  ;;  %10799 = vmatpush.bf16.msra.mxu2 %v12819_v2  ;;  %10712 = vmatpush.bf16.msra.mxu3 %v12809_v1  ;;  %v12807_v2 = vld [vmem:[#allocation15 + $0x1c0] sm:$0xff] }
 0xacd   : > { %v10151_v48 = vadd.f32 %v18045_v63, %v10150_v38 }
 0xace   : > { %v10328_v34 = vpop.f32.mrf.mxu1 }
 0xacf   : > { %10424 = vmatmul.bf16.gmra.mxu3 %v18013_v4 }
 0xad0   : > { %v10239_v14 = vpop.f32.mrf.mxu0 }
 0xad1   : > { %v10240_v57 = vadd.f32 %v10239_v14, %v10151_v48  ;;  %10468 = vmatmul.bf16.gmra.mxu2 %v17726_v46  ;;  %v12808_v14 = vld [vmem:[#allocation15 + $0x1c8] sm:$0xff] }
 0xad2   : > { %v10385_v62 = vpop.f32.mrf.mxu3  ;;  %10713 = vmatpush.bf16.msra.mxu3 %v12808_v14 }
 0xad3   : > { %v18143_v45 = vadd.f32 %v10385_v62, %v18004_v5  ;;  %v18145_v16 = vadd.f32 %v10328_v34, %v10240_v57 }
 0xad4   : > { %v10153_v3 = vpop.f32.mrf.mxu2 }
 0xad5   : > { %v10154_v59 = vadd.f32 %v18045_v63, %v10153_v3 }
 0xad6   : > { %v10331_v12 = vpop.f32.mrf.mxu1  ;;  %10714 = vmatpush.bf16.msra.mxu3 %v12807_v2 }
 0xad8   : > { %v10242_v38 = vpop.f32.mrf.mxu0 }
 0xad9   : > { %v10243_v48 = vadd.f32 %v10242_v38, %v10154_v59  ;;  %10646 = vmatmul.bf16.gmra.mxu1 %v13094_v41 }
 0xada   : > { %v10387_v29 = vpop.f32.mrf.mxu3 }
 0xadb   : > { %10557 = vmatmul.bf16.gmra.mxu0 %v17717_v28  ;;  %v18150_v5 = vadd.f32 %v10387_v29, %v18020_v58  ;;  %v18152_v34 = vadd.f32 %v10331_v12, %v10243_v48 }
 0xadc   : > { %v10155_v57 = vpop.f32.mrf.mxu2 }
 0xadd   : > { %v10156_v19 = vadd.f32 %v18045_v63, %v10155_v57  ;;  %v13095_v57 = vld [vmem:[#allocation3 + $0x54] sm:$0xff] }
 0xade   : > { %v10333_v62 = vpop.f32.mrf.mxu1 }
 0xadf   : > { %10429 = vmatmul.bf16.gmra.mxu3 %v18051_v44 }
 0xae0   : > { %v10244_v3 = vpop.f32.mrf.mxu0 }
 0xae1   : > { %v10245_v59 = vadd.f32 %v10244_v3, %v10156_v19  ;;  %10473 = vmatmul.bf16.gmra.mxu2 %v17766_v23  ;;  %v18170_v3 = vld [vmem:[#allocation3 + $0xc0] sm:$0xff] }
 0xae2   : > { %v10390_v1 = vpop.f32.mrf.mxu3 }
 0xae3   : > { %v18158_v38 = vadd.f32 %v10390_v1, %v18040_v43  ;;  %v18160_v29 = vadd.f32 %v10333_v62, %v10245_v59 }
 0xae4   : > { %v10158_v58 = vpop.f32.mrf.mxu2 }
 0xae5   : > { %v10159_v12 = vadd.f32 %v18045_v63, %v10158_v58 }
 0xae6   : > { %v10336_v48 = vpop.f32.mrf.mxu1 }
 0xae8   : > { %v10247_v41 = vpop.f32.mrf.mxu0 }
 0xae9   : > { %v10248_v14 = vadd.f32 %v10247_v41, %v10159_v12  ;;  %10651 = vmatmul.bf16.gmra.mxu1 %v13095_v57 }
 0xaea   : > { %v10392_v28 = vpop.f32.mrf.mxu3 }
 0xaeb   : > { %10562 = vmatmul.bf16.gmra.mxu0 %v17755_v15  ;;  %v18165_v19 = vadd.f32 %v10392_v28, %v18058_v61  ;;  %v18167_v2 = vadd.f32 %v10336_v48, %v10248_v14  ;;  %v12818_v28 = vld [vmem:[#allocation15 + $0x218] sm:$0xff] }
 0xaec   : > { %v10160_v43 = vpop.f32.mrf.mxu2  ;;  %10800 = vmatpush.bf16.msra.mxu2 %v12818_v28 }
 0xaed   : > { %v10161_v62 = vadd.f32 %v18045_v63, %v10160_v43 }
 0xaee   : > { %v10338_v59 = vpop.f32.mrf.mxu1 }
 0xaef   : > { %10434 = vmatmul.bf16.gmra.mxu3 %v18170_v3 }
 0xaf0   : > { %v10249_v1 = vpop.f32.mrf.mxu0 }
 0xaf1   : > { %v10250_v58 = vadd.f32 %v10249_v1, %v10161_v62  ;;  %10478 = vmatmul.bf16.gmra.mxu2 %v17796_v7 }
 0xaf2   : > { %v10395_v12 = vpop.f32.mrf.mxu3 }
 0xaf3   : > { %v18175_v41 = vadd.f32 %v10395_v12, %v18077_v36  ;;  %v18177_v61 = vadd.f32 %v10338_v59, %v10250_v58 }
 0xaf4   : > { %v10163_v48 = vpop.f32.mrf.mxu2 }
 0xaf5   : > { %19395 = vst [vmem:[#allocation85_spill] sm:$0xff] %v18175_v41  ;;  %v10164_v14 = vadd.f32 %v18045_v63, %v10163_v48  ;;  %v19403_v41 = vld [vmem:[#allocation115_spill] sm:$0xff] }
 0xaf6   : > { %v10341_v57 = vpop.f32.mrf.mxu1 }
 0xaf8   : > { %v10252_v43 = vpop.f32.mrf.mxu0 }
 0xaf9   : > { %v10253_v15 = vadd.f32 %v10252_v43, %v10164_v14  ;;  %10656 = vmatmul.bf16.gmra.mxu1 %v13096_v60 }
 0xafa   : > { %v10397_v35 = vpop.f32.mrf.mxu3 }
 0xafb   : > { %10567 = vmatmul.bf16.gmra.mxu0 %v17791_v13  ;;  %v18182_v62 = vadd.f32 %v10397_v35, %v18085_v24  ;;  %v18184_v36 = vadd.f32 %v10341_v57, %v10253_v15 }
 0xafc   : > { %v10165_v1 = vpop.f32.mrf.mxu2 }
 0xafd   : > { %19396 = vst [vmem:[#allocation74_spill] sm:$0xff] %v18182_v62  ;;  %v10166_v59 = vadd.f32 %v18045_v63, %v10165_v1  ;;  %v13097_v1 = vld [vmem:[#allocation3 + $0x6c] sm:$0xff] }
 0xafe   : > { %v10343_v58 = vpop.f32.mrf.mxu1 }
 0xaff   : > { %10715 = vmatmul.bf16.vlgmr.msra.gmra.mxu3 %v19393_v21  ;;  %v19398_v21 = vld [vmem:[#allocation76_spill] sm:$0xff] }
 0xb00   : > { %v10254_v12 = vpop.f32.mrf.mxu0 }
 0xb01   : > { %v10255_v28 = vadd.f32 %v10254_v12, %v10166_v59  ;;  %10483 = vmatmul.bf16.gmra.mxu2 %v17824_v22 }
 0xb02   : > { %v10400_v48 = vpop.f32.mrf.mxu3 }
 0xb03   : > { %v18190_v60 = vadd.f32 %v10400_v48, %v18092_v33  ;;  %v18192_v14 = vadd.f32 %v10343_v58, %v10255_v28 }
 0xb04   : > { %v10168_v24 = vpop.f32.mrf.mxu2 }
 0xb05   : > { %19397 = vst [vmem:[#allocation110_spill] sm:$0xff] %v18190_v60  ;;  %v10169_v15 = vadd.f32 %v18045_v63, %v10168_v24  ;;  %v19400_v24 = vld [vmem:[#allocation161_spill] sm:$0xff] }
 0xb06   : > { %v10346_v35 = vpop.f32.mrf.mxu1 }
 0xb08   : > { %v10257_v57 = vpop.f32.mrf.mxu0 }
 0xb09   : > { %v10258_v43 = vadd.f32 %v10257_v57, %v10169_v15  ;;  %10661 = vmatmul.bf16.gmra.mxu1 %v13097_v1  ;;  %v10096_v15 = vadd.f32 %v18045_v63, %v19400_v24  ;;  %v19401_v1 = vld [vmem:[#allocation79_spill] sm:$0xff] }
 0xb0a   : > { %v10402_v13 = vpop.f32.mrf.mxu3 }
 0xb0b   : > { %10572 = vmatmul.bf16.gmra.mxu0 %v19398_v21  ;;  %v18197_v59 = vadd.f32 %v10402_v13, %v18100_v10  ;;  %v18199_v12 = vadd.f32 %v10346_v35, %v10258_v43  ;;  %v12817_v13 = vld [vmem:[#allocation15 + $0x210] sm:$0xff]  ;;  %v19402_v43 = vld [vmem:[#allocation28_spill] sm:$0xff] }
 0xb0c   : > { %v10170_v33 = vpop.f32.mrf.mxu2  ;;  %10801 = vmatpush.bf16.msra.mxu2 %v12817_v13 }
 0xb0d   : > { %19399 = vst [vmem:[#allocation88_spill] sm:$0xff] %v18197_v59  ;;  %v10171_v58 = vadd.f32 %v18045_v63, %v10170_v33  ;;  %v10185_v33 = vadd.f32 %v19402_v43, %v10096_v15 }
 0xb0e   : > { %v10348_v28 = vpop.f32.mrf.mxu1 }
 0xb0f   : > { %10720 = vmatmul.bf16.gmra.mxu3 %v17651_v37  ;;  %v10274_v63 = vadd.f32 %v19403_v41, %v10185_v33 }
 0xb10   : > { %v10259_v48 = vpop.f32.mrf.mxu0 }
 0xb11   : > { %v10260_v57 = vadd.f32 %v10259_v48, %v10171_v58  ;;  %10488 = vmatmul.bf16.gmra.mxu2 %v19401_v1  ;;  %v13098_v48 = vld [vmem:[#allocation3 + $0x78] sm:$0xff] }
 0xb12   : > { %v10405_v60 = vpop.f32.mrf.mxu3 }
 0xb13   : > { %v18207_v21 = vadd.f32 %v10405_v60, %v18107_v42  ;;  %v18209_v10 = vadd.f32 %v10348_v28, %v10260_v57  ;;  %v10363_v42 = vadd.f32 %v18074_v54, %v10274_v63  ;;  %v19404_v60 = vld [vmem:[#allocation106_spill] sm:$0xff] }
 0xb14   : > { %v10449_v35 = vpop.f32.mrf.mxu2 }
 0xb15   : > { %v10450_v59 = vadd.f32 %v10449_v35, %v18056_v47 }
 0xb16   : > { %v10627_v37 = vpop.f32.mrf.mxu1 }
 0xb18   : > { %v10538_v62 = vpop.f32.mrf.mxu0 }
 0xb19   : > { %v10539_v58 = vadd.f32 %v10538_v62, %v10450_v59  ;;  %10666 = vmatmul.bf16.gmra.mxu1 %v13098_v48  ;;  %v19405_v62 = vld [vmem:[#allocation82_spill] sm:$0xff]  ;;  %v13099_v48 = vld [vmem:[#allocation3 + $0x84] sm:$0xff] }
 0xb1a   : > { %v10407_v24 = vpop.f32.mrf.mxu3 }
 0xb1b   : > { %10577 = vmatmul.bf16.gmra.mxu0 %v19404_v60  ;;  %v18217_v28 = vadd.f32 %v10407_v24, %v18115_v18  ;;  %v18219_v57 = vadd.f32 %v10627_v37, %v10539_v58 }
 0xb1c   : > { %v10451_v15 = vpop.f32.mrf.mxu2 }
 0xb1d   : > { %v10452_v47 = vadd.f32 %v10451_v15, %v10363_v42 }
 0xb1e   : > { %v10629_v13 = vpop.f32.mrf.mxu1 }
 0xb1f   : > { %10725 = vmatmul.bf16.gmra.mxu3 %v17688_v30  ;;  %v19406_v30 = vld [vmem:[#allocation107_spill] sm:$0xff] }
 0xb20   : > { %v10540_v35 = vpop.f32.mrf.mxu0 }
 0xb21   : > { %v10541_v41 = vadd.f32 %v10540_v35, %v10452_v47  ;;  %10493 = vmatmul.bf16.gmra.mxu2 %v19405_v62 }
 0xb22   : > { %v10410_v59 = vpop.f32.mrf.mxu3 }
 0xb23   : > { %v18224_v43 = vadd.f32 %v10410_v59, %v18122_v50  ;;  %v18226_v54 = vadd.f32 %v10629_v13, %v10541_v41  ;;  %v19407_v41 = vld [vmem:[#allocation109_spill] sm:$0xff] }
 0xb24   : > { %v10454_v33 = vpop.f32.mrf.mxu2 }
 0xb25   : > { %v10455_v18 = vadd.f32 %v10454_v33, %v18083_v27 }
 0xb26   : > { %v10632_v37 = vpop.f32.mrf.mxu1 }
 0xb28   : > { %v10543_v63 = vpop.f32.mrf.mxu0 }
 0xb29   : > { %v10544_v58 = vadd.f32 %v10543_v63, %v10455_v18  ;;  %10671 = vmatmul.bf16.gmra.mxu1 %v13099_v48  ;;  %v12816_v18 = vld [vmem:[#allocation15 + $0x208] sm:$0xff] }
 0xb2a   : > { %v10412_v24 = vpop.f32.mrf.mxu3  ;;  %10802 = vmatpush.bf16.msra.mxu2 %v12816_v18 }
 0xb2b   : > { %10582 = vmatmul.bf16.gmra.mxu0 %v19406_v30  ;;  %v18231_v42 = vadd.f32 %v10412_v24, %v18130_v55  ;;  %v18233_v15 = vadd.f32 %v10632_v37, %v10544_v58  ;;  %v19408_v24 = vld [vmem:[#allocation124_spill] sm:$0xff] }
 0xb2c   : > { %v10456_v50 = vpop.f32.mrf.mxu2 }
 0xb2d   : > { %v10457_v47 = vadd.f32 %v10456_v50, %v18090_v31 }
 0xb2e   : > { %v10634_v13 = vpop.f32.mrf.mxu1 }
 0xb2f   : > { %10730 = vmatmul.bf16.gmra.mxu3 %v17726_v46 }
 0xb30   : > { %v10545_v27 = vpop.f32.mrf.mxu0 }
 0xb31   : > { %v10546_v35 = vadd.f32 %v10545_v27, %v10457_v47  ;;  %10498 = vmatmul.bf16.gmra.mxu2 %v19407_v41 }
 0xb32   : > { %v10415_v59 = vpop.f32.mrf.mxu3 }
 0xb33   : > { %v18239_v33 = vadd.f32 %v10415_v59, %v18137_v52  ;;  %v18241_v63 = vadd.f32 %v10634_v13, %v10546_v35 }
 0xb34   : > { %v10459_v55 = vpop.f32.mrf.mxu2 }
 0xb35   : > { %v10460_v37 = vadd.f32 %v10459_v55, %v18098_v49 }
 0xb36   : > { %v10637_v58 = vpop.f32.mrf.mxu1 }
 0xb38   : > { %v10548_v31 = vpop.f32.mrf.mxu0 }
 0xb39   : > { %v10549_v48 = vadd.f32 %v10548_v31, %v10460_v37  ;;  %10676 = vmatmul.bf16.gmra.mxu1 %v17938_v11 }
 0xb3a   : > { %v10417_v46 = vpop.f32.mrf.mxu3 }
 0xb3b   : > { %10587 = vmatmul.bf16.gmra.mxu0 %v19408_v24  ;;  %v18247_v50 = vadd.f32 %v10417_v46, %v18145_v16  ;;  %v18249_v52 = vadd.f32 %v10637_v58, %v10549_v48 }
 0xb3c   : > { %v10461_v47 = vpop.f32.mrf.mxu2 }
 0xb3d   : > { %v10462_v13 = vadd.f32 %v10461_v47, %v18105_v20 }
 0xb3e   : > { %v10639_v27 = vpop.f32.mrf.mxu1 }
 0xb3f   : > { %10735 = vmatmul.bf16.gmra.mxu3 %v17766_v23 }
 0xb40   : > { %v10550_v49 = vpop.f32.mrf.mxu0 }
 0xb41   : > { %v10551_v35 = vadd.f32 %v10550_v49, %v10462_v13  ;;  %10503 = vmatmul.bf16.gmra.mxu2 %v17961_v51  ;;  %v12815_v49 = vld [vmem:[#allocation15 + $0x200] sm:$0xff] }
 0xb42   : > { %v10420_v59 = vpop.f32.mrf.mxu3  ;;  %10803 = vmatpush.bf16.msra.mxu2 %v12815_v49 }
 0xb43   : > { %v18255_v11 = vadd.f32 %v10420_v59, %v18152_v34  ;;  %v18257_v18 = vadd.f32 %v10639_v27, %v10551_v35 }
 0xb44   : > { %v10464_v16 = vpop.f32.mrf.mxu2 }
 0xb45   : > { %v10465_v55 = vadd.f32 %v10464_v16, %v18113_v6 }
 0xb46   : > { %v10642_v37 = vpop.f32.mrf.mxu1 }
 0xb48   : > { %v10553_v58 = vpop.f32.mrf.mxu0 }
 0xb49   : > { %v10554_v31 = vadd.f32 %v10553_v58, %v10465_v55  ;;  %10681 = vmatmul.bf16.gmra.mxu1 %v17975_v32 }
 0xb4a   : > { %v10422_v20 = vpop.f32.mrf.mxu3 }
 0xb4b   : > { %10592 = vmatmul.bf16.gmra.mxu0 %v17956_v56  ;;  %v18263_v23 = vadd.f32 %v10422_v20, %v18160_v29  ;;  %v18265_v48 = vadd.f32 %v10642_v37, %v10554_v31  ;;  %v9032_v31 = vld [vmem:[#allocation3 + $0xc8] sm:$0x1] }
 0xb4c   : > { %v10466_v34 = vpop.f32.mrf.mxu2 }
 0xb4d   : > { %v10467_v46 = vadd.f32 %v10466_v34, %v18120_v40 }
 0xb4e   : > { %v10644_v13 = vpop.f32.mrf.mxu1 }
 0xb4f   : > { %10740 = vmatmul.bf16.gmra.mxu3 %v17796_v7 }
 0xb50   : > { %v10555_v47 = vpop.f32.mrf.mxu0 }
 0xb51   : > { %v10556_v6 = vadd.f32 %v10555_v47, %v10467_v46  ;;  %10508 = vmatmul.bf16.gmra.mxu2 %v17999_v25  ;;  %v9464_v46 = vshll.u32 %v18170_v3, 16 }
 0xb52   : > { %v10425_v27 = vpop.f32.mrf.mxu3 }
 0xb53   : > { %v18271_v32 = vadd.f32 %v10425_v27, %v18167_v2  ;;  %v18273_v35 = vadd.f32 %v10644_v13, %v10556_v6  ;;  %v9466_v47 = vrot.slane %v9464_v46, 1 }
 0xb54   : > { %v10469_v29 = vpop.f32.mrf.mxu2 }
 0xb55   : > { %v18276_v59 = vadd.f32 %v10469_v29, %v18128_v39 }
 0xb59   : > { %10686 = vmatmul.bf16.gmra.mxu1 %v18013_v4 }
 0xb5a   : > { %v10427_v7 = vpop.f32.mrf.mxu3 }
 0xb5b   : > { %10597 = vmatmul.bf16.gmra.mxu0 %v17994_v17  ;;  %v18281_v40 = vadd.f32 %v10427_v7, %v18177_v61 }
 0xb5c   : > { %v10471_v16 = vpop.f32.mrf.mxu2 }
 0xb5d   : > { %v18284_v2 = vadd.f32 %v10471_v16, %v18135_v9 }
 0xb5f   : > { %10745 = vmatmul.bf16.gmra.mxu3 %v17824_v22 }
 0xb61   : > { %10513 = vmatmul.bf16.gmra.mxu2 %v18037_v26 }
 0xb62   : > { %v10430_v55 = vpop.f32.mrf.mxu3 }
 0xb63   : > { %v18289_v39 = vadd.f32 %v10430_v55, %v18184_v36  ;;  %v9459_v36 = vunpack.c.l.b16 %v9032_v31  ;;  %v9474_v31 = vrot.slane %v18170_v3, 1 }
 0xb64   : > { %v10474_v37 = vpop.f32.mrf.mxu2 }
 0xb65   : > { %v18292_v4 = vadd.f32 %v10474_v37, %v18143_v45  ;;  %v9460_v34 = vpack.c.b16 %v9459_v36, %v9459_v36  ;;  %v19409_v37 = vld [vmem:[#allocation85_spill] sm:$0xff] }
 0xb69   : > { %10691 = vmatmul.bf16.gmra.mxu1 %v18051_v44 }
 0xb6a   : > { %v10432_v61 = vpop.f32.mrf.mxu3 }
 0xb6b   : > { %10602 = vmatmul.bf16.gmra.mxu0 %v18032_v53  ;;  %v18297_v9 = vadd.f32 %v10432_v61, %v18192_v14 }
 0xb6c   : > { %v10476_v58 = vpop.f32.mrf.mxu2 }
 0xb6d   : > { %v18300_v22 = vadd.f32 %v10476_v58, %v18150_v5  ;;  %v9469_v5 = vshll.u32 %v9460_v34, 16  ;;  %v9475_v58 = vrot.slane %v9460_v34, 1  ;;  %v19411_v34 = vld [vmem:[#allocation155_spill] sm:$0xff] }
 0xb6f   : > { %10750 = vmatmul.bf16.gmra.mxu3 %v19401_v1  ;;  %v9462_v1 = vshrl.u32 %v18170_v3, 16  ;;  %v9471_v49 = vrot.slane %v9469_v5, 1  ;;  %v19412_v5 = vld [vmem:[#allocation110_spill] sm:$0xff] }
 0xb71   : > { %10518 = vmatmul.bf16.gmra.mxu2 %v18072_v8  ;;  %v9467_v27 = vor.u32 %v9466_v47, %v9462_v1 }
 0xb72   : > { %v10435_v45 = vpop.f32.mrf.mxu3 }
 0xb73   : > { %v18305_v20 = vadd.f32 %v10435_v45, %v18199_v12  ;;  %v19410_v45 = vld [vmem:[#allocation74_spill] sm:$0xff] }
 0xb74   : > { %v10479_v44 = vpop.f32.mrf.mxu2 }
 0xb75   : > { %v18309_v14 = vadd.f32 %v10479_v44, %v18158_v38  ;;  %v9472_v38 = vsel %vm1746_vm2, %v9467_v27, %v9471_v49  ;;  %v19413_v27 = vld [vmem:[#allocation88_spill] sm:$0xff] }
 0xb79   : > { %10696 = vmatmul.bf16.gmra.mxu1 %v18170_v3 }
 0xb7a   : > { %v10437_v6 = vpop.f32.mrf.mxu3 }
 0xb7b   : > { %10607 = vmatmul.bf16.gmra.mxu0 %v18068_v0  ;;  %v18315_v13 = vadd.f32 %v10437_v6, %v18209_v10  ;;  %v18328_v10 = vld [vmem:[#allocation3 + $0xcc] sm:$0xff] }
 0xb7c   : > { %v10481_v12 = vpop.f32.mrf.mxu2 }
 0xb7d   : > { %v18318_v29 = vadd.f32 %v10481_v12, %v18165_v19  ;;  %v18333_v19 = vsel %vm1971_vm3, %v9474_v31, %v9475_v58 }
 0xb7f   : > { %10755 = vmatmul.bf16.gmra.mxu3 %v19405_v62 }
 0xb81   : > { %10523 = vmatmul.bf16.gmra.mxu2 %v9472_v38 }
 0xb82   : > { %v10716_v7 = vpop.f32.mrf.mxu3 }
 0xb83   : > { %v18323_v16 = vadd.f32 %v10716_v7, %v18219_v57 }
 0xb84   : > { %v10484_v55 = vpop.f32.mrf.mxu2 }
 0xb85   : > { %v18326_v61 = vadd.f32 %v10484_v55, %v19409_v37 }
 0xb89   : > { %10701 = vmatmul.bf16.gmra.mxu1 %v18328_v10 }
 0xb8a   : > { %v10718_v62 = vpop.f32.mrf.mxu3 }
 0xb8b   : > { %10612 = vmatmul.bf16.gmra.mxu0 %v18333_v19  ;;  %v18337_v57 = vadd.f32 %v10718_v62, %v18226_v54 }
 0xb8c   : > { %v10486_v36 = vpop.f32.mrf.mxu2 }
 0xb8d   : > { %v18340_v44 = vadd.f32 %v10486_v36, %v19410_v45 }
 0xb8f   : > { %10760 = vmatmul.bf16.gmra.mxu3 %v19407_v41  ;;  %v19414_v41 = vld [vmem:[#allocation160_spill] sm:$0xff] }
 0xb91   : > { %10804 = vmatmul.bf16.vlgmr.msra.gmra.mxu2 %v19411_v34 }
 0xb92   : > { %v10721_v3 = vpop.f32.mrf.mxu3 }
 0xb93   : > { %v18345_v46 = vadd.f32 %v10721_v3, %v18233_v15 }
 0xb94   : > { %v10489_v47 = vpop.f32.mrf.mxu2 }
 0xb95   : > { %v18348_v6 = vadd.f32 %v10489_v47, %v19412_v5 }
 0xb9a   : > { %v10723_v1 = vpop.f32.mrf.mxu3 }
 0xb9b   : > { %v18351_v54 = vadd.f32 %v10723_v1, %v18241_v63 }
 0xb9c   : > { %v10491_v12 = vpop.f32.mrf.mxu2 }
 0xb9d   : > { %v18354_v49 = vadd.f32 %v10491_v12, %v19413_v27  ;;  %v9035_v12 = vld [vmem:[#allocation3 + $0xd4] sm:$0x1] }
 0xb9e   : > { %v9485_v27 = vunpack.c.l.b16 %v9035_v12 }
 0xb9f   : > { %10765 = vmatmul.bf16.gmra.mxu3 %v17961_v51  ;;  %v19415_v51 = vld [vmem:[#allocation103_spill] sm:$0xff] }
 0xba1   : > { %10809 = vmatmul.bf16.gmra.mxu2 %v19414_v41 }
 0xba2   : > { %v10726_v7 = vpop.f32.mrf.mxu3 }
 0xba3   : > { %v18359_v15 = vadd.f32 %v10726_v7, %v18249_v52  ;;  %v19418_v7 = vld [vmem:[#allocation114_spill] sm:$0xff] }
 0xba4   : > { %v10494_v55 = vpop.f32.mrf.mxu2 }
 0xba5   : > { %v18362_v37 = vadd.f32 %v10494_v55, %v18207_v21  ;;  %v9488_v55 = vshrl.u32 %v18328_v10, 16 }
 0xbaa   : > { %v10728_v58 = vpop.f32.mrf.mxu3 }
 0xbab   : > { %v18365_v63 = vadd.f32 %v10728_v58, %v18257_v18 }
 0xbac   : > { %v10496_v31 = vpop.f32.mrf.mxu2 }
 0xbad   : > { %v18368_v62 = vadd.f32 %v10496_v31, %v18217_v28 }
 0xbaf   : > { %10770 = vmatmul.bf16.gmra.mxu3 %v17999_v25  ;;  %v19416_v25 = vld [vmem:[#allocation73_spill] sm:$0xff] }
 0xbb1   : > { %10814 = vmatmul.bf16.gmra.mxu2 %v19415_v51 }
 0xbb2   : > { %v10731_v36 = vpop.f32.mrf.mxu3 }
 0xbb3   : > { %v18373_v52 = vadd.f32 %v10731_v36, %v18265_v48 }
 0xbb4   : > { %v10499_v45 = vpop.f32.mrf.mxu2 }
 0xbb5   : > { %v18376_v21 = vadd.f32 %v10499_v45, %v18224_v43 }
 0xbba   : > { %v10733_v34 = vpop.f32.mrf.mxu3 }
 0xbbb   : > { %v18379_v18 = vadd.f32 %v10733_v34, %v18273_v35  ;;  %v19417_v35 = vld [vmem:[#allocation104_spill] sm:$0xff] }
 0xbbc   : > { %v10501_v3 = vpop.f32.mrf.mxu2  ;;  %v19419_v34 = vld [vmem:[#allocation76_spill] sm:$0xff] }
 0xbbd   : > { %v18382_v28 = vadd.f32 %v10501_v3, %v18231_v42 }
 0xbbf   : > { %10775 = vmatmul.bf16.gmra.mxu3 %v18037_v26 }
 0xbc1   : > { %10819 = vmatmul.bf16.gmra.mxu2 %v19416_v25 }
 0xbc4   : > { %v10504_v47 = vpop.f32.mrf.mxu2 }
 0xbc5   : > { %v18387_v48 = vadd.f32 %v10504_v47, %v18239_v33  ;;  %v18400_v33 = vpack.c.b16 %v9485_v27, %v9485_v27 }
 0xbcc   : > { %v10506_v5 = vpop.f32.mrf.mxu2 }
 0xbcd   : > { %v18390_v43 = vadd.f32 %v10506_v5, %v18247_v50  ;;  %v9490_v50 = vshll.u32 %v18328_v10, 16 }
 0xbcf   : > { %10780 = vmatmul.bf16.gmra.mxu3 %v18072_v8  ;;  %v9492_v58 = vrot.slane %v9490_v50, 1  ;;  %v19420_v50 = vld [vmem:[#allocation149_spill] sm:$0xff] }
 0xbd1   : > { %10824 = vmatmul.bf16.gmra.mxu2 %v19417_v35  ;;  %v9493_v51 = vor.u32 %v9492_v58, %v9488_v55  ;;  %v10647_v55 = vpop.f32.mrf.mxu1 }
 0xbd4   : > { %v10509_v1 = vpop.f32.mrf.mxu2 }
 0xbd5   : > { %v18395_v42 = vadd.f32 %v10509_v1, %v18255_v11  ;;  %v9495_v11 = vshll.u32 %v18400_v33, 16 }
 0xbd7   : > { %v9497_v36 = vrot.slane %v9495_v11, 1 }
 0xbd9   : > { %v10649_v11 = vpop.f32.mrf.mxu1 }
 0xbdc   : > { %v10511_v26 = vpop.f32.mrf.mxu2 }
 0xbdd   : > { %v18398_v41 = vadd.f32 %v10511_v26, %v18263_v23  ;;  %v10558_v26 = vpop.f32.mrf.mxu0 }
 0xbdf   : > { %10785 = vmatmul.bf16.gmra.mxu3 %v9472_v38  ;;  %v9498_v38 = vsel %vm1746_vm2, %v9493_v51, %v9497_v36 }
 0xbe1   : > { %10829 = vmatmul.bf16.gmra.mxu2 %v19418_v7  ;;  %v19421_v7 = vld [vmem:[#allocation151_spill] sm:$0xff] }
 0xbe4   : > { %v10514_v8 = vpop.f32.mrf.mxu2 }
 0xbe5   : > { %v18407_v31 = vadd.f32 %v10514_v8, %v18271_v32 }
 0xbec   : > { %v10516_v23 = vpop.f32.mrf.mxu2 }
 0xbed   : > { %v18411_v45 = vadd.f32 %v10516_v23, %v18281_v40  ;;  %v19422_v23 = vld [vmem:[#allocation153_spill] sm:$0xff] }
 0xbef   : > { %10790 = vmatmul.bf16.gmra.mxu3 %v9498_v38 }
 0xbf1   : > { %10834 = vmatmul.bf16.gmra.mxu2 %v19419_v34  ;;  %v19423_v34 = vld [vmem:[#allocation156_spill] sm:$0xff] }
 0xbf4   : > { %v10519_v3 = vpop.f32.mrf.mxu2 }
 0xbf5   : > { %v18415_v25 = vadd.f32 %v10519_v3, %v18289_v39 }
 0xbfc   : > { %v10521_v47 = vpop.f32.mrf.mxu2 }
 0xbfd   : > { %v18418_v5 = vadd.f32 %v10521_v47, %v18297_v9 }
 0xc01   : > { %10839 = vmatmul.bf16.gmra.mxu2 %v19404_v60 }
 0xc04   : > { %v10524_v32 = vpop.f32.mrf.mxu2 }
 0xc05   : > { %v18422_v35 = vadd.f32 %v10524_v32, %v18305_v20 }
 0xc0c   : > { %v10526_v40 = vpop.f32.mrf.mxu2 }
 0xc0d   : > { %v18425_v1 = vadd.f32 %v10526_v40, %v18315_v13  ;;  %v10736_v13 = vpop.f32.mrf.mxu3  ;;  %v10652_v40 = vpop.f32.mrf.mxu1 }
 0xc11   : > { %10844 = vmatmul.bf16.gmra.mxu2 %v19406_v30  ;;  %v10560_v30 = vpop.f32.mrf.mxu0 }
 0xc14   : > { %v10805_v12 = vpop.f32.mrf.mxu2 }
 0xc15   : > { %v10806_v39 = vadd.f32 %v10805_v12, %v18323_v16  ;;  %v10738_v51 = vpop.f32.mrf.mxu3 }
 0xc17   : > { %v10885_v60 = vadd.f32 %v10806_v39, %v19420_v50  ;;  %v19424_v50 = vld [vmem:[#allocation158_spill] sm:$0xff] }
 0xc19   : > { %v10563_v47 = vpop.f32.mrf.mxu0 }
 0xc1c   : > { %v10807_v27 = vpop.f32.mrf.mxu2 }
 0xc1d   : > { %v10808_v9 = vadd.f32 %v10807_v27, %v18337_v57  ;;  %v10741_v12 = vpop.f32.mrf.mxu3 }
 0xc1f   : > { %v10886_v8 = vadd.f32 %v10808_v9, %v19421_v7  ;;  %v19425_v7 = vld [vmem:[#allocation98_spill] sm:$0xff] }
 0xc21   : > { %v12827_v20 = vpack.c.bf16 %v10886_v8, %v10885_v60  ;;  %10849 = vmatmul.bf16.gmra.mxu2 %v19408_v24  ;;  %v10565_v39 = vpop.f32.mrf.mxu0 }
 0xc23   : > { %12828 = vst [vmem:[%s13650_s10] sm:$0xff] %v12827_v20  }
 0xc24   : > { %v10810_v58 = vpop.f32.mrf.mxu2 }
 0xc25   : > { %v10811_v16 = vadd.f32 %v10810_v58, %v18345_v46  ;;  %v10743_v20 = vpop.f32.mrf.mxu3 }
 0xc27   : > { %v10887_v38 = vadd.f32 %v10811_v16, %v19422_v23 }
 0xc2c   : > { %v10812_v36 = vpop.f32.mrf.mxu2 }
 0xc2d   : > { %v10813_v57 = vadd.f32 %v10812_v36, %v18351_v54  ;;  %v10654_v54 = vpop.f32.mrf.mxu1 }
 0xc2f   : > { %v10888_v3 = vadd.f32 %v10813_v57, %v19423_v34  ;;  %v10746_v57 = vpop.f32.mrf.mxu3  ;;  %v19426_v34 = vld [vmem:[#allocation118_spill] sm:$0xff] }
 0xc31   : > { %v12832_v32 = vpack.c.bf16 %v10888_v3, %v10887_v38  ;;  %10854 = vmatmul.bf16.gmra.mxu2 %v17956_v56  ;;  %v10568_v56 = vpop.f32.mrf.mxu0 }
 0xc33   : > { %12904 = vst [vmem:[%s13650_s10 + $0x8] sm:$0xff] %v12832_v32   ;;  %v19427_v32 = vld [vmem:[#allocation119_spill] sm:$0xff] }
 0xc34   : > { %v10815_v24 = vpop.f32.mrf.mxu2 }
 0xc35   : > { %v10816_v46 = vadd.f32 %v10815_v24, %v18359_v15  ;;  %v10657_v36 = vpop.f32.mrf.mxu1 }
 0xc37   : > { %v10889_v60 = vadd.f32 %v10816_v46, %v19424_v50 }
 0xc39   : > { %v10570_v38 = vpop.f32.mrf.mxu0 }
 0xc3c   : > { %v10817_v27 = vpop.f32.mrf.mxu2 }
 0xc3d   : > { %v10818_v9 = vadd.f32 %v10817_v27, %v18365_v63  ;;  %v10659_v27 = vpop.f32.mrf.mxu1 }
 0xc3f   : > { %v10890_v8 = vadd.f32 %v10818_v9, %v19425_v7  ;;  %v10748_v9 = vpop.f32.mrf.mxu3 }
 0xc41   : > { %v12837_v58 = vpack.c.bf16 %v10890_v8, %v10889_v60  ;;  %10859 = vmatmul.bf16.gmra.mxu2 %v17994_v17  ;;  %v10559_v17 = vadd.f32 %v10558_v26, %v18276_v59  ;;  %v10561_v60 = vadd.f32 %v10560_v30, %v18284_v2  ;;  %v10573_v7 = vpop.f32.mrf.mxu0  ;;  %v19429_v59 = vld [vmem:[#allocation33_spill] sm:$0xff]  ;;  %v10564_v2 = vadd.f32 %v10563_v47, %v18292_v4 }
 0xc43   : > { %12905 = vst [vmem:[%s13650_s10 + $0x10] sm:$0xff] %v12837_v58   ;;  %v10650_v8 = vadd.f32 %v10649_v11, %v10561_v60  ;;  %v10653_v11 = vadd.f32 %v10652_v40, %v10564_v2  ;;  %v10569_v40 = vadd.f32 %v10568_v56, %v18309_v14  ;;  %v19432_v56 = vld [vmem:[#allocation123_spill] sm:$0xff] }
 0xc44   : > { %v10820_v16 = vpop.f32.mrf.mxu2 }
 0xc45   : > { %v10821_v15 = vadd.f32 %v10820_v16, %v18373_v52  ;;  %v10648_v52 = vadd.f32 %v10647_v55, %v10559_v17  ;;  %v10739_v58 = vadd.f32 %v10738_v51, %v10650_v8 }
 0xc47   : > { %v10891_v3 = vadd.f32 %v10821_v15, %v19426_v34  ;;  %v10751_v34 = vpop.f32.mrf.mxu3 }
 0xc4c   : > { %v10822_v23 = vpop.f32.mrf.mxu2 }
 0xc4d   : > { %v10823_v63 = vadd.f32 %v10822_v23, %v18379_v18  ;;  %v10737_v18 = vadd.f32 %v10736_v13, %v10648_v52  ;;  %v10662_v23 = vpop.f32.mrf.mxu1  ;;  %v10566_v13 = vadd.f32 %v10565_v39, %v18300_v22 }
 0xc4f   : > { %v10892_v24 = vadd.f32 %v10823_v63, %v19427_v32  ;;  %v10753_v51 = vpop.f32.mrf.mxu3  ;;  %v10655_v17 = vadd.f32 %v10654_v54, %v10566_v13 }
 0xc51   : > { %v12842_v46 = vpack.c.bf16 %v10892_v24, %v10891_v3  ;;  %10864 = vmatmul.bf16.gmra.mxu2 %v18032_v53  ;;  %v19428_v53 = vld [vmem:[#allocation122_spill] sm:$0xff]  ;;  %v10575_v24 = vpop.f32.mrf.mxu0 }
 0xc53   : > { %12906 = vst [vmem:[%s13650_s10 + $0x18] sm:$0xff] %v12842_v46   ;;  %v10742_v46 = vadd.f32 %v10741_v12, %v10653_v11  ;;  %v10571_v12 = vadd.f32 %v10570_v38, %v18318_v29  ;;  %v19433_v29 = vld [vmem:[#allocation111_spill] sm:$0xff] }
 0xc54   : > { %v10825_v50 = vpop.f32.mrf.mxu2 }
 0xc55   : > { %v10826_v16 = vadd.f32 %v10825_v50, %v10737_v18  ;;  %v10664_v30 = vpop.f32.mrf.mxu1  ;;  %v10744_v50 = vadd.f32 %v10743_v20, %v10655_v17  ;;  %v10658_v20 = vadd.f32 %v10657_v36, %v10569_v40 }
 0xc57   : > { %v10893_v3 = vadd.f32 %v10826_v16, %v19428_v53  ;;  %v19431_v16 = vld [vmem:[#allocation121_spill] sm:$0xff]  ;;  %v10756_v22 = vpop.f32.mrf.mxu3  ;;  %v10660_v53 = vadd.f32 %v10659_v27, %v10571_v12  ;;  %v10574_v27 = vadd.f32 %v10573_v7, %v18326_v61 }
 0xc59   : > { %v10578_v52 = vpop.f32.mrf.mxu0  ;;  %v10663_v17 = vadd.f32 %v10662_v23, %v10574_v27 }
 0xc5c   : > { %v10827_v15 = vpop.f32.mrf.mxu2 }
 0xc5d   : > { %v10828_v63 = vadd.f32 %v10827_v15, %v10739_v58  ;;  %v19430_v58 = vld [vmem:[#allocation77_spill] sm:$0xff]  ;;  %v10667_v4 = vpop.f32.mrf.mxu1 }
 0xc5f   : > { %v10894_v26 = vadd.f32 %v10828_v63, %v19429_v59  ;;  %v10747_v63 = vadd.f32 %v10746_v57, %v10658_v20  ;;  %v9501_v59 = vrot.slane %v18400_v33, 1  ;;  %v10576_v33 = vadd.f32 %v10575_v24, %v18340_v44 }
 0xc60   : > { %v10579_v44 = vadd.f32 %v10578_v52, %v18348_v6 }
 0xc61   : > { %v12847_v32 = vpack.c.bf16 %v10894_v26, %v10893_v3  ;;  %10869 = vmatmul.bf16.gmra.mxu2 %v18068_v0  ;;  %v10580_v54 = vpop.f32.mrf.mxu0  ;;  %v9500_v3 = vrot.slane %v18328_v10, 1 }
 0xc62   : > { %v10581_v23 = vadd.f32 %v10580_v54, %v18354_v49 }
 0xc63   : > { %12907 = vst [vmem:[%s13650_s10 + $0x20] sm:$0xff] %v12847_v32   ;;  %v10749_v32 = vadd.f32 %v10748_v9, %v10660_v53  ;;  %v9502_v14 = vsel %vm1971_vm3, %v9500_v3, %v9501_v59 }
 0xc64   : > { %v10830_v55 = vpop.f32.mrf.mxu2 }
 0xc65   : > { %v10831_v60 = vadd.f32 %v10830_v55, %v10742_v46  ;;  %v10669_v26 = vpop.f32.mrf.mxu1 }
 0xc67   : > { %v10895_v0 = vadd.f32 %v10831_v60, %v19430_v58  ;;  %v10665_v60 = vadd.f32 %v10664_v30, %v10576_v33 }
 0xc69   : > { %v10583_v36 = vpop.f32.mrf.mxu0 }
 0xc6c   : > { %v10832_v18 = vpop.f32.mrf.mxu2 }
 0xc6d   : > { %v10833_v8 = vadd.f32 %v10832_v18, %v10744_v50  ;;  %v10672_v9 = vpop.f32.mrf.mxu1  ;;  %v10752_v50 = vadd.f32 %v10751_v34, %v10663_v17  ;;  %v10668_v34 = vadd.f32 %v10667_v4, %v10579_v44 }
 0xc6f   : > { %v10896_v15 = vadd.f32 %v10833_v8, %v19431_v16  ;;  %v10754_v8 = vadd.f32 %v10753_v51, %v10665_v60  ;;  %v10757_v51 = vadd.f32 %v10756_v22, %v10668_v34  ;;  %v19438_v60 = vld [vmem:[#allocation89_spill] sm:$0xff] }
 0xc70   : > { %v19441_v34 = vld [vmem:[#allocation61_spill] sm:$0xff] }
 0xc71   : > { %v12852_v47 = vpack.c.bf16 %v10896_v15, %v10895_v0  ;;  %10874 = vmatmul.bf16.gmra.mxu2 %v18333_v19  ;;  %v10758_v19 = vpop.f32.mrf.mxu3  ;;  %v10585_v18 = vpop.f32.mrf.mxu0 }
 0xc72   : > { %v10586_v22 = vadd.f32 %v10585_v18, %v18368_v62 }
 0xc73   : > { %12908 = vst [vmem:[%s13650_s10 + $0x28] sm:$0xff] %v12852_v47   ;;  %v19434_v47 = vld [vmem:[#allocation83_spill] sm:$0xff] }
 0xc74   : > { %v10835_v39 = vpop.f32.mrf.mxu2 }
 0xc75   : > { %v10836_v2 = vadd.f32 %v10835_v39, %v10747_v63  ;;  %v10674_v15 = vpop.f32.mrf.mxu1  ;;  %v19435_v39 = vld [vmem:[#allocation86_spill] sm:$0xff]  ;;  %v10670_v63 = vadd.f32 %v10669_v26, %v10581_v23 }
 0xc77   : > { %v10897_v11 = vadd.f32 %v10836_v2, %v19432_v56  ;;  %v10759_v3 = vadd.f32 %v10758_v19, %v10670_v63  ;;  %v19437_v56 = vld [vmem:[#allocation94_spill] sm:$0xff] }
 0xc79   : > { %v10761_v46 = vpop.f32.mrf.mxu3  ;;  %v10588_v24 = vpop.f32.mrf.mxu0 }
 0xc7c   : > { %v10837_v55 = vpop.f32.mrf.mxu2 }
 0xc7d   : > { %v10838_v13 = vadd.f32 %v10837_v55, %v10749_v32  ;;  %v10677_v30 = vpop.f32.mrf.mxu1 }
 0xc7f   : > { %v10898_v38 = vadd.f32 %v10838_v13, %v19433_v29  ;;  %v19436_v13 = vld [vmem:[#allocation127_spill] sm:$0xff] }
 0xc81   : > { %v12857_v57 = vpack.c.bf16 %v10898_v38, %v10897_v11  ;;  %10879 = vmatmul.bf16.gmra.mxu2 %v9502_v14  ;;  %v10763_v7 = vpop.f32.mrf.mxu3  ;;  %v10590_v55 = vpop.f32.mrf.mxu0  ;;  %v10584_v11 = vadd.f32 %v10583_v36, %v18362_v37  ;;  %v10675_v38 = vadd.f32 %v10674_v15, %v10586_v22  ;;  %v19439_v37 = vld [vmem:[#allocation38_spill] sm:$0xff] }
 0xc83   : > { %12909 = vst [vmem:[%s13650_s10 + $0x30] sm:$0xff] %v12857_v57   ;;  %v10673_v54 = vadd.f32 %v10672_v9, %v10584_v11  ;;  %v10764_v57 = vadd.f32 %v10763_v7, %v10675_v38  ;;  %v10591_v9 = vadd.f32 %v10590_v55, %v18382_v28  ;;  %v19442_v11 = vld [vmem:[#allocation40_spill] sm:$0xff] }
 0xc84   : > { %v10840_v10 = vpop.f32.mrf.mxu2 }
 0xc85   : > { %v10841_v58 = vadd.f32 %v10840_v10, %v10752_v50  ;;  %v10679_v29 = vpop.f32.mrf.mxu1  ;;  %v10762_v19 = vadd.f32 %v10761_v46, %v10673_v54 }
 0xc87   : > { %v10899_v40 = vadd.f32 %v10841_v58, %v19434_v47 }
 0xc89   : > { %v10766_v53 = vpop.f32.mrf.mxu3  ;;  %v10593_v26 = vpop.f32.mrf.mxu0 }
 0xc8a   : > { %v10594_v28 = vadd.f32 %v10593_v26, %v18387_v48 }
 0xc8c   : > { %v10842_v0 = vpop.f32.mrf.mxu2 }
 0xc8d   : > { %v10843_v16 = vadd.f32 %v10842_v0, %v10754_v8  ;;  %v10682_v33 = vpop.f32.mrf.mxu1 }
 0xc8f   : > { %v10900_v61 = vadd.f32 %v10843_v16, %v19435_v39  ;;  %v10589_v16 = vadd.f32 %v10588_v24, %v18376_v21 }
 0xc91   : > { %v12862_v12 = vpack.c.bf16 %v10900_v61, %v10899_v40  ;;  %v10768_v49 = vpop.f32.mrf.mxu3  ;;  %v10595_v0 = vpop.f32.mrf.mxu0  ;;  %v10678_v18 = vadd.f32 %v10677_v30, %v10589_v16  ;;  %v10680_v40 = vadd.f32 %v10679_v29, %v10591_v9 }
 0xc92   : > { %v10596_v30 = vadd.f32 %v10595_v0, %v18390_v43  ;;  %v19445_v0 = vld [vmem:[#allocation62_spill] sm:$0xff] }
 0xc93   : > { %12910 = vst [vmem:[%s13650_s10 + $0x38] sm:$0xff] %v12862_v12   ;;  %v10767_v47 = vadd.f32 %v10766_v53, %v10678_v18  ;;  %v10769_v39 = vadd.f32 %v10768_v49, %v10680_v40  ;;  %v19443_v49 = vld [vmem:[#allocation39_spill] sm:$0xff] }
 0xc94   : > { %v10845_v20 = vpop.f32.mrf.mxu2 }
 0xc95   : > { %v10846_v59 = vadd.f32 %v10845_v20, %v10757_v51  ;;  %v10684_v46 = vpop.f32.mrf.mxu1  ;;  %v19440_v20 = vld [vmem:[#allocation133_spill] sm:$0xff] }
 0xc97   : > { %v10901_v14 = vadd.f32 %v10846_v59, %v19436_v13  ;;  %v10683_v59 = vadd.f32 %v10682_v33, %v10594_v28 }
 0xc99   : > { %v10771_v50 = vpop.f32.mrf.mxu3  ;;  %v10598_v7 = vpop.f32.mrf.mxu0 }
 0xc9a   : > { %v10599_v54 = vadd.f32 %v10598_v7, %v18395_v42 }
 0xc9c   : > { %v10847_v32 = vpop.f32.mrf.mxu2 }
 0xc9d   : > { %v10848_v2 = vadd.f32 %v10847_v32, %v10759_v3  ;;  %v10687_v21 = vpop.f32.mrf.mxu1  ;;  %v10772_v32 = vadd.f32 %v10771_v50, %v10683_v59 }
 0xc9f   : > { %v10902_v6 = vadd.f32 %v10848_v2, %v19437_v56  ;;  %v10685_v2 = vadd.f32 %v10684_v46, %v10596_v30 }
 0xca1   : > { %v12867_v52 = vpack.c.bf16 %v10902_v6, %v10901_v14  ;;  %v10773_v15 = vpop.f32.mrf.mxu3  ;;  %v10600_v53 = vpop.f32.mrf.mxu0 }
 0xca2   : > { %v10774_v13 = vadd.f32 %v10773_v15, %v10685_v2  ;;  %v10601_v26 = vadd.f32 %v10600_v53, %v18398_v41 }
 0xca3   : > { %12911 = vst [vmem:[%s13650_s10 + $0x40] sm:$0xff] %v12867_v52  }
 0xca4   : > { %v10850_v4 = vpop.f32.mrf.mxu2 }
 0xca5   : > { %v10851_v27 = vadd.f32 %v10850_v4, %v10762_v19  ;;  %v10689_v55 = vpop.f32.mrf.mxu1 }
 0xca7   : > { %v10903_v8 = vadd.f32 %v10851_v27, %v19438_v60 }
 0xca9   : > { %v10776_v63 = vpop.f32.mrf.mxu3  ;;  %v10603_v48 = vpop.f32.mrf.mxu0 }
 0xcaa   : > { %v10604_v41 = vadd.f32 %v10603_v48, %v18407_v31 }
 0xcac   : > { %v10852_v10 = vpop.f32.mrf.mxu2 }
 0xcad   : > { %v10853_v17 = vadd.f32 %v10852_v10, %v10764_v57  ;;  %v10692_v19 = vpop.f32.mrf.mxu1  ;;  %v10688_v57 = vadd.f32 %v10687_v21, %v10599_v54  ;;  %v10690_v10 = vadd.f32 %v10689_v55, %v10601_v26  ;;  %v19447_v21 = vld [vmem:[#allocation154_spill] sm:$0xff] }
 0xcae   : > { %v10693_v15 = vadd.f32 %v10692_v19, %v10604_v41 }
 0xcaf   : > { %v10904_v36 = vadd.f32 %v10853_v17, %v19439_v37  ;;  %v10777_v27 = vadd.f32 %v10776_v63, %v10688_v57 }
 0xcb1   : > { %v12872_v58 = vpack.c.bf16 %v10904_v36, %v10903_v8  ;;  %v10778_v56 = vpop.f32.mrf.mxu3  ;;  %v10605_v33 = vpop.f32.mrf.mxu0  ;;  %v19444_v36 = vld [vmem:[#allocation137_spill] sm:$0xff] }
 0xcb2   : > { %v10779_v17 = vadd.f32 %v10778_v56, %v10690_v10  ;;  %v10606_v18 = vadd.f32 %v10605_v33, %v18411_v45 }
 0xcb3   : > { %12912 = vst [vmem:[%s13650_s10 + $0x48] sm:$0xff] %v12872_v58  }
 0xcb4   : > { %v10855_v62 = vpop.f32.mrf.mxu2 }
 0xcb5   : > { %v10856_v61 = vadd.f32 %v10855_v62, %v10767_v47  ;;  %v10694_v37 = vpop.f32.mrf.mxu1 }
 0xcb7   : > { %v10905_v23 = vadd.f32 %v10856_v61, %v19440_v20 }
 0xcb9   : > { %v10781_v38 = vpop.f32.mrf.mxu3  ;;  %v10608_v9 = vpop.f32.mrf.mxu0 }
 0xcba   : > { %v10782_v40 = vadd.f32 %v10781_v38, %v10693_v15  ;;  %v10609_v63 = vadd.f32 %v10608_v9, %v18415_v25 }
 0xcbc   : > { %v10857_v12 = vpop.f32.mrf.mxu2 }
 0xcbd   : > { %v10858_v44 = vadd.f32 %v10857_v12, %v10769_v39  ;;  %v10697_v47 = vpop.f32.mrf.mxu1  ;;  %v10695_v39 = vadd.f32 %v10694_v37, %v10606_v18 }
 0xcbe   : > { %v10698_v53 = vadd.f32 %v10697_v47, %v10609_v63 }
 0xcbf   : > { %v10906_v51 = vadd.f32 %v10858_v44, %v19441_v34  ;;  %v19446_v34 = vld [vmem:[#allocation140_spill] sm:$0xff] }
 0xcc1   : > { %v12877_v24 = vpack.c.bf16 %v10906_v51, %v10905_v23  ;;  %v10783_v16 = vpop.f32.mrf.mxu3  ;;  %v10610_v23 = vpop.f32.mrf.mxu0 }
 0xcc2   : > { %v10784_v7 = vadd.f32 %v10783_v16, %v10695_v39  ;;  %v10611_v30 = vadd.f32 %v10610_v23, %v18418_v5 }
 0xcc3   : > { %12913 = vst [vmem:[%s13650_s10 + $0x50] sm:$0xff] %v12877_v24  }
 0xcc4   : > { %v10860_v3 = vpop.f32.mrf.mxu2 }
 0xcc5   : > { %v10861_v14 = vadd.f32 %v10860_v3, %v10772_v32  ;;  %v10699_v28 = vpop.f32.mrf.mxu1 }
 0xcc6   : > { %v10700_v2 = vadd.f32 %v10699_v28, %v10611_v30 }
 0xcc7   : > { %v10907_v29 = vadd.f32 %v10861_v14, %v19442_v11  ;;  %v19448_v11 = vld [vmem:[#allocation46_spill] sm:$0xff] }
 0xcc9   : > { %v10786_v61 = vpop.f32.mrf.mxu3  ;;  %v10613_v59 = vpop.f32.mrf.mxu0 }
 0xcca   : > { %v10787_v32 = vadd.f32 %v10786_v61, %v10698_v53  ;;  %v10614_v5 = vadd.f32 %v10613_v59, %v18422_v35 }
 0xccc   : > { %v10862_v6 = vpop.f32.mrf.mxu2 }
 0xccd   : > { %v10863_v52 = vadd.f32 %v10862_v6, %v10774_v13  ;;  %v10702_v14 = vpop.f32.mrf.mxu1 }
 0xcce   : > { %v10703_v26 = vadd.f32 %v10702_v14, %v10614_v5 }
 0xccf   : > { %v10908_v4 = vadd.f32 %v10863_v52, %v19443_v49 }
 0xcd1   : > { %v12882_v22 = vpack.c.bf16 %v10908_v4, %v10907_v29  ;;  %v10788_v45 = vpop.f32.mrf.mxu3  ;;  %v19449_v29 = vld [vmem:[#allocation108_spill] sm:$0xff]  ;;  %v10615_v48 = vpop.f32.mrf.mxu0 }
 0xcd2   : > { %v10789_v55 = vadd.f32 %v10788_v45, %v10700_v2  ;;  %v10616_v54 = vadd.f32 %v10615_v48, %v18425_v1  ;;  %v19451_v1 = vld [vmem:[#allocation31_spill] sm:$0xff] }
 0xcd3   : > { %12914 = vst [vmem:[%s13650_s10 + $0x58] sm:$0xff] %v12882_v22  }
 0xcd4   : > { %v10865_v43 = vpop.f32.mrf.mxu2 }
 0xcd5   : > { %v10866_v50 = vadd.f32 %v10865_v43, %v10777_v27  ;;  %v10704_v43 = vpop.f32.mrf.mxu1 }
 0xcd6   : > { %v10705_v38 = vadd.f32 %v10704_v43, %v10616_v54 }
 0xcd7   : > { %v10909_v58 = vadd.f32 %v10866_v50, %v19444_v36  ;;  %v19452_v50 = vld [vmem:[#allocation63_spill] sm:$0xff] }
 0xcd9   : > { %v10791_v52 = vpop.f32.mrf.mxu3 }
 0xcda   : > { %v10792_v57 = vadd.f32 %v10791_v52, %v10703_v26 }
 0xcdc   : > { %v10867_v60 = vpop.f32.mrf.mxu2 }
 0xcdd   : > { %v10868_v8 = vadd.f32 %v10867_v60, %v10779_v17 }
 0xcdf   : > { %v10910_v42 = vadd.f32 %v10868_v8, %v19445_v0 }
 0xce1   : > { %v12887_v62 = vpack.c.bf16 %v10910_v42, %v10909_v58  ;;  %v10793_v19 = vpop.f32.mrf.mxu3 }
 0xce2   : > { %v10794_v27 = vadd.f32 %v10793_v19, %v10705_v38 }
 0xce3   : > { %12915 = vst [vmem:[%s13650_s10 + $0x60] sm:$0xff] %v12887_v62  }
 0xce4   : > { %v10870_v46 = vpop.f32.mrf.mxu2 }
 0xce5   : > { %v10871_v12 = vadd.f32 %v10870_v46, %v10782_v40 }
 0xce7   : > { %v10911_v51 = vadd.f32 %v10871_v12, %v19446_v34 }
 0xcec   : > { %v10872_v44 = vpop.f32.mrf.mxu2 }
 0xced   : > { %v10873_v20 = vadd.f32 %v10872_v44, %v10784_v7 }
 0xcef   : > { %v10912_v31 = vadd.f32 %v10873_v20, %v19447_v21 }
 0xcf1   : > { %v12892_v24 = vpack.c.bf16 %v10912_v31, %v10911_v51 }
 0xcf3   : > { %12916 = vst [vmem:[%s13650_s10 + $0x68] sm:$0xff] %v12892_v24  }
 0xcf4   : > { %v10875_v3 = vpop.f32.mrf.mxu2 }
 0xcf5   : > { %v10876_v13 = vadd.f32 %v10875_v3, %v10787_v32 }
 0xcf7   : > { %v10913_v25 = vadd.f32 %v10876_v13, %v19448_v11 }
 0xcfc   : > { %v10877_v56 = vpop.f32.mrf.mxu2 }
 0xcfd   : > { %v10878_v6 = vadd.f32 %v10877_v56, %v10789_v55 }
 0xcff   : > { %v10914_v49 = vadd.f32 %v10878_v6, %v19449_v29 }
 0xd01   : > { %v12897_v4 = vpack.c.bf16 %v10914_v49, %v10913_v25 }
 0xd03   : > { %12917 = vst [vmem:[%s13650_s10 + $0x70] sm:$0xff] %v12897_v4  }
 0xd04   : > { %v10880_v22 = vpop.f32.mrf.mxu2 }
 0xd05   : > { %v10881_v10 = vadd.f32 %v10880_v22, %v10792_v57 }
 0xd07   : > { %v10915_v17 = vadd.f32 %v10881_v10, %v19451_v1 }
 0xd0c   : > { %v10882_v35 = vpop.f32.mrf.mxu2 }
 0xd0d   : > { %v10883_v33 = vadd.f32 %v10882_v35, %v10794_v27 }
 0xd0f   : > { %v10916_v60 = vadd.f32 %v10883_v33, %v19452_v50 }
 0xd11   : > { %v12902_v8 = vpack.c.bf16 %v10916_v60, %v10915_v17 }
 0xd13   : > { %12918 = vst [vmem:[%s13650_s10 + $0x78] sm:$0xff] %v12902_v8  }
 0xd14   : > { %13337 = shalt.err (!%p13334_p11)
}
 0xd15   : > { %s13408_s4 = smov 4  }
 0xd16   : > { %12961 = dma.vmem_to_hbm [thread:$0]  (%p13565_p2), %s10995_s0, 2048, %s10997_s29, %s10982_s28, %s13406_s27, %s13406_s27, %s13408_s4  }
 0xd17 PF: > { %s11011_s25 = sand.u32 1, %s13380_s21   ;;  %p19454_p12 = scmp.ge.s32.totalorder %s13392_s24, 2 }
 0xd18   : > { %s11012_s26 = scalar_lea.sflag [#allocation6], %s11011_s25 }
 0xd19   : > { %p12987_p13 = pnand %p19454_p12, %p13571_p6 }
 0xd1b   : > { %p12988_p5 = pneg %p12987_p13 }
 0xd1d   : > { %13375 = dma.done.wait (%p12988_p5), %s11012_s26, 2048  }
 0xd1e   : > { %13377 = vsyncadd (%p12988_p5), %s11012_s26, 4294965248  ;;  %s19455_s24 = sld [smem:[#allocation24_spill]]  ;;  %s19458_s21 = smov %s13384_s22 }
 0xd1f   : > { %s19456_s8 = sld [smem:[#allocation23_spill]] }
 0xd20   : > { %s19457_s23 = sld [smem:[#allocation25_spill]] }
 0xd24   : > { %p30_p7 = scmp.ge.s32.totalorder %s19455_s24, 4  }
 0xd25   : > { %s19459_s22 = smov %s19456_s8 }
 0xd26   :  { %32 = sbr.rel (!%p30_p7) target bundleno = 17 (0x11), region = 152 }
 0xd2b   :  { %11018 = vsyncpa [#allocation5], 1 }
 0xd2c   :  { %11020 = vsyncpa [#allocation5 + $0x1], 1 }
 0xd2d   :  { %11021 = vsyncpa [#allocation8], 1 }
 0xd2e   :  { %11023 = vsyncpa [#allocation8 + $0x1], 1 }
 0xd2f   :  { %11024 = vsyncpa [#allocation11], 1 }
 0xd30   :  { %11025 = vsyncpa [#allocation14], 1 }
 0xd31   :  { %11026 = vsyncpa [#allocation6], 1 }
 0xd32   :  { %11028 = vsyncpa [#allocation6 + $0x1], 1 }

</bundles_post_ra>
